<compile_context>
chip_gen: v7x
topology: tpu7x:2x2x1
jax: 0.10.0
libtpu: 0.0.40
codegen_flags: <defaults>
</compile_context>

<pallas_src>
import functools

import jax
import jax.numpy as jnp
from jax import lax
from jax.experimental import pallas as pl
from jax.experimental.pallas import tpu as pltpu


_WPAD = 8                 # aligned zero band on each side of W (provides the 'same' zero pad)
_MIB = 1024 * 1024


def _vmem_budget_bytes():
    """Return (compiler vmem limit, tile-sizing budget), per TPU generation."""
    cap = 64 * _MIB                      # conservative fallback: v7x per-TensorCore VMEM
    try:
        info = pltpu.get_tpu_info()
        cap = int(getattr(info, "vmem_capacity_bytes", cap))
    except Exception:
        cap = 64 * _MIB
    limit = max(32 * _MIB, min(cap * 3 // 4, 96 * _MIB))     # headroom below physical
    return limit, max(8 * _MIB, int(limit * 0.6))            # extra headroom for tile sizing


def _compiler_params(vmem_limit_bytes):
    return pltpu.CompilerParams(
        dimension_semantics=("parallel", "parallel"),
        vmem_limit_bytes=vmem_limit_bytes,
    )


# ----------------------------------------------------------------------------
# Kernel 1: per-(batch, H-tile) channel sums of x (for the first GroupNorm).
# ----------------------------------------------------------------------------
def _stats_kernel(x_ref, st_ref):
    xf = x_ref[0].astype(jnp.float32)                        # (TH, W, C)
    st_ref[0, 0, 0:1, :] = jnp.sum(xf, axis=(0, 1)).reshape(1, -1)
    st_ref[0, 0, 1:2, :] = jnp.sum(xf * xf, axis=(0, 1)).reshape(1, -1)


def groupnorm_stats(x, tile_h, vmem_limit):
    B, H, W, C = x.shape
    n_t = H // tile_h
    return pl.pallas_call(
        _stats_kernel,
        out_shape=jax.ShapeDtypeStruct((B, n_t, 2, C), jnp.float32),
        grid=(B, n_t),
        in_specs=[pl.BlockSpec((1, tile_h, W, C), lambda b, t: (b, t, 0, 0))],
        out_specs=pl.BlockSpec((1, 1, 2, C), lambda b, t: (b, t, 0, 0)),
        compiler_params=_compiler_params(vmem_limit),
    )(x)


def _scale_shift_from_stats(stats, gamma, beta, groups, hw, eps):
    """Fold GroupNorm statistics + affine into per-(batch, channel) scale / shift.

    stats: (B, n_tiles, 2, C) partial channel sums / sums-of-squares.
    Returns (B, 2, C): [:, 0] = scale, [:, 1] = shift  (y = x * scale + shift).
    Tiny O(B*C) math -> plain-JAX glue.
    """
    s = stats.sum(axis=1)                                    # (B, 2, C)
    s1, s2 = s[:, 0], s[:, 1]
    B, C = s1.shape
    cg = C // groups
    n = float(hw * cg)
    gs1 = s1.reshape(B, groups, cg).sum(-1)                  # (B, groups)
    gs2 = s2.reshape(B, groups, cg).sum(-1)
    mean = gs1 / n
    var = jnp.maximum(gs2 / n - mean * mean, 0.0)            # clamp: no rsqrt(<0) NaNs
    inv = lax.rsqrt(var + eps)
    mean_c = jnp.repeat(mean, cg, axis=1)                    # (B, C)
    inv_c = jnp.repeat(inv, cg, axis=1)
    scale = inv_c * gamma[None, :].astype(jnp.float32)
    shift = beta[None, :].astype(jnp.float32) - mean_c * scale
    return jnp.stack([scale, shift], axis=1)                 # (B, 2, C)


def _make_halos(x, tile_h):
    """One raw row above / below each H tile, merged into a single (B, n_t, 2, W, C) array."""
    B, H, W, C = x.shape
    n_t = H // tile_h
    idx = jnp.arange(n_t)
    top = jnp.take(x, jnp.maximum(idx * tile_h - 1, 0), axis=1)            # (B, n_t, W, C)
    bot = jnp.take(x, jnp.minimum(idx * tile_h + tile_h, H - 1), axis=1)
    return jnp.stack([top, bot], axis=2)                                   # (B, n_t, 2, W, C)


# ----------------------------------------------------------------------------
# Kernel 2: fused GroupNorm(scale/shift) + SiLU + 3x3 'same' conv
#           (+ pre-folded per-batch bias, + optional residual / 1x1 identity conv,
#            + optional output channel sums for the next GroupNorm).
# ----------------------------------------------------------------------------
def _gn_silu_conv3x3_kernel(*refs, has_res, has_id, compute_stats):
    it = iter(refs)
    x_ref = next(it)       # (1, TH, W, Cin)    raw input tile
    halo_ref = next(it)    # (1, 1, 2, W, Cin)  raw rows just above / below the tile
    ss_ref = next(it)      # (1, 2, Cin)        folded GN scale / shift
    w_ref = next(it)       # (3, 3*Cin, Cout)   conv taps, wide-K over dw (bf16)
    b_ref = next(it)       # (1, 1, Cout)       pre-folded bias (conv [+ embed] [+ 1x1 bias])
    res_ref = next(it) if has_res else None     # (1, TH, W, Cres)
    idw_ref = next(it) if has_id else None      # (Cres, Cout) bf16 1x1 identity conv
    o_ref = next(it)                            # (1, TH, W, Cout)
    st_ref = next(it) if compute_stats else None  # (1, 1, 2, Cout)
    pad_ref = next(it)                          # VMEM scratch (TH+2, W+2*_WPAD, Cin) f32

    _, TH, W, cin = x_ref.shape
    cout = o_ref.shape[-1]
    THp = TH + 2
    t = pl.program_id(1)
    n_t = pl.num_programs(1)

    ss = ss_ref[...]
    scale = ss[0, 0].reshape(1, 1, cin)
    shift = ss[0, 1].reshape(1, 1, cin)

    def norm_act(v):                            # folded GroupNorm affine + SiLU (f32 VPU/EUP)
        y = v.astype(jnp.float32) * scale + shift
        return y * jax.nn.sigmoid(y)

    # --- assemble the 'same'-padded, normalized+activated slab in VMEM -----------------
    # zero bands provide the W-boundary zeros; masked halo rows provide the H-boundary ones.
    zband = jnp.zeros((THp, _WPAD, cin), jnp.float32)
    pad_ref[:, pl.ds(0, _WPAD), :] = zband
    pad_ref[:, pl.ds(_WPAD + W, _WPAD), :] = zband

    halo = halo_ref[...]                        # (1, 1, 2, W, Cin)
    top = norm_act(halo[0, 0, 0:1]) * (t > 0).astype(jnp.float32)
    bot = norm_act(halo[0, 0, 1:2]) * (t < n_t - 1).astype(jnp.float32)
    pad_ref[pl.ds(0, 1), pl.ds(_WPAD, W), :] = top
    pad_ref[pl.ds(TH + 1, 1), pl.ds(_WPAD, W), :] = bot
    pad_ref[pl.ds(1, TH), pl.ds(_WPAD, W), :] = norm_act(x_ref[0])

    # --- wide-K im2col over dw: one (THp, W, 3*Cin) bf16 operand, 3 MXU matmuls over dh --
    full = pad_ref[...]                         # (THp, W + 2*_WPAD, Cin) f32
    cat = jnp.concatenate(
        [full[:, _WPAD - 1:_WPAD - 1 + W, :],   # column w-1  (dw = 0)
         full[:, _WPAD:_WPAD + W, :],           # column w    (dw = 1)
         full[:, _WPAD + 1:_WPAD + 1 + W, :]],  # column w+1  (dw = 2)
        axis=-1).astype(jnp.bfloat16)           # (THp, W, 3*Cin)

    acc = jnp.dot(cat[0:TH].reshape(TH * W, 3 * cin), w_ref[0],
                  preferred_element_type=jnp.float32)
    for dh in (1, 2):                           # dh accumulation: only 2 VPU adds remain
        acc = acc + jnp.dot(cat[dh:dh + TH].reshape(TH * W, 3 * cin), w_ref[dh],
                            preferred_element_type=jnp.float32)

    y = acc + b_ref[0]                          # pre-folded bias (conv + embed [+ 1x1 bias])
    if has_res:
        r = res_ref[0].reshape(TH * W, res_ref.shape[-1])
        if has_id:                              # 1x1 identity conv (in_channels != out_channels)
            y = y + jnp.dot(r.astype(jnp.bfloat16), idw_ref[...],
                            preferred_element_type=jnp.float32)
        else:
            y = y + r.astype(jnp.float32)

    if compute_stats:                           # channel sums for the *next* GroupNorm (f32)
        st_ref[0, 0, 0:1, :] = jnp.sum(y, axis=0, keepdims=True)
        st_ref[0, 0, 1:2, :] = jnp.sum(y * y, axis=0, keepdims=True)

    o_ref[0] = y.reshape(TH, W, cout).astype(o_ref.dtype)


def gn_silu_conv3x3(x, ss, w3, bias, *, tile_h, vmem_limit, residual=None,
                    id_w=None, compute_stats=False, out_dtype=None):
    """Fused GroupNorm (folded scale/shift) + SiLU + 3x3 'same' conv (NHWC)."""
    B, H, W, Cin = x.shape
    Cout = w3.shape[-1]
    assert H % tile_h == 0, "tile_h must divide H"
    assert W % 8 == 0 and W >= 8, "W should be a multiple of 8 for clean TPU layouts"
    n_t = H // tile_h
    out_dtype = x.dtype if out_dtype is None else out_dtype

    halos = _make_halos(x, tile_h)                           # (B, n_t, 2, W, Cin)

    in_specs = [
        pl.BlockSpec((1, tile_h, W, Cin), lambda bb, tt: (bb, tt, 0, 0)),       # x tile
        pl.BlockSpec((1, 1, 2, W, Cin), lambda bb, tt: (bb, tt, 0, 0, 0)),      # merged halos
        pl.BlockSpec((1, 2, Cin), lambda bb, tt: (bb, 0, 0)),                   # scale / shift
        pl.BlockSpec((3, 3 * Cin, Cout), lambda bb, tt: (0, 0, 0)),             # wide-K taps
        pl.BlockSpec((1, 1, Cout), lambda bb, tt: (bb, 0, 0)),                  # folded bias
    ]
    args = [x, halos, ss, w3, bias]

    has_res = residual is not None
    has_id = has_res and (id_w is not None)
    if has_res:
        Cres = residual.shape[-1]
        in_specs.append(pl.BlockSpec((1, tile_h, W, Cres),
                                     lambda bb, tt: (bb, tt, 0, 0)))
        args.append(residual)
        if has_id:
            in_specs.append(pl.BlockSpec((Cres, Cout), lambda bb, tt: (0, 0)))
            args.append(id_w.astype(jnp.bfloat16))
        else:
            assert Cres == Cout, "identity skip requires matching channel counts"

    kernel = functools.partial(_gn_silu_conv3x3_kernel, has_res=has_res,
                               has_id=has_id, compute_stats=compute_stats)
    scratch = [pltpu.VMEM((tile_h + 2, W + 2 * _WPAD, Cin), jnp.float32)]
    out_spec_y = pl.BlockSpec((1, tile_h, W, Cout), lambda bb, tt: (bb, tt, 0, 0))

    if compute_stats:
        out_shape = (jax.ShapeDtypeStruct((B, H, W, Cout), out_dtype),
                     jax.ShapeDtypeStruct((B, n_t, 2, Cout), jnp.float32))
        out_specs = (out_spec_y,
                     pl.BlockSpec((1, 1, 2, Cout), lambda bb, tt: (bb, tt, 0, 0)))
        return pl.pallas_call(kernel, out_shape=out_shape, grid=(B, n_t),
                              in_specs=in_specs, out_specs=out_specs,
                              scratch_shapes=scratch,
                              compiler_params=_compiler_params(vmem_limit))(*args)

    return pl.pallas_call(kernel,
                          out_shape=jax.ShapeDtypeStruct((B, H, W, Cout), out_dtype),
                          grid=(B, n_t), in_specs=in_specs, out_specs=out_spec_y,
                          scratch_shapes=scratch,
                          compiler_params=_compiler_params(vmem_limit))(*args)


# ----------------------------------------------------------------------------
# Tile sizing: explicit per-step VMEM footprint vs. per-generation budget.
# ----------------------------------------------------------------------------
def _tile_vmem_bytes(th, W, Cin, Cout):
    thp, wp = th + 2, W + 2 * _WPAD
    dbl = 2 * (                                   # double-buffered pipeline blocks
        th * W * Cin * 4                          # x tile (f32 worst case)
        + 2 * W * Cin * 4                         # merged halo rows
        + th * W * Cin * 4                        # residual tile
        + th * W * Cout * 4                       # output tile
        + 9 * Cin * Cout * 2                      # conv taps (bf16)
        + Cin * Cout * 2                          # 1x1 identity taps (bf16)
        + (2 * Cin + 3 * Cout) * 4                # scale/shift, bias, stats
    )
    scratch = thp * wp * Cin * 4                  # f32 padded slab
    temps = (thp * W * 3 * Cin * (4 + 2)          # im2col concat (f32) + bf16 copy
             + 2 * th * W * Cout * 4              # f32 accumulator + epilogue temp
             + th * W * Cin * 4)                  # f32 norm/act temp
    return dbl + scratch + temps


def _select_tile_h(B, H, W, Cin, Cout, budget_bytes):
    best = 1
    for d in range(1, H + 1):
        if H % d:
            continue
        if B == 1 and H >= 2 and d > H // 2:
            continue                              # keep >= 2 'parallel' points for 2-TC chips
        if _tile_vmem_bytes(d, W, Cin, Cout) <= budget_bytes:
            best = d
    return best


# ----------------------------------------------------------------------------
# Module forward (glue in plain JAX, hot paths in the kernels above).
# ----------------------------------------------------------------------------
def residual_block2d(x, p, *, groups=32, eps=1e-6, time_embed=None,
                     class_conditioning=None, tile_h=None):
    """ResidualBlock2D forward on an NHWC tensor."""
    B, H, W, Cin = x.shape
    Cout = p["w1"].shape[-1]
    vmem_limit, tile_budget = _vmem_budget_bytes()
    if tile_h is None:
        tile_h = _select_tile_h(B, H, W, max(Cin, Cout), Cout, tile_budget)

    # GroupNorm1 statistics (on the raw input), folded with the affine.
    st1 = groupnorm_stats(x, tile_h, vmem_limit)
    ss1 = _scale_shift_from_stats(st1, p["g1"], p["b1"], groups, H * W, eps)

    # conv1 bias pre-folded with the optional time / class embedding projections (per batch).
    bias1 = jnp.broadcast_to(p["c1b"].astype(jnp.float32)[None, :], (B, Cout))
    if time_embed is not None:
        bias1 = bias1 + time_embed.astype(jnp.float32) @ p["te_w"] + p["te_b"]
    if class_conditioning is not None:
        bias1 = bias1 + class_conditioning.astype(jnp.float32) @ p["ce_w"] + p["ce_b"]
    bias1 = bias1.reshape(B, 1, Cout)

    # conv2 bias pre-folded with the 1x1 identity-conv bias (if present).
    bias2 = p["c2b"].astype(jnp.float32)
    if "idb" in p:
        bias2 = bias2 + p["idb"].astype(jnp.float32)
    bias2 = jnp.broadcast_to(bias2[None, :], (B, Cout)).reshape(B, 1, Cout)

    # wide-K weight layout: (dh, dw*Cin, Cout), bf16 for the MXU.
    w1 = p["w1"].reshape(3, 3 * Cin, Cout).astype(jnp.bfloat16)
    w2 = p["w2"].reshape(3, 3 * Cout, Cout).astype(jnp.bfloat16)

    # norm1 + SiLU + conv1 (+ embed bias); also emits channel sums for norm2.
    # The intermediate h is stored in bf16 to halve HBM writeback + re-read.
    h, st2 = gn_silu_conv3x3(x, ss1, w1, bias1, tile_h=tile_h, vmem_limit=vmem_limit,
                             compute_stats=True, out_dtype=jnp.bfloat16)
    ss2 = _scale_shift_from_stats(st2, p["g2"], p["b2"], groups, H * W, eps)

    # TODO(synk): nn.Dropout is the identity for dropout_p == 0.0 (and in eval mode);
    # training-mode dropout with p > 0 is not implemented here.

    # norm2 + SiLU + conv2, with the residual (identity or fused 1x1 conv) in the epilogue.
    out = gn_silu_conv3x3(h, ss2, w2, bias2, tile_h=tile_h, vmem_limit=vmem_limit,
                          residual=x, id_w=p.get("idw"), compute_stats=False,
                          out_dtype=x.dtype)
    return out


def residual_block2d_nchw(x_nchw, p, *, groups=32, eps=1e-6, time_embed=None,
                          class_conditioning=None, tile_h=None):
    """Matches the PyTorch module's NCHW convention (transpose is boundary glue only)."""
    x = jnp.transpose(x_nchw, (0, 2, 3, 1))
    y = residual_block2d(x, p, groups=groups, eps=eps, time_embed=time_embed,
                         class_conditioning=class_conditioning, tile_h=tile_h)
    return jnp.transpose(y, (0, 3, 1, 2))


# ----------------------------------------------------------------------------
# Deterministic synthetic parameter init (shapes per the PyTorch __init__).
# Conv weights stored HWIO (kh, kw, Cin, Cout); linear weights as (in, out).
# ----------------------------------------------------------------------------
def init_params(key, in_channels, out_channels, *, time_embed_dim=None,
                class_embed_dim=None, scale=0.05):
    ks = jax.random.split(key, 14)
    p = dict(
        g1=1.0 + 0.1 * jax.random.normal(ks[0], (in_channels,), jnp.float32),
        b1=0.1 * jax.random.normal(ks[1], (in_channels,), jnp.float32),
        w1=scale * jax.random.normal(ks[2], (3, 3, in_channels, out_channels), jnp.float32),
        c1b=scale * jax.random.normal(ks[3], (out_channels,), jnp.float32),
        g2=1.0 + 0.1 * jax.random.normal(ks[4], (out_channels,), jnp.float32),
        b2=0.1 * jax.random.normal(ks[5], (out_channels,), jnp.float32),
        w2=scale * jax.random.normal(ks[6], (3, 3, out_channels, out_channels), jnp.float32),
        c2b=scale * jax.random.normal(ks[7], (out_channels,), jnp.float32),
    )
    if in_channels != out_channels:
        p["idw"] = scale * jax.random.normal(ks[8], (in_channels, out_channels), jnp.float32)
        p["idb"] = scale * jax.random.normal(ks[9], (out_channels,), jnp.float32)
    if time_embed_dim is not None:
        p["te_w"] = scale * jax.random.normal(ks[10], (time_embed_dim, out_channels), jnp.float32)
        p["te_b"] = scale * jax.random.normal(ks[11], (out_channels,), jnp.float32)
    if class_embed_dim is not None:
        p["ce_w"] = scale * jax.random.normal(ks[12], (class_embed_dim, out_channels), jnp.float32)
        p["ce_b"] = scale * jax.random.normal(ks[13], (out_channels,), jnp.float32)
    return p


# ----------------------------------------------------------------------------
# Pure-JAX f32 reference of the PyTorch forward semantics (for self-check).
# ----------------------------------------------------------------------------
def _ref_groupnorm(x, gamma, beta, groups, eps):
    B, H, W, C = x.shape
    cg = C // groups
    xg = x.reshape(B, H, W, groups, cg)
    mean = xg.mean(axis=(1, 2, 4), keepdims=True)
    var = ((xg - mean) ** 2).mean(axis=(1, 2, 4), keepdims=True)
    xn = ((xg - mean) / jnp.sqrt(var + eps)).reshape(B, H, W, C)
    return xn * gamma + beta


def _ref_conv3x3(x, w, b):
    y = lax.conv_general_dilated(x, w, (1, 1), "SAME",
                                 dimension_numbers=("NHWC", "HWIO", "NHWC"))
    return y + b


def ref_residual_block2d(x, p, *, groups=32, eps=1e-6, time_embed=None,
                         class_conditioning=None):
    r = x
    h = jax.nn.silu(_ref_groupnorm(x, p["g1"], p["b1"], groups, eps))
    h = _ref_conv3x3(h, p["w1"], p["c1b"])
    if time_embed is not None:
        h = h + (time_embed @ p["te_w"] + p["te_b"])[:, None, None, :]
    if class_conditioning is not None:
        h = h + (class_conditioning @ p["ce_w"] + p["ce_b"])[:, None, None, :]
    h = jax.nn.silu(_ref_groupnorm(h, p["g2"], p["b2"], groups, eps))
    h = _ref_conv3x3(h, p["w2"], p["c2b"])
    if "idw" in p:
        r = jnp.einsum("bhwc,cd->bhwd", r, p["idw"]) + p["idb"]
    return h + r


def ref_residual_block2d_nchw(x_nchw, p, **kw):
    x = jnp.transpose(x_nchw, (0, 2, 3, 1))
    return jnp.transpose(ref_residual_block2d(x, p, **kw), (0, 3, 1, 2))


if __name__ == "__main__":
    groups, eps = 32, 1e-6
    key = jax.random.PRNGKey(0)
    k1, k2, k3, k4, k5 = jax.random.split(key, 5)

    # Case A: in_channels == out_channels (identity skip), no embeddings.
    B, C, H, W = 2, 64, 16, 16
    xA = jax.random.normal(k1, (B, C, H, W), jnp.float32)
    pA = init_params(k2, C, C)
    fwdA = jax.jit(functools.partial(residual_block2d_nchw, groups=groups, eps=eps))
    outA = jax.block_until_ready(fwdA(xA, pA))
    refA = ref_residual_block2d_nchw(xA, pA, groups=groups, eps=eps)

    # Case B: in != out channels (1x1 identity conv) + time-embedding injection.
    Cin, Cout, Tdim = 64, 128, 32
    xB = jax.random.normal(k3, (B, Cin, H, W), jnp.float32)
    pB = init_params(k4, Cin, Cout, time_embed_dim=Tdim)
    te = jax.random.normal(k5, (B, Tdim), jnp.float32)
    fwdB = jax.jit(functools.partial(residual_block2d_nchw, groups=groups, eps=eps))
    outB = jax.block_until_ready(fwdB(xB, pB, time_embed=te))
    refB = ref_residual_block2d_nchw(xB, pB, groups=groups, eps=eps, time_embed=te)

    assert outA.shape == (B, C, H, W) and outA.dtype == jnp.float32
    assert outB.shape == (B, Cout, H, W) and outB.dtype == jnp.float32
    errA = float(jnp.max(jnp.abs(outA - refA)))
    errB = float(jnp.max(jnp.abs(outB - refB)))
    # tolerance accounts for bf16 MXU inputs + bf16 intermediate h (f32 accumulation)
    if not (errA < 5e-2 and errB < 5e-2):
        raise AssertionError(f"Pallas/reference mismatch: errA={errA}, errB={errB}")
    print("KERNEL_OK")
</pallas_src>

<mosaic_0001>
module attributes {stable_mosaic.version = 11 : i64} {
  func.func @_stats_kernel(%arg0: i32, %arg1: i32, %arg2: memref<1x16x16x64xf32, #tpu.memory_space<vmem>>, %arg3: memref<1x1x2x64xf32, #tpu.memory_space<vmem>>) attributes {dimension_semantics = [#tpu.dimension_semantics<parallel>, #tpu.dimension_semantics<parallel>], iteration_bounds = array<i64: 2, 1>, scalar_prefetch = 0 : i64, scratch_operands = 0 : i64, tpu.core_type = #tpu.core_type<tc>, window_params = [{transform_indices = @transform_0, window_bounds = array<i64: 1, 16, 16, 64>}, {transform_indices = @transform_1, window_bounds = array<i64: 1, 1, 2, 64>}]} {
    %c0 = arith.constant 0 : index
    %c0_0 = arith.constant 0 : index
    %c0_1 = arith.constant 0 : index
    %c0_2 = arith.constant 0 : index
    %0 = vector.load %arg2[%c0, %c0_0, %c0_1, %c0_2] : memref<1x16x16x64xf32, #tpu.memory_space<vmem>>, vector<1x16x16x64xf32>
    %1 = vector.shape_cast %0 : vector<1x16x16x64xf32> to vector<16x16x64xf32>
    %cst = arith.constant dense<0.000000e+00> : vector<64xf32>
    %2 = vector.multi_reduction <add>, %1, %cst [0, 1] : vector<16x16x64xf32> to vector<64xf32>
    %3 = vector.shape_cast %2 : vector<64xf32> to vector<1x64xf32>
    %c0_3 = arith.constant 0 : index
    %c0_4 = arith.constant 0 : index
    %c0_5 = arith.constant 0 : index
    %c0_6 = arith.constant 0 : index
    %4 = vector.load %arg3[%c0_3, %c0_4, %c0_5, %c0_6] : memref<1x1x2x64xf32, #tpu.memory_space<vmem>>, vector<1x1x1x64xf32>
    %5 = vector.shape_cast %4 : vector<1x1x1x64xf32> to vector<1x64xf32>
    %6 = vector.shape_cast %3 : vector<1x64xf32> to vector<1x1x1x64xf32>
    tpu.vector_store %arg3[%c0_3, %c0_4, %c0_5, %c0_6], %6 {strides = array<i32>} : memref<1x1x2x64xf32, #tpu.memory_space<vmem>>, vector<1x1x1x64xf32>,
    %7 = arith.mulf %1, %1 : vector<16x16x64xf32>
    %cst_7 = arith.constant dense<0.000000e+00> : vector<64xf32>
    %8 = vector.multi_reduction <add>, %7, %cst_7 [0, 1] : vector<16x16x64xf32> to vector<64xf32>
    %9 = vector.shape_cast %8 : vector<64xf32> to vector<1x64xf32>
    %c0_8 = arith.constant 0 : index
    %c0_9 = arith.constant 0 : index
    %c1 = arith.constant 1 : index
    %c0_10 = arith.constant 0 : index
    %10 = vector.load %arg3[%c0_8, %c0_9, %c1, %c0_10] : memref<1x1x2x64xf32, #tpu.memory_space<vmem>>, vector<1x1x1x64xf32>
    %11 = vector.shape_cast %10 : vector<1x1x1x64xf32> to vector<1x64xf32>
    %12 = vector.shape_cast %9 : vector<1x64xf32> to vector<1x1x1x64xf32>
    tpu.vector_store %arg3[%c0_8, %c0_9, %c1, %c0_10], %12 {strides = array<i32>} : memref<1x1x2x64xf32, #tpu.memory_space<vmem>>, vector<1x1x1x64xf32>,
    return
  }
  func.func @transform_0(%arg0: i32, %arg1: i32) -> (i32, i32, i32, i32) {
    %c0_i32 = arith.constant 0 : i32
    %c0_i32_0 = arith.constant 0 : i32
    %c0_i32_1 = arith.constant 0 : i32
    return %arg0, %arg1, %c0_i32, %c0_i32_0 : i32, i32, i32, i32
  }
  func.func @transform_1(%arg0: i32, %arg1: i32) -> (i32, i32, i32, i32) {
    %c0_i32 = arith.constant 0 : i32
    %c0_i32_0 = arith.constant 0 : i32
    %c0_i32_1 = arith.constant 0 : i32
    return %arg0, %arg1, %c0_i32, %c0_i32_0 : i32, i32, i32, i32
  }
}

module attributes {stable_mosaic.version = 11 : i64} {
  func.func @_gn_silu_conv3x3_kernel(%arg0: i32, %arg1: i32, %arg2: memref<1x16x16x64xbf16, #tpu.memory_space<vmem>>, %arg3: memref<1x1x2x16x64xbf16, #tpu.memory_space<vmem>>, %arg4: memref<1x2x64xf32, #tpu.memory_space<vmem>>, %arg5: memref<3x192x64xbf16, #tpu.memory_space<vmem>>, %arg6: memref<1x1x64xf32, #tpu.memory_space<vmem>>, %arg7: memref<1x16x16x64xf32, #tpu.memory_space<vmem>>, %arg8: memref<1x16x16x64xf32, #tpu.memory_space<vmem>>, %arg9: memref<18x32x64xf32, #tpu.memory_space<vmem>>) attributes {dimension_semantics = [#tpu.dimension_semantics<parallel>, #tpu.dimension_semantics<parallel>], iteration_bounds = array<i64: 2, 1>, scalar_prefetch = 0 : i64, scratch_operands = 1 : i64, tpu.core_type = #tpu.core_type<tc>, window_params = [{transform_indices = @transform_0, window_bounds = array<i64: 1, 16, 16, 64>}, {transform_indices = @transform_1, window_bounds = array<i64: 1, 1, 2, 16, 64>}, {transform_indices = @transform_2, window_bounds = array<i64: 1, 2, 64>}, {pipeline_mode = #tpu.pipeline_mode<synchronous>, transform_indices = @transform_3, window_bounds = array<i64: 3, 192, 64>}, {transform_indices = @transform_4, window_bounds = array<i64: 1, 1, 64>}, {transform_indices = @transform_5, window_bounds = array<i64: 1, 16, 16, 64>}, {transform_indices = @transform_6, window_bounds = array<i64: 1, 16, 16, 64>}]} {
    %c0 = arith.constant 0 : index
    %c0_0 = arith.constant 0 : index
    %c0_1 = arith.constant 0 : index
    %0 = vector.load %arg4[%c0, %c0_0, %c0_1] : memref<1x2x64xf32, #tpu.memory_space<vmem>>, vector<1x2x64xf32>
    %1 = vector.extract_strided_slice %0 {offsets = [0, 0, 0], sizes = [1, 1, 64], strides = [1, 1, 1]} : vector<1x2x64xf32> to vector<1x1x64xf32>
    %2 = vector.shape_cast %1 : vector<1x1x64xf32> to vector<64xf32>
    %3 = vector.shape_cast %2 : vector<64xf32> to vector<1x1x64xf32>
    %4 = vector.extract_strided_slice %0 {offsets = [0, 1, 0], sizes = [1, 1, 64], strides = [1, 1, 1]} : vector<1x2x64xf32> to vector<1x1x64xf32>
    %5 = vector.shape_cast %4 : vector<1x1x64xf32> to vector<64xf32>
    %6 = vector.shape_cast %5 : vector<64xf32> to vector<1x1x64xf32>
    %cst = arith.constant 0.000000e+00 : f32
    %7 = vector.broadcast %cst : f32 to vector<18x8x64xf32>
    %c0_2 = arith.constant 0 : index
    %c0_3 = arith.constant 0 : index
    %c0_4 = arith.constant 0 : index
    %8 = vector.load %arg9[%c0_2, %c0_3, %c0_4] : memref<18x32x64xf32, #tpu.memory_space<vmem>>, vector<18x8x64xf32>
    tpu.vector_store %arg9[%c0_2, %c0_3, %c0_4], %7 {strides = array<i32>} : memref<18x32x64xf32, #tpu.memory_space<vmem>>, vector<18x8x64xf32>,
    %c0_5 = arith.constant 0 : index
    %c24 = arith.constant 24 : index
    %c0_6 = arith.constant 0 : index
    %9 = vector.load %arg9[%c0_5, %c24, %c0_6] : memref<18x32x64xf32, #tpu.memory_space<vmem>>, vector<18x8x64xf32>
    tpu.vector_store %arg9[%c0_5, %c24, %c0_6], %7 {strides = array<i32>} : memref<18x32x64xf32, #tpu.memory_space<vmem>>, vector<18x8x64xf32>,
    %c0_7 = arith.constant 0 : index
    %c0_8 = arith.constant 0 : index
    %c0_9 = arith.constant 0 : index
    %c0_10 = arith.constant 0 : index
    %c0_11 = arith.constant 0 : index
    %10 = vector.load %arg3[%c0_7, %c0_8, %c0_9, %c0_10, %c0_11] : memref<1x1x2x16x64xbf16, #tpu.memory_space<vmem>>, vector<1x1x2x16x64xbf16>
    %11 = vector.extract_strided_slice %10 {offsets = [0, 0, 0, 0, 0], sizes = [1, 1, 1, 16, 64], strides = [1, 1, 1, 1, 1]} : vector<1x1x2x16x64xbf16> to vector<1x1x1x16x64xbf16>
    %12 = vector.shape_cast %11 : vector<1x1x1x16x64xbf16> to vector<1x16x64xbf16>
    %13 = arith.extf %12 : vector<1x16x64xbf16> to vector<1x16x64xf32>
    %14 = vector.broadcast %3 : vector<1x1x64xf32> to vector<1x16x64xf32>
    %15 = arith.mulf %13, %14 : vector<1x16x64xf32>
    %16 = vector.broadcast %6 : vector<1x1x64xf32> to vector<1x16x64xf32>
    %17 = arith.addf %15, %16 : vector<1x16x64xf32>
    %18 = arith.negf %17 : vector<1x16x64xf32>
    %19 = math.exp %18 : vector<1x16x64xf32>
    %cst_12 = arith.constant 1.000000e+00 : f32
    %20 = vector.broadcast %cst_12 : f32 to vector<1x16x64xf32>
    %21 = arith.addf %20, %19 : vector<1x16x64xf32>
    %22 = arith.divf %20, %21 : vector<1x16x64xf32>
    %23 = arith.mulf %17, %22 : vector<1x16x64xf32>
    %c0_i32 = arith.constant 0 : i32
    %24 = arith.cmpi sgt, %arg1, %c0_i32 : i32
    %25 = arith.extui %24 : i1 to i32
    %26 = arith.sitofp %25 : i32 to f32
    %27 = vector.broadcast %26 : f32 to vector<1x16x64xf32>
    %28 = arith.mulf %23, %27 : vector<1x16x64xf32>
    %29 = vector.extract_strided_slice %10 {offsets = [0, 0, 1, 0, 0], sizes = [1, 1, 1, 16, 64], strides = [1, 1, 1, 1, 1]} : vector<1x1x2x16x64xbf16> to vector<1x1x1x16x64xbf16>
    %30 = vector.shape_cast %29 : vector<1x1x1x16x64xbf16> to vector<1x16x64xbf16>
    %31 = arith.extf %30 : vector<1x16x64xbf16> to vector<1x16x64xf32>
    %32 = vector.broadcast %3 : vector<1x1x64xf32> to vector<1x16x64xf32>
    %33 = arith.mulf %31, %32 : vector<1x16x64xf32>
    %34 = vector.broadcast %6 : vector<1x1x64xf32> to vector<1x16x64xf32>
    %35 = arith.addf %33, %34 : vector<1x16x64xf32>
    %36 = arith.negf %35 : vector<1x16x64xf32>
    %37 = math.exp %36 : vector<1x16x64xf32>
    %cst_13 = arith.constant 1.000000e+00 : f32
    %38 = vector.broadcast %cst_13 : f32 to vector<1x16x64xf32>
    %39 = arith.addf %38, %37 : vector<1x16x64xf32>
    %40 = arith.divf %38, %39 : vector<1x16x64xf32>
    %41 = arith.mulf %35, %40 : vector<1x16x64xf32>
    %c0_i32_14 = arith.constant 0 : i32
    %42 = arith.cmpi slt, %arg1, %c0_i32_14 : i32
    %43 = arith.extui %42 : i1 to i32
    %44 = arith.sitofp %43 : i32 to f32
    %45 = vector.broadcast %44 : f32 to vector<1x16x64xf32>
    %46 = arith.mulf %41, %45 : vector<1x16x64xf32>
    %c0_15 = arith.constant 0 : index
    %c8 = arith.constant 8 : index
    %c0_16 = arith.constant 0 : index
    %47 = vector.load %arg9[%c0_15, %c8, %c0_16] : memref<18x32x64xf32, #tpu.memory_space<vmem>>, vector<1x16x64xf32>
    tpu.vector_store %arg9[%c0_15, %c8, %c0_16], %28 {strides = array<i32>} : memref<18x32x64xf32, #tpu.memory_space<vmem>>, vector<1x16x64xf32>,
    %c17 = arith.constant 17 : index
    %c8_17 = arith.constant 8 : index
    %c0_18 = arith.constant 0 : index
    %48 = vector.load %arg9[%c17, %c8_17, %c0_18] : memref<18x32x64xf32, #tpu.memory_space<vmem>>, vector<1x16x64xf32>
    tpu.vector_store %arg9[%c17, %c8_17, %c0_18], %46 {strides = array<i32>} : memref<18x32x64xf32, #tpu.memory_space<vmem>>, vector<1x16x64xf32>,
    %c0_19 = arith.constant 0 : index
    %c0_20 = arith.constant 0 : index
    %c0_21 = arith.constant 0 : index
    %c0_22 = arith.constant 0 : index
    %49 = vector.load %arg2[%c0_19, %c0_20, %c0_21, %c0_22] : memref<1x16x16x64xbf16, #tpu.memory_space<vmem>>, vector<1x16x16x64xbf16>
    %50 = vector.shape_cast %49 : vector<1x16x16x64xbf16> to vector<16x16x64xbf16>
    %51 = arith.extf %50 : vector<16x16x64xbf16> to vector<16x16x64xf32>
    %52 = vector.broadcast %3 : vector<1x1x64xf32> to vector<16x16x64xf32>
    %53 = arith.mulf %51, %52 : vector<16x16x64xf32>
    %54 = vector.broadcast %6 : vector<1x1x64xf32> to vector<16x16x64xf32>
    %55 = arith.addf %53, %54 : vector<16x16x64xf32>
    %56 = arith.negf %55 : vector<16x16x64xf32>
    %57 = math.exp %56 : vector<16x16x64xf32>
    %cst_23 = arith.constant 1.000000e+00 : f32
    %58 = vector.broadcast %cst_23 : f32 to vector<16x16x64xf32>
    %59 = arith.addf %58, %57 : vector<16x16x64xf32>
    %60 = arith.divf %58, %59 : vector<16x16x64xf32>
    %61 = arith.mulf %55, %60 : vector<16x16x64xf32>
    %c1 = arith.constant 1 : index
    %c8_24 = arith.constant 8 : index
    %c0_25 = arith.constant 0 : index
    %62 = vector.load %arg9[%c1, %c8_24, %c0_25] : memref<18x32x64xf32, #tpu.memory_space<vmem>>, vector<16x16x64xf32>
    tpu.vector_store %arg9[%c1, %c8_24, %c0_25], %61 {strides = array<i32>} : memref<18x32x64xf32, #tpu.memory_space<vmem>>, vector<16x16x64xf32>,
    %c0_26 = arith.constant 0 : index
    %c0_27 = arith.constant 0 : index
    %c0_28 = arith.constant 0 : index
    %63 = vector.load %arg9[%c0_26, %c0_27, %c0_28] : memref<18x32x64xf32, #tpu.memory_space<vmem>>, vector<18x32x64xf32>
    %64 = vector.extract_strided_slice %63 {offsets = [0, 7, 0], sizes = [18, 16, 64], strides = [1, 1, 1]} : vector<18x32x64xf32> to vector<18x16x64xf32>
    %65 = vector.extract_strided_slice %63 {offsets = [0, 8, 0], sizes = [18, 16, 64], strides = [1, 1, 1]} : vector<18x32x64xf32> to vector<18x16x64xf32>
    %66 = vector.extract_strided_slice %63 {offsets = [0, 9, 0], sizes = [18, 16, 64], strides = [1, 1, 1]} : vector<18x32x64xf32> to vector<18x16x64xf32>
    %67 = tpu.concatenate %64, %65, %66 in 2 : vector<18x16x64xf32>, vector<18x16x64xf32>, vector<18x16x64xf32> -> vector<18x16x192xf32>
    %68 = arith.truncf %67 : vector<18x16x192xf32> to vector<18x16x192xbf16>
    %69 = vector.extract_strided_slice %68 {offsets = [0, 0, 0], sizes = [16, 16, 192], strides = [1, 1, 1]} : vector<18x16x192xbf16> to vector<16x16x192xbf16>
    %70 = vector.shape_cast %69 : vector<16x16x192xbf16> to vector<256x192xbf16>
    %c0_29 = arith.constant 0 : index
    %c0_30 = arith.constant 0 : index
    %c0_31 = arith.constant 0 : index
    %71 = vector.load %arg5[%c0_29, %c0_30, %c0_31] : memref<3x192x64xbf16, #tpu.memory_space<vmem>>, vector<1x192x64xbf16>
    %72 = vector.shape_cast %71 : vector<1x192x64xbf16> to vector<192x64xbf16>
    %cst_32 = arith.constant dense<0.000000e+00> : vector<256x64xf32>
    %73 = tpu.matmul %70, %72, %cst_32 {dimension_numbers = #tpu.dot_dimension_numbers<[1], [0], [0], [1], [0, 0, 1, 1], [], []>} : vector<256x192xbf16>, vector<192x64xbf16>, vector<256x64xf32> -> vector<256x64xf32>
    %74 = vector.extract_strided_slice %68 {offsets = [1, 0, 0], sizes = [16, 16, 192], strides = [1, 1, 1]} : vector<18x16x192xbf16> to vector<16x16x192xbf16>
    %75 = vector.shape_cast %74 : vector<16x16x192xbf16> to vector<256x192xbf16>
    %c1_33 = arith.constant 1 : index
    %c0_34 = arith.constant 0 : index
    %c0_35 = arith.constant 0 : index
    %76 = vector.load %arg5[%c1_33, %c0_34, %c0_35] : memref<3x192x64xbf16, #tpu.memory_space<vmem>>, vector<1x192x64xbf16>
    %77 = vector.shape_cast %76 : vector<1x192x64xbf16> to vector<192x64xbf16>
    %cst_36 = arith.constant dense<0.000000e+00> : vector<256x64xf32>
    %78 = tpu.matmul %75, %77, %cst_36 {dimension_numbers = #tpu.dot_dimension_numbers<[1], [0], [0], [1], [0, 0, 1, 1], [], []>} : vector<256x192xbf16>, vector<192x64xbf16>, vector<256x64xf32> -> vector<256x64xf32>
    %79 = arith.addf %73, %78 : vector<256x64xf32>
    %80 = vector.extract_strided_slice %68 {offsets = [2, 0, 0], sizes = [16, 16, 192], strides = [1, 1, 1]} : vector<18x16x192xbf16> to vector<16x16x192xbf16>
    %81 = vector.shape_cast %80 : vector<16x16x192xbf16> to vector<256x192xbf16>
    %c2 = arith.constant 2 : index
    %c0_37 = arith.constant 0 : index
    %c0_38 = arith.constant 0 : index
    %82 = vector.load %arg5[%c2, %c0_37, %c0_38] : memref<3x192x64xbf16, #tpu.memory_space<vmem>>, vector<1x192x64xbf16>
    %83 = vector.shape_cast %82 : vector<1x192x64xbf16> to vector<192x64xbf16>
    %cst_39 = arith.constant dense<0.000000e+00> : vector<256x64xf32>
    %84 = tpu.matmul %81, %83, %cst_39 {dimension_numbers = #tpu.dot_dimension_numbers<[1], [0], [0], [1], [0, 0, 1, 1], [], []>} : vector<256x192xbf16>, vector<192x64xbf16>, vector<256x64xf32> -> vector<256x64xf32>
    %85 = arith.addf %79, %84 : vector<256x64xf32>
    %c0_40 = arith.constant 0 : index
    %c0_41 = arith.constant 0 : index
    %c0_42 = arith.constant 0 : index
    %86 = vector.load %arg6[%c0_40, %c0_41, %c0_42] : memref<1x1x64xf32, #tpu.memory_space<vmem>>, vector<1x1x64xf32>
    %87 = vector.shape_cast %86 : vector<1x1x64xf32> to vector<1x64xf32>
    %88 = vector.broadcast %87 : vector<1x64xf32> to vector<256x64xf32>
    %89 = arith.addf %85, %88 : vector<256x64xf32>
    %c0_43 = arith.constant 0 : index
    %c0_44 = arith.constant 0 : index
    %c0_45 = arith.constant 0 : index
    %c0_46 = arith.constant 0 : index
    %90 = vector.load %arg7[%c0_43, %c0_44, %c0_45, %c0_46] : memref<1x16x16x64xf32, #tpu.memory_space<vmem>>, vector<1x16x16x64xf32>
    %91 = vector.shape_cast %90 : vector<1x16x16x64xf32> to vector<16x16x64xf32>
    %92 = vector.shape_cast %91 : vector<16x16x64xf32> to vector<256x64xf32>
    %93 = arith.addf %89, %92 : vector<256x64xf32>
    %94 = vector.shape_cast %93 : vector<256x64xf32> to vector<16x16x64xf32>
    %c0_47 = arith.constant 0 : index
    %c0_48 = arith.constant 0 : index
    %c0_49 = arith.constant 0 : index
    %c0_50 = arith.constant 0 : index
    %95 = vector.load %arg8[%c0_47, %c0_48, %c0_49, %c0_50] : memref<1x16x16x64xf32, #tpu.memory_space<vmem>>, vector<1x16x16x64xf32>
    %96 = vector.shape_cast %95 : vector<1x16x16x64xf32> to vector<16x16x64xf32>
    %97 = vector.shape_cast %94 : vector<16x16x64xf32> to vector<1x16x16x64xf32>
    tpu.vector_store %arg8[%c0_47, %c0_48, %c0_49, %c0_50], %97 {strides = array<i32>} : memref<1x16x16x64xf32, #tpu.memory_space<vmem>>, vector<1x16x16x64xf32>,
    return
  }
  func.func @transform_0(%arg0: i32, %arg1: i32) -> (i32, i32, i32, i32) {
    %c0_i32 = arith.constant 0 : i32
    %c0_i32_0 = arith.constant 0 : i32
    %c0_i32_1 = arith.constant 0 : i32
    return %arg0, %arg1, %c0_i32, %c0_i32_0 : i32, i32, i32, i32
  }
  func.func @transform_1(%arg0: i32, %arg1: i32) -> (i32, i32, i32, i32, i32) {
    %c0_i32 = arith.constant 0 : i32
    %c0_i32_0 = arith.constant 0 : i32
    %c0_i32_1 = arith.constant 0 : i32
    %c0_i32_2 = arith.constant 0 : i32
    return %arg0, %arg1, %c0_i32, %c0_i32_0, %c0_i32_1 : i32, i32, i32, i32, i32
  }
  func.func @transform_2(%arg0: i32, %arg1: i32) -> (i32, i32, i32) {
    %c0_i32 = arith.constant 0 : i32
    %c0_i32_0 = arith.constant 0 : i32
    %c0_i32_1 = arith.constant 0 : i32
    return %arg0, %c0_i32, %c0_i32_0 : i32, i32, i32
  }
  func.func @transform_3(%arg0: i32, %arg1: i32) -> (i32, i32, i32) {
    %c0_i32 = arith.constant 0 : i32
    %c0_i32_0 = arith.constant 0 : i32
    %c0_i32_1 = arith.constant 0 : i32
    %c0_i32_2 = arith.constant 0 : i32
    return %c0_i32, %c0_i32_0, %c0_i32_1 : i32, i32, i32
  }
  func.func @transform_4(%arg0: i32, %arg1: i32) -> (i32, i32, i32) {
    %c0_i32 = arith.constant 0 : i32
    %c0_i32_0 = arith.constant 0 : i32
    %c0_i32_1 = arith.constant 0 : i32
    return %arg0, %c0_i32, %c0_i32_0 : i32, i32, i32
  }
  func.func @transform_5(%arg0: i32, %arg1: i32) -> (i32, i32, i32, i32) {
    %c0_i32 = arith.constant 0 : i32
    %c0_i32_0 = arith.constant 0 : i32
    %c0_i32_1 = arith.constant 0 : i32
    return %arg0, %arg1, %c0_i32, %c0_i32_0 : i32, i32, i32, i32
  }
  func.func @transform_6(%arg0: i32, %arg1: i32) -> (i32, i32, i32, i32) {
    %c0_i32 = arith.constant 0 : i32
    %c0_i32_0 = arith.constant 0 : i32
    %c0_i32_1 = arith.constant 0 : i32
    return %arg0, %arg1, %c0_i32, %c0_i32_0 : i32, i32, i32, i32
  }
}

module attributes {stable_mosaic.version = 11 : i64} {
  func.func @_gn_silu_conv3x3_kernel(%arg0: i32, %arg1: i32, %arg2: memref<1x16x16x64xf32, #tpu.memory_space<vmem>>, %arg3: memref<1x1x2x16x64xf32, #tpu.memory_space<vmem>>, %arg4: memref<1x2x64xf32, #tpu.memory_space<vmem>>, %arg5: memref<3x192x64xbf16, #tpu.memory_space<vmem>>, %arg6: memref<1x1x64xf32, #tpu.memory_space<vmem>>, %arg7: memref<1x16x16x64xbf16, #tpu.memory_space<vmem>>, %arg8: memref<1x1x2x64xf32, #tpu.memory_space<vmem>>, %arg9: memref<18x32x64xf32, #tpu.memory_space<vmem>>) attributes {dimension_semantics = [#tpu.dimension_semantics<parallel>, #tpu.dimension_semantics<parallel>], iteration_bounds = array<i64: 2, 1>, scalar_prefetch = 0 : i64, scratch_operands = 1 : i64, tpu.core_type = #tpu.core_type<tc>, window_params = [{transform_indices = @transform_0, window_bounds = array<i64: 1, 16, 16, 64>}, {transform_indices = @transform_1, window_bounds = array<i64: 1, 1, 2, 16, 64>}, {transform_indices = @transform_2, window_bounds = array<i64: 1, 2, 64>}, {pipeline_mode = #tpu.pipeline_mode<synchronous>, transform_indices = @transform_3, window_bounds = array<i64: 3, 192, 64>}, {transform_indices = @transform_4, window_bounds = array<i64: 1, 1, 64>}, {transform_indices = @transform_5, window_bounds = array<i64: 1, 16, 16, 64>}, {transform_indices = @transform_6, window_bounds = array<i64: 1, 1, 2, 64>}]} {
    %c0 = arith.constant 0 : index
    %c0_0 = arith.constant 0 : index
    %c0_1 = arith.constant 0 : index
    %0 = vector.load %arg4[%c0, %c0_0, %c0_1] : memref<1x2x64xf32, #tpu.memory_space<vmem>>, vector<1x2x64xf32>
    %1 = vector.extract_strided_slice %0 {offsets = [0, 0, 0], sizes = [1, 1, 64], strides = [1, 1, 1]} : vector<1x2x64xf32> to vector<1x1x64xf32>
    %2 = vector.shape_cast %1 : vector<1x1x64xf32> to vector<64xf32>
    %3 = vector.shape_cast %2 : vector<64xf32> to vector<1x1x64xf32>
    %4 = vector.extract_strided_slice %0 {offsets = [0, 1, 0], sizes = [1, 1, 64], strides = [1, 1, 1]} : vector<1x2x64xf32> to vector<1x1x64xf32>
    %5 = vector.shape_cast %4 : vector<1x1x64xf32> to vector<64xf32>
    %6 = vector.shape_cast %5 : vector<64xf32> to vector<1x1x64xf32>
    %cst = arith.constant 0.000000e+00 : f32
    %7 = vector.broadcast %cst : f32 to vector<18x8x64xf32>
    %c0_2 = arith.constant 0 : index
    %c0_3 = arith.constant 0 : index
    %c0_4 = arith.constant 0 : index
    %8 = vector.load %arg9[%c0_2, %c0_3, %c0_4] : memref<18x32x64xf32, #tpu.memory_space<vmem>>, vector<18x8x64xf32>
    tpu.vector_store %arg9[%c0_2, %c0_3, %c0_4], %7 {strides = array<i32>} : memref<18x32x64xf32, #tpu.memory_space<vmem>>, vector<18x8x64xf32>,
    %c0_5 = arith.constant 0 : index
    %c24 = arith.constant 24 : index
    %c0_6 = arith.constant 0 : index
    %9 = vector.load %arg9[%c0_5, %c24, %c0_6] : memref<18x32x64xf32, #tpu.memory_space<vmem>>, vector<18x8x64xf32>
    tpu.vector_store %arg9[%c0_5, %c24, %c0_6], %7 {strides = array<i32>} : memref<18x32x64xf32, #tpu.memory_space<vmem>>, vector<18x8x64xf32>,
    %c0_7 = arith.constant 0 : index
    %c0_8 = arith.constant 0 : index
    %c0_9 = arith.constant 0 : index
    %c0_10 = arith.constant 0 : index
    %c0_11 = arith.constant 0 : index
    %10 = vector.load %arg3[%c0_7, %c0_8, %c0_9, %c0_10, %c0_11] : memref<1x1x2x16x64xf32, #tpu.memory_space<vmem>>, vector<1x1x2x16x64xf32>
    %11 = vector.extract_strided_slice %10 {offsets = [0, 0, 0, 0, 0], sizes = [1, 1, 1, 16, 64], strides = [1, 1, 1, 1, 1]} : vector<1x1x2x16x64xf32> to vector<1x1x1x16x64xf32>
    %12 = vector.shape_cast %11 : vector<1x1x1x16x64xf32> to vector<1x16x64xf32>
    %13 = vector.broadcast %3 : vector<1x1x64xf32> to vector<1x16x64xf32>
    %14 = arith.mulf %12, %13 : vector<1x16x64xf32>
    %15 = vector.broadcast %6 : vector<1x1x64xf32> to vector<1x16x64xf32>
    %16 = arith.addf %14, %15 : vector<1x16x64xf32>
    %17 = arith.negf %16 : vector<1x16x64xf32>
    %18 = math.exp %17 : vector<1x16x64xf32>
    %cst_12 = arith.constant 1.000000e+00 : f32
    %19 = vector.broadcast %cst_12 : f32 to vector<1x16x64xf32>
    %20 = arith.addf %19, %18 : vector<1x16x64xf32>
    %21 = arith.divf %19, %20 : vector<1x16x64xf32>
    %22 = arith.mulf %16, %21 : vector<1x16x64xf32>
    %c0_i32 = arith.constant 0 : i32
    %23 = arith.cmpi sgt, %arg1, %c0_i32 : i32
    %24 = arith.extui %23 : i1 to i32
    %25 = arith.sitofp %24 : i32 to f32
    %26 = vector.broadcast %25 : f32 to vector<1x16x64xf32>
    %27 = arith.mulf %22, %26 : vector<1x16x64xf32>
    %28 = vector.extract_strided_slice %10 {offsets = [0, 0, 1, 0, 0], sizes = [1, 1, 1, 16, 64], strides = [1, 1, 1, 1, 1]} : vector<1x1x2x16x64xf32> to vector<1x1x1x16x64xf32>
    %29 = vector.shape_cast %28 : vector<1x1x1x16x64xf32> to vector<1x16x64xf32>
    %30 = vector.broadcast %3 : vector<1x1x64xf32> to vector<1x16x64xf32>
    %31 = arith.mulf %29, %30 : vector<1x16x64xf32>
    %32 = vector.broadcast %6 : vector<1x1x64xf32> to vector<1x16x64xf32>
    %33 = arith.addf %31, %32 : vector<1x16x64xf32>
    %34 = arith.negf %33 : vector<1x16x64xf32>
    %35 = math.exp %34 : vector<1x16x64xf32>
    %cst_13 = arith.constant 1.000000e+00 : f32
    %36 = vector.broadcast %cst_13 : f32 to vector<1x16x64xf32>
    %37 = arith.addf %36, %35 : vector<1x16x64xf32>
    %38 = arith.divf %36, %37 : vector<1x16x64xf32>
    %39 = arith.mulf %33, %38 : vector<1x16x64xf32>
    %c0_i32_14 = arith.constant 0 : i32
    %40 = arith.cmpi slt, %arg1, %c0_i32_14 : i32
    %41 = arith.extui %40 : i1 to i32
    %42 = arith.sitofp %41 : i32 to f32
    %43 = vector.broadcast %42 : f32 to vector<1x16x64xf32>
    %44 = arith.mulf %39, %43 : vector<1x16x64xf32>
    %c0_15 = arith.constant 0 : index
    %c8 = arith.constant 8 : index
    %c0_16 = arith.constant 0 : index
    %45 = vector.load %arg9[%c0_15, %c8, %c0_16] : memref<18x32x64xf32, #tpu.memory_space<vmem>>, vector<1x16x64xf32>
    tpu.vector_store %arg9[%c0_15, %c8, %c0_16], %27 {strides = array<i32>} : memref<18x32x64xf32, #tpu.memory_space<vmem>>, vector<1x16x64xf32>,
    %c17 = arith.constant 17 : index
    %c8_17 = arith.constant 8 : index
    %c0_18 = arith.constant 0 : index
    %46 = vector.load %arg9[%c17, %c8_17, %c0_18] : memref<18x32x64xf32, #tpu.memory_space<vmem>>, vector<1x16x64xf32>
    tpu.vector_store %arg9[%c17, %c8_17, %c0_18], %44 {strides = array<i32>} : memref<18x32x64xf32, #tpu.memory_space<vmem>>, vector<1x16x64xf32>,
    %c0_19 = arith.constant 0 : index
    %c0_20 = arith.constant 0 : index
    %c0_21 = arith.constant 0 : index
    %c0_22 = arith.constant 0 : index
    %47 = vector.load %arg2[%c0_19, %c0_20, %c0_21, %c0_22] : memref<1x16x16x64xf32, #tpu.memory_space<vmem>>, vector<1x16x16x64xf32>
    %48 = vector.shape_cast %47 : vector<1x16x16x64xf32> to vector<16x16x64xf32>
    %49 = vector.broadcast %3 : vector<1x1x64xf32> to vector<16x16x64xf32>
    %50 = arith.mulf %48, %49 : vector<16x16x64xf32>
    %51 = vector.broadcast %6 : vector<1x1x64xf32> to vector<16x16x64xf32>
    %52 = arith.addf %50, %51 : vector<16x16x64xf32>
    %53 = arith.negf %52 : vector<16x16x64xf32>
    %54 = math.exp %53 : vector<16x16x64xf32>
    %cst_23 = arith.constant 1.000000e+00 : f32
    %55 = vector.broadcast %cst_23 : f32 to vector<16x16x64xf32>
    %56 = arith.addf %55, %54 : vector<16x16x64xf32>
    %57 = arith.divf %55, %56 : vector<16x16x64xf32>
    %58 = arith.mulf %52, %57 : vector<16x16x64xf32>
    %c1 = arith.constant 1 : index
    %c8_24 = arith.constant 8 : index
    %c0_25 = arith.constant 0 : index
    %59 = vector.load %arg9[%c1, %c8_24, %c0_25] : memref<18x32x64xf32, #tpu.memory_space<vmem>>, vector<16x16x64xf32>
    tpu.vector_store %arg9[%c1, %c8_24, %c0_25], %58 {strides = array<i32>} : memref<18x32x64xf32, #tpu.memory_space<vmem>>, vector<16x16x64xf32>,
    %c0_26 = arith.constant 0 : index
    %c0_27 = arith.constant 0 : index
    %c0_28 = arith.constant 0 : index
    %60 = vector.load %arg9[%c0_26, %c0_27, %c0_28] : memref<18x32x64xf32, #tpu.memory_space<vmem>>, vector<18x32x64xf32>
    %61 = vector.extract_strided_slice %60 {offsets = [0, 7, 0], sizes = [18, 16, 64], strides = [1, 1, 1]} : vector<18x32x64xf32> to vector<18x16x64xf32>
    %62 = vector.extract_strided_slice %60 {offsets = [0, 8, 0], sizes = [18, 16, 64], strides = [1, 1, 1]} : vector<18x32x64xf32> to vector<18x16x64xf32>
    %63 = vector.extract_strided_slice %60 {offsets = [0, 9, 0], sizes = [18, 16, 64], strides = [1, 1, 1]} : vector<18x32x64xf32> to vector<18x16x64xf32>
    %64 = tpu.concatenate %61, %62, %63 in 2 : vector<18x16x64xf32>, vector<18x16x64xf32>, vector<18x16x64xf32> -> vector<18x16x192xf32>
    %65 = arith.truncf %64 : vector<18x16x192xf32> to vector<18x16x192xbf16>
    %66 = vector.extract_strided_slice %65 {offsets = [0, 0, 0], sizes = [16, 16, 192], strides = [1, 1, 1]} : vector<18x16x192xbf16> to vector<16x16x192xbf16>
    %67 = vector.shape_cast %66 : vector<16x16x192xbf16> to vector<256x192xbf16>
    %c0_29 = arith.constant 0 : index
    %c0_30 = arith.constant 0 : index
    %c0_31 = arith.constant 0 : index
    %68 = vector.load %arg5[%c0_29, %c0_30, %c0_31] : memref<3x192x64xbf16, #tpu.memory_space<vmem>>, vector<1x192x64xbf16>
    %69 = vector.shape_cast %68 : vector<1x192x64xbf16> to vector<192x64xbf16>
    %cst_32 = arith.constant dense<0.000000e+00> : vector<256x64xf32>
    %70 = tpu.matmul %67, %69, %cst_32 {dimension_numbers = #tpu.dot_dimension_numbers<[1], [0], [0], [1], [0, 0, 1, 1], [], []>} : vector<256x192xbf16>, vector<192x64xbf16>, vector<256x64xf32> -> vector<256x64xf32>
    %71 = vector.extract_strided_slice %65 {offsets = [1, 0, 0], sizes = [16, 16, 192], strides = [1, 1, 1]} : vector<18x16x192xbf16> to vector<16x16x192xbf16>
    %72 = vector.shape_cast %71 : vector<16x16x192xbf16> to vector<256x192xbf16>
    %c1_33 = arith.constant 1 : index
    %c0_34 = arith.constant 0 : index
    %c0_35 = arith.constant 0 : index
    %73 = vector.load %arg5[%c1_33, %c0_34, %c0_35] : memref<3x192x64xbf16, #tpu.memory_space<vmem>>, vector<1x192x64xbf16>
    %74 = vector.shape_cast %73 : vector<1x192x64xbf16> to vector<192x64xbf16>
    %cst_36 = arith.constant dense<0.000000e+00> : vector<256x64xf32>
    %75 = tpu.matmul %72, %74, %cst_36 {dimension_numbers = #tpu.dot_dimension_numbers<[1], [0], [0], [1], [0, 0, 1, 1], [], []>} : vector<256x192xbf16>, vector<192x64xbf16>, vector<256x64xf32> -> vector<256x64xf32>
    %76 = arith.addf %70, %75 : vector<256x64xf32>
    %77 = vector.extract_strided_slice %65 {offsets = [2, 0, 0], sizes = [16, 16, 192], strides = [1, 1, 1]} : vector<18x16x192xbf16> to vector<16x16x192xbf16>
    %78 = vector.shape_cast %77 : vector<16x16x192xbf16> to vector<256x192xbf16>
    %c2 = arith.constant 2 : index
    %c0_37 = arith.constant 0 : index
    %c0_38 = arith.constant 0 : index
    %79 = vector.load %arg5[%c2, %c0_37, %c0_38] : memref<3x192x64xbf16, #tpu.memory_space<vmem>>, vector<1x192x64xbf16>
    %80 = vector.shape_cast %79 : vector<1x192x64xbf16> to vector<192x64xbf16>
    %cst_39 = arith.constant dense<0.000000e+00> : vector<256x64xf32>
    %81 = tpu.matmul %78, %80, %cst_39 {dimension_numbers = #tpu.dot_dimension_numbers<[1], [0], [0], [1], [0, 0, 1, 1], [], []>} : vector<256x192xbf16>, vector<192x64xbf16>, vector<256x64xf32> -> vector<256x64xf32>
    %82 = arith.addf %76, %81 : vector<256x64xf32>
    %c0_40 = arith.constant 0 : index
    %c0_41 = arith.constant 0 : index
    %c0_42 = arith.constant 0 : index
    %83 = vector.load %arg6[%c0_40, %c0_41, %c0_42] : memref<1x1x64xf32, #tpu.memory_space<vmem>>, vector<1x1x64xf32>
    %84 = vector.shape_cast %83 : vector<1x1x64xf32> to vector<1x64xf32>
    %85 = vector.broadcast %84 : vector<1x64xf32> to vector<256x64xf32>
    %86 = arith.addf %82, %85 : vector<256x64xf32>
    %cst_43 = arith.constant dense<0.000000e+00> : vector<64xf32>
    %87 = vector.multi_reduction <add>, %86, %cst_43 [0] : vector<256x64xf32> to vector<64xf32>
    %88 = vector.shape_cast %87 : vector<64xf32> to vector<1x64xf32>
    %c0_44 = arith.constant 0 : index
    %c0_45 = arith.constant 0 : index
    %c0_46 = arith.constant 0 : index
    %c0_47 = arith.constant 0 : index
    %89 = vector.load %arg8[%c0_44, %c0_45, %c0_46, %c0_47] : memref<1x1x2x64xf32, #tpu.memory_space<vmem>>, vector<1x1x1x64xf32>
    %90 = vector.shape_cast %89 : vector<1x1x1x64xf32> to vector<1x64xf32>
    %91 = vector.shape_cast %88 : vector<1x64xf32> to vector<1x1x1x64xf32>
    tpu.vector_store %arg8[%c0_44, %c0_45, %c0_46, %c0_47], %91 {strides = array<i32>} : memref<1x1x2x64xf32, #tpu.memory_space<vmem>>, vector<1x1x1x64xf32>,
    %92 = arith.mulf %86, %86 : vector<256x64xf32>
    %cst_48 = arith.constant dense<0.000000e+00> : vector<64xf32>
    %93 = vector.multi_reduction <add>, %92, %cst_48 [0] : vector<256x64xf32> to vector<64xf32>
    %94 = vector.shape_cast %93 : vector<64xf32> to vector<1x64xf32>
    %c0_49 = arith.constant 0 : index
    %c0_50 = arith.constant 0 : index
    %c1_51 = arith.constant 1 : index
    %c0_52 = arith.constant 0 : index
    %95 = vector.load %arg8[%c0_49, %c0_50, %c1_51, %c0_52] : memref<1x1x2x64xf32, #tpu.memory_space<vmem>>, vector<1x1x1x64xf32>
    %96 = vector.shape_cast %95 : vector<1x1x1x64xf32> to vector<1x64xf32>
    %97 = vector.shape_cast %94 : vector<1x64xf32> to vector<1x1x1x64xf32>
    tpu.vector_store %arg8[%c0_49, %c0_50, %c1_51, %c0_52], %97 {strides = array<i32>} : memref<1x1x2x64xf32, #tpu.memory_space<vmem>>, vector<1x1x1x64xf32>,
    %98 = vector.shape_cast %86 : vector<256x64xf32> to vector<16x16x64xf32>
    %99 = arith.truncf %98 : vector<16x16x64xf32> to vector<16x16x64xbf16>
    %c0_53 = arith.constant 0 : index
    %c0_54 = arith.constant 0 : index
    %c0_55 = arith.constant 0 : index
    %c0_56 = arith.constant 0 : index
    %100 = vector.load %arg7[%c0_53, %c0_54, %c0_55, %c0_56] : memref<1x16x16x64xbf16, #tpu.memory_space<vmem>>, vector<1x16x16x64xbf16>
    %101 = vector.shape_cast %100 : vector<1x16x16x64xbf16> to vector<16x16x64xbf16>
    %102 = vector.shape_cast %99 : vector<16x16x64xbf16> to vector<1x16x16x64xbf16>
    tpu.vector_store %arg7[%c0_53, %c0_54, %c0_55, %c0_56], %102 {strides = array<i32>} : memref<1x16x16x64xbf16, #tpu.memory_space<vmem>>, vector<1x16x16x64xbf16>,
    return
  }
  func.func @transform_0(%arg0: i32, %arg1: i32) -> (i32, i32, i32, i32) {
    %c0_i32 = arith.constant 0 : i32
    %c0_i32_0 = arith.constant 0 : i32
    %c0_i32_1 = arith.constant 0 : i32
    return %arg0, %arg1, %c0_i32, %c0_i32_0 : i32, i32, i32, i32
  }
  func.func @transform_1(%arg0: i32, %arg1: i32) -> (i32, i32, i32, i32, i32) {
    %c0_i32 = arith.constant 0 : i32
    %c0_i32_0 = arith.constant 0 : i32
    %c0_i32_1 = arith.constant 0 : i32
    %c0_i32_2 = arith.constant 0 : i32
    return %arg0, %arg1, %c0_i32, %c0_i32_0, %c0_i32_1 : i32, i32, i32, i32, i32
  }
  func.func @transform_2(%arg0: i32, %arg1: i32) -> (i32, i32, i32) {
    %c0_i32 = arith.constant 0 : i32
    %c0_i32_0 = arith.constant 0 : i32
    %c0_i32_1 = arith.constant 0 : i32
    return %arg0, %c0_i32, %c0_i32_0 : i32, i32, i32
  }
  func.func @transform_3(%arg0: i32, %arg1: i32) -> (i32, i32, i32) {
    %c0_i32 = arith.constant 0 : i32
    %c0_i32_0 = arith.constant 0 : i32
    %c0_i32_1 = arith.constant 0 : i32
    %c0_i32_2 = arith.constant 0 : i32
    return %c0_i32, %c0_i32_0, %c0_i32_1 : i32, i32, i32
  }
  func.func @transform_4(%arg0: i32, %arg1: i32) -> (i32, i32, i32) {
    %c0_i32 = arith.constant 0 : i32
    %c0_i32_0 = arith.constant 0 : i32
    %c0_i32_1 = arith.constant 0 : i32
    return %arg0, %c0_i32, %c0_i32_0 : i32, i32, i32
  }
  func.func @transform_5(%arg0: i32, %arg1: i32) -> (i32, i32, i32, i32) {
    %c0_i32 = arith.constant 0 : i32
    %c0_i32_0 = arith.constant 0 : i32
    %c0_i32_1 = arith.constant 0 : i32
    return %arg0, %arg1, %c0_i32, %c0_i32_0 : i32, i32, i32, i32
  }
  func.func @transform_6(%arg0: i32, %arg1: i32) -> (i32, i32, i32, i32) {
    %c0_i32 = arith.constant 0 : i32
    %c0_i32_0 = arith.constant 0 : i32
    %c0_i32_1 = arith.constant 0 : i32
    return %arg0, %arg1, %c0_i32, %c0_i32_0 : i32, i32, i32, i32
  }
}

</mosaic_0001>

<bundles_post_ra>
// kernel: squeeze.5
= control target key start
LH: loop header
LB: loop body
LE: loop exit
PB: predicated region body
PF: predicated region fallthrough
CT: control target
= control target key end

     0   :  { %s354_s8 = smov 122   ;;  %s355_s9 = smov 124   ;;  %vm7_vm0 = vcmask 15360   ;;  %s653_s0 = inlined_call_operand.vmem [shape: f32[2,64], index: 0, kind: input, shape index: {}]   ;;  %s654_s1 = inlined_call_operand.vmem [shape: f32[2,32,2], index: 1, kind: output, shape index: {}]  }
   0x1   :  { %v4_v0 = vld [vmem:[%s653_s0] sm:$0x3]  ;;  %s353_s0 = smov 126   ;;  %s356_s10 = smov 120  }
   0x2   :  { %5 = vst [vmem:[#allocation0] sm:$0x3] %v4_v0  ;;  %s357_s11 = smov 118   ;;  %s358_s12 = smov 116  }
   0x3   :  { %s359_s13 = smov 114   ;;  %s360_s14 = smov 112  }
   0x4   :  { %s361_s15 = smov 110   ;;  %s362_s16 = smov 108  }
   0x5   :  { %s363_s17 = smov 106   ;;  %s364_s18 = smov 104  }
   0x6   :  { %s365_s19 = smov 102   ;;  %s366_s20 = smov 100  }
   0x7   :  { %s367_s21 = smov 98   ;;  %s368_s22 = smov 96  }
   0x8   :  { %s369_s23 = smov 94   ;;  %s370_s24 = smov 92  }
   0x9   :  { %v11_v1 = vld [vmem:[#allocation0] sm:$0x3]   ;;  %s371_s25 = smov 90   ;;  %s372_s26 = smov 88  }
   0xa   :  { %v27_v2 = vld [vmem:[#allocation0] sm:$0x3]   ;;  %12 = vrot.lane.b32.xlu0 %v11_v1, %s353_s0  ;;  %s373_s27 = smov 86   ;;  %s374_s28 = smov 84  }
   0xb   :  { %28 = vrot.lane.b32.xlu1 %v27_v2, %s354_s8  ;;  %v19_v3 = vld [vmem:[#allocation0] sm:$0x3]   ;;  %s375_s29 = smov 82   ;;  %s376_s30 = smov 80  }
   0xc   :  { %v35_v4 = vld [vmem:[#allocation0] sm:$0x3]   ;;  %s377_s6 = smov 78   ;;  %s378_s7 = smov 76  }
   0xd   :  { %v43_v5 = vld [vmem:[#allocation0] sm:$0x3]   ;;  %s379_s0 = smov 74   ;;  %s380_s8 = smov 72  }
   0xe   :  { %20 = vrot.lane.b32.xlu0 %v19_v3, %s355_s9  ;;  %v51_v6 = vld [vmem:[#allocation0] sm:$0x3]   ;;  %s381_s9 = smov 70  }
   0xf   :  { %36 = vrot.lane.b32.xlu1 %v35_v4, %s356_s10  ;;  %v59_v7 = vld [vmem:[#allocation0] sm:$0x3]   ;;  %s382_s10 = smov 68  }
  0x10   :  { %v67_v8 = vld [vmem:[#allocation0] sm:$0x3]  }
  0x11   :  { %v75_v9 = vld [vmem:[#allocation0] sm:$0x3]  }
  0x12   :  { %44 = vrot.lane.b32.xlu0 %v43_v5, %s357_s11  ;;  %v83_v10 = vld [vmem:[#allocation0] sm:$0x3]   ;;  %s383_s11 = smov 66  }
  0x13   :  { %52 = vrot.lane.b32.xlu1 %v51_v6, %s358_s12  ;;  %v91_v11 = vld [vmem:[#allocation0] sm:$0x3]  }
  0x14   :  { %v99_v12 = vld [vmem:[#allocation0] sm:$0x3]  }
  0x15   :  { %v107_v13 = vld [vmem:[#allocation0] sm:$0x3]  }
  0x16   :  { %60 = vrot.lane.b32.xlu0 %v59_v7, %s359_s13  ;;  %v115_v14 = vld [vmem:[#allocation0] sm:$0x3]  }
  0x17   :  { %68 = vrot.lane.b32.xlu1 %v67_v8, %s360_s14  ;;  %v123_v15 = vld [vmem:[#allocation0] sm:$0x3]  }
  0x18   :  { %v131_v16 = vld [vmem:[#allocation0] sm:$0x3]  }
  0x19   :  { %v139_v17 = vld [vmem:[#allocation0] sm:$0x3]  }
  0x1a   :  { %76 = vrot.lane.b32.xlu0 %v75_v9, %s361_s15  ;;  %v147_v18 = vld [vmem:[#allocation0] sm:$0x3]  }
  0x1b   :  { %84 = vrot.lane.b32.xlu1 %v83_v10, %s362_s16  ;;  %v155_v19 = vld [vmem:[#allocation0] sm:$0x3]  }
  0x1c   :  { %v163_v20 = vld [vmem:[#allocation0] sm:$0x3]  }
  0x1d   :  { %v171_v21 = vld [vmem:[#allocation0] sm:$0x3]  }
  0x1e   :  { %92 = vrot.lane.b32.xlu0 %v91_v11, %s363_s17  ;;  %v179_v22 = vld [vmem:[#allocation0] sm:$0x3]  }
  0x1f   :  { %100 = vrot.lane.b32.xlu1 %v99_v12, %s364_s18  ;;  %v187_v23 = vld [vmem:[#allocation0] sm:$0x3]  }
  0x20   :  { %v195_v24 = vld [vmem:[#allocation0] sm:$0x3]  }
  0x21   :  { %v203_v25 = vld [vmem:[#allocation0] sm:$0x3]  }
  0x22   :  { %108 = vrot.lane.b32.xlu0 %v107_v13, %s365_s19  ;;  %v211_v26 = vld [vmem:[#allocation0] sm:$0x3]  }
  0x23   :  { %116 = vrot.lane.b32.xlu1 %v115_v14, %s366_s20  ;;  %v6_v27 = vld [vmem:[#allocation0] sm:$0x3]  }
  0x24   :  { %8 = vst.msk [vmem:[%s654_s1] sm:$0x1] %vm7_vm0, %v6_v27   ;;  %259 = vst.msk [vmem:[%s654_s1 + $0x1f] sm:$0x2] %vm7_vm0, %v6_v27   ;;  %v219_v28 = vld [vmem:[#allocation0] sm:$0x3]  }
  0x25   :  { %v227_v29 = vld [vmem:[#allocation0] sm:$0x3]  }
  0x26   :  { %124 = vrot.lane.b32.xlu0 %v123_v15, %s367_s21  ;;  %v235_v30 = vld [vmem:[#allocation0] sm:$0x3]  }
  0x27   :  { %132 = vrot.lane.b32.xlu1 %v131_v16, %s368_s22  ;;  %v243_v31 = vld [vmem:[#allocation0] sm:$0x3]  }
  0x28   :  { %v251_v32 = vld [vmem:[#allocation0] sm:$0x3]  }
  0x2a   :  { %140 = vrot.lane.b32.xlu0 %v139_v17, %s369_s23 }
  0x2b   :  { %148 = vrot.lane.b32.xlu1 %v147_v18, %s370_s24 }
  0x2e   :  { %156 = vrot.lane.b32.xlu0 %v155_v19, %s371_s25 }
  0x2f   :  { %164 = vrot.lane.b32.xlu1 %v163_v20, %s372_s26 }
  0x32   :  { %172 = vrot.lane.b32.xlu0 %v171_v21, %s373_s27 }
  0x33   :  { %180 = vrot.lane.b32.xlu1 %v179_v22, %s374_s28 }
  0x36   :  { %188 = vrot.lane.b32.xlu0 %v187_v23, %s375_s29 }
  0x37   :  { %196 = vrot.lane.b32.xlu1 %v195_v24, %s376_s30 }
  0x3a   :  { %204 = vrot.lane.b32.xlu0 %v203_v25, %s377_s6 }
  0x3b   :  { %212 = vrot.lane.b32.xlu1 %v211_v26, %s378_s7 }
  0x3e   :  { %220 = vrot.lane.b32.xlu0 %v219_v28, %s379_s0 }
  0x3f   :  { %228 = vrot.lane.b32.xlu1 %v227_v29, %s380_s8 }
  0x42   :  { %236 = vrot.lane.b32.xlu0 %v235_v30, %s381_s9 }
  0x43   :  { %244 = vrot.lane.b32.xlu1 %v243_v31, %s382_s10 }
  0x46   :  { %252 = vrot.lane.b32.xlu0 %v251_v32, %s383_s11 }
  0x7c   :  { %v13_v33 = vpop.permute.xlu0 %12  }
  0x7d   :  { %v29_v34 = vpop.permute.xlu1 %28   ;;  %260 = vst.msk [vmem:[%s654_s1 + $0x1] sm:$0x1] %vm7_vm0, %v13_v33   ;;  %261 = vst.msk [vmem:[%s654_s1 + $0x20] sm:$0x2] %vm7_vm0, %v13_v33  }
  0x7e   :  { %264 = vst.msk [vmem:[%s654_s1 + $0x3] sm:$0x1] %vm7_vm0, %v29_v34   ;;  %265 = vst.msk [vmem:[%s654_s1 + $0x22] sm:$0x2] %vm7_vm0, %v29_v34  }
  0x80   :  { %v21_v35 = vpop.permute.xlu0 %20  }
  0x81   :  { %v37_v36 = vpop.permute.xlu1 %36   ;;  %262 = vst.msk [vmem:[%s654_s1 + $0x2] sm:$0x1] %vm7_vm0, %v21_v35   ;;  %263 = vst.msk [vmem:[%s654_s1 + $0x21] sm:$0x2] %vm7_vm0, %v21_v35  }
  0x82   :  { %266 = vst.msk [vmem:[%s654_s1 + $0x4] sm:$0x1] %vm7_vm0, %v37_v36   ;;  %267 = vst.msk [vmem:[%s654_s1 + $0x23] sm:$0x2] %vm7_vm0, %v37_v36  }
  0x84   :  { %v45_v37 = vpop.permute.xlu0 %44  }
  0x85   :  { %v53_v38 = vpop.permute.xlu1 %52   ;;  %268 = vst.msk [vmem:[%s654_s1 + $0x5] sm:$0x1] %vm7_vm0, %v45_v37   ;;  %269 = vst.msk [vmem:[%s654_s1 + $0x24] sm:$0x2] %vm7_vm0, %v45_v37  }
  0x86   :  { %270 = vst.msk [vmem:[%s654_s1 + $0x6] sm:$0x1] %vm7_vm0, %v53_v38   ;;  %271 = vst.msk [vmem:[%s654_s1 + $0x25] sm:$0x2] %vm7_vm0, %v53_v38  }
  0x88   :  { %v61_v39 = vpop.permute.xlu0 %60  }
  0x89   :  { %v69_v40 = vpop.permute.xlu1 %68   ;;  %272 = vst.msk [vmem:[%s654_s1 + $0x7] sm:$0x1] %vm7_vm0, %v61_v39   ;;  %273 = vst.msk [vmem:[%s654_s1 + $0x26] sm:$0x2] %vm7_vm0, %v61_v39  }
  0x8a   :  { %274 = vst.msk [vmem:[%s654_s1 + $0x8] sm:$0x1] %vm7_vm0, %v69_v40   ;;  %275 = vst.msk [vmem:[%s654_s1 + $0x27] sm:$0x2] %vm7_vm0, %v69_v40  }
  0x8c   :  { %v77_v41 = vpop.permute.xlu0 %76  }
  0x8d   :  { %v85_v42 = vpop.permute.xlu1 %84   ;;  %276 = vst.msk [vmem:[%s654_s1 + $0x9] sm:$0x1] %vm7_vm0, %v77_v41   ;;  %277 = vst.msk [vmem:[%s654_s1 + $0x28] sm:$0x2] %vm7_vm0, %v77_v41  }
  0x8e   :  { %278 = vst.msk [vmem:[%s654_s1 + $0xa] sm:$0x1] %vm7_vm0, %v85_v42   ;;  %279 = vst.msk [vmem:[%s654_s1 + $0x29] sm:$0x2] %vm7_vm0, %v85_v42  }
  0x90   :  { %v93_v43 = vpop.permute.xlu0 %92  }
  0x91   :  { %v101_v44 = vpop.permute.xlu1 %100   ;;  %280 = vst.msk [vmem:[%s654_s1 + $0xb] sm:$0x1] %vm7_vm0, %v93_v43   ;;  %281 = vst.msk [vmem:[%s654_s1 + $0x2a] sm:$0x2] %vm7_vm0, %v93_v43  }
  0x92   :  { %282 = vst.msk [vmem:[%s654_s1 + $0xc] sm:$0x1] %vm7_vm0, %v101_v44   ;;  %283 = vst.msk [vmem:[%s654_s1 + $0x2b] sm:$0x2] %vm7_vm0, %v101_v44  }
  0x94   :  { %v109_v45 = vpop.permute.xlu0 %108  }
  0x95   :  { %v117_v46 = vpop.permute.xlu1 %116   ;;  %284 = vst.msk [vmem:[%s654_s1 + $0xd] sm:$0x1] %vm7_vm0, %v109_v45   ;;  %285 = vst.msk [vmem:[%s654_s1 + $0x2c] sm:$0x2] %vm7_vm0, %v109_v45  }
  0x96   :  { %286 = vst.msk [vmem:[%s654_s1 + $0xe] sm:$0x1] %vm7_vm0, %v117_v46   ;;  %287 = vst.msk [vmem:[%s654_s1 + $0x2d] sm:$0x2] %vm7_vm0, %v117_v46  }
  0x98   :  { %v125_v47 = vpop.permute.xlu0 %124  }
  0x99   :  { %v133_v48 = vpop.permute.xlu1 %132   ;;  %288 = vst.msk [vmem:[%s654_s1 + $0xf] sm:$0x1] %vm7_vm0, %v125_v47   ;;  %289 = vst.msk [vmem:[%s654_s1 + $0x2e] sm:$0x2] %vm7_vm0, %v125_v47  }
  0x9a   :  { %290 = vst.msk [vmem:[%s654_s1 + $0x10] sm:$0x1] %vm7_vm0, %v133_v48   ;;  %291 = vst.msk [vmem:[%s654_s1 + $0x2f] sm:$0x2] %vm7_vm0, %v133_v48  }
  0x9c   :  { %v141_v49 = vpop.permute.xlu0 %140  }
  0x9d   :  { %v149_v50 = vpop.permute.xlu1 %148   ;;  %292 = vst.msk [vmem:[%s654_s1 + $0x11] sm:$0x1] %vm7_vm0, %v141_v49   ;;  %293 = vst.msk [vmem:[%s654_s1 + $0x30] sm:$0x2] %vm7_vm0, %v141_v49  }
  0x9e   :  { %294 = vst.msk [vmem:[%s654_s1 + $0x12] sm:$0x1] %vm7_vm0, %v149_v50   ;;  %295 = vst.msk [vmem:[%s654_s1 + $0x31] sm:$0x2] %vm7_vm0, %v149_v50  }
  0xa0   :  { %v157_v51 = vpop.permute.xlu0 %156  }
  0xa1   :  { %v165_v52 = vpop.permute.xlu1 %164   ;;  %296 = vst.msk [vmem:[%s654_s1 + $0x13] sm:$0x1] %vm7_vm0, %v157_v51   ;;  %297 = vst.msk [vmem:[%s654_s1 + $0x32] sm:$0x2] %vm7_vm0, %v157_v51  }
  0xa2   :  { %298 = vst.msk [vmem:[%s654_s1 + $0x14] sm:$0x1] %vm7_vm0, %v165_v52   ;;  %299 = vst.msk [vmem:[%s654_s1 + $0x33] sm:$0x2] %vm7_vm0, %v165_v52  }
  0xa4   :  { %v173_v53 = vpop.permute.xlu0 %172  }
  0xa5   :  { %v181_v54 = vpop.permute.xlu1 %180   ;;  %300 = vst.msk [vmem:[%s654_s1 + $0x15] sm:$0x1] %vm7_vm0, %v173_v53   ;;  %301 = vst.msk [vmem:[%s654_s1 + $0x34] sm:$0x2] %vm7_vm0, %v173_v53  }
  0xa6   :  { %302 = vst.msk [vmem:[%s654_s1 + $0x16] sm:$0x1] %vm7_vm0, %v181_v54   ;;  %303 = vst.msk [vmem:[%s654_s1 + $0x35] sm:$0x2] %vm7_vm0, %v181_v54  }
  0xa8   :  { %v189_v55 = vpop.permute.xlu0 %188  }
  0xa9   :  { %v197_v56 = vpop.permute.xlu1 %196   ;;  %304 = vst.msk [vmem:[%s654_s1 + $0x17] sm:$0x1] %vm7_vm0, %v189_v55   ;;  %305 = vst.msk [vmem:[%s654_s1 + $0x36] sm:$0x2] %vm7_vm0, %v189_v55  }
  0xaa   :  { %306 = vst.msk [vmem:[%s654_s1 + $0x18] sm:$0x1] %vm7_vm0, %v197_v56   ;;  %307 = vst.msk [vmem:[%s654_s1 + $0x37] sm:$0x2] %vm7_vm0, %v197_v56  }
  0xac   :  { %v205_v57 = vpop.permute.xlu0 %204  }
  0xad   :  { %v213_v58 = vpop.permute.xlu1 %212   ;;  %308 = vst.msk [vmem:[%s654_s1 + $0x19] sm:$0x1] %vm7_vm0, %v205_v57   ;;  %309 = vst.msk [vmem:[%s654_s1 + $0x38] sm:$0x2] %vm7_vm0, %v205_v57  }
  0xae   :  { %310 = vst.msk [vmem:[%s654_s1 + $0x1a] sm:$0x1] %vm7_vm0, %v213_v58   ;;  %311 = vst.msk [vmem:[%s654_s1 + $0x39] sm:$0x2] %vm7_vm0, %v213_v58  }
  0xb0   :  { %v221_v59 = vpop.permute.xlu0 %220  }
  0xb1   :  { %v229_v60 = vpop.permute.xlu1 %228   ;;  %312 = vst.msk [vmem:[%s654_s1 + $0x1b] sm:$0x1] %vm7_vm0, %v221_v59   ;;  %313 = vst.msk [vmem:[%s654_s1 + $0x3a] sm:$0x2] %vm7_vm0, %v221_v59  }
  0xb2   :  { %314 = vst.msk [vmem:[%s654_s1 + $0x1c] sm:$0x1] %vm7_vm0, %v229_v60   ;;  %315 = vst.msk [vmem:[%s654_s1 + $0x3b] sm:$0x2] %vm7_vm0, %v229_v60  }
  0xb4   :  { %v237_v61 = vpop.permute.xlu0 %236  }
  0xb5   :  { %v245_v62 = vpop.permute.xlu1 %244   ;;  %316 = vst.msk [vmem:[%s654_s1 + $0x1d] sm:$0x1] %vm7_vm0, %v237_v61   ;;  %317 = vst.msk [vmem:[%s654_s1 + $0x3c] sm:$0x2] %vm7_vm0, %v237_v61  }
  0xb6   :  { %318 = vst.msk [vmem:[%s654_s1 + $0x1e] sm:$0x1] %vm7_vm0, %v245_v62   ;;  %319 = vst.msk [vmem:[%s654_s1 + $0x3d] sm:$0x2] %vm7_vm0, %v245_v62  }
  0xb8   :  { %v253_v63 = vpop.permute.xlu0 %252  }
  0xb9   :  { %320 = vst.msk [vmem:[%s654_s1 + $0x1f] sm:$0x1] %vm7_vm0, %v253_v63   ;;  %321 = vst.msk [vmem:[%s654_s1 + $0x3e] sm:$0x2] %vm7_vm0, %v253_v63  }

// kernel: residual_block2d_nchw.3
= control target key start
LH: loop header
LB: loop body
LE: loop exit
PB: predicated region body
PF: predicated region fallthrough
CT: control target
= control target key end

     0   :  { %6 = vsyncpa [#allocation3], 0  ;;  %s842_s0 = inlined_call_operand.hbm [shape: f32[2,16,16,64], index: 0, kind: input, shape index: {}]   ;;  %s843_s1 = inlined_call_operand.vmem [shape: f32[2,1,2,64], index: 1, kind: output, shape index: {}]  }
   0x1   :  { %8 = vsyncpa [#allocation3 + $0x1], 0  ;;  %s618_s6 = smov 0   ;;  %s620_s7 = smov 0  }
   0x2   :  { %s622_s8 = smov 0   ;;  %s624_s9 = smov 0  }
   0x3   :  { %s626_s10 = smov 0   ;;  %s628_s11 = smov 0  }
   0x4 LB: > { %s453_s12 = sadd.s32 4294967295, %s603_s11   ;;  %s26_s13 = sadd.s32 1, %s599_s10  ;;  %s603_s11 = sphi %s628_s11, %s14_s11   ;;  %s599_s10 = sphi %s626_s10, %s851_s10   ;;  %s595_s9 = sphi %s624_s9, %s850_s9   ;;  %s591_s8 = sphi %s622_s8, %s849_s8   ;;  %s587_s7 = sphi %s620_s7, %s848_s7   ;;  %s583_s6 = sphi %s618_s6, %s847_s6  }
   0x5   : > { %p28_p0 = scmp.ge.s32.totalorder %s26_s13, 2  ;;  %s35_s14 = sadd.s32 1, %s591_s8 }
   0x6   : > { %p42_p1 = scmp.ne.s32.totalorder %s591_s8, %s587_s7  ;;  %p43_p2 = scmp.eq.s32.totalorder %s603_s11, 0 }
   0x7   : > { %s853_s13 = smov (%p28_p0, %s26_s13), 0  ;;  %p48_p4 = scmp.ne.s32.totalorder %s587_s7, %s583_s6 }
   0x8   : > { %p654_p3 = por %p43_p2, %p42_p1  ;;  %s30_s16 = ssub.s32 %s599_s10, %s853_s13 }
   0x9   : > { %p49_p5 = scmp.eq.s32.totalorder %s453_s12, 0  ;;  %p33_p6 = scmp.eq.s32.totalorder %s30_s16, 0 }
   0xa   : > { %p472_p8 = scmp.lt.s32.totalorder %s603_s11, 2  ;;  %s100_s19 = sand.u32 1, %s591_s8  }
   0xb   : > { %p661_p7 = por %p49_p5, %p48_p4  ;;  %s465_s20 = sshll.u32 %s599_s10, 12 }
   0xc   : > { %s667_s18 = scalar_select %p33_p6, %s591_s8, %s35_s14  }
   0xd   : > { %s457_s21 = sshll.u32 %s100_s19, 8  ;;  %s674_s24 = scalar_lea.hbm %s842_s0, %s465_s20 }
   0xe   : > { %s104_s25 = scalar_lea.vmem [#allocation2], %s457_s21  ;;  %p678_p9 = pnand %p472_p8, %p654_p3 }
   0xf   : > { %s114_s26 = sshll.u32 %s104_s25, 4  ;;  %s684_s28 = scalar_lea.sflag [#allocation3], %s100_s19  ;;  %s682_s26 = int_to_ptr.vmem [resolvable:$true] %s114_s26 }
  0x10   : > { %s523_s29 = scalar_lea.hbm %s674_s24, 4096  ;;  %p525_p11 = pneg %p678_p9 }
  0x11   : > { %p524_p10 = scmp.ne.s32.totalorder %s674_s24, %s523_s29  ;;  %s528_s3 = scalar_lea.hbm %s842_s0, 8192 }
  0x12   : > { %p529_p0 = scmp.lt.u32.totalorder %s674_s24, %s842_s0  ;;  %p530_p1 = scmp.lt.u32.totalorder %s528_s3, %s523_s29 }
  0x13   : > { %p526_p12 = pnand %p525_p11, %p524_p10  ;;  %p532_p3 = scmp.lt.u32.totalorder %s523_s29, %s674_s24 }
  0x14   : > { %p531_p2 = por %p530_p1, %p529_p0 }
  0x15   : > { %p527_p13 = pneg %p526_p12 }
  0x16   : > { %p533_p4 = por %p532_p3, %p531_p2 }
  0x18   : > { %p534_p5 = pnand %p533_p4, %p527_p13 }
  0x1a   : > { %537 = shalt.err (!%p534_p5)
}
  0x1b   : > { %s538_s6 = scalar_lea.vmem %s682_s26, 4096  ;;  %s605_s12 = smov [#allocation2]  }
  0x1c   : > { %p539_p6 = scmp.ne.s32.totalorder %s682_s26, %s538_s6  ;;  %s543_s14 = sshll.u32 %s605_s12, 4  ;;  %s544_s14 = int_to_ptr.vmem [resolvable:$false] %s543_s14 }
  0x1d   : > { %s545_s15 = scalar_lea.vmem %s544_s14, 8192  ;;  %p546_p12 = scmp.lt.s32.totalorder %s682_s26, %s544_s14 }
  0x1e   : > { %p541_p8 = pnand %p539_p6, %p525_p11  ;;  %p547_p0 = scmp.lt.s32.totalorder %s545_s15, %s538_s6 }
  0x20   : > { %p542_p10 = pneg %p541_p8  ;;  %p548_p1 = por %p547_p0, %p546_p12 }
  0x22   : > { %p549_p2 = pnand %p548_p1, %p542_p10 }
  0x24   : > { %552 = shalt.err (!%p549_p2)
}
  0x25   : > { %s606_s16 = smov 128   ;;  %s607_s19 = smov 8  }
  0x26   : > { %471 = dma.hbm_to_vmem [thread:$0]  (!%p678_p9), %s674_s24, 4096, %s682_s26, %s684_s28, %s606_s16, %s606_s16, %s607_s19  }
  0x27   : > { %p460_p11 = scmp.ge.s32.totalorder %s603_s11, 1  ;;  %p122_p13 = scmp.lt.s32.totalorder %s603_s11, 3 }
  0x29   : > { %p123_p3 = pnand %p460_p11, %p122_p13 }
  0x2a   : > { %s128_s20 = sand.u32 (!%p123_p3), 1, %s587_s7  }
  0x2b   : > { %126 = sbr.rel (%p123_p3) target bundleno = 133 (0x85), region = 24  ;;  %s461_s21 = sshll.u32 (!%p123_p3), %s128_s20, 8 }
  0x2c   : > { %s129_s22 = scalar_lea.sflag (!%p123_p3), [#allocation3], %s128_s20  ;;  %s715_s23 = scalar_lea.vmem (!%p123_p3), [#allocation2], %s461_s21 }
  0x32   : > { %578 = dma.done.wait (%p661_p7), %s129_s22, 4096  }
  0x33   : > { %580 = vsyncadd (%p661_p7), %s129_s22, 4294963200  ;;  %vm193_vm0 = vcmask 523264   ;;  %v161_v0 = vld [vmem:[%s715_s23] sm:$0xff]  ;;  %v162_v1 = vld [vmem:[%s715_s23 + $0x8] sm:$0xff]  ;;  %p154_p7 = scmp.lt.s32.totalorder %s595_s9, 1  ;;  %vm263_vm1 = vcmask 516096  }
  0x34   : > { %v163_v2 = vld [vmem:[%s715_s23 + $0x10] sm:$0xff]  ;;  %v194_v3 = vsel %vm193_vm0, %v161_v0, 0.0  ;;  %v195_v4 = vsel %vm193_vm0, %v162_v1, 0.0  ;;  %v164_v6 = vld [vmem:[%s715_s23 + $0x18] sm:$0xff]  ;;  %v165_v9 = vld [vmem:[%s715_s23 + $0x20] sm:$0xff]  ;;  %v265_v27 = vmul.f32 %v161_v0, %v161_v0  ;;  %v266_v28 = vmul.f32 %v162_v1, %v162_v1 }
  0x35   : > { %v197_v5 = vsel %vm193_vm0, %v163_v2, 0.0  ;;  %v196_v7 = vadd.f32 %v195_v4, %v194_v3  ;;  %v199_v8 = vsel %vm193_vm0, %v164_v6, 0.0  ;;  %v201_v11 = vsel %vm193_vm0, %v165_v9, 0.0  ;;  %v166_v12 = vld [vmem:[%s715_s23 + $0x28] sm:$0xff]  ;;  %v167_v15 = vld [vmem:[%s715_s23 + $0x30] sm:$0xff]  ;;  %v168_v18 = vld [vmem:[%s715_s23 + $0x38] sm:$0xff] }
  0x36   : > { %v203_v14 = vsel %vm193_vm0, %v166_v12, 0.0  ;;  %v205_v17 = vsel %vm193_vm0, %v167_v15, 0.0  ;;  %v207_v20 = vsel %vm193_vm0, %v168_v18, 0.0  ;;  %v169_v21 = vld [vmem:[%s715_s23 + $0x40] sm:$0xff]  ;;  %v170_v24 = vld [vmem:[%s715_s23 + $0x48] sm:$0xff]  ;;  %v267_v29 = vmul.f32 %v163_v2, %v163_v2  ;;  %v171_v30 = vld [vmem:[%s715_s23 + $0x50] sm:$0xff] }
  0x37   : > { %v198_v10 = vadd.f32 %v197_v5, %v196_v7  ;;  %v209_v23 = vsel %vm193_vm0, %v169_v21, 0.0  ;;  %v211_v26 = vsel %vm193_vm0, %v170_v24, 0.0  ;;  %v172_v32 = vld [vmem:[%s715_s23 + $0x58] sm:$0xff]  ;;  %v213_v33 = vsel %vm193_vm0, %v171_v30, 0.0  ;;  %v173_v41 = vld [vmem:[%s715_s23 + $0x60] sm:$0xff]  ;;  %v174_v47 = vld [vmem:[%s715_s23 + $0x68] sm:$0xff] }
  0x38   : > { %v268_v34 = vmul.f32 %v164_v6, %v164_v6  ;;  %v215_v36 = vsel %vm193_vm0, %v172_v32, 0.0  ;;  %v269_v37 = vmul.f32 %v165_v9, %v165_v9  ;;  %v297_v38 = vsel %vm193_vm0, %v265_v27, 0.0  ;;  %v175_v53 = vld [vmem:[%s715_s23 + $0x70] sm:$0xff]  ;;  %v176_v59 = vld [vmem:[%s715_s23 + $0x78] sm:$0xff]  ;;  %v177_v1 = vld [vmem:[%s715_s23 + $0x80] sm:$0xff]  ;;  %s855_s9 = smov (!%p154_p7, %s595_s9), 1 }
  0x39   : > { %v200_v13 = vadd.f32 %v199_v8, %v198_v10  ;;  %v298_v39 = vsel %vm193_vm0, %v266_v28, 0.0  ;;  %v300_v40 = vsel %vm193_vm0, %v267_v29, 0.0  ;;  %v217_v44 = vsel %vm193_vm0, %v173_v41, 0.0  ;;  %v178_v7 = vld [vmem:[%s715_s23 + $0x88] sm:$0xff]  ;;  %s462_s17 = sshll.u32 %s855_s9, 1 }
  0x3a   : > { %v299_v43 = vadd.f32 %v298_v39, %v297_v38  ;;  %v270_v45 = vmul.f32 %v166_v12, %v166_v12  ;;  %v302_v46 = vsel %vm193_vm0, %v268_v34, 0.0  ;;  %v219_v50 = vsel %vm193_vm0, %v174_v47, 0.0  ;;  %s160_s26 = scalar_lea.vmem %s843_s1, %s462_s17 }
  0x3b   : > { %v202_v16 = vadd.f32 %v201_v11, %v200_v13  ;;  %v271_v51 = vmul.f32 %v167_v15, %v167_v15  ;;  %v304_v52 = vsel %vm193_vm0, %v269_v37, 0.0  ;;  %v221_v56 = vsel %vm193_vm0, %v175_v53, 0.0  ;;  %v179_v13 = vld [vmem:[%s715_s23 + $0x90] sm:$0xff] }
  0x3c   : > { %v301_v49 = vadd.f32 %v300_v40, %v299_v43  ;;  %v272_v57 = vmul.f32 %v168_v18, %v168_v18  ;;  %v306_v58 = vsel %vm193_vm0, %v270_v45, 0.0  ;;  %v223_v62 = vsel %vm193_vm0, %v176_v59, 0.0  ;;  %v183_v37 = vld [vmem:[%s715_s23 + $0xb0] sm:$0xff]  ;;  %v184_v43 = vld [vmem:[%s715_s23 + $0xb8] sm:$0xff] }
  0x3d   : > { %v204_v19 = vadd.f32 %v203_v14, %v202_v16  ;;  %v273_v63 = vmul.f32 %v169_v21, %v169_v21  ;;  %v308_v0 = vsel %vm193_vm0, %v271_v51, 0.0  ;;  %v225_v4 = vsel %vm193_vm0, %v177_v1, 0.0 }
  0x3e   : > { %v303_v55 = vadd.f32 %v302_v46, %v301_v49  ;;  %v274_v5 = vmul.f32 %v170_v24, %v170_v24  ;;  %v310_v6 = vsel %vm193_vm0, %v272_v57, 0.0  ;;  %v227_v10 = vsel %vm193_vm0, %v178_v7, 0.0  ;;  %v185_v49 = vld [vmem:[%s715_s23 + $0xc0] sm:$0xff] }
  0x3f   : > { %v206_v22 = vadd.f32 %v205_v17, %v204_v19  ;;  %v275_v11 = vmul.f32 %v171_v30, %v171_v30  ;;  %v312_v12 = vsel %vm193_vm0, %v273_v63, 0.0  ;;  %v229_v16 = vsel %vm193_vm0, %v179_v13, 0.0  ;;  %v180_v19 = vld [vmem:[%s715_s23 + $0x98] sm:$0xff] }
  0x40   : > { %v305_v61 = vadd.f32 %v304_v52, %v303_v55  ;;  %v276_v17 = vmul.f32 %v172_v32, %v172_v32  ;;  %v314_v18 = vsel %vm193_vm0, %v274_v5, 0.0  ;;  %v278_v29 = vmul.f32 %v174_v47, %v174_v47  ;;  %v186_v55 = vld [vmem:[%s715_s23 + $0xc8] sm:$0xff] }
  0x41   : > { %v208_v25 = vadd.f32 %v207_v20, %v206_v22  ;;  %v231_v22 = vsel %vm193_vm0, %v180_v19, 0.0  ;;  %v316_v24 = vsel %vm193_vm0, %v275_v11, 0.0  ;;  %v237_v40 = vsel %vm193_vm0, %v183_v37, 0.0 }
  0x42   : > { %v307_v3 = vadd.f32 %v306_v58, %v305_v61  ;;  %v318_v30 = vsel %vm193_vm0, %v276_v17, 0.0  ;;  %v239_v46 = vsel %vm193_vm0, %v184_v43, 0.0  ;;  %v281_v47 = vmul.f32 %v177_v1, %v177_v1  ;;  %v187_v61 = vld [vmem:[%s715_s23 + $0xd0] sm:$0xff] }
  0x43   : > { %v210_v31 = vadd.f32 %v209_v23, %v208_v25  ;;  %v277_v23 = vmul.f32 %v173_v41, %v173_v41  ;;  %v181_v25 = vld [vmem:[%s715_s23 + $0xa0] sm:$0xff]  ;;  %v280_v41 = vmul.f32 %v176_v59, %v176_v59  ;;  %v241_v52 = vsel %vm193_vm0, %v185_v49, 0.0 }
  0x44   : > { %v309_v9 = vadd.f32 %v308_v0, %v307_v3  ;;  %v233_v28 = vsel %vm193_vm0, %v181_v25, 0.0  ;;  %v243_v58 = vsel %vm193_vm0, %v186_v55, 0.0  ;;  %v283_v59 = vmul.f32 %v179_v13, %v179_v13  ;;  %v188_v3 = vld [vmem:[%s715_s23 + $0xd8] sm:$0xff] }
  0x45   : > { %v212_v35 = vadd.f32 %v211_v26, %v210_v31  ;;  %v182_v31 = vld [vmem:[%s715_s23 + $0xa8] sm:$0xff]  ;;  %v245_v0 = vsel %vm193_vm0, %v187_v61, 0.0  ;;  %v284_v1 = vmul.f32 %v180_v19, %v180_v19  ;;  %v287_v19 = vmul.f32 %v183_v37, %v183_v37 }
  0x46   : > { %v311_v15 = vadd.f32 %v310_v6, %v309_v9  ;;  %v235_v34 = vsel %vm193_vm0, %v182_v31, 0.0  ;;  %v247_v6 = vsel %vm193_vm0, %v188_v3, 0.0  ;;  %v189_v9 = vld [vmem:[%s715_s23 + $0xe0] sm:$0xff]  ;;  %v286_v13 = vmul.f32 %v182_v31, %v182_v31 }
  0x47   : > { %v214_v42 = vadd.f32 %v213_v33, %v212_v35  ;;  %v279_v35 = vmul.f32 %v175_v53, %v175_v53  ;;  %v282_v53 = vmul.f32 %v178_v7, %v178_v7  ;;  %v285_v7 = vmul.f32 %v181_v25, %v181_v25 }
  0x48   : > { %v313_v21 = vadd.f32 %v312_v12, %v311_v15  ;;  %v249_v12 = vsel %vm193_vm0, %v189_v9, 0.0  ;;  %v190_v15 = vld [vmem:[%s715_s23 + $0xe8] sm:$0xff]  ;;  %v288_v25 = vmul.f32 %v184_v43, %v184_v43  ;;  %v289_v31 = vmul.f32 %v185_v49, %v185_v49 }
  0x49   : > { %v216_v48 = vadd.f32 %v215_v36, %v214_v42  ;;  %v320_v36 = vsel %vm193_vm0, %v277_v23, 0.0  ;;  %v322_v42 = vsel %vm193_vm0, %v278_v29, 0.0  ;;  %v292_v43 = vmul.f32 %v188_v3, %v188_v3 }
  0x4a   : > { %v315_v27 = vadd.f32 %v314_v18, %v313_v21  ;;  %v251_v18 = vsel %vm193_vm0, %v190_v15, 0.0  ;;  %v191_v21 = vld [vmem:[%s715_s23 + $0xf0] sm:$0xff] }
  0x4b   : > { %v218_v54 = vadd.f32 %v217_v44, %v216_v48  ;;  %v324_v48 = vsel %vm193_vm0, %v279_v35, 0.0  ;;  %v290_v35 = vmul.f32 %v186_v55, %v186_v55  ;;  %v295_v55 = vmul.f32 %v191_v21, %v191_v21 }
  0x4c   : > { %v317_v33 = vadd.f32 %v316_v24, %v315_v27  ;;  %v253_v24 = vsel %vm193_vm0, %v191_v21, 0.0  ;;  %v192_v27 = vld [vmem:[%s715_s23 + $0xf8] sm:$0xff] }
  0x4d   : > { %v220_v60 = vadd.f32 %v219_v50, %v218_v54  ;;  %v326_v54 = vsel %vm193_vm0, %v280_v41, 0.0 }
  0x4e   : > { %v319_v39 = vadd.f32 %v318_v30, %v317_v33  ;;  %v255_v30 = vsel %vm193_vm0, %v192_v27, 0.0 }
  0x4f   : > { %v222_v2 = vadd.f32 %v221_v56, %v220_v60  ;;  %v328_v60 = vsel %vm193_vm0, %v281_v47, 0.0  ;;  %v293_v47 = vmul.f32 %v189_v9, %v189_v9 }
  0x50   : > { %v321_v45 = vadd.f32 %v320_v36, %v319_v39  ;;  %v342_v36 = vsel %vm193_vm0, %v288_v25, 0.0  ;;  %v291_v39 = vmul.f32 %v187_v61, %v187_v61 }
  0x51   : > { %v224_v8 = vadd.f32 %v223_v62, %v222_v2  ;;  %v330_v2 = vsel %vm193_vm0, %v282_v53, 0.0 }
  0x52   : > { %v323_v51 = vadd.f32 %v322_v42, %v321_v45 }
  0x53   : > { %v226_v14 = vadd.f32 %v225_v4, %v224_v8  ;;  %v332_v8 = vsel %vm193_vm0, %v283_v59, 0.0  ;;  %v296_v59 = vmul.f32 %v192_v27, %v192_v27 }
  0x54   : > { %v325_v57 = vadd.f32 %v324_v48, %v323_v51  ;;  %v348_v48 = vsel %vm193_vm0, %v291_v39, 0.0  ;;  %v294_v51 = vmul.f32 %v190_v15, %v190_v15 }
  0x55   : > { %v228_v20 = vadd.f32 %v227_v10, %v226_v14  ;;  %v334_v14 = vsel %vm193_vm0, %v284_v1, 0.0  ;;  %v358_v1 = vsel %vm193_vm0, %v296_v59, 0.0 }
  0x56   : > { %v327_v63 = vadd.f32 %v326_v54, %v325_v57 }
  0x57   : > { %v230_v26 = vadd.f32 %v229_v16, %v228_v20  ;;  %v336_v20 = vsel %vm193_vm0, %v285_v7, 0.0 }
  0x58   : > { %v329_v5 = vadd.f32 %v328_v60, %v327_v63  ;;  %v354_v60 = vsel %vm193_vm0, %v294_v51, 0.0  ;;  %v356_v63 = vsel %vm193_vm0, %v295_v55, 0.0 }
  0x59   : > { %v232_v32 = vadd.f32 %v231_v22, %v230_v26  ;;  %v338_v26 = vsel %vm193_vm0, %v286_v13, 0.0 }
  0x5a   : > { %v331_v11 = vadd.f32 %v330_v2, %v329_v5 }
  0x5b   : > { %v234_v38 = vadd.f32 %v233_v28, %v232_v32  ;;  %v340_v32 = vsel %vm193_vm0, %v287_v19, 0.0 }
  0x5c   : > { %v333_v17 = vadd.f32 %v332_v8, %v331_v11 }
  0x5d   : > { %v236_v44 = vadd.f32 %v235_v34, %v234_v38 }
  0x5e   : > { %v335_v23 = vadd.f32 %v334_v14, %v333_v17 }
  0x5f   : > { %v238_v50 = vadd.f32 %v237_v40, %v236_v44  ;;  %v344_v40 = vsel %vm193_vm0, %v289_v31, 0.0  ;;  %v346_v44 = vsel %vm193_vm0, %v290_v35, 0.0 }
  0x60   : > { %v337_v29 = vadd.f32 %v336_v20, %v335_v23 }
  0x61   : > { %v240_v56 = vadd.f32 %v239_v46, %v238_v50 }
  0x62   : > { %v339_v34 = vadd.f32 %v338_v26, %v337_v29 }
  0x63   : > { %v242_v62 = vadd.f32 %v241_v52, %v240_v56  ;;  %v350_v52 = vsel %vm193_vm0, %v292_v43, 0.0  ;;  %v352_v56 = vsel %vm193_vm0, %v293_v47, 0.0 }
  0x64   : > { %v341_v38 = vadd.f32 %v340_v32, %v339_v34 }
  0x65   : > { %v244_v4 = vadd.f32 %v243_v58, %v242_v62 }
  0x66   : > { %v343_v42 = vadd.f32 %v342_v36, %v341_v38 }
  0x67   : > { %v246_v10 = vadd.f32 %v245_v0, %v244_v4 }
  0x68   : > { %v345_v46 = vadd.f32 %v344_v40, %v343_v42 }
  0x69   : > { %v248_v16 = vadd.f32 %v247_v6, %v246_v10 }
  0x6a   : > { %v347_v50 = vadd.f32 %v346_v44, %v345_v46 }
  0x6b   : > { %v250_v22 = vadd.f32 %v249_v12, %v248_v16 }
  0x6c   : > { %v349_v54 = vadd.f32 %v348_v48, %v347_v50 }
  0x6d   : > { %v252_v28 = vadd.f32 %v251_v18, %v250_v22 }
  0x6e   : > { %v351_v58 = vadd.f32 %v350_v52, %v349_v54 }
  0x6f   : > { %v254_v33 = vadd.f32 %v253_v24, %v252_v28 }
  0x70   : > { %v353_v62 = vadd.f32 %v352_v56, %v351_v58 }
  0x71   : > { %v256_v37 = vadd.f32 %v255_v30, %v254_v33 }
  0x72   : > { %v355_v0 = vadd.f32 %v354_v60, %v353_v62 }
  0x73   : > { %v257_v41 = vrot.slane %v256_v37, 4 }
  0x74   : > { %v357_v2 = vadd.f32 %v356_v63, %v355_v0 }
  0x75   : > { %v258_v45 = vadd.f32 %v257_v41, %v256_v37 }
  0x76   : > { %v359_v3 = vadd.f32 %v358_v1, %v357_v2 }
  0x77   : > { %v259_v49 = vrot.slane %v258_v45, 2 }
  0x78   : > { %v360_v4 = vrot.slane %v359_v3, 4 }
  0x79   : > { %v260_v53 = vadd.f32 %v259_v49, %v258_v45 }
  0x7a   : > { %v361_v5 = vadd.f32 %v360_v4, %v359_v3 }
  0x7b   : > { %v261_v57 = vrot.slane %v260_v53, 1 }
  0x7c   : > { %v362_v6 = vrot.slane %v361_v5, 2 }
  0x7d   : > { %v262_v61 = vadd.f32 %v261_v57, %v260_v53 }
  0x7e   : > { %v363_v7 = vadd.f32 %v362_v6, %v361_v5 }
  0x7f   : > { %264 = vst.msk [vmem:[%s160_s26] sm:$0x1] %vm263_vm1, %v262_v61 }
  0x80   : > { %v364_v8 = vrot.slane %v363_v7, 1 }
  0x82   : > { %v365_v9 = vadd.f32 %v364_v8, %v363_v7 }
  0x84   : > { %366 = vst.msk [vmem:[%s160_s26 + $0x1] sm:$0x1] %vm263_vm1, %v365_v9 }
  0x85 PF: > { %s14_s11 = sadd.s32 1, %s603_s11   ;;  %s847_s6 = smov %s587_s7 }
  0x86   : > { %p11_p9 = scmp.ge.s32.totalorder %s14_s11, 4   ;;  %s848_s7 = smov %s591_s8 }
  0x87   : > { %s849_s8 = smov %s667_s18  ;;  %s850_s9 = smov %s599_s10 }
  0x88   : > { %s851_s10 = smov %s853_s13  ;;  %13 = sbr.rel (!%p11_p9) target bundleno = 4 (0x4), region = 64 }
  0x8f   :  { %392 = vsyncpa [#allocation3], 1 }
  0x90   :  { %394 = vsyncpa [#allocation3 + $0x1], 1 }

// kernel: residual_block2d_nchw.5
= control target key start
LH: loop header
LB: loop body
LE: loop exit
PB: predicated region body
PF: predicated region fallthrough
CT: control target
= control target key end

     0   :  { %11 = vsyncpa [#allocation4], 0  ;;  %s5812_s0 = inlined_call_operand.vmem [shape: bf16[2,16,16,64], index: 0, kind: input, shape index: {}]   ;;  %s5813_s1 = inlined_call_operand.vmem [shape: bf16[2,1,2,16,64], index: 1, kind: input, shape index: {}]   ;;  %s5814_s2 = inlined_call_operand.vmem [shape: f32[2,2,64], index: 2, kind: input, shape index: {}]   ;;  %s5815_s3 = inlined_call_operand.vmem [shape: bf16[3,192,64], index: 3, kind: input, shape index: {}]   ;;  %s5816_s4 = inlined_call_operand.vmem [shape: f32[2,1,64], index: 4, kind: input, shape index: {}]   ;;  %s5817_s5 = inlined_call_operand.vmem [shape: f32[2,16,16,64], index: 5, kind: input, shape index: {}]   ;;  %s5818_s6 = inlined_call_operand.hbm [shape: f32[2,16,16,64], index: 6, kind: output, shape index: {}]  }
   0x1   :  { %13 = vsyncpa [#allocation4 + $0x1], 0  ;;  %s4110_s21 = smov 0   ;;  %s4112_s22 = smov 0  }
   0x2   :  { %s4114_s23 = smov 0   ;;  %s4116_s24 = smov 0  }
   0x3   :  { %s4118_s25 = smov 0   ;;  %s4120_s26 = smov 0  }
   0x4 LB: > { %s3282_s27 = sadd.s32 4294967295, %s4067_s26   ;;  %s3283_s28 = sadd.s32 4294967294, %s4067_s26   ;;  %s4067_s26 = sphi %s4120_s26, %s19_s26   ;;  %s4063_s25 = sphi %s4118_s25, %s5883_s25   ;;  %s4059_s24 = sphi %s4116_s24, %s5882_s24   ;;  %s4055_s23 = sphi %s4114_s23, %s5881_s23   ;;  %s4051_s22 = sphi %s4112_s22, %s5880_s22   ;;  %s4047_s21 = sphi %s4110_s21, %s5879_s21  }
   0x5   : > { %s31_s29 = sadd.s32 1, %s4063_s25  ;;  %s197_s30 = sadd.s32 1, %s4055_s23 }
   0x6   : > { %p33_p0 = scmp.ge.s32.totalorder %s31_s29, 2  ;;  %p207_p1 = scmp.ne.s32.totalorder %s4055_s23, %s4051_s22 }
   0x7   : > { %p208_p2 = scmp.eq.s32.totalorder %s3282_s27, 1  ;;  %p213_p3 = scmp.ne.s32.totalorder %s4051_s22, %s4047_s21 }
   0x8   : > { %s5885_s29 = smov (%p33_p0, %s31_s29), 0  ;;  %p214_p5 = scmp.eq.s32.totalorder %s3283_s28, 1 }
   0x9   : > { %p4150_p4 = por %p208_p2, %p207_p1  ;;  %s192_s8 = ssub.s32 %s4063_s25, %s5885_s29 }
   0xa   : > { %p3286_p6 = scmp.ge.s32.totalorder %s4067_s26, 1  ;;  %p195_p7 = scmp.eq.s32.totalorder %s192_s8, 0 }
   0xb   : > { %p4157_p8 = por %p214_p5, %p213_p3  ;;  %p288_p9 = scmp.lt.s32.totalorder %s4067_s26, 3 }
   0xc   : > { %s4163_s10 = scalar_select %p195_p7, %s4055_s23, %s197_s30  }
   0xd   : > { %p289_p10 = pnand %p3286_p6, %p288_p9 }
   0xf   : > { %292 = sbr.rel (%p289_p10) target bundleno = 671 (0x29f), region = 44 }
  0x16   : > { %p350_p11 = scmp.lt.s32.totalorder %s4059_s24, 1  ;;  %v433_v0 = vlaneseq  ;;  %v3775_v1 = vld [vmem:[%s5815_s3 + $0x60] sm:$0xff]   ;;  %vm390_vm0 = vcmask 523264   ;;  %v5819_v3 = vmov 0   ;;  %v3776_v4 = vld [vmem:[%s5815_s3 + $0x68] sm:$0xff]   ;;  %v4070_v7 = vmov 0.0  }
  0x17   : > { %3561 = vmatprep.subr.bf16.mxu1 %v5819_v3  ;;  %2260 = vmatprep.subr.bf16.mxu0 %v5819_v3  ;;  %400 = vst.msk [vmem:[#allocation2 + $0x120] sm:$0xff] %vm390_vm0, %v4070_v7  ;;  %391 = vst.msk [vmem:[#allocation2] sm:$0xff] %vm390_vm0, %v4070_v7  ;;  %v3777_v17 = vld [vmem:[%s5815_s3 + $0x70] sm:$0xff]   ;;  %v3778_v35 = vld [vmem:[%s5815_s3 + $0x78] sm:$0xff]   ;;  %vm989_vm1 = vcmask 1046528   ;;  %vm1224_vm2 = vcmask 1045504  }
  0x18   : > { %s4170_s13 = scalar_select %p350_p11, %s4059_s24, 1  ;;  %v434_v2 = vshrl.u32 %v433_v0, 7  ;;  %3573 = vmatpush1.bf16.msra.mxu1 %v3775_v1  ;;  %2261 = vmatpush1.bf16.msra.mxu0 %v3775_v1  ;;  %392 = vst.msk [vmem:[#allocation2 + $0x20] sm:$0xff] %vm390_vm0, %v4070_v7  ;;  %393 = vst.msk [vmem:[#allocation2 + $0x40] sm:$0xff] %vm390_vm0, %v4070_v7  ;;  %v3779_v46 = vld [vmem:[%s5815_s3 + $0x80] sm:$0xff]   ;;  %v3780_v0 = vld [vmem:[%s5815_s3 + $0x88] sm:$0xff]  }
  0x19   : > { %3562 = vmatprep.subr.bf16.mxu1 %v5819_v3  ;;  %2262 = vmatprep.subr.bf16.mxu0 %v5819_v3  ;;  %394 = vst.msk [vmem:[#allocation2 + $0x60] sm:$0xff] %vm390_vm0, %v4070_v7  ;;  %395 = vst.msk [vmem:[#allocation2 + $0x80] sm:$0xff] %vm390_vm0, %v4070_v7  ;;  %vm1495_vm3 = vsmask.f32 4352  ;;  %s346_s14 = sand.u32 1, %s4051_s22   ;;  %s4072_s11 = smov [#allocation3]  }
  0x1a   : > { %s3469_s16 = sshll.u32 %s4170_s13, 7  ;;  %s3292_s17 = sshll.u32 %s4170_s13, 1  ;;  %v435_v5 = vsub.s32 0, %v434_v2  ;;  %v441_v6 = vsub.s32 1, %v434_v2  ;;  %396 = vst.msk [vmem:[#allocation2 + $0xa0] sm:$0xff] %vm390_vm0, %v4070_v7  ;;  %397 = vst.msk [vmem:[#allocation2 + $0xc0] sm:$0xff] %vm390_vm0, %v4070_v7 }
  0x1b   : > { %398 = vst.msk [vmem:[#allocation2 + $0xe0] sm:$0xff] %vm390_vm0, %v4070_v7  ;;  %399 = vst.msk [vmem:[#allocation2 + $0x100] sm:$0xff] %vm390_vm0, %v4070_v7  ;;  %s4222_s20 = scalar_lea.vmem %s5812_s0, %s3469_s16  ;;  %s372_s30 = scalar_lea.vmem %s5814_s2, %s3292_s17 }
  0x1c   : > { %401 = vst.msk [vmem:[#allocation2 + $0x140] sm:$0xff] %vm390_vm0, %v4070_v7  ;;  %402 = vst.msk [vmem:[#allocation2 + $0x160] sm:$0xff] %vm390_vm0, %v4070_v7  ;;  %v389_v8 = vld [vmem:[%s372_s30] sm:$0x3]  ;;  %v3554_v15 = vld [vmem:[%s4222_s20 + $0x48] sm:$0xff]   ;;  %3574 = vmatpush1.bf16.msra.mxu1 %v3776_v4  ;;  %2263 = vmatpush1.bf16.msra.mxu0 %v3776_v4  ;;  %s4071_s17 = smov 64   ;;  %s375_s12 = scalar_lea.vmem %s5816_s4, %s4170_s13 }
  0x1d   : > { %403 = vst.msk [vmem:[#allocation2 + $0x180] sm:$0xff] %vm390_vm0, %v4070_v7  ;;  %404 = vst.msk [vmem:[#allocation2 + $0x1a0] sm:$0xff] %vm390_vm0, %v4070_v7  ;;  %v3553_v9 = vld [vmem:[%s4222_s20 + $0x40] sm:$0xff]   ;;  %v4231_v11 = vrot.slane %v389_v8, %v435_v5  ;;  %v4233_v12 = vrot.slane %v389_v8, %v441_v6  ;;  %v3546_v16 = vld [vmem:[%s4222_s20 + $0x8] sm:$0xff]   ;;  %v3519_v20 = vunpack.c.l.bf16 %v3554_v15  ;;  %v3520_v21 = vunpack.c.h.bf16 %v3554_v15  ;;  %3563 = vmatprep.subr.bf16.mxu1 %v5819_v3  ;;  %s3470_s27 = sshll.u32 %s4170_s13, 4  ;;  %s3287_s19 = sshll.u32 %s346_s14, 8 }
  0x1e   : > { %405 = vst.msk [vmem:[#allocation2 + $0x1c0] sm:$0xff] %vm390_vm0, %v4070_v7  ;;  %406 = vst.msk [vmem:[#allocation2 + $0x1e0] sm:$0xff] %vm390_vm0, %v4070_v7  ;;  %v3482_v10 = vld [vmem:[%s4222_s20] sm:$0xff]   ;;  %v3515_v13 = vunpack.c.l.bf16 %v3553_v9  ;;  %v3516_v14 = vunpack.c.h.bf16 %v3553_v9  ;;  %2264 = vmatprep.subr.bf16.mxu0 %v5819_v3  ;;  %v3487_v24 = vunpack.c.l.bf16 %v3546_v16  ;;  %v3488_v25 = vunpack.c.h.bf16 %v3546_v16  ;;  %v3555_v34 = vld [vmem:[%s4222_s20 + $0x50] sm:$0xff]   ;;  %s4555_s8 = scalar_lea.vmem %s5813_s1, %s3470_s27  ;;  %s3472_s27 = sshll.u32 %s4059_s24, 12 }
  0x1f   : > { %407 = vst.msk [vmem:[#allocation2 + $0x200] sm:$0xff] %vm390_vm0, %v4070_v7  ;;  %408 = vst.msk [vmem:[#allocation2 + $0x220] sm:$0xff] %vm390_vm0, %v4070_v7  ;;  %v3483_v18 = vunpack.c.l.bf16 %v3482_v10  ;;  %v3484_v19 = vunpack.c.h.bf16 %v3482_v10  ;;  %v578_v28 = vmul.f32 %v3519_v20, %v4231_v11  ;;  %v579_v29 = vmul.f32 %v3520_v21, %v4231_v11  ;;  %v3547_v40 = vld [vmem:[%s4222_s20 + $0x10] sm:$0xff]   ;;  %v3556_v41 = vld [vmem:[%s4222_s20 + $0x58] sm:$0xff]   ;;  %s5766_s24 = scalar_lea.sflag [#allocation4], %s346_s14 }
  0x20   : > { %409 = vst.msk [vmem:[#allocation2 + $0x18] sm:$0xff] %vm390_vm0, %v4070_v7  ;;  %410 = vst.msk [vmem:[#allocation2 + $0x38] sm:$0xff] %vm390_vm0, %v4070_v7  ;;  %v576_v22 = vmul.f32 %v3515_v13, %v4231_v11  ;;  %v577_v23 = vmul.f32 %v3516_v14, %v4231_v11  ;;  %v562_v32 = vmul.f32 %v3487_v24, %v4231_v11  ;;  %3575 = vmatpush1.bf16.msra.mxu1 %v3777_v17  ;;  %v3548_v63 = vld [vmem:[%s4222_s20 + $0x18] sm:$0xff]   ;;  %v3557_v5 = vld [vmem:[%s4222_s20 + $0x60] sm:$0xff]  }
  0x21   : > { %411 = vst.msk [vmem:[#allocation2 + $0x58] sm:$0xff] %vm390_vm0, %v4070_v7  ;;  %412 = vst.msk [vmem:[#allocation2 + $0x78] sm:$0xff] %vm390_vm0, %v4070_v7  ;;  %v560_v26 = vmul.f32 %v3483_v18, %v4231_v11  ;;  %v561_v27 = vmul.f32 %v3484_v19, %v4231_v11  ;;  %v563_v33 = vmul.f32 %v3488_v25, %v4231_v11  ;;  %2265 = vmatpush1.bf16.msra.mxu0 %v3777_v17  ;;  %v4317_v9 = vld [vmem:[%s4222_s20 + $0x20] sm:$0xff]   ;;  %v3781_v15 = vld [vmem:[%s5815_s3 + $0x90] sm:$0xff]  }
  0x22   : > { %413 = vst.msk [vmem:[#allocation2 + $0x98] sm:$0xff] %vm390_vm0, %v4070_v7  ;;  %414 = vst.msk [vmem:[#allocation2 + $0xb8] sm:$0xff] %vm390_vm0, %v4070_v7  ;;  %v4249_v30 = vadd.f32 %v576_v22, %v4233_v12  ;;  %v4252_v31 = vadd.f32 %v577_v23, %v4233_v12  ;;  %v4267_v38 = vadd.f32 %v578_v28, %v4233_v12  ;;  %3564 = vmatprep.subr.bf16.mxu1 %v5819_v3 }
  0x23   : > { %415 = vst.msk [vmem:[#allocation2 + $0xd8] sm:$0xff] %vm390_vm0, %v4070_v7  ;;  %416 = vst.msk [vmem:[#allocation2 + $0xf8] sm:$0xff] %vm390_vm0, %v4070_v7  ;;  %v4261_v36 = vadd.f32 %v560_v26, %v4233_v12  ;;  %v4264_v37 = vadd.f32 %v561_v27, %v4233_v12  ;;  %v4270_v39 = vadd.f32 %v579_v29, %v4233_v12  ;;  %2266 = vmatprep.subr.bf16.mxu0 %v5819_v3 }
  0x24   : > { %417 = vst.msk [vmem:[#allocation2 + $0x118] sm:$0xff] %vm390_vm0, %v4070_v7  ;;  %418 = vst.msk [vmem:[#allocation2 + $0x138] sm:$0xff] %vm390_vm0, %v4070_v7  ;;  %v3315_v42 = vmul.f32 -1.442695, %v4249_v30  ;;  %v3316_v43 = vmul.f32 -1.442695, %v4252_v31  ;;  %v4277_v44 = vadd.f32 %v562_v32, %v4233_v12  ;;  %v4280_v45 = vadd.f32 %v563_v33, %v4233_v12  ;;  %3576 = vmatpush1.bf16.msra.mxu1 %v3778_v35 }
  0x25   : > { %419 = vst.msk [vmem:[#allocation2 + $0x158] sm:$0xff] %vm390_vm0, %v4070_v7  ;;  %420 = vst.msk [vmem:[#allocation2 + $0x178] sm:$0xff] %vm390_vm0, %v4070_v7  ;;  %v3299_v47 = vmul.f32 -1.442695, %v4261_v36  ;;  %v3300_v48 = vmul.f32 -1.442695, %v4264_v37  ;;  %v3523_v50 = vunpack.c.l.bf16 %v3555_v34  ;;  %v3524_v54 = vunpack.c.h.bf16 %v3555_v34  ;;  %2267 = vmatpush1.bf16.msra.mxu0 %v3778_v35  ;;  %3565 = vmatprep.subr.bf16.mxu1 %v5819_v3 }
  0x26   : > { %421 = vst.msk [vmem:[#allocation2 + $0x198] sm:$0xff] %vm390_vm0, %v4070_v7  ;;  %422 = vst.msk [vmem:[#allocation2 + $0x1b8] sm:$0xff] %vm390_vm0, %v4070_v7  ;;  %v3317_v49 = vmul.f32 -1.442695, %v4267_v38  ;;  %3811 = vpow2.f32 %v3315_v42  ;;  %v3318_v51 = vmul.f32 -1.442695, %v4270_v39  ;;  %v3491_v56 = vunpack.c.l.bf16 %v3547_v40  ;;  %2268 = vmatprep.subr.bf16.mxu0 %v5819_v3 }
  0x27   : > { %423 = vst.msk [vmem:[#allocation2 + $0x1d8] sm:$0xff] %vm390_vm0, %v4070_v7  ;;  %424 = vst.msk [vmem:[#allocation2 + $0x1f8] sm:$0xff] %vm390_vm0, %v4070_v7  ;;  %v3301_v52 = vmul.f32 -1.442695, %v4277_v44  ;;  %v3302_v53 = vmul.f32 -1.442695, %v4280_v45  ;;  %3813 = vpow2.f32 %v3316_v43  ;;  %v580_v55 = vmul.f32 %v3523_v50, %v4231_v11 }
  0x28   : > { %425 = vst.msk [vmem:[#allocation2 + $0x218] sm:$0xff] %vm390_vm0, %v4070_v7  ;;  %426 = vst.msk [vmem:[#allocation2 + $0x238] sm:$0xff] %vm390_vm0, %v4070_v7  ;;  %3815 = vpow2.f32 %v3299_v47  ;;  %v3492_v57 = vunpack.c.h.bf16 %v3547_v40  ;;  %v3527_v58 = vunpack.c.l.bf16 %v3556_v41  ;;  %v3528_v59 = vunpack.c.h.bf16 %v3556_v41  ;;  %3577 = vmatpush1.bf16.msra.mxu1 %v3779_v46  ;;  %v3782_v43 = vld [vmem:[%s5815_s3 + $0x98] sm:$0xff]  }
  0x29   : > { %3817 = vpow2.f32 %v3300_v48  ;;  %v581_v60 = vmul.f32 %v3524_v54, %v4231_v11  ;;  %v4298_v61 = vadd.f32 %v580_v55, %v4233_v12  ;;  %v564_v62 = vmul.f32 %v3491_v56, %v4231_v11  ;;  %2269 = vmatpush1.bf16.msra.mxu0 %v3779_v46  ;;  %3566 = vmatprep.subr.bf16.mxu1 %v5819_v3 }
  0x2a   : > { %3819 = vpow2.f32 %v3317_v49  ;;  %v565_v1 = vmul.f32 %v3492_v57, %v4231_v11  ;;  %v582_v2 = vmul.f32 %v3527_v58, %v4231_v11  ;;  %v583_v4 = vmul.f32 %v3528_v59, %v4231_v11  ;;  %2270 = vmatprep.subr.bf16.mxu0 %v5819_v3  ;;  %v3558_v57 = vld [vmem:[%s4222_s20 + $0x68] sm:$0xff]  }
  0x2b   : > { %3821 = vpow2.f32 %v3318_v51  ;;  %v4310_v6 = vadd.f32 %v581_v60, %v4233_v12  ;;  %v3319_v7 = vmul.f32 -1.442695, %v4298_v61  ;;  %v4314_v8 = vadd.f32 %v564_v62, %v4233_v12 }
  0x2c   : > { %3823 = vpow2.f32 %v3301_v52  ;;  %v4321_v10 = vadd.f32 %v565_v1, %v4233_v12  ;;  %v4324_v13 = vadd.f32 %v582_v2, %v4233_v12  ;;  %v4327_v14 = vadd.f32 %v583_v4, %v4233_v12  ;;  %3578 = vmatpush1.bf16.msra.mxu1 %v3780_v0 }
  0x2d   : > { %3825 = vpow2.f32 %v3302_v53  ;;  %v3320_v16 = vmul.f32 -1.442695, %v4310_v6  ;;  %v3303_v17 = vmul.f32 -1.442695, %v4314_v8  ;;  %v3495_v18 = vunpack.c.l.bf16 %v3548_v63  ;;  %2271 = vmatpush1.bf16.msra.mxu0 %v3780_v0  ;;  %3567 = vmatprep.subr.bf16.mxu1 %v5819_v3 }
  0x2e   : > { %3827 = vpow2.f32 %v3319_v7  ;;  %v3304_v19 = vmul.f32 -1.442695, %v4321_v10  ;;  %v3321_v20 = vmul.f32 -1.442695, %v4324_v13  ;;  %v4338_v21 = vmul.f32 -1.442695, %v4327_v14  ;;  %2272 = vmatprep.subr.bf16.mxu0 %v5819_v3 }
  0x2f   : > { %3829 = vpow2.f32 %v3320_v16  ;;  %v566_v22 = vmul.f32 %v3495_v18, %v4231_v11  ;;  %v3496_v23 = vunpack.c.h.bf16 %v3548_v63  ;;  %v3531_v24 = vunpack.c.l.bf16 %v3557_v5 }
  0x30   : > { %v3812_v25 = vpop.eup %3811  ;;  %3831 = vpow2.f32 %v3303_v17  ;;  %v3532_v26 = vunpack.c.h.bf16 %v3557_v5  ;;  %v3499_v27 = vunpack.c.l.bf16 %v4317_v9  ;;  %v3500_v28 = vunpack.c.h.bf16 %v4317_v9  ;;  %3579 = vmatpush1.bf16.msra.mxu1 %v3781_v15 }
  0x31   : > { %v3814_v29 = vpop.eup %3813  ;;  %v736_v32 = vadd.f32 1.0, %v3812_v25  ;;  %3833 = vpow2.f32 %v3304_v19  ;;  %v4346_v33 = vadd.f32 %v566_v22, %v4233_v12  ;;  %v567_v34 = vmul.f32 %v3496_v23, %v4231_v11  ;;  %2273 = vmatpush1.bf16.msra.mxu0 %v3781_v15  ;;  %3568 = vmatprep.subr.bf16.mxu1 %v5819_v3  ;;  %v3550_v15 = vld [vmem:[%s4222_s20 + $0x28] sm:$0xff]  }
  0x32   : > { %v3816_v35 = vpop.eup %3815  ;;  %v737_v40 = vadd.f32 1.0, %v3814_v29  ;;  %3835 = vpow2.f32 %v3321_v20  ;;  %v584_v41 = vmul.f32 %v3531_v24, %v4231_v11  ;;  %v585_v42 = vmul.f32 %v3532_v26, %v4231_v11  ;;  %2274 = vmatprep.subr.bf16.mxu0 %v5819_v3 }
  0x33   : > { %v3818_v46 = vpop.eup %3817  ;;  %3837 = vrcp.f32 %v736_v32  ;;  %v720_v47 = vadd.f32 1.0, %v3816_v35  ;;  %v4355_v48 = vmul.f32 -1.442695, %v4346_v33  ;;  %v4358_v49 = vadd.f32 %v567_v34, %v4233_v12 }
  0x34   : > { %v3820_v50 = vpop.eup %3819  ;;  %3839 = vrcp.f32 %v737_v40  ;;  %v721_v51 = vadd.f32 1.0, %v3818_v46  ;;  %v4362_v52 = vadd.f32 %v584_v41, %v4233_v12  ;;  %v4366_v55 = vadd.f32 %v585_v42, %v4233_v12  ;;  %3580 = vmatpush1.bf16.msra.mxu1 %v3782_v43  ;;  %v3559_v46 = vld [vmem:[%s4222_s20 + $0x70] sm:$0xff]  }
  0x35   : > { %v3822_v53 = vpop.eup %3821  ;;  %3841 = vrcp.f32 %v720_v47  ;;  %v738_v54 = vadd.f32 1.0, %v3820_v50  ;;  %v568_v56 = vmul.f32 %v3499_v27, %v4231_v11  ;;  %v4371_v60 = vmul.f32 -1.442695, %v4358_v49  ;;  %2275 = vmatpush1.bf16.msra.mxu0 %v3782_v43  ;;  %3569 = vmatprep.subr.bf16.mxu1 %v5819_v3 }
  0x36   : > { %v3824_v58 = vpop.eup %3823  ;;  %3843 = vrcp.f32 %v721_v51  ;;  %v739_v59 = vadd.f32 1.0, %v3822_v53  ;;  %v4374_v62 = vmul.f32 -1.442695, %v4362_v52  ;;  %v569_v2 = vmul.f32 %v3500_v28, %v4231_v11  ;;  %2276 = vmatprep.subr.bf16.mxu0 %v5819_v3 }
  0x37   : > { %v3826_v63 = vpop.eup %3825  ;;  %3845 = vrcp.f32 %v738_v54  ;;  %v722_v0 = vadd.f32 1.0, %v3824_v58  ;;  %v4377_v1 = vadd.f32 %v568_v56, %v4233_v12  ;;  %v3535_v7 = vunpack.c.l.bf16 %v3558_v57  ;;  %v4406_v54 = vld [vmem:[%s4222_s20 + $0x30] sm:$0xff]  }
  0x38   : > { %v3828_v4 = vpop.eup %3827  ;;  %3847 = vrcp.f32 %v739_v59  ;;  %v723_v5 = vadd.f32 1.0, %v3826_v63  ;;  %v3536_v9 = vunpack.c.h.bf16 %v3558_v57  ;;  %v4384_v18 = vmul.f32 -1.442695, %v4366_v55 }
  0x39   : > { %v3830_v16 = vpop.eup %3829  ;;  %3849 = vrcp.f32 %v722_v0  ;;  %v740_v17 = vadd.f32 1.0, %v3828_v4  ;;  %v4387_v19 = vadd.f32 %v569_v2, %v4233_v12  ;;  %v586_v23 = vmul.f32 %v3535_v7, %v4231_v11 }
  0x3a   : > { %v3832_v20 = vpop.eup %3831  ;;  %3851 = vrcp.f32 %v723_v5  ;;  %v741_v22 = vadd.f32 1.0, %v3830_v16  ;;  %v587_v24 = vmul.f32 %v3536_v9, %v4231_v11  ;;  %v3307_v27 = vmul.f32 -1.442695, %v4377_v1 }
  0x3b   : > { %v3834_v25 = vpop.eup %3833  ;;  %3853 = vrcp.f32 %v740_v17  ;;  %v724_v26 = vadd.f32 1.0, %v3832_v20  ;;  %v3503_v28 = vunpack.c.l.bf16 %v3550_v15  ;;  %v4393_v34 = vadd.f32 %v586_v23, %v4233_v12 }
  0x3c   : > { %v3836_v29 = vpop.eup %3835  ;;  %3855 = vrcp.f32 %v741_v22  ;;  %v725_v32 = vadd.f32 1.0, %v3834_v25  ;;  %v4396_v35 = vadd.f32 %v587_v24, %v4233_v12  ;;  %v3504_v43 = vunpack.c.h.bf16 %v3550_v15 }
  0x3d   : > { %v3838_v40 = vpop.eup %3837  ;;  %3857 = vrcp.f32 %v724_v26  ;;  %v742_v41 = vadd.f32 1.0, %v3836_v29  ;;  %v570_v42 = vmul.f32 %v3503_v28, %v4231_v11  ;;  %v3308_v51 = vmul.f32 -1.442695, %v4387_v19 }
  0x3e   : > { %v3840_v47 = vpop.eup %3839  ;;  %v832_v50 = vmul.f32 %v3838_v40, %v4249_v30  ;;  %3859 = vrcp.f32 %v725_v32  ;;  %v4403_v53 = vmul.f32 -1.442695, %v4393_v34  ;;  %v571_v59 = vmul.f32 %v3504_v43, %v4231_v11 }
  0x3f   : > { %v3842_v56 = vpop.eup %3841  ;;  %v833_v57 = vmul.f32 %v3840_v47, %v4252_v31  ;;  %3861 = vpow2.f32 %v4338_v21  ;;  %v4411_v58 = vadd.f32 %v570_v42, %v4233_v12  ;;  %v3539_v0 = vunpack.c.l.bf16 %v3559_v46 }
  0x40   : > { %v3844_v63 = vpop.eup %3843  ;;  %865 = vst.msk [vmem:[#allocation2 + $0x128] sm:$0xff] %vm390_vm0, %v832_v50  ;;  %v816_v30 = vmul.f32 %v3842_v56, %v4261_v36  ;;  %v3540_v2 = vunpack.c.h.bf16 %v3559_v46  ;;  %3863 = vrcp.f32 %v742_v41  ;;  %v3326_v21 = vmul.f32 -1.442695, %v4396_v35 }
  0x41   : > { %v3846_v4 = vpop.eup %3845  ;;  %866 = vst.msk [vmem:[#allocation2 + $0x130] sm:$0xff] %vm390_vm0, %v833_v57  ;;  %v817_v31 = vmul.f32 %v3844_v63, %v4264_v37  ;;  %v4420_v5 = vadd.f32 %v571_v59, %v4233_v12  ;;  %3865 = vpow2.f32 %v4355_v48  ;;  %v588_v36 = vmul.f32 %v3539_v0, %v4231_v11 }
  0x42   : > { %v3848_v7 = vpop.eup %3847  ;;  %849 = vst.msk [vmem:[#allocation2 + $0x28] sm:$0xff] %vm390_vm0, %v816_v30  ;;  %v834_v9 = vmul.f32 %v3846_v4, %v4267_v38  ;;  %v589_v15 = vmul.f32 %v3540_v2, %v4231_v11  ;;  %3867 = vpow2.f32 %v4371_v60  ;;  %v3309_v17 = vmul.f32 -1.442695, %v4411_v58 }
  0x43   : > { %v3850_v16 = vpop.eup %3849  ;;  %850 = vst.msk [vmem:[#allocation2 + $0x30] sm:$0xff] %vm390_vm0, %v817_v31  ;;  %v835_v37 = vmul.f32 %v3848_v7, %v4270_v39  ;;  %v3507_v20 = vunpack.c.l.bf16 %v4406_v54  ;;  %3869 = vpow2.f32 %v4374_v62  ;;  %v3310_v48 = vmul.f32 -1.442695, %v4420_v5  ;;  %v3783_v39 = vld [vmem:[%s5815_s3 + $0xa0] sm:$0xff]   ;;  %v3785_v7 = vld [vmem:[%s5815_s3 + $0xb0] sm:$0xff]  }
  0x44   : > { %v3852_v22 = vpop.eup %3851  ;;  %867 = vst.msk [vmem:[#allocation2 + $0x148] sm:$0xff] %vm390_vm0, %v834_v9  ;;  %v818_v38 = vmul.f32 %v3850_v16, %v4277_v44  ;;  %3871 = vpow2.f32 %v4384_v18  ;;  %v4445_v62 = vadd.f32 %v588_v36, %v4233_v12  ;;  %v4448_v25 = vadd.f32 %v589_v15, %v4233_v12  ;;  %3581 = vmatpush1.bf16.msra.mxu1 %v3783_v39 }
  0x45   : > { %v3854_v23 = vpop.eup %3853  ;;  %868 = vst.msk [vmem:[#allocation2 + $0x150] sm:$0xff] %vm390_vm0, %v835_v37  ;;  %v819_v60 = vmul.f32 %v3852_v22, %v4280_v45  ;;  %3873 = vpow2.f32 %v3307_v27  ;;  %2277 = vmatpush1.bf16.msra.mxu0 %v3783_v39  ;;  %v572_v18 = vmul.f32 %v3507_v20, %v4231_v11  ;;  %3570 = vmatprep.subr.bf16.mxu1 %v5819_v3 }
  0x46   : > { %v3856_v24 = vpop.eup %3855  ;;  %851 = vst.msk [vmem:[#allocation2 + $0x48] sm:$0xff] %vm390_vm0, %v818_v38  ;;  %v836_v44 = vmul.f32 %v3854_v23, %v4298_v61  ;;  %3875 = vpow2.f32 %v3308_v51  ;;  %v3508_v61 = vunpack.c.h.bf16 %v4406_v54  ;;  %2278 = vmatprep.subr.bf16.mxu0 %v5819_v3  ;;  %v3784_v54 = vld [vmem:[%s5815_s3 + $0xa8] sm:$0xff]   ;;  %v4487_v63 = vmul.f32 -1.442695, %v4448_v25 }
  0x47   : > { %v3858_v26 = vpop.eup %3857  ;;  %v4450_v28 = vld [vmem:[#allocation2 + $0x128] sm:$0xff]  ;;  %852 = vst.msk [vmem:[#allocation2 + $0x50] sm:$0xff] %vm390_vm0, %v819_v60  ;;  %v837_v45 = vmul.f32 %v3856_v24, %v4310_v6  ;;  %3877 = vpow2.f32 %v4403_v53  ;;  %v4476_v53 = vmul.f32 -1.442695, %v4445_v62  ;;  %v4490_v30 = vadd.f32 %v572_v18, %v4233_v12 }
  0x48   : > { %v3860_v27 = vpop.eup %3859  ;;  %v4458_v29 = vld [vmem:[#allocation2 + $0x130] sm:$0xff]  ;;  %v1017_v32 = vrot.slane %v4450_v28, 1  ;;  %v1270_v40 = vrot.slane %v4450_v28, 2  ;;  %869 = vst.msk [vmem:[#allocation2 + $0x168] sm:$0xff] %vm390_vm0, %v836_v44  ;;  %v820_v6 = vmul.f32 %v3858_v26, %v4314_v8  ;;  %3879 = vpow2.f32 %v3326_v21  ;;  %3582 = vmatpush1.bf16.msra.mxu1 %v3784_v54 }
  0x49   : > { %v3862_v41 = vpop.eup %3861  ;;  %v1018_v42 = vrot.slane %v4458_v29, 1  ;;  %v1271_v43 = vrot.slane %v4458_v29, 2  ;;  %v4467_v46 = vld [vmem:[#allocation2 + $0x28] sm:$0xff]  ;;  %870 = vst.msk [vmem:[#allocation2 + $0x170] sm:$0xff] %vm390_vm0, %v837_v45  ;;  %v821_v47 = vmul.f32 %v3860_v27, %v4321_v10  ;;  %3881 = vpow2.f32 %v3309_v17  ;;  %2279 = vmatpush1.bf16.msra.mxu0 %v3784_v54  ;;  %3571 = vmatprep.subr.bf16.mxu1 %v5819_v3 }
  0x4a   : > { %v993_v50 = vrot.slane %v4467_v46, 1  ;;  %v4472_v51 = vld [vmem:[#allocation2 + $0x30] sm:$0xff]  ;;  %853 = vst.msk [vmem:[#allocation2 + $0x68] sm:$0xff] %vm390_vm0, %v820_v6  ;;  %v743_v8 = vadd.f32 1.0, %v3862_v41  ;;  %v3864_v56 = vpop.eup %3863  ;;  %3883 = vpow2.f32 %v3310_v48  ;;  %v4496_v21 = vmul.f32 %v3508_v61, %v4231_v11  ;;  %2280 = vmatprep.subr.bf16.mxu0 %v5819_v3  ;;  %v3786_v41 = vld [vmem:[%s5815_s3 + $0xb8] sm:$0xff]  }
  0x4b   : > { %v1019_v57 = vsel %vm989_vm1, %v1017_v32, %v1018_v42  ;;  %v994_v10 = vrot.slane %v4472_v51, 1  ;;  %v4483_v59 = vld [vmem:[#allocation2 + $0x148] sm:$0xff]  ;;  %854 = vst.msk [vmem:[#allocation2 + $0x70] sm:$0xff] %vm390_vm0, %v821_v47  ;;  %v3866_v0 = vpop.eup %3865  ;;  %v1272_v36 = vsel %vm1224_vm2, %v1270_v40, %v1271_v43  ;;  %v1230_v15 = vrot.slane %v4467_v46, 2 }
  0x4c   : > { %v3645_v2 = vpack.i.bf16 %v1019_v57, %v1017_v32  ;;  %v4492_v4 = vld [vmem:[#allocation2 + $0x150] sm:$0xff]  ;;  %v1020_v31 = vrot.slane %v4483_v59, 1  ;;  %v3868_v9 = vpop.eup %3867  ;;  %v3650_v22 = vpack.i.bf16 %v993_v50, %v1018_v42  ;;  %3885 = vrcp.f32 %v743_v8  ;;  %3583 = vmatpush1.bf16.msra.mxu1 %v3785_v7 }
  0x4d   : > { %v995_v16 = vsel %vm989_vm1, %v993_v50, %v994_v10  ;;  %v1021_v37 = vrot.slane %v4492_v4, 1  ;;  %v4507_v17 = vld [vmem:[#allocation2 + $0x48] sm:$0xff]  ;;  %v3870_v20 = vpop.eup %3869  ;;  %v1231_v60 = vrot.slane %v4472_v51, 2  ;;  %v838_v28 = vmul.f32 %v3864_v56, %v4324_v13  ;;  %2281 = vmatpush1.bf16.msra.mxu0 %v3785_v7  ;;  %3572 = vmatprep.subr.bf16.mxu1 %v5819_v3 }
  0x4e   : > { %3646 = vrot.lane.b32.xlu0 %v3645_v2, %s4071_s17  ;;  %v3660_v38 = vpack.i.bf16 %v994_v10, %v995_v16  ;;  %v996_v48 = vrot.slane %v4507_v17, 1  ;;  %v4513_v39 = vld [vmem:[#allocation2 + $0x50] sm:$0xff]  ;;  %v3872_v23 = vpop.eup %3871  ;;  %v4521_v18 = vpack.c.bf16 %v1272_v36, %v1270_v40  ;;  %v726_v8 = vadd.f32 1.0, %v3866_v0  ;;  %2282 = vmatprep.subr.bf16.mxu0 %v5819_v3  ;;  %v3560_v0 = vld [vmem:[%s4222_s20 + $0x78] sm:$0xff]  }
  0x4f   : > { %v1022_v24 = vsel %vm989_vm1, %v1020_v31, %v1021_v37  ;;  %v997_v44 = vrot.slane %v4513_v39, 1  ;;  %v4518_v26 = vld [vmem:[#allocation2 + $0x168] sm:$0xff]  ;;  %v3874_v45 = vpop.eup %3873  ;;  %871 = vst.msk [vmem:[#allocation2 + $0x188] sm:$0xff] %vm390_vm0, %v838_v28 }
  0x50   : > { %3661 = vrot.lane.b32.xlu1 %v3660_v38, %s4071_s17  ;;  %v3665_v27 = vpack.i.bf16 %v1022_v24, %v1020_v31  ;;  %v4525_v32 = vld [vmem:[#allocation2 + $0x170] sm:$0xff]  ;;  %v1023_v6 = vrot.slane %v4518_v26, 1  ;;  %v3876_v42 = vpop.eup %3875  ;;  %v3655_v57 = vpack.i.bf16 %v996_v48, %v1021_v37  ;;  %v727_v31 = vadd.f32 1.0, %v3868_v9  ;;  %3584 = vmatpush1.bf16.msra.mxu1 %v3786_v41 }
  0x51   : > { %v998_v40 = vsel %vm989_vm1, %v996_v48, %v997_v44  ;;  %v1024_v47 = vrot.slane %v4525_v32, 1  ;;  %v4534_v50 = vld [vmem:[#allocation2 + $0x68] sm:$0xff]  ;;  %v3878_v54 = vpop.eup %3877  ;;  %3887 = vrcp.f32 %v726_v8  ;;  %v744_v9 = vadd.f32 1.0, %v3870_v20  ;;  %2283 = vmatpush1.bf16.msra.mxu0 %v3786_v41  ;;  %2496 = vmatprep.subr.bf16.mxu1 %v5819_v3 }
  0x52   : > { %3651 = vrot.lane.b32.xlu0 %v3650_v22, %s4071_s17  ;;  %v999_v10 = vrot.slane %v4534_v50, 1  ;;  %v4541_v2 = vld [vmem:[#allocation2 + $0x70] sm:$0xff]  ;;  %v3880_v36 = vpop.eup %3879  ;;  %v3670_v37 = vpack.i.bf16 %v997_v44, %v998_v40  ;;  %3889 = vrcp.f32 %v727_v31  ;;  %v745_v24 = vadd.f32 1.0, %v3872_v23  ;;  %2792 = vmatprep.subr.bf16.mxu0 %v5819_v3  ;;  %v3552_v31 = vld [vmem:[%s4222_s20 + $0x38] sm:$0xff]  }
  0x53   : > { %v1025_v7 = vsel %vm989_vm1, %v1023_v6, %v1024_v47  ;;  %v1000_v16 = vrot.slane %v4541_v2, 1  ;;  %v3882_v22 = vpop.eup %3881  ;;  %v728_v28 = vadd.f32 1.0, %v3874_v45  ;;  %v729_v56 = vadd.f32 1.0, %v3876_v42 }
  0x54   : > { %3666 = vrot.lane.b32.xlu1 %v3665_v27, %s4071_s17  ;;  %v3884_v44 = vpop.eup %3883  ;;  %v3680_v20 = vpack.i.bf16 %v1025_v7, %v1023_v6  ;;  %v3675_v27 = vpack.i.bf16 %v999_v10, %v1024_v47  ;;  %3891 = vrcp.f32 %v744_v9  ;;  %v746_v23 = vadd.f32 1.0, %v3878_v54  ;;  %v3474_v47 = vld [vmem:[%s4555_s8] sm:$0xff]  }
  0x55   : > { %v1001_v48 = vsel %vm989_vm1, %v999_v10, %v1000_v16  ;;  %3893 = vrcp.f32 %v745_v24  ;;  %v747_v42 = vadd.f32 1.0, %v3880_v36  ;;  %v730_v40 = vadd.f32 1.0, %v3882_v22 }
  0x56   : > { %3656 = vrot.lane.b32.xlu0 %v3655_v57, %s4071_s17  ;;  %v3685_v45 = vpack.i.bf16 %v1000_v16, %v1001_v48  ;;  %v3886_v8 = vpop.eup %3885  ;;  %3895 = vrcp.f32 %v728_v28  ;;  %v4563_v41 = vadd.f32 %v4496_v21, %v4233_v12  ;;  %v3543_v57 = vunpack.c.l.bf16 %v3560_v0 }
  0x57   : > { %v3544_v6 = vunpack.c.h.bf16 %v3560_v0  ;;  %v839_v54 = vmul.f32 %v3886_v8, %v4327_v14  ;;  %3897 = vrcp.f32 %v729_v56  ;;  %v731_v10 = vadd.f32 1.0, %v3884_v44  ;;  %v4574_v0 = vld [vmem:[#allocation2 + $0x188] sm:$0xff] }
  0x58   : > { %3671 = vrot.lane.b32.xlu1 %v3670_v37, %s4071_s17  ;;  %v3311_v7 = vmul.f32 -1.442695, %v4490_v30  ;;  %3899 = vrcp.f32 %v746_v23  ;;  %v3312_v36 = vmul.f32 -1.442695, %v4563_v41  ;;  %v590_v16 = vmul.f32 %v3543_v57, %v4231_v11 }
  0x59   : > { %v591_v21 = vmul.f32 %v3544_v6, %v4231_v11  ;;  %872 = vst.msk [vmem:[#allocation2 + $0x190] sm:$0xff] %vm390_vm0, %v839_v54  ;;  %3901 = vrcp.f32 %v747_v42  ;;  %v3511_v22 = vunpack.c.l.bf16 %v3552_v31  ;;  %v3512_v14 = vunpack.c.h.bf16 %v3552_v31  ;;  %v888_v54 = vld [vmem:[#allocation2 + $0x38] sm:$0xff] }
  0x5a   : > { %3681 = vrot.lane.b32.xlu0 %v3680_v20, %s4071_s17  ;;  %v3475_v56 = vunpack.c.l.bf16 %v3474_v47  ;;  %3903 = vrcp.f32 %v730_v40  ;;  %v4578_v37 = vadd.f32 %v590_v16, %v4233_v12  ;;  %v3476_v48 = vunpack.c.h.bf16 %v3474_v47 }
  0x5b   : > { %v4581_v9 = vadd.f32 %v591_v21, %v4233_v12  ;;  %v3888_v24 = vpop.eup %3887  ;;  %3905 = vrcp.f32 %v731_v10  ;;  %v574_v28 = vmul.f32 %v3511_v22, %v4231_v11  ;;  %v575_v44 = vmul.f32 %v3512_v14, %v4231_v11 }
  0x5c   : > { %3676 = vrot.lane.b32.xlu1 %v3675_v27, %s4071_s17  ;;  %v437_v20 = vmul.f32 %v3475_v56, %v4231_v11  ;;  %v3890_v23 = vpop.eup %3889  ;;  %v1026_v27 = vrot.slane %v4574_v0, 1  ;;  %v822_v42 = vmul.f32 %v3888_v24, %v4346_v33  ;;  %3907 = vpow2.f32 %v4476_v53 }
  0x5d   : > { %v3329_v40 = vmul.f32 -1.442695, %v4578_v37  ;;  %v823_v8 = vmul.f32 %v3890_v23, %v4358_v49  ;;  %3909 = vpow2.f32 %v4487_v63  ;;  %v4594_v57 = vadd.f32 %v574_v28, %v4233_v12 }
  0x5e   : > { %3686 = vrot.lane.b32.xlu0 %v3685_v45, %s4071_s17  ;;  %v4597_v6 = vadd.f32 %v575_v44, %v4233_v12  ;;  %v3892_v31 = vpop.eup %3891  ;;  %855 = vst.msk [vmem:[#allocation2 + $0x88] sm:$0xff] %vm390_vm0, %v822_v42  ;;  %3911 = vpow2.f32 %v3311_v7  ;;  %v3330_v33 = vmul.f32 -1.442695, %v4581_v9  ;;  %v438_v53 = vmul.f32 %v3476_v48, %v4231_v11 }
  0x5f   : > { %v4603_v45 = vadd.f32 %v4233_v12, %v437_v20  ;;  %v3894_v49 = vpop.eup %3893  ;;  %856 = vst.msk [vmem:[#allocation2 + $0x90] sm:$0xff] %vm390_vm0, %v823_v8  ;;  %v840_v63 = vmul.f32 %v3892_v31, %v4362_v52  ;;  %3913 = vpow2.f32 %v3312_v36  ;;  %v3313_v47 = vmul.f32 -1.442695, %v4594_v57  ;;  %v920_v31 = vld [vmem:[#allocation2 + $0x138] sm:$0xff] }
  0x60   : > { %v1232_v10 = vsel %vm1224_vm2, %v1230_v15, %v1231_v60  ;;  %v3896_v7 = vpop.eup %3895  ;;  %v4613_v16 = vld [vmem:[#allocation2 + $0x190] sm:$0xff]  ;;  %v841_v21 = vmul.f32 %v3894_v49, %v4366_v55  ;;  %3915 = vpow2.f32 %v3329_v40  ;;  %v3314_v22 = vmul.f32 -1.442695, %v4597_v6 }
  0x61   : > { %v4618_v52 = vadd.f32 %v4233_v12, %v438_v53  ;;  %v3898_v36 = vpop.eup %3897  ;;  %v1027_v56 = vrot.slane %v4613_v16, 1  ;;  %873 = vst.msk [vmem:[#allocation2 + $0x1a8] sm:$0xff] %vm390_vm0, %v840_v63  ;;  %v824_v48 = vmul.f32 %v3896_v7, %v4377_v1  ;;  %v3295_v24 = vmul.f32 -1.442695, %v4603_v45 }
  0x62   : > { %v3900_v28 = vpop.eup %3899  ;;  %874 = vst.msk [vmem:[#allocation2 + $0x1b0] sm:$0xff] %vm390_vm0, %v841_v21  ;;  %v825_v55 = vmul.f32 %v3898_v36, %v4387_v19  ;;  %3917 = vpow2.f32 %v3330_v33  ;;  %v1233_v20 = vrot.slane %v888_v54, 2  ;;  %v4633_v1 = vpack.c.bf16 %v1232_v10, %v1230_v15 }
  0x63   : > { %v3296_v44 = vmul.f32 -1.442695, %v4618_v52  ;;  %v3902_v23 = vpop.eup %3901  ;;  %v1028_v42 = vsel %vm989_vm1, %v1026_v27, %v1027_v56  ;;  %857 = vst.msk [vmem:[#allocation2 + $0xa8] sm:$0xff] %vm390_vm0, %v824_v48  ;;  %v842_v40 = vmul.f32 %v3900_v28, %v4393_v34  ;;  %3919 = vpow2.f32 %v3313_v47 }
  0x64   : > { %v3904_v8 = vpop.eup %3903  ;;  %v3695_v19 = vpack.i.bf16 %v1028_v42, %v1026_v27  ;;  %858 = vst.msk [vmem:[#allocation2 + $0xb0] sm:$0xff] %vm390_vm0, %v825_v55  ;;  %v843_v33 = vmul.f32 %v3902_v23, %v4396_v35  ;;  %3921 = vpow2.f32 %v3314_v22  ;;  %v1234_v46 = vsel %vm1224_vm2, %v1231_v60, %v1233_v20 }
  0x65   : > { %v3906_v53 = vpop.eup %3905  ;;  %v4639_v63 = vld [vmem:[#allocation2 + $0x88] sm:$0xff]  ;;  %875 = vst.msk [vmem:[#allocation2 + $0x1c8] sm:$0xff] %vm390_vm0, %v842_v40  ;;  %v826_v34 = vmul.f32 %v3904_v8, %v4411_v58  ;;  %3923 = vpow2.f32 %v3295_v24  ;;  %v1548_v7 = vshrl.u32 %v4633_v1, 16  ;;  %v4661_v24 = vpack.c.bf16 %v1234_v46, %v1234_v46 }
  0x66   : > { %v3908_v15 = vpop.eup %3907  ;;  %3696 = vrot.lane.b32.xlu1 %v3695_v19, %s4071_s17  ;;  %v1002_v35 = vrot.slane %v4639_v63, 1  ;;  %v4649_v47 = vld [vmem:[#allocation2 + $0x90] sm:$0xff]  ;;  %876 = vst.msk [vmem:[#allocation2 + $0x1d0] sm:$0xff] %vm390_vm0, %v843_v33  ;;  %v827_v54 = vmul.f32 %v3906_v53, %v4420_v5  ;;  %3925 = vpow2.f32 %v3296_v44  ;;  %v1551_v19 = vshll.u32 %v4633_v1, 16 }
  0x67   : > { %v3910_v58 = vpop.eup %3909  ;;  %v1003_v51 = vrot.slane %v4649_v47, 1  ;;  %859 = vst.msk [vmem:[#allocation2 + $0xc8] sm:$0xff] %vm390_vm0, %v826_v34  ;;  %v748_v60 = vadd.f32 1.0, %v3908_v15  ;;  %v4676_v15 = vrot.slane %v1548_v7, 3  ;;  %v1556_v1 = vshrl.u32 %v4661_v24, 16 }
  0x68   : > { %v3912_v21 = vpop.eup %3911  ;;  %v3690_v36 = vpack.i.bf16 %v1002_v35, %v1027_v56  ;;  %v4658_v48 = vld [vmem:[#allocation2 + $0x1a8] sm:$0xff]  ;;  %860 = vst.msk [vmem:[#allocation2 + $0xd0] sm:$0xff] %vm390_vm0, %v827_v54  ;;  %v749_v5 = vadd.f32 1.0, %v3910_v58  ;;  %v1553_v61 = vrot.slane %v1551_v19, 4 }
  0x69   : > { %v3914_v28 = vpop.eup %3913  ;;  %v1004_v55 = vsel %vm989_vm1, %v1002_v35, %v1003_v51  ;;  %v4665_v20 = vld [vmem:[#allocation2 + $0x1b0] sm:$0xff]  ;;  %v1029_v23 = vrot.slane %v4658_v48, 1  ;;  %3927 = vrcp.f32 %v748_v60  ;;  %v732_v34 = vadd.f32 1.0, %v3912_v21 }
  0x6a   : > { %v3916_v42 = vpop.eup %3915  ;;  %3691 = vrot.lane.b32.xlu0 %v3690_v36, %s4071_s17  ;;  %v3700_v56 = vpack.i.bf16 %v1003_v51, %v1004_v55  ;;  %v1030_v40 = vrot.slane %v4665_v20, 1  ;;  %v4670_v8 = vld [vmem:[#allocation2 + $0xa8] sm:$0xff]  ;;  %3929 = vrcp.f32 %v749_v5  ;;  %v733_v46 = vadd.f32 1.0, %v3914_v28 }
  0x6b   : > { %v1005_v33 = vrot.slane %v4670_v8, 1  ;;  %v4674_v53 = vld [vmem:[#allocation2 + $0xb0] sm:$0xff]  ;;  %v750_v28 = vadd.f32 1.0, %v3916_v42  ;;  %3931 = vrcp.f32 %v732_v34 }
  0x6c   : > { %v3918_v35 = vpop.eup %3917  ;;  %3701 = vrot.lane.b32.xlu1 %v3700_v56, %s4071_s17  ;;  %v1031_v54 = vsel %vm989_vm1, %v1029_v23, %v1030_v40  ;;  %v1006_v51 = vrot.slane %v4674_v53, 1  ;;  %v4682_v60 = vld [vmem:[#allocation2 + $0x1c8] sm:$0xff]  ;;  %3933 = vrcp.f32 %v733_v46 }
  0x6d   : > { %v3920_v36 = vpop.eup %3919  ;;  %v3710_v5 = vpack.i.bf16 %v1031_v54, %v1029_v23  ;;  %v3705_v55 = vpack.i.bf16 %v1005_v33, %v1030_v40  ;;  %v4685_v21 = vld [vmem:[#allocation2 + $0x1d0] sm:$0xff]  ;;  %v1032_v7 = vrot.slane %v4682_v60, 1  ;;  %v751_v38 = vadd.f32 1.0, %v3918_v35 }
  0x6e   : > { %v3922_v3 = vpop.eup %3921  ;;  %v1007_v27 = vsel %vm989_vm1, %v1005_v33, %v1006_v51  ;;  %v1033_v58 = vrot.slane %v4685_v21, 1  ;;  %v4691_v10 = vld [vmem:[#allocation2 + $0xc8] sm:$0xff]  ;;  %3935 = vrcp.f32 %v750_v28  ;;  %v1820_v28 = vshrl.u32 %v4521_v18, 16 }
  0x6f   : > { %v3924_v22 = vpop.eup %3923  ;;  %3711 = vrot.lane.b32.xlu0 %v3710_v5, %s4071_s17  ;;  %v3715_v40 = vpack.i.bf16 %v1006_v51, %v1007_v27  ;;  %v1008_v54 = vrot.slane %v4691_v10, 1  ;;  %v4696_v44 = vld [vmem:[#allocation2 + $0xd0] sm:$0xff]  ;;  %v734_v27 = vadd.f32 1.0, %v3920_v36  ;;  %3937 = vrcp.f32 %v751_v38  ;;  %v924_v38 = vld [vmem:[#allocation2 + $0x158] sm:$0xff] }
  0x70   : > { %v3926_v42 = vpop.eup %3925  ;;  %3706 = vrot.lane.b32.xlu1 %v3705_v55, %s4071_s17  ;;  %v1034_v56 = vsel %vm989_vm1, %v1032_v7, %v1033_v58  ;;  %v1009_v34 = vrot.slane %v4696_v44, 1  ;;  %v735_v23 = vadd.f32 1.0, %v3922_v3  ;;  %v451_v46 = vadd.f32 1.0, %v3924_v22 }
  0x71   : > { %v3725_v5 = vpack.i.bf16 %v1034_v56, %v1032_v7  ;;  %v3720_v14 = vpack.i.bf16 %v1008_v54, %v1033_v58  ;;  %3939 = vrcp.f32 %v734_v27  ;;  %v452_v33 = vadd.f32 1.0, %v3926_v42 }
  0x72   : > { %v1010_v51 = vsel %vm989_vm1, %v1008_v54, %v1009_v34  ;;  %3941 = vrcp.f32 %v735_v23  ;;  %v1558_v58 = vrot.slane %v1556_v1, 3  ;;  %v1559_v36 = vshll.u32 %v4661_v24, 16 }
  0x73   : > { %v3928_v49 = vpop.eup %3927  ;;  %3716 = vrot.lane.b32.xlu0 %v3715_v40, %s4071_s17  ;;  %v3730_v55 = vpack.i.bf16 %v1009_v34, %v1010_v51  ;;  %3943 = vrcp.f32 %v451_v46  ;;  %v1554_v22 = vor.u32 %v1553_v61, %v4676_v15  ;;  %v1273_v7 = vrot.slane %v920_v31, 2 }
  0x74   : > { %v3930_v13 = vpop.eup %3929  ;;  %3726 = vrot.lane.b32.xlu1 %v3725_v5, %s4071_s17  ;;  %v844_v35 = vmul.f32 %v3928_v49, %v4445_v62  ;;  %3945 = vrcp.f32 %v452_v33  ;;  %v1561_v19 = vrot.slane %v1559_v36, 4  ;;  %v1823_v56 = vshll.u32 %v4521_v18, 16  ;;  %v892_v62 = vld [vmem:[#allocation2 + $0x58] sm:$0xff] }
  0x75   : > { %v845_v3 = vmul.f32 %v3930_v13, %v4448_v25  ;;  %v1295_v49 = vrot.slane %v4682_v60, 2  ;;  %v1274_v25 = vsel %vm1224_vm2, %v1271_v43, %v1273_v7  ;;  %v5827_v61 = vrot.slane %v4492_v4, 2  ;;  %v3932_v15 = vpop.eup %3931 }
  0x76   : > { %877 = vst.msk [vmem:[#allocation2 + $0x1e8] sm:$0xff] %vm390_vm0, %v844_v35  ;;  %v5828_v13 = vrot.slane %v4483_v59, 2  ;;  %v1278_v24 = vrot.slane %v924_v38, 2  ;;  %v1562_v18 = vor.u32 %v1561_v19, %v1558_v58  ;;  %v1462_v1 = vpack.c.bf16 %v1274_v25, %v1274_v25  ;;  %v3934_v40 = vpop.eup %3933 }
  0x77   : > { %3721 = vrot.lane.b32.xlu0 %v3720_v14, %s4071_s17  ;;  %878 = vst.msk [vmem:[#allocation2 + $0x1f0] sm:$0xff] %vm390_vm0, %v845_v3  ;;  %v1822_v23 = vrot.slane %v1820_v28, 3  ;;  %v1825_v14 = vrot.slane %v1823_v56, 4  ;;  %v828_v54 = vmul.f32 %v3932_v15, %v4490_v30  ;;  %v5829_v29 = vmov %v5827_v61 }
  0x78   : > { %v1277_v31 = vsel %vm1224_vm2, %v5828_v13, %v5827_v61  ;;  %3731 = vrot.lane.b32.xlu1 %v3730_v55, %s4071_s17  ;;  %v1279_v43 = vsel %vm1224_vm2, %v5829_v29, %v1278_v24  ;;  %v5830_v42 = vmov %v5828_v13  ;;  %v1238_v34 = vrot.slane %v892_v62, 2  ;;  %v3936_v55 = vpop.eup %3935 }
  0x79   : > { %v1464_v33 = vpack.c.bf16 %v1277_v31, %v5830_v42  ;;  %v1296_v5 = vrot.slane %v4685_v21, 2  ;;  %v829_v27 = vmul.f32 %v3934_v40, %v4563_v41  ;;  %v4733_v51 = vsel %vm1495_vm3, %v1554_v22, %v1562_v18  ;;  %861 = vst.msk [vmem:[#allocation2 + $0xe8] sm:$0xff] %vm390_vm0, %v828_v54  ;;  %v3938_v41 = vpop.eup %3937 }
  0x7a   : > { %v1828_v46 = vshrl.u32 %v1462_v1, 16  ;;  %3367 = vmatprep.mubr.msk.bf16.mxu0 %vm390_vm0, %v4733_v51  ;;  %v1831_v30 = vshll.u32 %v1462_v1, 16  ;;  %v1466_v4 = vpack.c.bf16 %v1279_v43, %v1279_v43  ;;  %v5831_v59 = vrot.slane %v4513_v39, 2 }
  0x7b   : > { %v1854_v35 = vshrl.u32 %v1464_v33, 16  ;;  %v5832_v58 = vrot.slane %v4507_v17, 2  ;;  %v1255_v38 = vrot.slane %v4691_v10, 2  ;;  %862 = vst.msk [vmem:[#allocation2 + $0xf0] sm:$0xff] %vm390_vm0, %v829_v27  ;;  %v846_v3 = vmul.f32 %v3936_v55, %v4578_v37  ;;  %v3940_v19 = vpop.eup %3939 }
  0x7c   : > { %v1830_v22 = vrot.slane %v1828_v46, 3  ;;  %v1857_v7 = vshll.u32 %v1464_v33, 16  ;;  %v847_v56 = vmul.f32 %v3938_v41, %v4581_v9  ;;  %v1826_v62 = vor.u32 %v1825_v14, %v1822_v23  ;;  %v3942_v31 = vpop.eup %3941 }
  0x7d   : > { %v1237_v36 = vsel %vm1224_vm2, %v5832_v58, %v5831_v59  ;;  %v4746_v28 = vld [vmem:[#allocation2 + $0x1e8] sm:$0xff]  ;;  %v1833_v25 = vrot.slane %v1831_v30, 4  ;;  %v5833_v61 = vmov %v5831_v59  ;;  %879 = vst.msk [vmem:[#allocation2 + $0x208] sm:$0xff] %vm390_vm0, %v846_v3  ;;  %v830_v37 = vmul.f32 %v3940_v19, %v4594_v57  ;;  %v3944_v9 = vpop.eup %3943  ;;  %v932_v19 = vld [vmem:[#allocation2 + $0x198] sm:$0xff] }
  0x7e   : > { %v1239_v13 = vsel %vm1224_vm2, %v5833_v61, %v1238_v34  ;;  %v4752_v24 = vld [vmem:[#allocation2 + $0x1f0] sm:$0xff]  ;;  %v1035_v15 = vrot.slane %v4746_v28, 1  ;;  %v1862_v18 = vshrl.u32 %v1466_v4, 16  ;;  %v5834_v1 = vmov %v5832_v58  ;;  %880 = vst.msk [vmem:[#allocation2 + $0x210] sm:$0xff] %vm390_vm0, %v847_v56  ;;  %v3946_v29 = vpop.eup %3945 }
  0x7f   : > { %v1432_v40 = vpack.c.bf16 %v1237_v36, %v5834_v1  ;;  %v1036_v23 = vrot.slane %v4752_v24, 1  ;;  %v831_v39 = vmul.f32 %v3942_v31, %v4597_v6  ;;  %v1834_v14 = vor.u32 %v1833_v25, %v1830_v22  ;;  %863 = vst.msk [vmem:[#allocation2 + $0x108] sm:$0xff] %vm390_vm0, %v830_v37 }
  0x80   : > { %v1856_v54 = vrot.slane %v1854_v35, 3  ;;  %v457_v43 = vmul.f32 %v3944_v9, %v4603_v45  ;;  %v1859_v42 = vrot.slane %v1857_v7, 4  ;;  %v1864_v57 = vrot.slane %v1862_v18, 3  ;;  %v4771_v55 = vld [vmem:[#allocation2 + $0xe8] sm:$0xff] }
  0x81   : > { %v1865_v33 = vshll.u32 %v1466_v4, 16  ;;  %v1256_v17 = vrot.slane %v4696_v44, 2  ;;  %v1037_v34 = vsel %vm989_vm1, %v1035_v15, %v1036_v23  ;;  %864 = vst.msk [vmem:[#allocation2 + $0x110] sm:$0xff] %vm390_vm0, %v831_v39  ;;  %v458_v27 = vmul.f32 %v3946_v29, %v4618_v52 }
  0x82   : > { %v4769_v6 = vsel %vm1495_vm3, %v1826_v62, %v1834_v14  ;;  %v3740_v46 = vpack.i.bf16 %v1037_v34, %v1035_v15  ;;  %v463_v30 = vmul.f32 0.0, %v457_v43  ;;  %v1582_v4 = vshrl.u32 %v1432_v40, 16  ;;  %v4776_v59 = vld [vmem:[#allocation2 + $0xf0] sm:$0xff]  ;;  %v896_v14 = vld [vmem:[#allocation2 + $0x78] sm:$0xff] }
  0x83   : > { %3375 = vmatprep.mubr.msk.bf16.mxu1 %vm390_vm0, %v4769_v6  ;;  %v1867_v45 = vrot.slane %v1865_v33, 4  ;;  %v1011_v35 = vrot.slane %v4771_v55, 1  ;;  %v464_v58 = vmul.f32 0.0, %v458_v27  ;;  %v1434_v36 = vpack.c.bf16 %v1239_v13, %v1239_v13  ;;  %v928_v33 = vld [vmem:[#allocation2 + $0x178] sm:$0xff] }
  0x84   : > { %v1585_v41 = vshll.u32 %v1432_v40, 16  ;;  %3741 = vrot.lane.b32.xlu0 %v3740_v46, %s4071_s17  ;;  %v1012_v3 = vrot.slane %v4776_v59, 1  ;;  %491 = vst.msk [vmem:[#allocation2 + $0x8] sm:$0xff] %vm390_vm0, %v463_v30  ;;  %v1860_v22 = vor.u32 %v1859_v42, %v1856_v54  ;;  %v4783_v62 = vld [vmem:[#allocation2 + $0x208] sm:$0xff]  ;;  %v4786_v25 = vrot.slane %v1582_v4, 3 }
  0x85   : > { %v1868_v7 = vor.u32 %v1867_v45, %v1864_v57  ;;  %v3735_v56 = vpack.i.bf16 %v1011_v35, %v1036_v23  ;;  %492 = vst.msk [vmem:[#allocation2 + $0x10] sm:$0xff] %vm390_vm0, %v464_v58  ;;  %v1260_v13 = vrot.slane %v4771_v55, 2  ;;  %v1261_v15 = vrot.slane %v4776_v59, 2  ;;  %v4793_v37 = vld [vmem:[#allocation2 + $0x210] sm:$0xff]  ;;  %v900_v58 = vld [vmem:[#allocation2 + $0x98] sm:$0xff] }
  0x86   : > { %v4788_v61 = vrot.slane %v1585_v41, 4  ;;  %v1013_v31 = vsel %vm989_vm1, %v1011_v35, %v1012_v3  ;;  %v1038_v18 = vrot.slane %v4783_v62, 1  ;;  %v1039_v40 = vrot.slane %v4793_v37, 1  ;;  %v4798_v9 = vld [vmem:[#allocation2 + $0x108] sm:$0xff]  ;;  %v916_v59 = vld [vmem:[#allocation2 + $0x118] sm:$0xff] }
  0x87   : > { %3736 = vrot.lane.b32.xlu1 %v3735_v56, %s4071_s17  ;;  %v3745_v1 = vpack.i.bf16 %v1012_v3, %v1013_v31  ;;  %v1590_v23 = vshrl.u32 %v1434_v36, 16  ;;  %v1593_v39 = vshll.u32 %v1434_v36, 16  ;;  %v1014_v43 = vrot.slane %v4798_v9, 1 }
  0x88   : > { %v4803_v42 = vld [vmem:[#allocation2 + $0x110] sm:$0xff]  ;;  %v4806_v57 = vsel %vm1495_vm3, %v1860_v22, %v1868_v7  ;;  %v1040_v34 = vsel %vm989_vm1, %v1038_v18, %v1039_v40  ;;  %v1588_v46 = vor.u32 %v4788_v61, %v4786_v25  ;;  %v5835_v30 = vrot.slane %v4541_v2, 2 }
  0x89   : > { %3746 = vrot.lane.b32.xlu0 %v3745_v1, %s4071_s17  ;;  %v1015_v27 = vrot.slane %v4803_v42, 1  ;;  %v5836_v45 = vrot.slane %v4534_v50, 2  ;;  %v3755_v35 = vpack.i.bf16 %v1040_v34, %v1038_v18  ;;  %v3750_v36 = vpack.i.bf16 %v1014_v43, %v1039_v40 }
  0x8a   : > { %v1243_v41 = vrot.slane %v896_v14, 2  ;;  %v5838_v31 = vrot.slane %v4525_v32, 2  ;;  %v5839_v1 = vrot.slane %v4518_v26, 2  ;;  %v1283_v29 = vrot.slane %v928_v33, 2 }
  0x8b   : > { %v1242_v4 = vsel %vm1224_vm2, %v5836_v45, %v5835_v30  ;;  %v1016_v3 = vsel %vm989_vm1, %v1014_v43, %v1015_v27  ;;  %v4820_v22 = vld [vmem:[#allocation2 + $0x8] sm:$0xff]  ;;  %v5837_v7 = vmov %v5836_v45  ;;  %3756 = vrot.lane.b32.xlu1 %v3755_v35, %s4071_s17  ;;  %v4833_v14 = vrot.slane %v1590_v23, 3 }
  0x8c   : > { %v1436_v56 = vpack.c.bf16 %v1242_v4, %v5837_v7  ;;  %v1282_v54 = vsel %vm1224_vm2, %v5839_v1, %v5838_v31  ;;  %v3760_v18 = vpack.i.bf16 %v1015_v27, %v1016_v3  ;;  %v4830_v34 = vld [vmem:[#allocation2 + $0x10] sm:$0xff]  ;;  %v990_v40 = vrot.slane %v4820_v22, 1 }
  0x8d   : > { %v4835_v43 = vrot.slane %v1593_v39, 4  ;;  %3751 = vrot.lane.b32.xlu0 %v3750_v36, %s4071_s17  ;;  %v991_v30 = vrot.slane %v4830_v34, 1  ;;  %v5840_v45 = vrot.slane %v4541_v2, 2  ;;  %v5841_v3 = vmov %v5838_v31 }
  0x8e   : > { %v1616_v4 = vshrl.u32 %v1436_v56, 16  ;;  %v1619_v35 = vshll.u32 %v1436_v56, 16  ;;  %v1284_v23 = vsel %vm1224_vm2, %v5841_v3, %v1283_v29  ;;  %v5842_v39 = vmov %v5839_v1 }
  0x8f   : > { %v1244_v33 = vsel %vm1224_vm2, %v5840_v45, %v1243_v41  ;;  %v1468_v7 = vpack.c.bf16 %v1282_v54, %v5842_v39  ;;  %v992_v36 = vsel %vm989_vm1, %v990_v40, %v991_v30  ;;  %v1470_v1 = vpack.c.bf16 %v1284_v23, %v1284_v23  ;;  %3761 = vrot.lane.b32.xlu1 %v3760_v18, %s4071_s17 }
  0x90   : > { %v1438_v27 = vpack.c.bf16 %v1244_v33, %v1244_v33  ;;  %v1618_v31 = vrot.slane %v1616_v4, 3  ;;  %v5843_v50 = vrot.slane %v4649_v47, 2  ;;  %v5844_v2 = vrot.slane %v4639_v63, 2 }
  0x91   : > { %v3765_v56 = vpack.i.bf16 %v992_v36, %v990_v40  ;;  %v1621_v32 = vrot.slane %v1619_v35, 4  ;;  %v1888_v33 = vshrl.u32 %v1468_v7, 16  ;;  %v1891_v26 = vshll.u32 %v1468_v7, 16 }
  0x92   : > { %v1247_v41 = vsel %vm1224_vm2, %v5844_v2, %v5843_v50  ;;  %v1624_v45 = vshrl.u32 %v1438_v27, 16  ;;  %v1627_v29 = vshll.u32 %v1438_v27, 16  ;;  %v1896_v54 = vshrl.u32 %v1470_v1, 16 }
  0x93   : > { %v1899_v3 = vshll.u32 %v1470_v1, 16  ;;  %3766 = vrot.lane.b32.xlu0 %v3765_v56, %s4071_s17  ;;  %v1596_v4 = vor.u32 %v4835_v43, %v4833_v14  ;;  %v1248_v52 = vrot.slane %v900_v58, 2  ;;  %v1890_v50 = vrot.slane %v1888_v33, 3  ;;  %1048 = vrot.lane.b32.xlu1 %v991_v30, %s4071_s17 }
  0x94   : > { %v1626_v23 = vrot.slane %v1624_v45, 3  ;;  %v1629_v39 = vrot.slane %v1627_v29, 4  ;;  %v1893_v2 = vrot.slane %v1891_v26, 4  ;;  %v1898_v18 = vrot.slane %v1896_v54, 3 }
  0x95   : > { %v1901_v40 = vrot.slane %v1899_v3, 4  ;;  %v5845_v27 = vrot.slane %v4649_v47, 2  ;;  %v5846_v36 = vrot.slane %v4639_v63, 2  ;;  %v5847_v14 = vrot.slane %v4613_v16, 2 }
  0x96   : > { %v5848_v58 = vrot.slane %v4574_v0, 2  ;;  %v1622_v56 = vor.u32 %v1621_v32, %v1618_v31  ;;  %v1630_v45 = vor.u32 %v1629_v39, %v1626_v23  ;;  %v1288_v33 = vrot.slane %v932_v19, 2  ;;  %v904_v19 = vld [vmem:[#allocation2 + $0xb8] sm:$0xff] }
  0x97   : > { %v1249_v7 = vsel %vm1224_vm2, %v5845_v27, %v1248_v52  ;;  %v1440_v1 = vpack.c.bf16 %v1247_v41, %v5846_v36  ;;  %v1894_v26 = vor.u32 %v1893_v2, %v1890_v50  ;;  %v1902_v52 = vor.u32 %v1901_v40, %v1898_v18  ;;  %v936_v18 = vld [vmem:[#allocation2 + $0x1b8] sm:$0xff] }
  0x98   : > { %v1287_v43 = vsel %vm1224_vm2, %v5848_v58, %v5847_v14  ;;  %v1442_v29 = vpack.c.bf16 %v1249_v7, %v1249_v7  ;;  %v5849_v47 = vmov %v5848_v58  ;;  %v5850_v41 = vmov %v5847_v14 }
  0x99   : > { %v1650_v54 = vshrl.u32 %v1440_v1, 16  ;;  %v1653_v30 = vshll.u32 %v1440_v1, 16  ;;  %v1472_v3 = vpack.c.bf16 %v1287_v43, %v5849_v47  ;;  %v1289_v36 = vsel %vm1224_vm2, %v5850_v41, %v1288_v33 }
  0x9a   : > { %v1658_v27 = vshrl.u32 %v1442_v29, 16  ;;  %v1661_v63 = vshll.u32 %v1442_v29, 16  ;;  %v1474_v31 = vpack.c.bf16 %v1289_v36, %v1289_v36  ;;  %v5851_v50 = vrot.slane %v4674_v53, 2 }
  0x9b   : > { %v4875_v35 = vrot.slane %v1650_v54, 3  ;;  %v4877_v14 = vrot.slane %v1653_v30, 4  ;;  %v1922_v32 = vshrl.u32 %v1472_v3, 16  ;;  %v1925_v0 = vshll.u32 %v1472_v3, 16 }
  0x9c   : > { %v4879_v23 = vrot.slane %v1658_v27, 3  ;;  %v4881_v39 = vrot.slane %v1661_v63, 4  ;;  %v5852_v2 = vrot.slane %v4670_v8, 2  ;;  %v1226_v40 = vrot.slane %v4830_v34, 2 }
  0x9d   : > { %v4893_v7 = vsel %vm1495_vm3, %v1588_v46, %v1596_v4  ;;  %v4896_v1 = vsel %vm1495_vm3, %v1622_v56, %v1630_v45  ;;  %v1930_v58 = vshrl.u32 %v1474_v31, 16  ;;  %v4899_v43 = vsel %vm1495_vm3, %v1894_v26, %v1902_v52 }
  0x9e   : > { %v1252_v16 = vsel %vm1224_vm2, %v5852_v2, %v5851_v50  ;;  %v1933_v29 = vshll.u32 %v1474_v31, 16  ;;  %v1253_v33 = vrot.slane %v904_v19, 2  ;;  %v5853_v54 = vmov %v5852_v2 }
  0x9f   : > { %v1444_v30 = vpack.c.bf16 %v1252_v16, %v5853_v54  ;;  %v1656_v47 = vor.u32 %v4877_v14, %v4875_v35  ;;  %v1924_v3 = vrot.slane %v1922_v32, 3  ;;  %v5854_v25 = vrot.slane %v4665_v20, 2 }
  0xa0   : > { %v5855_v61 = vrot.slane %v4658_v48, 2  ;;  %v1293_v4 = vrot.slane %v936_v18, 2  ;;  %v1664_v56 = vor.u32 %v4881_v39, %v4879_v23  ;;  %v1927_v45 = vrot.slane %v1925_v0, 4  ;;  %v908_v23 = vld [vmem:[#allocation2 + $0xd8] sm:$0xff] }
  0xa1   : > { %v5856_v26 = vmov %v5851_v50  ;;  %v1684_v52 = vshrl.u32 %v1444_v30, 16  ;;  %v1932_v27 = vrot.slane %v1930_v58, 3  ;;  %v1687_v35 = vshll.u32 %v1444_v30, 16  ;;  %v940_v30 = vld [vmem:[#allocation2 + $0x1d8] sm:$0xff] }
  0xa2   : > { %v1292_v46 = vsel %vm1224_vm2, %v5855_v61, %v5854_v25  ;;  %v1254_v8 = vsel %vm1224_vm2, %v5856_v26, %v1253_v33  ;;  %v5857_v41 = vmov %v5854_v25  ;;  %v1935_v14 = vrot.slane %v1933_v29, 4 }
  0xa3   : > { %v1446_v63 = vpack.c.bf16 %v1254_v8, %v1254_v8  ;;  %v1294_v36 = vsel %vm1224_vm2, %v5857_v41, %v1293_v4  ;;  %v1686_v31 = vrot.slane %v1684_v52, 3  ;;  %v5858_v32 = vmov %v5855_v61 }
  0xa4   : > { %v1476_v19 = vpack.c.bf16 %v1292_v46, %v5858_v32  ;;  %v1478_v50 = vpack.c.bf16 %v1294_v36, %v1294_v36  ;;  %v1689_v39 = vrot.slane %v1687_v35, 4  ;;  %v1257_v2 = vsel %vm1224_vm2, %v1255_v38, %v1256_v17 }
  0xa5   : > { %v1692_v0 = vshrl.u32 %v1446_v63, 16  ;;  %v1695_v53 = vshll.u32 %v1446_v63, 16  ;;  %v1928_v29 = vor.u32 %v1927_v45, %v1924_v3  ;;  %v1258_v48 = vrot.slane %v908_v23, 2 }
  0xa6   : > { %v1956_v16 = vshrl.u32 %v1476_v19, 16  ;;  %v1959_v20 = vshll.u32 %v1476_v19, 16  ;;  %v1964_v18 = vshrl.u32 %v1478_v50, 16  ;;  %v1967_v58 = vshll.u32 %v1478_v50, 16 }
  0xa7   : > { %v1694_v33 = vrot.slane %v1692_v0, 3  ;;  %v1697_v54 = vrot.slane %v1695_v53, 4  ;;  %v1936_v26 = vor.u32 %v1935_v14, %v1932_v27  ;;  %v1259_v8 = vsel %vm1224_vm2, %v1256_v17, %v1258_v48 }
  0xa8   : > { %v1958_v25 = vrot.slane %v1956_v16, 3  ;;  %v1961_v61 = vrot.slane %v1959_v20, 4  ;;  %v1966_v46 = vrot.slane %v1964_v18, 3  ;;  %v1969_v4 = vrot.slane %v1967_v58, 4 }
  0xa9   : > { %v1448_v52 = vpack.c.bf16 %v1257_v2, %v1255_v38  ;;  %v1297_v3 = vsel %vm1224_vm2, %v1295_v49, %v1296_v5  ;;  %v1690_v45 = vor.u32 %v1689_v39, %v1686_v31  ;;  %v1698_v63 = vor.u32 %v1697_v54, %v1694_v33  ;;  %v912_v39 = vld [vmem:[#allocation2 + $0xf8] sm:$0xff] }
  0xaa   : > { %v1450_v35 = vpack.c.bf16 %v1259_v8, %v1259_v8  ;;  %v1298_v41 = vrot.slane %v940_v30, 2  ;;  %v1962_v36 = vor.u32 %v1961_v61, %v1958_v25  ;;  %v1480_v44 = vpack.c.bf16 %v1297_v3, %v1295_v49  ;;  %v944_v49 = vld [vmem:[#allocation2 + $0x1f8] sm:$0xff] }
  0xab   : > { %v1718_v32 = vshrl.u32 %v1448_v52, 16  ;;  %v1721_v27 = vshll.u32 %v1448_v52, 16  ;;  %v1970_v17 = vor.u32 %v1969_v4, %v1966_v46  ;;  %v1262_v21 = vsel %vm1224_vm2, %v1260_v13, %v1261_v15 }
  0xac   : > { %v1726_v14 = vshrl.u32 %v1450_v35, 16  ;;  %v1729_v10 = vshll.u32 %v1450_v35, 16  ;;  %v1299_v38 = vsel %vm1224_vm2, %v1296_v5, %v1298_v41  ;;  %v1990_v23 = vshrl.u32 %v1480_v44, 16 }
  0xad   : > { %v4940_v19 = vrot.slane %v1718_v32, 3  ;;  %v4942_v50 = vrot.slane %v1721_v27, 4  ;;  %v1482_v31 = vpack.c.bf16 %v1299_v38, %v1299_v38  ;;  %v1993_v60 = vshll.u32 %v1480_v44, 16 }
  0xae   : > { %v4944_v0 = vrot.slane %v1726_v14, 3  ;;  %v4946_v53 = vrot.slane %v1729_v10, 4  ;;  %v4954_v5 = vsel %vm1495_vm3, %v1656_v47, %v1664_v56  ;;  %v4957_v2 = vsel %vm1495_vm3, %v1928_v29, %v1936_v26 }
  0xaf   : > { %v4960_v16 = vsel %vm1495_vm3, %v1690_v45, %v1698_v63  ;;  %v1998_v20 = vshrl.u32 %v1482_v31, 16  ;;  %v4963_v18 = vsel %vm1495_vm3, %v1962_v36, %v1970_v17  ;;  %v2001_v58 = vshll.u32 %v1482_v31, 16 }
  0xb0   : > { %v1263_v33 = vrot.slane %v912_v39, 2  ;;  %v1452_v54 = vpack.c.bf16 %v1262_v21, %v1260_v13  ;;  %v1724_v48 = vor.u32 %v4942_v50, %v4940_v19  ;;  %v4969_v47 = vrot.slane %v1990_v23, 3  ;;  %v948_v21 = vld [vmem:[#allocation2 + $0x218] sm:$0xff] }
  0xb1   : > { %v5859_v56 = vrot.slane %v4752_v24, 2  ;;  %v5860_v29 = vrot.slane %v4746_v28, 2  ;;  %v1303_v25 = vrot.slane %v944_v49, 2  ;;  %v1732_v61 = vor.u32 %v4946_v53, %v4944_v0 }
  0xb2   : > { %v4978_v46 = vrot.slane %v1993_v60, 4  ;;  %v1264_v55 = vsel %vm1224_vm2, %v1261_v15, %v1263_v33  ;;  %v1752_v13 = vshrl.u32 %v1452_v54, 16  ;;  %v4983_v4 = vrot.slane %v1998_v20, 3 }
  0xb3   : > { %v1302_v30 = vsel %vm1224_vm2, %v5860_v29, %v5859_v56  ;;  %v1454_v26 = vpack.c.bf16 %v1264_v55, %v1264_v55  ;;  %v1755_v8 = vshll.u32 %v1452_v54, 16  ;;  %v5861_v52 = vmov %v5859_v56 }
  0xb4   : > { %v1304_v3 = vsel %vm1224_vm2, %v5861_v52, %v1303_v25  ;;  %v4988_v45 = vrot.slane %v2001_v58, 4  ;;  %v4990_v63 = vrot.slane %v1752_v13, 3  ;;  %v5862_v35 = vmov %v5860_v29 }
  0xb5   : > { %v1484_v41 = vpack.c.bf16 %v1302_v30, %v5862_v35  ;;  %v1486_v36 = vpack.c.bf16 %v1304_v3, %v1304_v3  ;;  %v4994_v32 = vrot.slane %v1755_v8, 4  ;;  %v1760_v15 = vshrl.u32 %v1454_v26, 16 }
  0xb6   : > { %v1763_v27 = vshll.u32 %v1454_v26, 16  ;;  %v5863_v44 = vrot.slane %v4803_v42, 2  ;;  %v5864_v17 = vrot.slane %v4798_v9, 2  ;;  %v1996_v28 = vor.u32 %v4978_v46, %v4969_v47  ;;  %v3545_v9 = vld [vmem:[%s4555_s8 + $0x8] sm:$0xff]  }
  0xb7   : > { %v2024_v14 = vshrl.u32 %v1484_v41, 16  ;;  %v2027_v10 = vshll.u32 %v1484_v41, 16  ;;  %v2032_v38 = vshrl.u32 %v1486_v36, 16  ;;  %v2035_v31 = vshll.u32 %v1486_v36, 16 }
  0xb8   : > { %v1267_v24 = vsel %vm1224_vm2, %v5864_v17, %v5863_v44  ;;  %v1762_v23 = vrot.slane %v1760_v15, 3  ;;  %v1765_v39 = vrot.slane %v1763_v27, 4  ;;  %v1268_v60 = vrot.slane %v916_v59, 2 }
  0xb9   : > { %v2026_v49 = vrot.slane %v2024_v14, 3  ;;  %v2029_v20 = vrot.slane %v2027_v10, 4  ;;  %v2034_v58 = vrot.slane %v2032_v38, 3  ;;  %v2037_v33 = vrot.slane %v2035_v31, 4  ;;  %v884_v31 = vld [vmem:[#allocation2 + $0x18] sm:$0xff] }
  0xba   : > { %v2004_v54 = vor.u32 %v4988_v45, %v4983_v4  ;;  %v5865_v56 = vmov %v5863_v44  ;;  %v5866_v30 = vmov %v5864_v17  ;;  %v5867_v47 = vrot.slane %v4793_v37, 2 }
  0xbb   : > { %v1269_v29 = vsel %vm1224_vm2, %v5865_v56, %v1268_v60  ;;  %v1456_v25 = vpack.c.bf16 %v1267_v24, %v5866_v30  ;;  %v5868_v46 = vrot.slane %v4783_v62, 2  ;;  %v1758_v13 = vor.u32 %v4994_v32, %v4990_v63 }
  0xbc   : > { %v1766_v26 = vor.u32 %v1765_v39, %v1762_v23  ;;  %v1458_v8 = vpack.c.bf16 %v1269_v29, %v1269_v29  ;;  %v1308_v52 = vrot.slane %v948_v21, 2  ;;  %v2030_v4 = vor.u32 %v2029_v20, %v2026_v49 }
  0xbd   : > { %v1307_v55 = vsel %vm1224_vm2, %v5868_v46, %v5867_v47  ;;  %v1786_v3 = vshrl.u32 %v1456_v25, 16  ;;  %v1789_v42 = vshll.u32 %v1456_v25, 16  ;;  %v5869_v45 = vmov %v5868_v46 }
  0xbe   : > { %v1488_v35 = vpack.c.bf16 %v1307_v55, %v5869_v45  ;;  %v2038_v41 = vor.u32 %v2037_v33, %v2034_v58  ;;  %v1794_v36 = vshrl.u32 %v1458_v8, 16  ;;  %v1797_v59 = vshll.u32 %v1458_v8, 16  ;;  %v917_v8 = vld [vmem:[#allocation2 + $0x120] sm:$0xff] }
  0xbf   : > { %v5870_v15 = vmov %v5867_v47  ;;  %v1788_v44 = vrot.slane %v1786_v3, 3  ;;  %v1791_v17 = vrot.slane %v1789_v42, 4  ;;  %v3479_v38 = vunpack.c.l.bf16 %v3545_v9 }
  0xc0   : > { %v1309_v27 = vsel %vm1224_vm2, %v5870_v15, %v1308_v52  ;;  %v2098_v32 = vshrl.u32 %v1488_v35, 16  ;;  %v1796_v24 = vrot.slane %v1794_v36, 3  ;;  %v1799_v14 = vrot.slane %v1797_v59, 4  ;;  %v3647_v52 = vpop.permute.xlu0 %3646 }
  0xc1   : > { %v1490_v63 = vpack.c.bf16 %v1309_v27, %v1309_v27  ;;  %v2101_v10 = vshll.u32 %v1488_v35, 16  ;;  %v1792_v23 = vor.u32 %v1791_v17, %v1788_v44  ;;  %v3480_v20 = vunpack.c.h.bf16 %v3545_v9 }
  0xc2   : > { %v2100_v62 = vrot.slane %v2098_v32, 3  ;;  %v1800_v21 = vor.u32 %v1799_v14, %v1796_v24  ;;  %v467_v37 = vmul.f32 %v3479_v38, %v4231_v11  ;;  %v5871_v56 = vrot.slane %v4820_v22, 2  ;;  %v3662_v45 = vpop.permute.xlu1 %3661  ;;  %v921_v14 = vld [vmem:[#allocation2 + $0x140] sm:$0xff] }
  0xc3   : > { %v2106_v39 = vshrl.u32 %v1490_v63, 16  ;;  %v2109_v60 = vshll.u32 %v1490_v63, 16  ;;  %v2103_v49 = vrot.slane %v2101_v10, 4  ;;  %v1228_v30 = vrot.slane %v884_v31, 2  ;;  %v3957_v63 = vld [vmem:[#allocation2 + $0x28] sm:$0xff] }
  0xc4   : > { %v1227_v29 = vsel %vm1224_vm2, %v5871_v56, %v1226_v40  ;;  %v5036_v25 = vsel %vm1495_vm3, %v1724_v48, %v1732_v61  ;;  %v468_v46 = vmul.f32 %v3480_v20, %v4231_v11  ;;  %v5040_v55 = vadd.f32 %v467_v37, %v4233_v12  ;;  %v3652_v59 = vpop.permute.xlu0 %3651 }
  0xc5   : > { %v2108_v58 = vrot.slane %v2106_v39, 3  ;;  %v2111_v33 = vrot.slane %v2109_v60, 4  ;;  %v2104_v47 = vor.u32 %v2103_v49, %v2100_v62  ;;  %v5043_v3 = vsel %vm1495_vm3, %v1996_v28, %v2004_v54  ;;  %v3958_v62 = vld [vmem:[#allocation2 + $0x130] sm:$0xff] }
  0xc6   : > { %v5046_v42 = vsel %vm1495_vm3, %v1758_v13, %v1766_v26  ;;  %v5872_v19 = vmov %v5871_v56  ;;  %v3649_v53 = vunpack.i.h.bf16 %v3647_v52  ;;  %v3648_v48 = vunpack.i.l.bf16 %v3647_v52  ;;  %v3955_v13 = vld [vmem:[#allocation2 + $0x128] sm:$0xff]  ;;  %v3667_v10 = vpop.permute.xlu1 %3666 }
  0xc7   : > { %v2112_v0 = vor.u32 %v2111_v33, %v2108_v58  ;;  %v5050_v50 = vpack.c.bf16 %v1227_v29, %v5872_v19  ;;  %v5053_v11 = vadd.f32 %v468_v46, %v4233_v12  ;;  %v3297_v61 = vmul.f32 -1.442695, %v5040_v55  ;;  %v889_v33 = vld [vmem:[#allocation2 + $0x40] sm:$0xff]  ;;  %v3959_v29 = vld [vmem:[#allocation2 + $0x148] sm:$0xff] }
  0xc8   : > { %v5057_v35 = vsel %vm1495_vm3, %v2030_v4, %v2038_v41  ;;  %v5060_v28 = vsel %vm1495_vm3, %v1792_v23, %v1800_v21  ;;  %v5068_v22 = vsel %vm1224_vm2, %v1226_v40, %v1228_v30  ;;  %v1397_v12 = vsel %vm390_vm0, %v3955_v13, %v3649_v53  ;;  %v885_v41 = vld [vmem:[#allocation2 + $0x20] sm:$0xff]  ;;  %v3956_v40 = vld [vmem:[#allocation2 + $0x30] sm:$0xff]  ;;  %v3657_v56 = vpop.permute.xlu0 %3656 }
  0xc9   : > { %5873 = vst [vmem:[#allocation6_spill] sm:$0xff] %v5057_v35  ;;  %v5063_v54 = vsel %vm1495_vm3, %v2104_v47, %v2112_v0  ;;  %v1396_v26 = vsel %vm390_vm0, %v917_v8, %v3648_v48  ;;  %v3664_v9 = vunpack.i.h.bf16 %v3662_v45  ;;  %v3663_v36 = vunpack.i.l.bf16 %v3662_v45  ;;  %v3960_v45 = vld [vmem:[#allocation2 + $0x150] sm:$0xff] }
  0xca   : > { %v5072_v4 = vpack.c.bf16 %v1397_v12, %v1396_v26  ;;  %3947 = vpow2.f32 %v3297_v61  ;;  %v3298_v15 = vmul.f32 -1.442695, %v5053_v11  ;;  %v3654_v34 = vunpack.i.h.bf16 %v3652_v59  ;;  %v3672_v53 = vpop.permute.xlu1 %3671 }
  0xcb   : > { %v3653_v44 = vunpack.i.l.bf16 %v3652_v59  ;;  %v1374_v17 = vsel %vm390_vm0, %v3956_v40, %v3664_v9  ;;  %v1373_v32 = vsel %vm390_vm0, %v3957_v63, %v3663_v36  ;;  %v3669_v60 = vunpack.i.h.bf16 %v3667_v10  ;;  %v925_v36 = vld [vmem:[#allocation2 + $0x160] sm:$0xff]  ;;  %v3962_v40 = vld [vmem:[#allocation2 + $0x48] sm:$0xff] }
  0xcc   : > { %v1429_v24 = vpack.c.bf16 %v1374_v17, %v1374_v17  ;;  %v1803_v38 = vshrl.u32 %v5072_v4, 16  ;;  %v1806_v31 = vshll.u32 %v5072_v4, 16  ;;  %3949 = vpow2.f32 %v3298_v15  ;;  %v3682_v4 = vpop.permute.xlu0 %3681 }
  0xcd   : > { %v1372_v23 = vsel %vm390_vm0, %v885_v41, %v3654_v34  ;;  %v1398_v39 = vsel %vm390_vm0, %v3958_v62, %v3653_v44  ;;  %v3668_v21 = vunpack.i.l.bf16 %v3667_v10  ;;  %v1400_v30 = vsel %vm390_vm0, %v3959_v29, %v3669_v60  ;;  %v3961_v34 = vld [vmem:[#allocation2 + $0x50] sm:$0xff] }
  0xce   : > { %v1461_v49 = vpack.c.bf16 %v1398_v39, %v1398_v39  ;;  %v1539_v20 = vshrl.u32 %v1429_v24, 16  ;;  %v1542_v37 = vshll.u32 %v1429_v24, 16  ;;  %v1427_v58 = vpack.c.bf16 %v1373_v32, %v1372_v23  ;;  %v3963_v39 = vld [vmem:[#allocation2 + $0x168] sm:$0xff] }
  0xcf   : > { %v1399_v47 = vsel %vm390_vm0, %v921_v14, %v3668_v21  ;;  %v3659_v46 = vunpack.i.h.bf16 %v3657_v56  ;;  %v3658_v8 = vunpack.i.l.bf16 %v3657_v56  ;;  %v3674_v12 = vunpack.i.h.bf16 %v3672_v53 }
  0xd0   : > { %v1811_v52 = vshrl.u32 %v1461_v49, 16  ;;  %v1814_v0 = vshll.u32 %v1461_v49, 16  ;;  %v5084_v19 = vpack.c.bf16 %v1400_v30, %v1399_v47  ;;  %v1531_v48 = vshrl.u32 %v1427_v58, 16 }
  0xd1   : > { %v1375_v61 = vsel %vm390_vm0, %v889_v33, %v3659_v46  ;;  %v1401_v13 = vsel %vm390_vm0, %v3960_v45, %v3658_v8  ;;  %v3673_v26 = vunpack.i.l.bf16 %v3672_v53  ;;  %v1534_v59 = vshll.u32 %v1427_v58, 16  ;;  %v3677_v58 = vpop.permute.xlu1 %3676  ;;  %v3687_v46 = vpop.permute.xlu0 %3686  ;;  %v893_v45 = vld [vmem:[#allocation2 + $0x60] sm:$0xff] }
  0xd2   : > { %v5088_v9 = vpack.c.bf16 %v1401_v13, %v1401_v13  ;;  %v1533_v41 = vrot.slane %v1531_v48, 3  ;;  %v1541_v15 = vrot.slane %v1539_v20, 3  ;;  %v1377_v44 = vsel %vm390_vm0, %v3961_v34, %v3674_v12  ;;  %v3788_v13 = vld [vmem:[%s5815_s3 + $0xc0] sm:$0xff]  }
  0xd3   : > { %v1376_v17 = vsel %vm390_vm0, %v3962_v40, %v3673_v26  ;;  %v3684_v63 = vunpack.i.h.bf16 %v3682_v4  ;;  %v3683_v32 = vunpack.i.l.bf16 %v3682_v4  ;;  %v1433_v23 = vpack.c.bf16 %v1377_v44, %v1377_v44  ;;  %v3965_v44 = vld [vmem:[#allocation2 + $0x70] sm:$0xff] }
  0xd4   : > { %v5092_v24 = vpop.eup %3947  ;;  %v1845_v14 = vshrl.u32 %v5088_v9, 16  ;;  %v1848_v10 = vshll.u32 %v5088_v9, 16  ;;  %v1431_v62 = vpack.c.bf16 %v1376_v17, %v1375_v61  ;;  %v1536_v49 = vrot.slane %v1534_v59, 4 }
  0xd5   : > { %v1403_v60 = vsel %vm390_vm0, %v3963_v39, %v3684_v63  ;;  %v1402_v21 = vsel %vm390_vm0, %v925_v36, %v3683_v32  ;;  %v1544_v20 = vrot.slane %v1542_v37, 4  ;;  %v1573_v56 = vshrl.u32 %v1433_v23, 16  ;;  %v3966_v32 = vld [vmem:[#allocation2 + $0x68] sm:$0xff] }
  0xd6   : > { %v5098_v33 = vpop.eup %3949  ;;  %v1576_v29 = vshll.u32 %v1433_v23, 16  ;;  %v5100_v30 = vpack.c.bf16 %v1403_v60, %v1402_v21  ;;  %v1805_v47 = vrot.slane %v1803_v38, 3  ;;  %v1537_v8 = vor.u32 %v1536_v49, %v1533_v41  ;;  %v3790_v60 = vld [vmem:[%s5815_s3 + $0xc8] sm:$0xff]  }
  0xd7   : > { %v1545_v53 = vor.u32 %v1544_v20, %v1541_v15  ;;  %v1808_v48 = vrot.slane %v1806_v31, 4  ;;  %v1813_v61 = vrot.slane %v1811_v52, 3  ;;  %v1816_v12 = vrot.slane %v1814_v0, 4  ;;  %v3787_v31 = vld [vmem:[%s5815_s3] sm:$0xff]   ;;  %v3964_v15 = vld [vmem:[#allocation2 + $0x170] sm:$0xff] }
  0xd8   : > { %v3679_v37 = vunpack.i.h.bf16 %v3677_v58  ;;  %v3678_v26 = vunpack.i.l.bf16 %v3677_v58  ;;  %v3689_v36 = vunpack.i.h.bf16 %v3687_v46  ;;  %v3688_v34 = vunpack.i.l.bf16 %v3687_v46 }
  0xd9   : > { %v5106_v4 = vsel %vm1495_vm3, %v1537_v8, %v1545_v53  ;;  %v1809_v59 = vor.u32 %v1808_v48, %v1805_v47  ;;  %v1565_v38 = vshrl.u32 %v1431_v62, 16  ;;  %v1817_v41 = vor.u32 %v1816_v12, %v1813_v61  ;;  %v3789_v61 = vld [vmem:[%s5815_s3 + $0x8] sm:$0xff]  }
  0xda   : > { %2293 = vmatmul.mubr.bf16.vlgmr.msra.gmra.mrb[0].mxu0 %v5106_v4  ;;  %v1378_v52 = vsel %vm390_vm0, %v893_v45, %v3679_v37  ;;  %v1404_v0 = vsel %vm390_vm0, %v3964_v15, %v3678_v26  ;;  %v1380_v40 = vsel %vm390_vm0, %v3965_v44, %v3689_v36  ;;  %v1379_v23 = vsel %vm390_vm0, %v3966_v32, %v3688_v34  ;;  %v3697_v34 = vpop.permute.xlu1 %3696  ;;  %v3791_v44 = vld [vmem:[%s5815_s3 + $0x10] sm:$0xff]  }
  0xdb   : > { %v5115_v17 = vpack.c.bf16 %v1404_v0, %v1404_v0  ;;  %2793 = vmatpush1.bf16.msra.mxu0 %v3788_v13  ;;  %v1437_v63 = vpack.c.bf16 %v1380_v40, %v1380_v40  ;;  %3368 = vmatprep.mubr.msk.bf16.mxu0 %vm390_vm0, %v4893_v7  ;;  %v1567_v39 = vrot.slane %v1565_v38, 3  ;;  %v5124_v21 = vsel %vm1495_vm3, %v1809_v59, %v1817_v41  ;;  %v929_v59 = vld [vmem:[#allocation2 + $0x180] sm:$0xff] }
  0xdc   : > { %v1435_v49 = vpack.c.bf16 %v1379_v23, %v1378_v52  ;;  %v5874_v20 = vmov 0   ;;  %v1568_v58 = vshll.u32 %v1431_v62, 16  ;;  %v1575_v47 = vrot.slane %v1573_v56, 3  ;;  %2357 = vmatmul.mubr.bf16.vlgmr.msra.gmra.mrb[0].mxu1 %v5124_v21 }
  0xdd   : > { %2794 = vmatprep.subr.bf16.mxu0 %v5874_v20  ;;  %v1879_v46 = vshrl.u32 %v5115_v17, 16  ;;  %v1882_v8 = vshll.u32 %v5115_v17, 16  ;;  %v1607_v53 = vshrl.u32 %v1437_v63, 16  ;;  %v1610_v48 = vshll.u32 %v1437_v63, 16  ;;  %2497 = vmatpush1.bf16.msra.mxu1 %v3787_v31  ;;  %v3967_v63 = vld [vmem:[#allocation2 + $0x188] sm:$0xff] }
  0xde   : > { %3376 = vmatprep.mubr.msk.bf16.mxu1 %vm390_vm0, %v4806_v57  ;;  %v1570_v45 = vrot.slane %v1568_v58, 4  ;;  %v1578_v13 = vrot.slane %v1576_v29, 4  ;;  %v1837_v62 = vshrl.u32 %v5084_v19, 16  ;;  %v1840_v56 = vshll.u32 %v5084_v19, 16  ;;  %2498 = vmatprep.subr.bf16.mxu1 %v5874_v20  ;;  %v3792_v19 = vld [vmem:[%s5815_s3 + $0xd0] sm:$0xff]  }
  0xdf   : > { %v1847_v12 = vrot.slane %v1845_v14, 3  ;;  %v1850_v37 = vrot.slane %v1848_v10, 4  ;;  %2795 = vmatpush1.bf16.msra.mxu0 %v3790_v60  ;;  %v1599_v26 = vshrl.u32 %v1435_v49, 16  ;;  %v1602_v36 = vshll.u32 %v1435_v49, 16 }
  0xe0   : > { %v1571_v38 = vor.u32 %v1570_v45, %v1567_v39  ;;  %v1579_v41 = vor.u32 %v1578_v13, %v1575_v47  ;;  %v1839_v29 = vrot.slane %v1837_v62, 3  ;;  %v1842_v31 = vrot.slane %v1840_v56, 4  ;;  %2796 = vmatprep.subr.bf16.mxu0 %v5874_v20  ;;  %v897_v47 = vld [vmem:[#allocation2 + $0x80] sm:$0xff] }
  0xe1   : > { %v3699_v52 = vunpack.i.h.bf16 %v3697_v34  ;;  %v3698_v14 = vunpack.i.l.bf16 %v3697_v34  ;;  %v1851_v15 = vor.u32 %v1850_v37, %v1847_v12  ;;  %v1601_v9 = vrot.slane %v1599_v26, 3  ;;  %2499 = vmatpush1.bf16.msra.mxu1 %v3789_v61  ;;  %v3692_v61 = vpop.permute.xlu0 %3691  ;;  %v3702_v37 = vpop.permute.xlu1 %3701 }
  0xe2   : > { %v5147_v10 = vsel %vm1495_vm3, %v1571_v38, %v1579_v41  ;;  %v1843_v0 = vor.u32 %v1842_v31, %v1839_v29  ;;  %v1604_v40 = vrot.slane %v1602_v36, 4  ;;  %v1609_v17 = vrot.slane %v1607_v53, 3  ;;  %2500 = vmatprep.subr.bf16.mxu1 %v5874_v20  ;;  %v3968_v41 = vld [vmem:[#allocation2 + $0x190] sm:$0xff] }
  0xe3   : > { %v1406_v32 = vsel %vm390_vm0, %v3967_v63, %v3699_v52  ;;  %v1405_v23 = vsel %vm390_vm0, %v929_v59, %v3698_v14  ;;  %2301 = vmatmul.mubr.bf16.gmra.mrb[4].mxu0 %v5147_v10  ;;  %v1612_v39 = vrot.slane %v1610_v48, 4  ;;  %v1871_v60 = vshrl.u32 %v5100_v30, 16  ;;  %v3794_v48 = vld [vmem:[%s5815_s3 + $0xd8] sm:$0xff]  }
  0xe4   : > { %v5157_v49 = vpack.c.bf16 %v1406_v32, %v1405_v23  ;;  %v5160_v58 = vsel %vm1495_vm3, %v1843_v0, %v1851_v15  ;;  %2797 = vmatpush1.bf16.msra.mxu0 %v3792_v19  ;;  %3369 = vmatprep.mubr.msk.bf16.mxu0 %vm390_vm0, %v4896_v1  ;;  %v1605_v53 = vor.u32 %v1604_v40, %v1601_v9  ;;  %v1874_v45 = vshll.u32 %v5100_v30, 16  ;;  %v3793_v59 = vld [vmem:[%s5815_s3 + $0x18] sm:$0xff]   ;;  %v3796_v15 = vld [vmem:[%s5815_s3 + $0xe0] sm:$0xff]   ;;  %v3969_v9 = vld [vmem:[#allocation2 + $0x90] sm:$0xff] }
  0xe5   : > { %2365 = vmatmul.mubr.bf16.gmra.mrb[4].mxu1 %v5160_v58  ;;  %v3694_v13 = vunpack.i.h.bf16 %v3692_v61  ;;  %v3693_v62 = vunpack.i.l.bf16 %v3692_v61  ;;  %v1613_v56 = vor.u32 %v1612_v39, %v1609_v17  ;;  %v1873_v12 = vrot.slane %v1871_v60, 3  ;;  %2798 = vmatprep.subr.bf16.mxu0 %v5874_v20  ;;  %v3712_v17 = vpop.permute.xlu0 %3711  ;;  %v933_v61 = vld [vmem:[#allocation2 + $0x1a0] sm:$0xff] }
  0xe6   : > { %2501 = vmatpush1.bf16.msra.mxu1 %v3791_v44  ;;  %3377 = vmatprep.mubr.msk.bf16.mxu1 %vm390_vm0, %v4899_v43  ;;  %v1876_v26 = vrot.slane %v1874_v45, 4  ;;  %v1881_v36 = vrot.slane %v1879_v46, 3  ;;  %v1884_v30 = vrot.slane %v1882_v8, 4  ;;  %v1905_v34 = vshrl.u32 %v5157_v49, 16  ;;  %v3970_v44 = vld [vmem:[#allocation2 + $0x88] sm:$0xff]  ;;  %v3707_v45 = vpop.permute.xlu1 %3706 }
  0xe7   : > { %v1381_v38 = vsel %vm390_vm0, %v897_v47, %v3694_v13  ;;  %v1407_v29 = vsel %vm390_vm0, %v3968_v41, %v3693_v62  ;;  %v3704_v31 = vunpack.i.h.bf16 %v3702_v37  ;;  %v3703_v19 = vunpack.i.l.bf16 %v3702_v37  ;;  %2502 = vmatprep.subr.bf16.mxu1 %v5874_v20 }
  0xe8   : > { %v5179_v52 = vpack.c.bf16 %v1407_v29, %v1407_v29  ;;  %v5182_v46 = vsel %vm1495_vm3, %v1605_v53, %v1613_v56  ;;  %v1877_v8 = vor.u32 %v1876_v26, %v1873_v12  ;;  %v1885_v14 = vor.u32 %v1884_v30, %v1881_v36  ;;  %2799 = vmatpush1.bf16.msra.mxu0 %v3794_v48  ;;  %v901_v53 = vld [vmem:[#allocation2 + $0xa0] sm:$0xff] }
  0xe9   : > { %v1383_v0 = vsel %vm390_vm0, %v3969_v9, %v3704_v31  ;;  %v1382_v40 = vsel %vm390_vm0, %v3970_v44, %v3703_v19  ;;  %2800 = vmatprep.subr.bf16.mxu0 %v5874_v20  ;;  %v5190_v63 = vrot.slane %v1905_v34, 3  ;;  %v1908_v32 = vshll.u32 %v5157_v49, 16  ;;  %v3795_v48 = vld [vmem:[%s5815_s3 + $0x20] sm:$0xff]   ;;  %v3971_v34 = vld [vmem:[#allocation2 + $0x1a8] sm:$0xff]  ;;  %v3717_v31 = vpop.permute.xlu0 %3716  ;;  %v3802_v49 = vld [vmem:[%s5815_s3 + $0xf8] sm:$0xff]  }
  0xea   : > { %v1913_v23 = vshrl.u32 %v5179_v52, 16  ;;  %v1916_v39 = vshll.u32 %v5179_v52, 16  ;;  %v1441_v60 = vpack.c.bf16 %v1383_v0, %v1383_v0  ;;  %v1439_v47 = vpack.c.bf16 %v1382_v40, %v1381_v38  ;;  %2503 = vmatpush1.bf16.msra.mxu1 %v3793_v59  ;;  %v3798_v59 = vld [vmem:[%s5815_s3 + $0xe8] sm:$0xff]   ;;  %v3727_v44 = vpop.permute.xlu1 %3726 }
  0xeb   : > { %v3714_v13 = vunpack.i.h.bf16 %v3712_v17  ;;  %v3713_v62 = vunpack.i.l.bf16 %v3712_v17  ;;  %2309 = vmatmul.mubr.bf16.gmra.mrb[8].mxu0 %v5182_v46  ;;  %v5200_v56 = vsel %vm1495_vm3, %v1877_v8, %v1885_v14  ;;  %v3709_v12 = vunpack.i.h.bf16 %v3707_v45  ;;  %2504 = vmatprep.subr.bf16.mxu1 %v5874_v20  ;;  %v3972_v14 = vld [vmem:[#allocation2 + $0x1b0] sm:$0xff]  ;;  %v3797_v40 = vld [vmem:[%s5815_s3 + $0x28] sm:$0xff]  }
  0xec   : > { %v1641_v37 = vshrl.u32 %v1441_v60, 16  ;;  %v1644_v26 = vshll.u32 %v1441_v60, 16  ;;  %v3708_v36 = vunpack.i.l.bf16 %v3707_v45  ;;  %3370 = vmatprep.mubr.msk.bf16.mxu0 %vm390_vm0, %v4954_v5  ;;  %v1633_v30 = vshrl.u32 %v1439_v47, 16  ;;  %2801 = vmatpush1.bf16.msra.mxu0 %v3796_v15  ;;  %v937_v60 = vld [vmem:[#allocation2 + $0x1c0] sm:$0xff]  ;;  %v3973_v45 = vld [vmem:[#allocation2 + $0xb0] sm:$0xff] }
  0xed   : > { %v1409_v38 = vsel %vm390_vm0, %v3971_v34, %v3714_v13  ;;  %v1408_v41 = vsel %vm390_vm0, %v933_v61, %v3713_v62  ;;  %2373 = vmatmul.mubr.bf16.gmra.mrb[8].mxu1 %v5200_v56  ;;  %v1384_v29 = vsel %vm390_vm0, %v901_v53, %v3709_v12  ;;  %v1636_v19 = vshll.u32 %v1439_v47, 16  ;;  %2802 = vmatprep.subr.bf16.mxu0 %v5874_v20  ;;  %v3800_v34 = vld [vmem:[%s5815_s3 + $0xf0] sm:$0xff]  }
  0xee   : > { %v5213_v8 = vpack.c.bf16 %v1409_v38, %v1408_v41  ;;  %v1410_v15 = vsel %vm390_vm0, %v3972_v14, %v3708_v36  ;;  %v3719_v9 = vunpack.i.h.bf16 %v3717_v31  ;;  %v3718_v0 = vunpack.i.l.bf16 %v3717_v31  ;;  %2505 = vmatpush1.bf16.msra.mxu1 %v3795_v48  ;;  %3378 = vmatprep.mubr.msk.bf16.mxu1 %vm390_vm0, %v4957_v2  ;;  %v3974_v48 = vld [vmem:[#allocation2 + $0xa8] sm:$0xff] }
  0xef   : > { %v5221_v17 = vpack.c.bf16 %v1410_v15, %v1410_v15  ;;  %v3729_v47 = vunpack.i.h.bf16 %v3727_v44  ;;  %v3728_v61 = vunpack.i.l.bf16 %v3727_v44  ;;  %v1635_v53 = vrot.slane %v1633_v30, 3  ;;  %2506 = vmatprep.subr.bf16.mxu1 %v5874_v20  ;;  %v3975_v14 = vld [vmem:[#allocation2 + $0x1c8] sm:$0xff]  ;;  %v3799_v44 = vld [vmem:[%s5815_s3 + $0x30] sm:$0xff]  }
  0xf0   : > { %v1386_v13 = vsel %vm390_vm0, %v3973_v45, %v3719_v9  ;;  %v1385_v62 = vsel %vm390_vm0, %v3974_v48, %v3718_v0  ;;  %v1638_v12 = vrot.slane %v1636_v19, 4  ;;  %v1643_v36 = vrot.slane %v1641_v37, 3  ;;  %2803 = vmatpush1.bf16.msra.mxu0 %v3798_v59  ;;  %v3722_v59 = vpop.permute.xlu0 %3721  ;;  %v3732_v0 = vpop.permute.xlu1 %3731 }
  0xf1   : > { %v1947_v38 = vshrl.u32 %v5221_v17, 16  ;;  %v1950_v41 = vshll.u32 %v5221_v17, 16  ;;  %v1445_v30 = vpack.c.bf16 %v1386_v13, %v1386_v13  ;;  %v1443_v31 = vpack.c.bf16 %v1385_v62, %v1384_v29  ;;  %2804 = vmatprep.subr.bf16.mxu0 %v5874_v20  ;;  %v905_v62 = vld [vmem:[#allocation2 + $0xc0] sm:$0xff] }
  0xf2   : > { %v1412_v15 = vsel %vm390_vm0, %v3975_v14, %v3729_v47  ;;  %v1411_v9 = vsel %vm390_vm0, %v937_v60, %v3728_v61  ;;  %v1639_v19 = vor.u32 %v1638_v12, %v1635_v53  ;;  %v1646_v37 = vrot.slane %v1644_v26, 4  ;;  %2507 = vmatpush1.bf16.msra.mxu1 %v3797_v40  ;;  %v3977_v14 = vld [vmem:[#allocation2 + $0xd0] sm:$0xff] }
  0xf3   : > { %v1675_v45 = vshrl.u32 %v1445_v30, 16  ;;  %v1678_v48 = vshll.u32 %v1445_v30, 16  ;;  %v5237_v13 = vpack.c.bf16 %v1412_v15, %v1411_v9  ;;  %v1910_v29 = vrot.slane %v1908_v32, 4  ;;  %2508 = vmatprep.subr.bf16.mxu1 %v5874_v20  ;;  %v3978_v9 = vld [vmem:[#allocation2 + $0xc8] sm:$0xff] }
  0xf4   : > { %v1647_v60 = vor.u32 %v1646_v37, %v1643_v36  ;;  %v1915_v26 = vrot.slane %v1913_v23, 3  ;;  %v1918_v40 = vrot.slane %v1916_v39, 4  ;;  %v3724_v47 = vunpack.i.h.bf16 %v3722_v59  ;;  %2805 = vmatpush1.bf16.msra.mxu0 %v3800_v34  ;;  %v3976_v36 = vld [vmem:[#allocation2 + $0x1d0] sm:$0xff] }
  0xf5   : > { %v1911_v61 = vor.u32 %v1910_v29, %v5190_v63  ;;  %v3723_v53 = vunpack.i.l.bf16 %v3722_v59  ;;  %v3734_v12 = vunpack.i.h.bf16 %v3732_v0  ;;  %v3733_v30 = vunpack.i.l.bf16 %v3732_v0  ;;  %2806 = vmatprep.subr.bf16.mxu0 %v5874_v20  ;;  %v3801_v63 = vld [vmem:[%s5815_s3 + $0x38] sm:$0xff]  }
  0xf6   : > { %v5252_v32 = vsel %vm1495_vm3, %v1639_v19, %v1647_v60  ;;  %v1919_v23 = vor.u32 %v1918_v40, %v1915_v26  ;;  %v1387_v52 = vsel %vm390_vm0, %v905_v62, %v3724_v47  ;;  %v1667_v39 = vshrl.u32 %v1443_v31, 16  ;;  %2509 = vmatpush1.bf16.msra.mxu1 %v3799_v44 }
  0xf7   : > { %2317 = vmatmul.mubr.bf16.gmra.mrb[12].mxu0 %v5252_v32  ;;  %v1413_v34 = vsel %vm390_vm0, %v3976_v36, %v3723_v53  ;;  %v1389_v15 = vsel %vm390_vm0, %v3977_v14, %v3734_v12  ;;  %v1388_v19 = vsel %vm390_vm0, %v3978_v9, %v3733_v30  ;;  %v1670_v37 = vshll.u32 %v1443_v31, 16  ;;  %2510 = vmatprep.subr.bf16.mxu1 %v5874_v20  ;;  %v3804_v31 = vld [vmem:[%s5815_s3 + $0x100] sm:$0xff]  }
  0xf8   : > { %v5264_v59 = vsel %vm1495_vm3, %v1911_v61, %v1919_v23  ;;  %v5266_v0 = vpack.c.bf16 %v1413_v34, %v1413_v34  ;;  %v1449_v44 = vpack.c.bf16 %v1389_v15, %v1389_v15  ;;  %v1447_v29 = vpack.c.bf16 %v1388_v19, %v1387_v52  ;;  %3371 = vmatprep.mubr.msk.bf16.mxu0 %vm390_vm0, %v4960_v16  ;;  %v941_v19 = vld [vmem:[#allocation2 + $0x1e0] sm:$0xff] }
  0xf9   : > { %2381 = vmatmul.mubr.bf16.gmra.mrb[12].mxu1 %v5264_v59  ;;  %v1669_v62 = vrot.slane %v1667_v39, 3  ;;  %v1672_v60 = vrot.slane %v1670_v37, 4  ;;  %v1677_v26 = vrot.slane %v1675_v45, 3  ;;  %v1680_v40 = vrot.slane %v1678_v48, 4  ;;  %2807 = vmatpush1.bf16.msra.mxu0 %v3802_v49  ;;  %v3803_v45 = vld [vmem:[%s5815_s3 + $0x40] sm:$0xff]   ;;  %v3742_v37 = vpop.permute.xlu0 %3741 }
  0xfa   : > { %v1981_v47 = vshrl.u32 %v5266_v0, 16  ;;  %v1984_v61 = vshll.u32 %v5266_v0, 16  ;;  %v1709_v53 = vshrl.u32 %v1449_v44, 16  ;;  %v1712_v12 = vshll.u32 %v1449_v44, 16  ;;  %3379 = vmatprep.mubr.msk.bf16.mxu1 %vm390_vm0, %v4963_v18  ;;  %2511 = vmatpush1.bf16.msra.mxu1 %v3801_v63 }
  0xfb   : > { %v1673_v48 = vor.u32 %v1672_v60, %v1669_v62  ;;  %v1681_v30 = vor.u32 %v1680_v40, %v1677_v26  ;;  %v1939_v49 = vshrl.u32 %v5213_v8, 16  ;;  %v1942_v23 = vshll.u32 %v5213_v8, 16  ;;  %2512 = vmatprep.subr.bf16.mxu1 %v5874_v20  ;;  %2808 = vmatprep.subr.bf16.mxu0 %v5874_v20  ;;  %v3806_v8 = vld [vmem:[%s5815_s3 + $0x108] sm:$0xff]  }
  0xfc   : > { %v1949_v52 = vrot.slane %v1947_v38, 3  ;;  %v1952_v39 = vrot.slane %v1950_v41, 4  ;;  %v1701_v63 = vshrl.u32 %v1447_v29, 16  ;;  %v1704_v36 = vshll.u32 %v1447_v29, 16  ;;  %v3805_v26 = vld [vmem:[%s5815_s3 + $0x48] sm:$0xff]  }
  0xfd   : > { %v5290_v34 = vsel %vm1495_vm3, %v1673_v48, %v1681_v30  ;;  %v1941_v14 = vrot.slane %v1939_v49, 3  ;;  %v1944_v15 = vrot.slane %v1942_v23, 4  ;;  %v1711_v9 = vrot.slane %v1709_v53, 3  ;;  %2809 = vmatpush1.bf16.msra.mxu0 %v3804_v31  ;;  %v909_v23 = vld [vmem:[#allocation2 + $0xe0] sm:$0xff] }
  0xfe   : > { %v1953_v0 = vor.u32 %v1952_v39, %v1949_v52  ;;  %v1703_v38 = vrot.slane %v1701_v63, 3  ;;  %v1706_v44 = vrot.slane %v1704_v36, 4  ;;  %v1714_v17 = vrot.slane %v1712_v12, 4  ;;  %2513 = vmatpush1.bf16.msra.mxu1 %v3803_v45  ;;  %2810 = vmatprep.subr.bf16.mxu0 %v5874_v20  ;;  %v3979_v45 = vld [vmem:[#allocation2 + $0x1e8] sm:$0xff]  ;;  %v3737_v52 = vpop.permute.xlu1 %3736  ;;  %v3808_v63 = vld [vmem:[%s5815_s3 + $0x110] sm:$0xff]  }
  0xff   : > { %v3744_v41 = vunpack.i.h.bf16 %v3742_v37  ;;  %v3743_v29 = vunpack.i.l.bf16 %v3742_v37  ;;  %2325 = vmatmul.mubr.bf16.gmra.mrb[16].mxu0 %v5290_v34  ;;  %v1945_v62 = vor.u32 %v1944_v15, %v1941_v14  ;;  %v1973_v60 = vshrl.u32 %v5237_v13, 16  ;;  %2514 = vmatprep.subr.bf16.mxu1 %v5874_v20  ;;  %v3747_v15 = vpop.permute.xlu0 %3746 }
 0x100   : > { %3372 = vmatprep.mubr.msk.bf16.mxu0 %vm390_vm0, %v5036_v25  ;;  %v1707_v40 = vor.u32 %v1706_v44, %v1703_v38  ;;  %v1715_v31 = vor.u32 %v1714_v17, %v1711_v9  ;;  %v1976_v53 = vshll.u32 %v5237_v13, 16  ;;  %v1983_v12 = vrot.slane %v1981_v47, 3  ;;  %v3980_v44 = vld [vmem:[#allocation2 + $0x1f0] sm:$0xff] }
 0x101   : > { %v1415_v48 = vsel %vm390_vm0, %v3979_v45, %v3744_v41  ;;  %v1414_v30 = vsel %vm390_vm0, %v941_v19, %v3743_v29  ;;  %v5308_v49 = vsel %vm1495_vm3, %v1945_v62, %v1953_v0  ;;  %v1975_v39 = vrot.slane %v1973_v60, 3  ;;  %2811 = vmatpush1.bf16.msra.mxu0 %v3806_v8  ;;  %v3807_v19 = vld [vmem:[%s5815_s3 + $0x50] sm:$0xff]  }
 0x102   : > { %v5313_v36 = vpack.c.bf16 %v1415_v48, %v1414_v30  ;;  %2389 = vmatmul.mubr.bf16.gmra.mrb[16].mxu1 %v5308_v49  ;;  %v3739_v13 = vunpack.i.h.bf16 %v3737_v52  ;;  %v3738_v47 = vunpack.i.l.bf16 %v3737_v52  ;;  %v5317_v14 = vsel %vm1495_vm3, %v1707_v40, %v1715_v31  ;;  %2812 = vmatprep.subr.bf16.mxu0 %v5874_v20  ;;  %v3982_v31 = vld [vmem:[#allocation2 + $0xe8] sm:$0xff]  ;;  %v3757_v45 = vpop.permute.xlu1 %3756 }
 0x103   : > { %3380 = vmatprep.mubr.msk.bf16.mxu1 %vm390_vm0, %v5043_v3  ;;  %v1978_v9 = vrot.slane %v1976_v53, 4  ;;  %v1986_v8 = vrot.slane %v1984_v61, 4  ;;  %2515 = vmatpush1.bf16.msra.mxu1 %v3805_v26  ;;  %v477_v37 = vadd.f32 1.0, %v5092_v24  ;;  %v5327_v0 = vadd.f32 1.0, %v5098_v33  ;;  %v3810_v24 = vld [vmem:[%s5815_s3 + $0x118] sm:$0xff]   ;;  %v3981_v33 = vld [vmem:[#allocation2 + $0xf0] sm:$0xff] }
 0x104   : > { %v1390_v38 = vsel %vm390_vm0, %v909_v23, %v3739_v13  ;;  %v1416_v17 = vsel %vm390_vm0, %v3980_v44, %v3738_v47  ;;  %v3749_v41 = vunpack.i.h.bf16 %v3747_v15  ;;  %v3748_v29 = vunpack.i.l.bf16 %v3747_v15  ;;  %2516 = vmatprep.subr.bf16.mxu1 %v5874_v20  ;;  %v3752_v13 = vpop.permute.xlu0 %3751  ;;  %v3809_v47 = vld [vmem:[%s5815_s3 + $0x58] sm:$0xff]  }
 0x105   : > { %v5332_v61 = vpack.c.bf16 %v1416_v17, %v1416_v17  ;;  %v1979_v62 = vor.u32 %v1978_v9, %v1975_v39  ;;  %v1987_v60 = vor.u32 %v1986_v8, %v1983_v12  ;;  %v2007_v26 = vshrl.u32 %v5313_v36, 16  ;;  %2813 = vmatpush1.bf16.msra.mxu0 %v3808_v63  ;;  %v945_v39 = vld [vmem:[#allocation2 + $0x200] sm:$0xff] }
 0x106   : > { %v1392_v40 = vsel %vm390_vm0, %v3981_v33, %v3749_v41  ;;  %v1391_v53 = vsel %vm390_vm0, %v3982_v31, %v3748_v29  ;;  %v2010_v48 = vshll.u32 %v5313_v36, 16  ;;  %3951 = vrcp.f32 %v477_v37  ;;  %2814 = vmatprep.subr.bf16.mxu0 %v5874_v20  ;;  %v913_v63 = vld [vmem:[#allocation2 + $0x100] sm:$0xff] }
 0x107   : > { %v2015_v12 = vshrl.u32 %v5332_v61, 16  ;;  %v2018_v30 = vshll.u32 %v5332_v61, 16  ;;  %v1453_v23 = vpack.c.bf16 %v1392_v40, %v1392_v40  ;;  %v1451_v52 = vpack.c.bf16 %v1391_v53, %v1390_v38  ;;  %2333 = vmatmul.mubr.bf16.gmra.mrb[20].mxu0 %v5317_v14  ;;  %2517 = vmatpush1.bf16.msra.mxu1 %v3807_v19  ;;  %v3983_v19 = vld [vmem:[#allocation2 + $0x208] sm:$0xff]  ;;  %v3984_v40 = vld [vmem:[#allocation2 + $0x210] sm:$0xff] }
 0x108   : > { %v3759_v36 = vunpack.i.h.bf16 %v3757_v45  ;;  %v3758_v15 = vunpack.i.l.bf16 %v3757_v45  ;;  %v5349_v9 = vsel %vm1495_vm3, %v1979_v62, %v1987_v60  ;;  %v3754_v8 = vunpack.i.h.bf16 %v3752_v13  ;;  %3373 = vmatprep.mubr.msk.bf16.mxu0 %vm390_vm0, %v5046_v42  ;;  %2518 = vmatprep.subr.bf16.mxu1 %v5874_v20  ;;  %v3762_v62 = vpop.permute.xlu1 %3761 }
 0x109   : > { %5875 = vst [vmem:[#allocation7_spill] sm:$0xff] %v5349_v9  ;;  %v1743_v37 = vshrl.u32 %v1453_v23, 16  ;;  %v1746_v38 = vshll.u32 %v1453_v23, 16  ;;  %v3753_v44 = vunpack.i.l.bf16 %v3752_v13  ;;  %v1735_v17 = vshrl.u32 %v1451_v52, 16  ;;  %2815 = vmatpush1.bf16.msra.mxu0 %v3810_v24  ;;  %v3985_v13 = vld [vmem:[#allocation2 + $0x110] sm:$0xff] }
 0x10a   : > { %v1418_v41 = vsel %vm390_vm0, %v3983_v19, %v3759_v36  ;;  %v1417_v29 = vsel %vm390_vm0, %v945_v39, %v3758_v15  ;;  %2397 = vmatmul.mubr.bf16.gmra.mrb[20].mxu1 %v5349_v9  ;;  %v1393_v61 = vsel %vm390_vm0, %v913_v63, %v3754_v8  ;;  %v1738_v60 = vshll.u32 %v1451_v52, 16  ;;  %v3986_v36 = vld [vmem:[#allocation2 + $0x108] sm:$0xff]  ;;  %v3767_v19 = vpop.permute.xlu0 %3766 }
 0x10b   : > { %v5358_v33 = vpack.c.bf16 %v1418_v41, %v1417_v29  ;;  %v1419_v20 = vsel %vm390_vm0, %v3984_v40, %v3753_v44  ;;  %v3764_v31 = vunpack.i.h.bf16 %v3762_v62  ;;  %v3763_v53 = vunpack.i.l.bf16 %v3762_v62  ;;  %3381 = vmatprep.mubr.msk.bf16.mxu1 %vm390_vm0, %v5057_v35  ;;  %2519 = vmatpush1.bf16.msra.mxu1 %v3809_v47 }
 0x10c   : > { %v1489_v24 = vpack.c.bf16 %v1419_v20, %v1419_v20  ;;  %v1737_v45 = vrot.slane %v1735_v17, 3  ;;  %v1740_v23 = vrot.slane %v1738_v60, 4  ;;  %v1745_v39 = vrot.slane %v1743_v37, 3  ;;  %v1049_v40 = vpop.permute.xlu1 %1048 }
 0x10d   : > { %v1395_v63 = vsel %vm390_vm0, %v3985_v13, %v3764_v31  ;;  %v1394_v52 = vsel %vm390_vm0, %v3986_v36, %v3763_v53  ;;  %v1748_v15 = vrot.slane %v1746_v38, 4  ;;  %v2009_v8 = vrot.slane %v2007_v26, 3  ;;  %v881_v31 = vld [vmem:[#allocation2] sm:$0xff]  ;;  %v3987_v36 = vld [vmem:[#allocation2 + $0x10] sm:$0xff] }
 0x10e   : > { %v2089_v44 = vshrl.u32 %v1489_v24, 16  ;;  %v2092_v41 = vshll.u32 %v1489_v24, 16  ;;  %v1457_v29 = vpack.c.bf16 %v1395_v63, %v1395_v63  ;;  %v1455_v62 = vpack.c.bf16 %v1394_v52, %v1393_v61 }
 0x10f   : > { %v1741_v27 = vor.u32 %v1740_v23, %v1737_v45  ;;  %v1749_v47 = vor.u32 %v1748_v15, %v1745_v39  ;;  %v2012_v20 = vrot.slane %v2010_v48, 4  ;;  %v2017_v17 = vrot.slane %v2015_v12, 3  ;;  %v3988_v45 = vld [vmem:[#allocation2 + $0x8] sm:$0xff] }
 0x110   : > { %v3952_v60 = vpop.eup %3951  ;;  %v1777_v37 = vshrl.u32 %v1457_v29, 16  ;;  %v1780_v35 = vshll.u32 %v1457_v29, 16  ;;  %v2020_v9 = vrot.slane %v2018_v30, 4  ;;  %v3769_v13 = vunpack.i.h.bf16 %v3767_v19 }
 0x111   : > { %v5366_v53 = vsel %vm1495_vm3, %v1741_v27, %v1749_v47  ;;  %v2013_v26 = vor.u32 %v2012_v20, %v2009_v8  ;;  %v3768_v38 = vunpack.i.l.bf16 %v3767_v19  ;;  %v1371_v24 = vsel %vm390_vm0, %v3987_v36, %v1049_v40 }
 0x112   : > { %2341 = vmatmul.mubr.bf16.gmra.mrb[24].mxu0 %v5366_v53  ;;  %v2021_v61 = vor.u32 %v2020_v9, %v2017_v17  ;;  %v1370_v48 = vsel %vm390_vm0, %v3988_v45, %v3769_v13  ;;  %v1425_v12 = vpack.c.bf16 %v1371_v24, %v1371_v24  ;;  %v1769_v23 = vshrl.u32 %v1455_v62, 16 }
 0x113   : > { %v1369_v30 = vsel %vm390_vm0, %v881_v31, %v3768_v38  ;;  %3374 = vmatprep.mubr.msk.bf16.mxu0 %vm390_vm0, %v5060_v28  ;;  %v1772_v27 = vshll.u32 %v1455_v62, 16  ;;  %v1779_v39 = vrot.slane %v1777_v37, 3  ;;  %v1782_v63 = vrot.slane %v1780_v35, 4 }
 0x114   : > { %v5375_v52 = vsel %vm1495_vm3, %v2013_v26, %v2021_v61  ;;  %v1423_v15 = vpack.c.bf16 %v1370_v48, %v1369_v30  ;;  %v1505_v8 = vshrl.u32 %v1425_v12, 16  ;;  %v1508_v19 = vshll.u32 %v1425_v12, 16 }
 0x115   : > { %2405 = vmatmul.mubr.bf16.gmra.mrb[24].mxu1 %v5375_v52  ;;  %v1771_v9 = vrot.slane %v1769_v23, 3  ;;  %v1774_v29 = vrot.slane %v1772_v27, 4  ;;  %v1783_v40 = vor.u32 %v1782_v63, %v1779_v39  ;;  %v2081_v47 = vshrl.u32 %v5358_v33, 16 }
 0x116   : > { %v1497_v20 = vshrl.u32 %v1423_v15, 16  ;;  %v1500_v17 = vshll.u32 %v1423_v15, 16  ;;  %3382 = vmatprep.mubr.msk.bf16.mxu1 %vm390_vm0, %v5063_v54  ;;  %v1426_v35 = vpack.c.bf16 %v5068_v22, %v5068_v22  ;;  %v1517_v62 = vshll.u32 %v5050_v50, 16 }
 0x117   : > { %v1775_v37 = vor.u32 %v1774_v29, %v1771_v9  ;;  %v2083_v31 = vrot.slane %v2081_v47, 3  ;;  %v2084_v13 = vshll.u32 %v5358_v33, 16  ;;  %v2091_v26 = vrot.slane %v2089_v44, 3 }
 0x118   : > { %v1507_v38 = vrot.slane %v1505_v8, 3  ;;  %v1510_v36 = vrot.slane %v1508_v19, 4  ;;  %v2094_v24 = vrot.slane %v2092_v41, 4  ;;  %v5876_v61 = vshrl.u32 %v5050_v50, 16 }
 0x119   : > { %v5388_v48 = vsel %vm1495_vm3, %v1775_v37, %v1783_v40  ;;  %v2086_v12 = vrot.slane %v2084_v13, 4  ;;  %3953 = vrcp.f32 %v5327_v0  ;;  %v483_v22 = vmul.f32 %v3952_v60, %v5040_v55 }
 0x11a   : > { %v1516_v45 = vrot.slane %v5876_v61, 3  ;;  %2349 = vmatmul.mubr.bf16.gmra.mrb[28].mxu0 %v5388_v48  ;;  %v2095_v23 = vor.u32 %v2094_v24, %v2091_v26  ;;  %v1519_v30 = vrot.slane %v1517_v62, 4  ;;  %v1522_v33 = vshrl.u32 %v1426_v35, 16 }
 0x11b   : > { %v1525_v44 = vshll.u32 %v1426_v35, 16  ;;  %v1499_v27 = vrot.slane %v1497_v20, 3  ;;  %v1502_v39 = vrot.slane %v1500_v17, 4  ;;  %v2087_v41 = vor.u32 %v2086_v12, %v2083_v31  ;;  %3447 = vmatprep.mubr.msk.bf16.mxu0 %vm390_vm0, %v4893_v7 }
 0x11c   : > { %v489_v63 = vmul.f32 0.0, %v483_v22  ;;  %v1520_v50 = vor.u32 %v1519_v30, %v1516_v45  ;;  %v1524_v15 = vrot.slane %v1522_v33, 3  ;;  %v1511_v60 = vor.u32 %v1510_v36, %v1507_v38 }
 0x11d   : > { %v1527_v8 = vrot.slane %v1525_v44, 4  ;;  %v5396_v0 = vsel %vm1495_vm3, %v2087_v41, %v2095_v23  ;;  %v1503_v19 = vor.u32 %v1502_v39, %v1499_v27 }
 0x11e   : > { %494 = vst.msk [vmem:[#allocation2 + $0x228] sm:$0xff] %vm390_vm0, %v489_v63  ;;  %2413 = vmatmul.mubr.bf16.gmra.mrb[28].mxu1 %v5396_v0 }
 0x11f   : > { %v1528_v55 = vor.u32 %v1527_v8, %v1524_v15  ;;  %v1512_v40 = vsel %vm1495_vm3, %v1503_v19, %v1511_v60 }
 0x121   : > { %v1529_v9 = vsel %vm1495_vm3, %v1520_v50, %v1528_v55 }
 0x122   : > { %3395 = vmatprep.mubr.msk.bf16.mxu1 %vm390_vm0, %v1529_v9  ;;  %2825 = vmatmul.mubr.bf16.vlgmr.msra.gmra.mrb[32].mxu0 %v5147_v10 }
 0x123   : > { %v3954_v29 = vpop.eup %3953  ;;  %3448 = vmatprep.mubr.msk.bf16.mxu0 %vm390_vm0, %v4896_v1 }
 0x124   : > { %v484_v47 = vmul.f32 %v3954_v29, %v5053_v11 }
 0x125   : > { %v5411_v17 = vld [vmem:[#allocation2 + $0x228] sm:$0xff] }
 0x126   : > { %v490_v20 = vmul.f32 0.0, %v484_v47  ;;  %2529 = vmatmul.mubr.bf16.vlgmr.msra.gmra.mrb[32].mxu1 %v1512_v40  ;;  %v1041_v35 = vrot.slane %v5411_v17, 1 }
 0x127   : > { %3396 = vmatprep.mubr.msk.bf16.mxu1 %vm390_vm0, %v4733_v51 }
 0x128   : > { %495 = vst.msk [vmem:[#allocation2 + $0x230] sm:$0xff] %vm390_vm0, %v490_v20 }
 0x12a   : > { %2833 = vmatmul.mubr.bf16.gmra.mrb[36].mxu0 %v5182_v46 }
 0x12b   : > { %3449 = vmatprep.mubr.msk.bf16.mxu0 %vm390_vm0, %v4954_v5 }
 0x12e   : > { %2537 = vmatmul.mubr.bf16.gmra.mrb[36].mxu1 %v5106_v4 }
 0x12f   : > { %v5417_v62 = vld [vmem:[#allocation2 + $0x230] sm:$0xff]  ;;  %3397 = vmatprep.mubr.msk.bf16.mxu1 %vm390_vm0, %v4893_v7  ;;  %v952_v7 = vld [vmem:[#allocation2 + $0x238] sm:$0xff] }
 0x130   : > { %v1042_v51 = vrot.slane %v5417_v62, 1 }
 0x132   : > { %v1043_v11 = vsel %vm989_vm1, %v1041_v35, %v1042_v51  ;;  %1150 = vrot.lane.b32.xlu1 %v1042_v51, %s4071_s17  ;;  %2841 = vmatmul.mubr.bf16.gmra.mrb[40].mxu0 %v5252_v32 }
 0x133   : > { %v3770_v37 = vpack.i.bf16 %v1043_v11, %v1041_v35  ;;  %3450 = vmatprep.mubr.msk.bf16.mxu0 %vm390_vm0, %v4960_v16 }
 0x135   : > { %3771 = vrot.lane.b32.xlu0 %v3770_v37, %s4071_s17  ;;  %s3471_s17 = sshll.u32 %s4170_s13, 8  ;;  %s5599_s13 = scalar_lea.vmem [#allocation3], %s3287_s19 }
 0x136   : > { %2545 = vmatmul.mubr.bf16.gmra.mrb[40].mxu1 %v5147_v10  ;;  %s5587_s18 = scalar_lea.vmem %s5817_s5, %s3471_s17  ;;  %s3137_s28 = sshll.u32 %s5599_s13, 4  ;;  %s5758_s28 = int_to_ptr.vmem [resolvable:$true] %s3137_s28 }
 0x137   : > { %3398 = vmatprep.mubr.msk.bf16.mxu1 %vm390_vm0, %v4896_v1  ;;  %v1311_v1 = vrot.slane %v5417_v62, 2  ;;  %s5756_s17 = scalar_lea.hbm %s5818_s6, %s3472_s27  ;;  %s3989_s20 = scalar_lea.vmem %s5758_s28, 4096 }
 0x138   : > { %p3990_p12 = scmp.ne.s32.totalorder %s5758_s28, %s3989_s20 }
 0x13a   : > { %2849 = vmatmul.mubr.bf16.gmra.mrb[44].mxu0 %v5290_v34  ;;  %p3991_p13 = pnand %p3990_p12, %p4150_p4 }
 0x13b   : > { %3451 = vmatprep.mubr.msk.bf16.mxu0 %vm390_vm0, %v5036_v25 }
 0x13c   : > { %p3992_p0 = pneg %p3991_p13 }
 0x13e   : > { %2553 = vmatmul.mubr.bf16.gmra.mrb[44].mxu1 %v5182_v46 }
 0x13f   : > { %3399 = vmatprep.mubr.msk.bf16.mxu1 %vm390_vm0, %v4954_v5  ;;  %v1313_v5 = vrot.slane %v952_v7, 2 }
 0x142   : > { %2857 = vmatmul.mubr.bf16.gmra.mrb[48].mxu0 %v5317_v14 }
 0x143   : > { %3452 = vmatprep.mubr.msk.bf16.mxu0 %vm390_vm0, %v5046_v42 }
 0x146   : > { %2561 = vmatmul.mubr.bf16.gmra.mrb[48].mxu1 %v5252_v32 }
 0x147   : > { %3400 = vmatprep.mubr.msk.bf16.mxu1 %vm390_vm0, %v4960_v16  ;;  %v1314_v16 = vsel %vm1224_vm2, %v1311_v1, %v1313_v5 }
 0x14a   : > { %2865 = vmatmul.mubr.bf16.gmra.mrb[52].mxu0 %v5366_v53 }
 0x14b   : > { %3453 = vmatprep.mubr.msk.bf16.mxu0 %vm390_vm0, %v5060_v28 }
 0x14e   : > { %2569 = vmatmul.mubr.bf16.gmra.mrb[52].mxu1 %v5290_v34 }
 0x14f   : > { %3401 = vmatprep.mubr.msk.bf16.mxu1 %vm390_vm0, %v5036_v25  ;;  %v1494_v25 = vpack.c.bf16 %v1314_v16, %v1314_v16 }
 0x151   : > { %v2683_v10 = vshrl.u32 %v1494_v25, 16 }
 0x152   : > { %2873 = vmatmul.mubr.bf16.gmra.mrb[56].mxu0 %v5388_v48 }
 0x153   : > { %3454 = vmatprep.mubr.msk.bf16.mxu0 %vm390_vm0, %v4769_v6  ;;  %v2685_v32 = vrot.slane %v2683_v10, 3 }
 0x156   : > { %2577 = vmatmul.mubr.bf16.gmra.mrb[56].mxu1 %v5317_v14 }
 0x157   : > { %3402 = vmatprep.mubr.msk.bf16.mxu1 %vm390_vm0, %v5046_v42  ;;  %v5877_v42 = vld [vmem:[#allocation7_spill] sm:$0xff] }
 0x15a   : > { %2881 = vmatmul.mubr.bf16.gmra.mrb[60].mxu0 %v5124_v21 }
 0x15b   : > { %3455 = vmatprep.mubr.msk.bf16.mxu0 %vm390_vm0, %v4806_v57 }
 0x15e   : > { %2585 = vmatmul.mubr.bf16.gmra.mrb[60].mxu1 %v5366_v53  ;;  %v949_v53 = vld [vmem:[#allocation2 + $0x220] sm:$0xff] }
 0x15f   : > { %3403 = vmatprep.mubr.msk.bf16.mxu1 %vm390_vm0, %v5060_v28  ;;  %v5878_v28 = vld [vmem:[#allocation6_spill] sm:$0xff] }
 0x162   : > { %2889 = vmatmul.mubr.bf16.gmra.mrb[64].mxu0 %v5160_v58 }
 0x163   : > { %3456 = vmatprep.mubr.msk.bf16.mxu0 %vm390_vm0, %v4899_v43 }
 0x166   : > { %2593 = vmatmul.mubr.bf16.gmra.mrb[64].mxu1 %v5388_v48 }
 0x167   : > { %3404 = vmatprep.mubr.msk.bf16.mxu1 %vm390_vm0, %v4769_v6  ;;  %v1310_v6 = vrot.slane %v5411_v17, 2 }
 0x16a   : > { %2897 = vmatmul.mubr.bf16.gmra.mrb[68].mxu0 %v5200_v56 }
 0x16b   : > { %3457 = vmatprep.mubr.msk.bf16.mxu0 %vm390_vm0, %v4957_v2 }
 0x16e   : > { %2601 = vmatmul.mubr.bf16.gmra.mrb[68].mxu1 %v5124_v21 }
 0x16f   : > { %3405 = vmatprep.mubr.msk.bf16.mxu1 %vm390_vm0, %v4806_v57  ;;  %v1312_v57 = vsel %vm1224_vm2, %v1310_v6, %v1311_v1 }
 0x172   : > { %2905 = vmatmul.mubr.bf16.gmra.mrb[72].mxu0 %v5264_v59 }
 0x173   : > { %3458 = vmatprep.mubr.msk.bf16.mxu0 %vm390_vm0, %v4963_v18 }
 0x176   : > { %2609 = vmatmul.mubr.bf16.gmra.mrb[72].mxu1 %v5160_v58  ;;  %v2686_v58 = vshll.u32 %v1494_v25, 16 }
 0x177   : > { %3406 = vmatprep.mubr.msk.bf16.mxu1 %vm390_vm0, %v4899_v43  ;;  %v1492_v43 = vpack.c.bf16 %v1312_v57, %v1310_v6 }
 0x179   : > { %v2675_v4 = vshrl.u32 %v1492_v43, 16  ;;  %v2678_v21 = vshll.u32 %v1492_v43, 16 }
 0x17a   : > { %2913 = vmatmul.mubr.bf16.gmra.mrb[76].mxu0 %v5308_v49 }
 0x17b   : > { %3459 = vmatprep.mubr.msk.bf16.mxu0 %vm390_vm0, %v5043_v3  ;;  %v2677_v46 = vrot.slane %v2675_v4, 3 }
 0x17e   : > { %2617 = vmatmul.mubr.bf16.gmra.mrb[76].mxu1 %v5200_v56  ;;  %v2680_v56 = vrot.slane %v2678_v21, 4 }
 0x17f   : > { %3407 = vmatprep.mubr.msk.bf16.mxu1 %vm390_vm0, %v4957_v2  ;;  %v2688_v2 = vrot.slane %v2686_v58, 4 }
 0x180   : > { %v2681_v34 = vor.u32 %v2680_v56, %v2677_v46 }
 0x181   : > { %v2689_v14 = vor.u32 %v2688_v2, %v2685_v32 }
 0x182   : > { %2921 = vmatmul.mubr.bf16.gmra.mrb[80].mxu0 %v5877_v42 }
 0x183   : > { %3460 = vmatprep.mubr.msk.bf16.mxu0 %vm390_vm0, %v5878_v28 }
 0x186   : > { %2625 = vmatmul.mubr.bf16.gmra.mrb[80].mxu1 %v5264_v59  ;;  %v2690_v59 = vsel %vm1495_vm3, %v2681_v34, %v2689_v14 }
 0x187   : > { %3408 = vmatprep.mubr.msk.bf16.mxu1 %vm390_vm0, %v4963_v18 }
 0x18a   : > { %2929 = vmatmul.mubr.bf16.gmra.mrb[84].mxu0 %v5375_v52 }
 0x18b   : > { %3461 = vmatprep.mubr.msk.bf16.mxu0 %vm390_vm0, %v5063_v54 }
 0x18e   : > { %2633 = vmatmul.mubr.bf16.gmra.mrb[84].mxu1 %v5308_v49 }
 0x18f   : > { %3409 = vmatprep.mubr.msk.bf16.mxu1 %vm390_vm0, %v5043_v3 }
 0x192   : > { %2937 = vmatmul.mubr.bf16.gmra.mrb[88].mxu0 %v5396_v0 }
 0x193   : > { %3462 = vmatprep.mubr.msk.bf16.mxu0 %vm390_vm0, %v2690_v59 }
 0x196   : > { %2641 = vmatmul.mubr.bf16.gmra.mrb[88].mxu1 %v5877_v42 }
 0x197   : > { %3410 = vmatprep.mubr.msk.bf16.mxu1 %vm390_vm0, %v5878_v28 }
 0x19e   : > { %2649 = vmatmul.mubr.bf16.gmra.mrb[92].mxu1 %v5375_v52 }
 0x1a4   : > { %v1151_v18 = vpop.permute.xlu1 %1150 }
 0x1a5   : > { %v1422_v54 = vsel %vm390_vm0, %v5417_v62, %v1151_v18 }
 0x1a6   : > { %v1493_v49 = vpack.c.bf16 %v1422_v54, %v1422_v54 }
 0x1a7   : > { %v3772_v3 = vpop.permute.xlu0 %3771 }
 0x1a8   : > { %v3774_v31 = vunpack.i.h.bf16 %v3772_v3  ;;  %v3773_v13 = vunpack.i.l.bf16 %v3772_v3  ;;  %v2666_v26 = vshrl.u32 %v1493_v49, 16  ;;  %v2669_v38 = vshll.u32 %v1493_v49, 16 }
 0x1aa   : > { %v1421_v36 = vsel %vm390_vm0, %v5411_v17, %v3774_v31  ;;  %v1420_v24 = vsel %vm390_vm0, %v949_v53, %v3773_v13  ;;  %v2668_v45 = vrot.slane %v2666_v26, 3  ;;  %v2671_v48 = vrot.slane %v2669_v38, 4 }
 0x1ab   : > { %v1491_v61 = vpack.c.bf16 %v1421_v36, %v1420_v24 }
 0x1ac   : > { %v2672_v44 = vor.u32 %v2671_v48, %v2668_v45 }
 0x1ad   : > { %v2658_v52 = vshrl.u32 %v1491_v61, 16  ;;  %v2661_v12 = vshll.u32 %v1491_v61, 16  ;;  %v5513_v22 = vpop.f32.mrb[0].mxu0 }
 0x1ae   : > { %v2296_v23 = vpop.f32.mrb[1].mxu0 }
 0x1af   : > { %v2660_v30 = vrot.slane %v2658_v52, 3  ;;  %v2663_v33 = vrot.slane %v2661_v12, 4  ;;  %v5515_v27 = vpop.f32.mrb[2].mxu0  ;;  %v5517_v39 = vpop.f32.mrb[0].mxu1 }
 0x1b0   : > { %v2299_v41 = vpop.f32.mrb[3].mxu0  ;;  %v2360_v50 = vpop.f32.mrb[1].mxu1 }
 0x1b1   : > { %v2664_v63 = vor.u32 %v2663_v33, %v2660_v30  ;;  %v5519_v15 = vpop.f32.mrb[2].mxu1 }
 0x1b2   : > { %v2363_v0 = vpop.f32.mrb[3].mxu1 }
 0x1b3   : > { %v2673_v8 = vsel %vm1495_vm3, %v2664_v63, %v2672_v44 }
 0x1b4   : > { %2945 = vmatmul.mubr.bf16.gmra.mrb[92].mxu0 %v2673_v8 }
 0x1b6   : > { %v5522_v55 = vpop.f32.mrb[4].mxu0 }
 0x1b7   : > { %v2304_v60 = vpop.f32.mrb[5].mxu0 }
 0x1b8   : > { %v5524_v19 = vpop.f32.mrb[4].mxu1  ;;  %v5526_v9 = vpop.f32.mrb[6].mxu0 }
 0x1b9   : > { %v2368_v29 = vpop.f32.mrb[5].mxu1  ;;  %v2307_v40 = vpop.f32.mrb[7].mxu0 }
 0x1ba   : > { %v5528_v47 = vpop.f32.mrb[6].mxu1 }
 0x1bb   : > { %v2371_v20 = vpop.f32.mrb[7].mxu1 }
 0x1bc   : > { %v5590_v20 = vld [vmem:[%s375_s12] ss:$0 sm:$0xff]  ;;  %s3993_s12 = sshll.u32 %s4072_s11, 4  ;;  %s3994_s12 = int_to_ptr.vmem [resolvable:$false] %s3993_s12 }
 0x1bd   : > { %s3995_s15 = scalar_lea.vmem %s3994_s12, 8192  ;;  %p3996_p1 = scmp.lt.s32.totalorder %s5758_s28, %s3994_s12 }
 0x1be   : > { %v5530_v17 = vpop.f32.mrb[8].mxu0  ;;  %p3997_p2 = scmp.lt.s32.totalorder %s3995_s15, %s3989_s20 }
 0x1bf   : > { %v2312_v35 = vpop.f32.mrb[9].mxu0 }
 0x1c0   : > { %v5532_v62 = vpop.f32.mrb[8].mxu1  ;;  %v5534_v51 = vpop.f32.mrb[10].mxu0  ;;  %p3998_p3 = por %p3997_p2, %p3996_p1 }
 0x1c1   : > { %v2376_v11 = vpop.f32.mrb[9].mxu1  ;;  %v2315_v37 = vpop.f32.mrb[11].mxu0 }
 0x1c2   : > { %v5536_v7 = vpop.f32.mrb[10].mxu1  ;;  %p3999_p5 = pnand %p3998_p3, %p3992_p0 }
 0x1c3   : > { %v2379_v6 = vpop.f32.mrb[11].mxu1 }
 0x1ca   : > { %v5538_v1 = vpop.f32.mrb[12].mxu0 }
 0x1cb   : > { %v2320_v5 = vpop.f32.mrb[13].mxu0 }
 0x1cc   : > { %v5540_v57 = vpop.f32.mrb[12].mxu1  ;;  %v5542_v16 = vpop.f32.mrb[14].mxu0  ;;  %v3024_v5 = vld [vmem:[%s5587_s18] sm:$0xff] }
 0x1cd   : > { %v2384_v43 = vpop.f32.mrb[13].mxu1  ;;  %v2323_v25 = vpop.f32.mrb[15].mxu0 }
 0x1ce   : > { %v5544_v42 = vpop.f32.mrb[14].mxu1 }
 0x1cf   : > { %v2387_v28 = vpop.f32.mrb[15].mxu1 }
 0x1d2   : > { %v5546_v4 = vpop.f32.mrb[16].mxu0 }
 0x1d3   : > { %v2328_v21 = vpop.f32.mrb[17].mxu0 }
 0x1d4   : > { %v5548_v10 = vpop.f32.mrb[18].mxu0 }
 0x1d5   : > { %v5550_v58 = vpop.f32.mrb[16].mxu1  ;;  %v2331_v46 = vpop.f32.mrb[19].mxu0 }
 0x1d6   : > { %v2392_v56 = vpop.f32.mrb[17].mxu1  ;;  %v3025_v46 = vld [vmem:[%s5587_s18 + $0x8] sm:$0xff] }
 0x1d7   : > { %v5552_v32 = vpop.f32.mrb[18].mxu1 }
 0x1d8   : > { %v2395_v2 = vpop.f32.mrb[19].mxu1 }
 0x1da   : > { %v5554_v34 = vpop.f32.mrb[20].mxu0 }
 0x1db   : > { %v2336_v14 = vpop.f32.mrb[21].mxu0 }
 0x1dc   : > { %v5556_v59 = vpop.f32.mrb[22].mxu0 }
 0x1dd   : > { %v5558_v18 = vpop.f32.mrb[20].mxu1  ;;  %v2339_v54 = vpop.f32.mrb[23].mxu0 }
 0x1de   : > { %v2400_v49 = vpop.f32.mrb[21].mxu1 }
 0x1df   : > { %v5560_v53 = vpop.f32.mrb[22].mxu1 }
 0x1e0   : > { %v2403_v3 = vpop.f32.mrb[23].mxu1 }
 0x1e5   : > { %v5562_v31 = vpop.f32.mrb[24].mxu0 }
 0x1e6   : > { %v2344_v13 = vpop.f32.mrb[25].mxu0 }
 0x1e7   : > { %v5564_v26 = vpop.f32.mrb[26].mxu0 }
 0x1e8   : > { %v5566_v38 = vpop.f32.mrb[24].mxu1  ;;  %v2347_v36 = vpop.f32.mrb[27].mxu0 }
 0x1e9   : > { %v2408_v24 = vpop.f32.mrb[25].mxu1 }
 0x1ea   : > { %v5568_v61 = vpop.f32.mrb[26].mxu1 }
 0x1eb   : > { %v2411_v45 = vpop.f32.mrb[27].mxu1 }
 0x1ed   : > { %v5570_v48 = vpop.f32.mrb[28].mxu0 }
 0x1ee   : > { %v2352_v52 = vpop.f32.mrb[29].mxu0 }
 0x1ef   : > { %v5572_v12 = vpop.f32.mrb[30].mxu0  ;;  %v3026_v52 = vld [vmem:[%s5587_s18 + $0x10] sm:$0xff] }
 0x1f0   : > { %v2355_v23 = vpop.f32.mrb[31].mxu0 }
 0x1f1   : > { %v5574_v30 = vpop.f32.mrb[28].mxu1 }
 0x1f2   : > { %v2416_v33 = vpop.f32.mrb[29].mxu1 }
 0x1f3   : > { %v5576_v44 = vpop.f32.mrb[30].mxu1 }
 0x1f4   : > { %v2419_v41 = vpop.f32.mrb[31].mxu1 }
 0x1f5   : > { %v2826_v63 = vpop.f32.mrb[32].mxu0 }
 0x1f6   : > { %v2828_v50 = vpop.f32.mrb[33].mxu0 }
 0x1f7   : > { %v2829_v8 = vpop.f32.mrb[34].mxu0  ;;  %v3027_v50 = vld [vmem:[%s5587_s18 + $0x18] sm:$0xff] }
 0x1f8   : > { %v2831_v0 = vpop.f32.mrb[35].mxu0 }
 0x1f9   : > { %v2530_v60 = vpop.f32.mrb[32].mxu1 }
 0x1fa   : > { %v2531_v29 = vadd.f32 %v2530_v60, %v5513_v22  ;;  %v2532_v40 = vpop.f32.mrb[33].mxu1 }
 0x1fb   : > { %v2533_v35 = vpop.f32.mrb[34].mxu1 }
 0x1fc   : > { %v2953_v11 = vadd.f32 %v2826_v63, %v2531_v29  ;;  %v2534_v37 = vadd.f32 %v2533_v35, %v5515_v27  ;;  %v2535_v6 = vpop.f32.mrb[35].mxu1 }
 0x1fd   : > { %v2834_v43 = vpop.f32.mrb[36].mxu0 }
 0x1fe   : > { %v2992_v25 = vadd.f32 %v5590_v20, %v2953_v11  ;;  %v2954_v28 = vadd.f32 %v2829_v8, %v2534_v37  ;;  %v2836_v21 = vpop.f32.mrb[37].mxu0 }
 0x1ff   : > { %v2837_v56 = vpop.f32.mrb[38].mxu0 }
 0x200   : > { %v3056_v22 = vadd.f32 %v3024_v5, %v2992_v25  ;;  %v2993_v2 = vadd.f32 %v5590_v20, %v2954_v28  ;;  %v2839_v14 = vpop.f32.mrb[39].mxu0 }
 0x201   : > { %v2538_v54 = vpop.f32.mrb[36].mxu1 }
 0x202   : > { %3088 = vst.msk [vmem:[%s5599_s13] sm:$0xff] %vm390_vm0, %v3056_v22  ;;  %v3057_v27 = vadd.f32 %v3025_v46, %v2993_v2  ;;  %v2539_v49 = vadd.f32 %v2538_v54, %v5522_v55  ;;  %v2540_v3 = vpop.f32.mrb[37].mxu1 }
 0x203   : > { %v2541_v13 = vpop.f32.mrb[38].mxu1 }
 0x204   : > { %3089 = vst.msk [vmem:[%s5599_s13 + $0x8] sm:$0xff] %vm390_vm0, %v3057_v27  ;;  %v2955_v36 = vadd.f32 %v2834_v43, %v2539_v49  ;;  %v2542_v24 = vadd.f32 %v2541_v13, %v5526_v9  ;;  %v2543_v45 = vpop.f32.mrb[39].mxu1  ;;  %v3028_v43 = vld [vmem:[%s5587_s18 + $0x20] sm:$0xff] }
 0x205   : > { %v2842_v23 = vpop.f32.mrb[40].mxu0  ;;  %v3030_v45 = vld [vmem:[%s5587_s18 + $0x30] sm:$0xff] }
 0x206   : > { %v2994_v33 = vadd.f32 %v5590_v20, %v2955_v36  ;;  %v2956_v41 = vadd.f32 %v2837_v56, %v2542_v24  ;;  %v2844_v63 = vpop.f32.mrb[41].mxu0  ;;  %v3029_v56 = vld [vmem:[%s5587_s18 + $0x28] sm:$0xff] }
 0x207   : > { %v2845_v8 = vpop.f32.mrb[42].mxu0  ;;  %v3031_v63 = vld [vmem:[%s5587_s18 + $0x38] sm:$0xff] }
 0x208   : > { %v3058_v55 = vadd.f32 %v3026_v52, %v2994_v33  ;;  %v2995_v0 = vadd.f32 %v5590_v20, %v2956_v41  ;;  %v2847_v60 = vpop.f32.mrb[43].mxu0 }
 0x209   : > { %v2546_v29 = vpop.f32.mrb[40].mxu1 }
 0x20a   : > { %3090 = vst.msk [vmem:[%s5599_s13 + $0x10] sm:$0xff] %vm390_vm0, %v3058_v55  ;;  %v3059_v9 = vadd.f32 %v3027_v50, %v2995_v0  ;;  %v2547_v40 = vadd.f32 %v2546_v29, %v5530_v17  ;;  %v2548_v35 = vpop.f32.mrb[41].mxu1 }
 0x20b   : > { %v2549_v11 = vpop.f32.mrb[42].mxu1 }
 0x20c   : > { %3091 = vst.msk [vmem:[%s5599_s13 + $0x18] sm:$0xff] %vm390_vm0, %v3059_v9  ;;  %v2957_v37 = vadd.f32 %v2842_v23, %v2547_v40  ;;  %v2550_v6 = vadd.f32 %v2549_v11, %v5534_v51  ;;  %v2551_v5 = vpop.f32.mrb[43].mxu1 }
 0x20d   : > { %v2850_v25 = vpop.f32.mrb[44].mxu0 }
 0x20e   : > { %v2996_v28 = vadd.f32 %v5590_v20, %v2957_v37  ;;  %v2958_v21 = vadd.f32 %v2845_v8, %v2550_v6  ;;  %v2852_v46 = vpop.f32.mrb[45].mxu0  ;;  %v3032_v37 = vld [vmem:[%s5587_s18 + $0x40] sm:$0xff] }
 0x20f   : > { %v2853_v22 = vpop.f32.mrb[46].mxu0 }
 0x210   : > { %v3060_v17 = vadd.f32 %v3028_v43, %v2996_v28  ;;  %v2997_v2 = vadd.f32 %v5590_v20, %v2958_v21  ;;  %v2855_v14 = vpop.f32.mrb[47].mxu0  ;;  %v3033_v28 = vld [vmem:[%s5587_s18 + $0x48] sm:$0xff] }
 0x211   : > { %v2554_v54 = vpop.f32.mrb[44].mxu1 }
 0x212   : > { %3092 = vst.msk [vmem:[%s5599_s13 + $0x20] sm:$0xff] %vm390_vm0, %v3060_v17  ;;  %v3061_v51 = vadd.f32 %v3029_v56, %v2997_v2  ;;  %v2555_v27 = vadd.f32 %v2554_v54, %v5538_v1  ;;  %v2556_v49 = vpop.f32.mrb[45].mxu1 }
 0x213   : > { %v2557_v3 = vpop.f32.mrb[46].mxu1  ;;  %v3034_v49 = vld [vmem:[%s5587_s18 + $0x50] sm:$0xff] }
 0x214   : > { %3093 = vst.msk [vmem:[%s5599_s13 + $0x28] sm:$0xff] %vm390_vm0, %v3061_v51  ;;  %v2959_v13 = vadd.f32 %v2850_v25, %v2555_v27  ;;  %v2558_v36 = vadd.f32 %v2557_v3, %v5542_v16  ;;  %v2559_v24 = vpop.f32.mrb[47].mxu1 }
 0x215   : > { %v2858_v52 = vpop.f32.mrb[48].mxu0 }
 0x216   : > { %v2998_v23 = vadd.f32 %v5590_v20, %v2959_v13  ;;  %v2960_v33 = vadd.f32 %v2853_v22, %v2558_v36  ;;  %v2860_v41 = vpop.f32.mrb[49].mxu0 }
 0x217   : > { %v2861_v50 = vpop.f32.mrb[50].mxu0 }
 0x218   : > { %v3062_v1 = vadd.f32 %v3030_v45, %v2998_v23  ;;  %v2999_v8 = vadd.f32 %v5590_v20, %v2960_v33  ;;  %v2863_v55 = vpop.f32.mrb[51].mxu0  ;;  %v3035_v45 = vld [vmem:[%s5587_s18 + $0x58] sm:$0xff] }
 0x219   : > { %v2562_v0 = vpop.f32.mrb[48].mxu1 }
 0x21a   : > { %3094 = vst.msk [vmem:[%s5599_s13 + $0x30] sm:$0xff] %vm390_vm0, %v3062_v1  ;;  %v3063_v16 = vadd.f32 %v3031_v63, %v2999_v8  ;;  %v2563_v60 = vadd.f32 %v2562_v0, %v5546_v4  ;;  %v2564_v29 = vpop.f32.mrb[49].mxu1 }
 0x21b   : > { %v2565_v9 = vpop.f32.mrb[50].mxu1 }
 0x21c   : > { %3095 = vst.msk [vmem:[%s5599_s13 + $0x38] sm:$0xff] %vm390_vm0, %v3063_v16  ;;  %v2961_v40 = vadd.f32 %v2858_v52, %v2563_v60  ;;  %v2566_v35 = vadd.f32 %v2565_v9, %v5548_v10  ;;  %v2567_v11 = vpop.f32.mrb[51].mxu1  ;;  %v3036_v16 = vld [vmem:[%s5587_s18 + $0x60] sm:$0xff] }
 0x21d   : > { %v2866_v6 = vpop.f32.mrb[52].mxu0 }
 0x21e   : > { %v3000_v5 = vadd.f32 %v5590_v20, %v2961_v40  ;;  %v2962_v43 = vadd.f32 %v2861_v50, %v2566_v35  ;;  %v2868_v25 = vpop.f32.mrb[53].mxu0  ;;  %v3037_v35 = vld [vmem:[%s5587_s18 + $0x68] sm:$0xff] }
 0x21f   : > { %v2869_v21 = vpop.f32.mrb[54].mxu0 }
 0x220   : > { %v3064_v4 = vadd.f32 %v3032_v37, %v3000_v5  ;;  %v3001_v46 = vadd.f32 %v5590_v20, %v2962_v43  ;;  %v2871_v56 = vpop.f32.mrb[55].mxu0 }
 0x221   : > { %v2570_v22 = vpop.f32.mrb[52].mxu1  ;;  %v3038_v56 = vld [vmem:[%s5587_s18 + $0x70] sm:$0xff] }
 0x222   : > { %3096 = vst.msk [vmem:[%s5599_s13 + $0x40] sm:$0xff] %vm390_vm0, %v3064_v4  ;;  %v3065_v10 = vadd.f32 %v3033_v28, %v3001_v46  ;;  %v2571_v17 = vadd.f32 %v2570_v22, %v5554_v34  ;;  %v2572_v2 = vpop.f32.mrb[53].mxu1 }
 0x223   : > { %v2573_v14 = vpop.f32.mrb[54].mxu1 }
 0x224   : > { %3097 = vst.msk [vmem:[%s5599_s13 + $0x48] sm:$0xff] %vm390_vm0, %v3065_v10  ;;  %v2963_v54 = vadd.f32 %v2866_v6, %v2571_v17  ;;  %v2574_v51 = vadd.f32 %v2573_v14, %v5556_v59  ;;  %v2575_v27 = vpop.f32.mrb[55].mxu1  ;;  %v3039_v14 = vld [vmem:[%s5587_s18 + $0x78] sm:$0xff] }
 0x225   : > { %v2874_v3 = vpop.f32.mrb[56].mxu0 }
 0x226   : > { %v3002_v13 = vadd.f32 %v5590_v20, %v2963_v54  ;;  %v2964_v36 = vadd.f32 %v2869_v21, %v2574_v51  ;;  %v2876_v24 = vpop.f32.mrb[57].mxu0 }
 0x227   : > { %v2877_v52 = vpop.f32.mrb[58].mxu0 }
 0x228   : > { %v3066_v34 = vadd.f32 %v3034_v49, %v3002_v13  ;;  %v3003_v23 = vadd.f32 %v5590_v20, %v2964_v36  ;;  %v2879_v33 = vpop.f32.mrb[59].mxu0 }
 0x229   : > { %v2578_v41 = vpop.f32.mrb[56].mxu1 }
 0x22a   : > { %3098 = vst.msk [vmem:[%s5599_s13 + $0x50] sm:$0xff] %vm390_vm0, %v3066_v34  ;;  %v3067_v59 = vadd.f32 %v3035_v45, %v3003_v23  ;;  %v2579_v63 = vadd.f32 %v2578_v41, %v5562_v31  ;;  %v2580_v50 = vpop.f32.mrb[57].mxu1  ;;  %v3040_v34 = vld [vmem:[%s5587_s18 + $0x80] sm:$0xff] }
 0x22b   : > { %v2581_v1 = vpop.f32.mrb[58].mxu1 }
 0x22c   : > { %3099 = vst.msk [vmem:[%s5599_s13 + $0x58] sm:$0xff] %vm390_vm0, %v3067_v59  ;;  %v2965_v8 = vadd.f32 %v2874_v3, %v2579_v63  ;;  %v2582_v55 = vadd.f32 %v2581_v1, %v5564_v26  ;;  %v2583_v0 = vpop.f32.mrb[59].mxu1  ;;  %v3041_v63 = vld [vmem:[%s5587_s18 + $0x88] sm:$0xff] }
 0x22d   : > { %v2882_v60 = vpop.f32.mrb[60].mxu0 }
 0x22e   : > { %v3004_v29 = vadd.f32 %v5590_v20, %v2965_v8  ;;  %v2966_v9 = vadd.f32 %v2877_v52, %v2582_v55  ;;  %v2884_v40 = vpop.f32.mrb[61].mxu0 }
 0x22f   : > { %v2885_v11 = vpop.f32.mrb[62].mxu0 }
 0x230   : > { %v3068_v31 = vadd.f32 %v3036_v16, %v3004_v29  ;;  %v3005_v37 = vadd.f32 %v5590_v20, %v2966_v9  ;;  %v2887_v6 = vpop.f32.mrb[63].mxu0 }
 0x231   : > { %v2586_v5 = vpop.f32.mrb[60].mxu1 }
 0x232   : > { %3100 = vst.msk [vmem:[%s5599_s13 + $0x60] sm:$0xff] %vm390_vm0, %v3068_v31  ;;  %v3069_v26 = vadd.f32 %v3037_v35, %v3005_v37  ;;  %v2587_v43 = vadd.f32 %v2586_v5, %v5570_v48  ;;  %v2588_v25 = vpop.f32.mrb[61].mxu1  ;;  %v3042_v35 = vld [vmem:[%s5587_s18 + $0x90] sm:$0xff]  ;;  %v3043_v5 = vld [vmem:[%s5587_s18 + $0x98] sm:$0xff] }
 0x233   : > { %v2589_v28 = vpop.f32.mrb[62].mxu1 }
 0x234   : > { %3101 = vst.msk [vmem:[%s5599_s13 + $0x68] sm:$0xff] %vm390_vm0, %v3069_v26  ;;  %v2967_v21 = vadd.f32 %v2882_v60, %v2587_v43  ;;  %v2590_v4 = vadd.f32 %v2589_v28, %v5572_v12  ;;  %v2591_v46 = vpop.f32.mrb[63].mxu1 }
 0x235   : > { %v2890_v22 = vpop.f32.mrb[64].mxu0 }
 0x236   : > { %v3006_v10 = vadd.f32 %v5590_v20, %v2967_v21  ;;  %v2968_v17 = vadd.f32 %v2885_v11, %v2590_v4  ;;  %v2892_v2 = vpop.f32.mrb[65].mxu0 }
 0x237   : > { %v2893_v54 = vpop.f32.mrb[66].mxu0 }
 0x238   : > { %v3070_v48 = vadd.f32 %v3038_v56, %v3006_v10  ;;  %v3007_v51 = vadd.f32 %v5590_v20, %v2968_v17  ;;  %v2895_v27 = vpop.f32.mrb[67].mxu0  ;;  %v3044_v17 = vld [vmem:[%s5587_s18 + $0xa0] sm:$0xff] }
 0x239   : > { %v2594_v49 = vpop.f32.mrb[64].mxu1 }
 0x23a   : > { %3102 = vst.msk [vmem:[%s5599_s13 + $0x70] sm:$0xff] %vm390_vm0, %v3070_v48  ;;  %v3071_v12 = vadd.f32 %v3039_v14, %v3007_v51  ;;  %v2595_v3 = vadd.f32 %v2594_v49, %v5517_v39  ;;  %v2596_v13 = vpop.f32.mrb[65].mxu1  ;;  %v3045_v51 = vld [vmem:[%s5587_s18 + $0xa8] sm:$0xff] }
 0x23b   : > { %v2597_v36 = vpop.f32.mrb[66].mxu1 }
 0x23c   : > { %3103 = vst.msk [vmem:[%s5599_s13 + $0x78] sm:$0xff] %vm390_vm0, %v3071_v12  ;;  %v2969_v24 = vadd.f32 %v2890_v22, %v2595_v3  ;;  %v2598_v45 = vadd.f32 %v2597_v36, %v5519_v15  ;;  %v2599_v52 = vpop.f32.mrb[67].mxu1 }
 0x23d   : > { %v2898_v23 = vpop.f32.mrb[68].mxu0 }
 0x23e   : > { %v3008_v33 = vadd.f32 %v5590_v20, %v2969_v24  ;;  %v2970_v41 = vadd.f32 %v2893_v54, %v2598_v45  ;;  %v2900_v59 = vpop.f32.mrb[69].mxu0 }
 0x23f   : > { %v2901_v50 = vpop.f32.mrb[70].mxu0 }
 0x240   : > { %v3072_v39 = vadd.f32 %v3040_v34, %v3008_v33  ;;  %v3009_v1 = vadd.f32 %v5590_v20, %v2970_v41  ;;  %v2903_v8 = vpop.f32.mrb[71].mxu0 }
 0x241   : > { %v2602_v55 = vpop.f32.mrb[68].mxu1 }
 0x242   : > { %3104 = vst.msk [vmem:[%s5599_s13 + $0x80] sm:$0xff] %vm390_vm0, %v3072_v39  ;;  %v3073_v15 = vadd.f32 %v3041_v63, %v3009_v1  ;;  %v2603_v0 = vadd.f32 %v2602_v55, %v5524_v19  ;;  %v2604_v16 = vpop.f32.mrb[69].mxu1 }
 0x243   : > { %v2605_v60 = vpop.f32.mrb[70].mxu1 }
 0x244   : > { %3105 = vst.msk [vmem:[%s5599_s13 + $0x88] sm:$0xff] %vm390_vm0, %v3073_v15  ;;  %v2971_v29 = vadd.f32 %v2898_v23, %v2603_v0  ;;  %v2606_v9 = vadd.f32 %v2605_v60, %v5528_v47  ;;  %v2607_v40 = vpop.f32.mrb[71].mxu1  ;;  %v3046_v23 = vld [vmem:[%s5587_s18 + $0xb0] sm:$0xff] }
 0x245   : > { %v2906_v11 = vpop.f32.mrb[72].mxu0  ;;  %v3048_v40 = vld [vmem:[%s5587_s18 + $0xc0] sm:$0xff] }
 0x246   : > { %v3010_v31 = vadd.f32 %v5590_v20, %v2971_v29  ;;  %v2972_v37 = vadd.f32 %v2901_v50, %v2606_v9  ;;  %v2908_v6 = vpop.f32.mrb[73].mxu0  ;;  %v3047_v50 = vld [vmem:[%s5587_s18 + $0xb8] sm:$0xff] }
 0x247   : > { %v2909_v26 = vpop.f32.mrb[74].mxu0  ;;  %v3049_v6 = vld [vmem:[%s5587_s18 + $0xc8] sm:$0xff] }
 0x248   : > { %v3074_v19 = vadd.f32 %v3042_v35, %v3010_v31  ;;  %v3011_v43 = vadd.f32 %v5590_v20, %v2972_v37  ;;  %v2911_v25 = vpop.f32.mrb[75].mxu0 }
 0x249   : > { %v2610_v28 = vpop.f32.mrb[72].mxu1 }
 0x24a   : > { %3106 = vst.msk [vmem:[%s5599_s13 + $0x90] sm:$0xff] %vm390_vm0, %v3074_v19  ;;  %v3075_v47 = vadd.f32 %v3043_v5, %v3011_v43  ;;  %v2611_v21 = vadd.f32 %v2610_v28, %v5532_v62  ;;  %v2612_v4 = vpop.f32.mrb[73].mxu1 }
 0x24b   : > { %v2613_v46 = vpop.f32.mrb[74].mxu1 }
 0x24c   : > { %3107 = vst.msk [vmem:[%s5599_s13 + $0x98] sm:$0xff] %vm390_vm0, %v3075_v47  ;;  %v2973_v56 = vadd.f32 %v2906_v11, %v2611_v21  ;;  %v2614_v22 = vadd.f32 %v2613_v46, %v5536_v7  ;;  %v2615_v10 = vpop.f32.mrb[75].mxu1 }
 0x24d   : > { %v2914_v2 = vpop.f32.mrb[76].mxu0 }
 0x24e   : > { %v3012_v14 = vadd.f32 %v5590_v20, %v2973_v56  ;;  %v2974_v54 = vadd.f32 %v2909_v26, %v2614_v22  ;;  %v2916_v48 = vpop.f32.mrb[77].mxu0  ;;  %v3050_v56 = vld [vmem:[%s5587_s18 + $0xd0] sm:$0xff] }
 0x24f   : > { %v2917_v27 = vpop.f32.mrb[78].mxu0 }
 0x250   : > { %v3076_v62 = vadd.f32 %v3044_v17, %v3012_v14  ;;  %v3013_v49 = vadd.f32 %v5590_v20, %v2974_v54  ;;  %v2919_v12 = vpop.f32.mrb[79].mxu0  ;;  %v3051_v14 = vld [vmem:[%s5587_s18 + $0xd8] sm:$0xff] }
 0x251   : > { %v2618_v3 = vpop.f32.mrb[76].mxu1 }
 0x252   : > { %3108 = vst.msk [vmem:[%s5599_s13 + $0xa0] sm:$0xff] %vm390_vm0, %v3076_v62  ;;  %v3077_v7 = vadd.f32 %v3045_v51, %v3013_v49  ;;  %v2619_v13 = vadd.f32 %v2618_v3, %v5540_v57  ;;  %v2620_v36 = vpop.f32.mrb[77].mxu1 }
 0x253   : > { %v2621_v24 = vpop.f32.mrb[78].mxu1  ;;  %v3052_v36 = vld [vmem:[%s5587_s18 + $0xe0] sm:$0xff] }
 0x254   : > { %3109 = vst.msk [vmem:[%s5599_s13 + $0xa8] sm:$0xff] %vm390_vm0, %v3077_v7  ;;  %v2975_v45 = vadd.f32 %v2914_v2, %v2619_v13  ;;  %v2622_v52 = vadd.f32 %v2621_v24, %v5544_v42  ;;  %v2623_v34 = vpop.f32.mrb[79].mxu1 }
 0x255   : > { %v2922_v33 = vpop.f32.mrb[80].mxu0 }
 0x256   : > { %v3014_v41 = vadd.f32 %v5590_v20, %v2975_v45  ;;  %v2976_v59 = vadd.f32 %v2917_v27, %v2622_v52  ;;  %v2924_v63 = vpop.f32.mrb[81].mxu0  ;;  %v3053_v52 = vld [vmem:[%s5587_s18 + $0xe8] sm:$0xff] }
 0x257   : > { %v2925_v39 = vpop.f32.mrb[82].mxu0 }
 0x258   : > { %v3078_v57 = vadd.f32 %v3046_v23, %v3014_v41  ;;  %v3015_v1 = vadd.f32 %v5590_v20, %v2976_v59  ;;  %v2927_v8 = vpop.f32.mrb[83].mxu0 }
 0x259   : > { %v2626_v55 = vpop.f32.mrb[80].mxu1  ;;  %v3054_v8 = vld [vmem:[%s5587_s18 + $0xf0] sm:$0xff] }
 0x25a   : > { %3110 = vst.msk [vmem:[%s5599_s13 + $0xb0] sm:$0xff] %vm390_vm0, %v3078_v57  ;;  %v3079_v42 = vadd.f32 %v3047_v50, %v3015_v1  ;;  %v2627_v15 = vadd.f32 %v2626_v55, %v5550_v58  ;;  %v2628_v0 = vpop.f32.mrb[81].mxu1 }
 0x25b   : > { %v2629_v16 = vpop.f32.mrb[82].mxu1  ;;  %v3055_v0 = vld [vmem:[%s5587_s18 + $0xf8] sm:$0xff] }
 0x25c   : > { %3111 = vst.msk [vmem:[%s5599_s13 + $0xb8] sm:$0xff] %vm390_vm0, %v3079_v42  ;;  %v2977_v60 = vadd.f32 %v2922_v33, %v2627_v15  ;;  %v2630_v29 = vadd.f32 %v2629_v16, %v5552_v32  ;;  %v2631_v9 = vpop.f32.mrb[83].mxu1 }
 0x25d   : > { %v2930_v35 = vpop.f32.mrb[84].mxu0 }
 0x25e   : > { %v3016_v11 = vadd.f32 %v5590_v20, %v2977_v60  ;;  %v2978_v31 = vadd.f32 %v2925_v39, %v2630_v29  ;;  %v2932_v37 = vpop.f32.mrb[85].mxu0 }
 0x25f   : > { %v2933_v5 = vpop.f32.mrb[86].mxu0 }
 0x260   : > { %v3080_v58 = vadd.f32 %v3048_v40, %v3016_v11  ;;  %v3017_v26 = vadd.f32 %v5590_v20, %v2978_v31  ;;  %v2935_v19 = vpop.f32.mrb[87].mxu0 }
 0x261   : > { %v2634_v43 = vpop.f32.mrb[84].mxu1 }
 0x262   : > { %3112 = vst.msk [vmem:[%s5599_s13 + $0xc0] sm:$0xff] %vm390_vm0, %v3080_v58  ;;  %v3081_v32 = vadd.f32 %v3049_v6, %v3017_v26  ;;  %v2635_v25 = vadd.f32 %v2634_v43, %v5558_v18  ;;  %v2636_v28 = vpop.f32.mrb[85].mxu1 }
 0x263   : > { %v2637_v47 = vpop.f32.mrb[86].mxu1 }
 0x264   : > { %3113 = vst.msk [vmem:[%s5599_s13 + $0xc8] sm:$0xff] %vm390_vm0, %v3081_v32  ;;  %v2979_v21 = vadd.f32 %v2930_v35, %v2635_v25  ;;  %v2638_v4 = vadd.f32 %v2637_v47, %v5560_v53  ;;  %v2639_v46 = vpop.f32.mrb[87].mxu1 }
 0x265   : > { %v2938_v22 = vpop.f32.mrb[88].mxu0 }
 0x266   : > { %v3018_v10 = vadd.f32 %v5590_v20, %v2979_v21  ;;  %v2980_v17 = vadd.f32 %v2933_v5, %v2638_v4  ;;  %v2940_v2 = vpop.f32.mrb[89].mxu0 }
 0x267   : > { %v2941_v54 = vpop.f32.mrb[90].mxu0 }
 0x268   : > { %v3082_v18 = vadd.f32 %v3050_v56, %v3018_v10  ;;  %v3019_v48 = vadd.f32 %v5590_v20, %v2980_v17  ;;  %v2943_v51 = vpop.f32.mrb[91].mxu0 }
 0x269   : > { %v2642_v27 = vpop.f32.mrb[88].mxu1 }
 0x26a   : > { %3114 = vst.msk [vmem:[%s5599_s13 + $0xd0] sm:$0xff] %vm390_vm0, %v3082_v18  ;;  %v3083_v53 = vadd.f32 %v3051_v14, %v3019_v48  ;;  %v2643_v62 = vadd.f32 %v2642_v27, %v5566_v38  ;;  %v2644_v49 = vpop.f32.mrb[89].mxu1 }
 0x26b   : > { %v2645_v12 = vpop.f32.mrb[90].mxu1 }
 0x26c   : > { %3115 = vst.msk [vmem:[%s5599_s13 + $0xd8] sm:$0xff] %vm390_vm0, %v3083_v53  ;;  %v2981_v3 = vadd.f32 %v2938_v22, %v2643_v62  ;;  %v2646_v7 = vadd.f32 %v2645_v12, %v5568_v61  ;;  %v2647_v13 = vpop.f32.mrb[91].mxu1 }
 0x26e   : > { %v3020_v24 = vadd.f32 %v5590_v20, %v2981_v3  ;;  %v2982_v45 = vadd.f32 %v2941_v54, %v2646_v7 }
 0x270   : > { %v3084_v34 = vadd.f32 %v3052_v36, %v3020_v24  ;;  %v3021_v23 = vadd.f32 %v5590_v20, %v2982_v45 }
 0x271   : > { %v2650_v33 = vpop.f32.mrb[92].mxu1 }
 0x272   : > { %3116 = vst.msk [vmem:[%s5599_s13 + $0xe0] sm:$0xff] %vm390_vm0, %v3084_v34  ;;  %v3085_v38 = vadd.f32 %v3053_v52, %v3021_v23  ;;  %v2651_v41 = vadd.f32 %v2650_v33, %v5574_v30  ;;  %v2652_v61 = vpop.f32.mrb[93].mxu1 }
 0x273   : > { %v2653_v59 = vpop.f32.mrb[94].mxu1 }
 0x274   : > { %3117 = vst.msk [vmem:[%s5599_s13 + $0xe8] sm:$0xff] %vm390_vm0, %v3085_v38  ;;  %v2654_v63 = vadd.f32 %v2653_v59, %v5576_v44  ;;  %v2655_v50 = vpop.f32.mrb[95].mxu1 }
 0x287   : > { %v2946_v39 = vpop.f32.mrb[92].mxu0 }
 0x288   : > { %v2983_v57 = vadd.f32 %v2946_v39, %v2651_v41  ;;  %v2948_v1 = vpop.f32.mrb[93].mxu0 }
 0x289   : > { %v2949_v55 = vpop.f32.mrb[94].mxu0 }
 0x28a   : > { %v3022_v42 = vadd.f32 %v5590_v20, %v2983_v57  ;;  %v2984_v30 = vadd.f32 %v2949_v55, %v2654_v63  ;;  %v2951_v15 = vpop.f32.mrb[95].mxu0 }
 0x28c   : > { %v3086_v16 = vadd.f32 %v3054_v8, %v3022_v42  ;;  %v3023_v44 = vadd.f32 %v5590_v20, %v2984_v30 }
 0x28e   : > { %3118 = vst.msk [vmem:[%s5599_s13 + $0xf0] sm:$0xff] %vm390_vm0, %v3086_v16  ;;  %v3087_v60 = vadd.f32 %v3055_v0, %v3023_v44 }
 0x290   : > { %3119 = vst.msk [vmem:[%s5599_s13 + $0xf8] sm:$0xff] %vm390_vm0, %v3087_v60 }
 0x291   : > { %4002 = shalt.err (!%p3999_p5)
}
 0x292   : > { %s4003_s14 = scalar_lea.hbm %s5756_s17, 4096  ;;  %s4007_s19 = scalar_lea.hbm %s5818_s6, 8192 }
 0x293   : > { %p4004_p6 = scmp.ne.s32.totalorder %s5756_s17, %s4003_s14  ;;  %p4008_p10 = scmp.lt.u32.totalorder %s5756_s17, %s5818_s6 }
 0x294   : > { %p4009_p11 = scmp.lt.u32.totalorder %s4007_s19, %s4003_s14  ;;  %p4011_p13 = scmp.lt.u32.totalorder %s4003_s14, %s5756_s17 }
 0x295   : > { %p4005_p7 = pnand %p4004_p6, %p4150_p4 }
 0x296   : > { %p4010_p12 = por %p4009_p11, %p4008_p10 }
 0x297   : > { %p4006_p9 = pneg %p4005_p7 }
 0x298   : > { %p4012_p0 = por %p4011_p13, %p4010_p12 }
 0x29a   : > { %p4013_p1 = pnand %p4012_p0, %p4006_p9 }
 0x29c   : > { %4016 = shalt.err (!%p4013_p1)
}
 0x29d   : > { %s4073_s30 = smov 128   ;;  %s4074_s8 = smov 8  }
 0x29e   : > { %3585 = dma.vmem_to_hbm [thread:$0]  (%p4150_p4), %s5758_s28, 4096, %s5756_s17, %s5766_s24, %s4073_s30, %s4073_s30, %s4074_s8  }
 0x29f PF: > { %p3591_p2 = scmp.ge.s32.totalorder %s4067_s26, 2  ;;  %s3152_s20 = sand.u32 1, %s4047_s21  }
 0x2a0   : > { %s3153_s11 = scalar_lea.sflag [#allocation4], %s3152_s20 }
 0x2a1   : > { %p3588_p3 = pnand %p3591_p2, %p4157_p8 }
 0x2a3   : > { %4042 = dma.done.wait (!%p3588_p3), %s3153_s11, 4096  }
 0x2a4   : > { %4044 = vsyncadd (!%p3588_p3), %s3153_s11, 4294963200  ;;  %s19_s26 = sadd.s32 1, %s4067_s26   ;;  %s5879_s21 = smov %s4051_s22 }
 0x2a5   : > { %p16_p5 = scmp.ge.s32.totalorder %s19_s26, 4   ;;  %s5880_s22 = smov %s4055_s23 }
 0x2a6   : > { %s5881_s23 = smov %s4163_s10  ;;  %s5882_s24 = smov %s4063_s25 }
 0x2a7   : > { %s5883_s25 = smov %s5885_s29  ;;  %18 = sbr.rel (!%p16_p5) target bundleno = 4 (0x4), region = 95 }
 0x2ae   :  { %3158 = vsyncpa [#allocation4], 1 }
 0x2af   :  { %3160 = vsyncpa [#allocation4 + $0x1], 1 }

// kernel: residual_block2d_nchw.4
= control target key start
LH: loop header
LB: loop body
LE: loop exit
PB: predicated region body
PF: predicated region fallthrough
CT: control target
= control target key end

     0   :  { %s4201_s21 = smov 0   ;;  %s4203_s22 = smov 0   ;;  %s5908_s0 = inlined_call_operand.vmem [shape: f32[2,16,16,64], index: 0, kind: input, shape index: {}]   ;;  %s5909_s1 = inlined_call_operand.vmem [shape: f32[2,1,2,16,64], index: 1, kind: input, shape index: {}]   ;;  %s5910_s2 = inlined_call_operand.vmem [shape: f32[2,2,64], index: 2, kind: input, shape index: {}]   ;;  %s5911_s3 = inlined_call_operand.vmem [shape: bf16[3,192,64], index: 3, kind: input, shape index: {}]   ;;  %s5912_s4 = inlined_call_operand.vmem [shape: f32[2,1,64], index: 4, kind: input, shape index: {}]   ;;  %s5913_s5 = inlined_call_operand.vmem [shape: bf16[2,16,16,64], index: 5, kind: output, shape index: {0}]   ;;  %s5914_s6 = inlined_call_operand.vmem [shape: f32[2,1,2,64], index: 6, kind: output, shape index: {1}]  }
   0x1   :  { %s4205_s23 = smov 0  }
   0x2 LB: > { %s29_s24 = sadd.s32 1, %s4157_s22  ;;  %p3497_p0 = scmp.ge.s32.totalorder %s4161_s23, 1  ;;  %s4161_s23 = sphi %s4205_s23, %s17_s23   ;;  %s4157_s22 = sphi %s4203_s22, %s5995_s22   ;;  %s4153_s21 = sphi %s4201_s21, %s5994_s21  }
   0x3   : > { %p31_p1 = scmp.ge.s32.totalorder %s29_s24, 2  ;;  %p272_p2 = scmp.lt.s32.totalorder %s4161_s23, 3 }
   0x5   : > { %s5997_s24 = smov (%p31_p1, %s29_s24), 0  ;;  %p273_p3 = pnand %p3497_p0, %p272_p2 }
   0x7   : > { %276 = sbr.rel (%p273_p3) target bundleno = 645 (0x285), region = 40 }
   0xe   : > { %p336_p4 = scmp.lt.s32.totalorder %s4153_s21, 1  ;;  %v423_v0 = vlaneseq  ;;  %v3925_v1 = vld [vmem:[%s5911_s3 + $0x60] sm:$0xff]   ;;  %vm382_vm0 = vcmask 523264   ;;  %v5924_v3 = vmov 0   ;;  %v3926_v4 = vld [vmem:[%s5911_s3 + $0x68] sm:$0xff]   ;;  %v4164_v7 = vmov 0.0  }
   0xf   : > { %3744 = vmatprep.subr.bf16.mxu1 %v5924_v3  ;;  %2216 = vmatprep.subr.bf16.mxu0 %v5924_v3  ;;  %392 = vst.msk [vmem:[#allocation2 + $0x120] sm:$0xff] %vm382_vm0, %v4164_v7  ;;  %383 = vst.msk [vmem:[#allocation2] sm:$0xff] %vm382_vm0, %v4164_v7  ;;  %v3927_v8 = vld [vmem:[%s5911_s3 + $0x70] sm:$0xff]   ;;  %v3928_v34 = vld [vmem:[%s5911_s3 + $0x78] sm:$0xff]   ;;  %vm945_vm1 = vcmask 1046528   ;;  %vm1180_vm2 = vcmask 1045504  }
  0x10   : > { %s5999_s21 = smov (!%p336_p4, %s4153_s21), 1  ;;  %v424_v2 = vshrl.u32 %v423_v0, 7  ;;  %3756 = vmatpush1.bf16.msra.mxu1 %v3925_v1  ;;  %2217 = vmatpush1.bf16.msra.mxu0 %v3925_v1  ;;  %384 = vst.msk [vmem:[#allocation2 + $0x20] sm:$0xff] %vm382_vm0, %v4164_v7  ;;  %385 = vst.msk [vmem:[#allocation2 + $0x40] sm:$0xff] %vm382_vm0, %v4164_v7  ;;  %s4165_s16 = smov 64   ;;  %vm3281_vm4 = vcmask 519168  }
  0x11   : > { %s3709_s29 = sshll.u32 %s5999_s21, 8  ;;  %s3502_s30 = sshll.u32 %s5999_s21, 1  ;;  %3745 = vmatprep.subr.bf16.mxu1 %v5924_v3  ;;  %2218 = vmatprep.subr.bf16.mxu0 %v5924_v3  ;;  %386 = vst.msk [vmem:[#allocation2 + $0x60] sm:$0xff] %vm382_vm0, %v4164_v7  ;;  %387 = vst.msk [vmem:[#allocation2 + $0x80] sm:$0xff] %vm382_vm0, %v4164_v7  ;;  %vm1451_vm3 = vsmask.f32 4352 }
  0x12   : > { %v425_v5 = vsub.s32 0, %v424_v2  ;;  %v431_v6 = vsub.s32 1, %v424_v2  ;;  %388 = vst.msk [vmem:[#allocation2 + $0xa0] sm:$0xff] %vm382_vm0, %v4164_v7  ;;  %389 = vst.msk [vmem:[#allocation2 + $0xc0] sm:$0xff] %vm382_vm0, %v4164_v7  ;;  %s4274_s9 = scalar_lea.vmem %s5908_s0, %s3709_s29  ;;  %s358_s12 = scalar_lea.vmem %s5910_s2, %s3502_s30  ;;  %vm3049_vm5 = vcmask 516096  }
  0x13   : > { %390 = vst.msk [vmem:[#allocation2 + $0xe0] sm:$0xff] %vm382_vm0, %v4164_v7  ;;  %391 = vst.msk [vmem:[#allocation2 + $0x100] sm:$0xff] %vm382_vm0, %v4164_v7  ;;  %v381_v9 = vld [vmem:[%s358_s12] sm:$0x3]  ;;  %v501_v11 = vld [vmem:[%s4274_s9 + $0x88] sm:$0xff]  ;;  %s3710_s29 = sshll.u32 %s5999_s21, 5  ;;  %s361_s13 = scalar_lea.vmem %s5912_s4, %s5999_s21 }
  0x14   : > { %393 = vst.msk [vmem:[#allocation2 + $0x140] sm:$0xff] %vm382_vm0, %v4164_v7  ;;  %394 = vst.msk [vmem:[#allocation2 + $0x160] sm:$0xff] %vm382_vm0, %v4164_v7  ;;  %v500_v10 = vld [vmem:[%s4274_s9 + $0x80] sm:$0xff]  ;;  %v4286_v12 = vrot.slane %v381_v9, %v425_v5  ;;  %v4288_v13 = vrot.slane %v381_v9, %v431_v6  ;;  %v485_v15 = vld [vmem:[%s4274_s9 + $0x8] sm:$0xff]  ;;  %3757 = vmatpush1.bf16.msra.mxu1 %v3926_v4  ;;  %2219 = vmatpush1.bf16.msra.mxu0 %v3926_v4  ;;  %s4554_s11 = scalar_lea.vmem %s5909_s1, %s3710_s29  ;;  %s3711_s14 = sshll.u32 %s5999_s21, 7 }
  0x15   : > { %395 = vst.msk [vmem:[#allocation2 + $0x180] sm:$0xff] %vm382_vm0, %v4164_v7  ;;  %396 = vst.msk [vmem:[#allocation2 + $0x1a0] sm:$0xff] %vm382_vm0, %v4164_v7  ;;  %v484_v14 = vld [vmem:[%s4274_s9] sm:$0xff]  ;;  %v502_v16 = vld [vmem:[%s4274_s9 + $0x90] sm:$0xff]  ;;  %3746 = vmatprep.subr.bf16.mxu1 %v5924_v3  ;;  %2220 = vmatprep.subr.bf16.mxu0 %v5924_v3  ;;  %s5703_s18 = scalar_lea.vmem %s5913_s5, %s3711_s14  ;;  %s379_s25 = scalar_lea.vmem %s5914_s6, %s3502_s30 }
  0x16   : > { %397 = vst.msk [vmem:[#allocation2 + $0x1c0] sm:$0xff] %vm382_vm0, %v4164_v7  ;;  %398 = vst.msk [vmem:[#allocation2 + $0x1e0] sm:$0xff] %vm382_vm0, %v4164_v7  ;;  %v503_v17 = vld [vmem:[%s4274_s9 + $0x98] sm:$0xff]  ;;  %v486_v18 = vld [vmem:[%s4274_s9 + $0x10] sm:$0xff]  ;;  %v532_v20 = vmul.f32 %v500_v10, %v4286_v12  ;;  %v533_v21 = vmul.f32 %v501_v11, %v4286_v12  ;;  %v516_v22 = vmul.f32 %v484_v14, %v4286_v12 }
  0x17   : > { %399 = vst.msk [vmem:[#allocation2 + $0x200] sm:$0xff] %vm382_vm0, %v4164_v7  ;;  %400 = vst.msk [vmem:[#allocation2 + $0x220] sm:$0xff] %vm382_vm0, %v4164_v7  ;;  %v487_v19 = vld [vmem:[%s4274_s9 + $0x18] sm:$0xff]  ;;  %v517_v23 = vmul.f32 %v485_v15, %v4286_v12  ;;  %v534_v24 = vmul.f32 %v502_v16, %v4286_v12  ;;  %v535_v25 = vmul.f32 %v503_v17, %v4286_v12  ;;  %v504_v28 = vld [vmem:[%s4274_s9 + $0xa0] sm:$0xff] }
  0x18   : > { %401 = vst.msk [vmem:[#allocation2 + $0x18] sm:$0xff] %vm382_vm0, %v4164_v7  ;;  %402 = vst.msk [vmem:[#allocation2 + $0x38] sm:$0xff] %vm382_vm0, %v4164_v7  ;;  %v518_v26 = vmul.f32 %v486_v18, %v4286_v12  ;;  %v519_v27 = vmul.f32 %v487_v19, %v4286_v12  ;;  %v4308_v29 = vadd.f32 %v532_v20, %v4288_v13  ;;  %v505_v33 = vld [vmem:[%s4274_s9 + $0xa8] sm:$0xff]  ;;  %3758 = vmatpush1.bf16.msra.mxu1 %v3927_v8  ;;  %v488_v38 = vld [vmem:[%s4274_s9 + $0x20] sm:$0xff] }
  0x19   : > { %403 = vst.msk [vmem:[#allocation2 + $0x58] sm:$0xff] %vm382_vm0, %v4164_v7  ;;  %404 = vst.msk [vmem:[#allocation2 + $0x78] sm:$0xff] %vm382_vm0, %v4164_v7  ;;  %v4311_v30 = vadd.f32 %v533_v21, %v4288_v13  ;;  %v4314_v31 = vadd.f32 %v516_v22, %v4288_v13  ;;  %v4317_v32 = vadd.f32 %v517_v23, %v4288_v13  ;;  %v489_v39 = vld [vmem:[%s4274_s9 + $0x28] sm:$0xff]  ;;  %2221 = vmatpush1.bf16.msra.mxu0 %v3927_v8  ;;  %v506_v47 = vld [vmem:[%s4274_s9 + $0xb0] sm:$0xff] }
  0x1a   : > { %405 = vst.msk [vmem:[#allocation2 + $0x98] sm:$0xff] %vm382_vm0, %v4164_v7  ;;  %406 = vst.msk [vmem:[#allocation2 + $0xb8] sm:$0xff] %vm382_vm0, %v4164_v7  ;;  %v4324_v35 = vadd.f32 %v534_v24, %v4288_v13  ;;  %v4327_v36 = vadd.f32 %v535_v25, %v4288_v13  ;;  %v4330_v37 = vadd.f32 %v518_v26, %v4288_v13  ;;  %v3526_v40 = vmul.f32 -1.442695, %v4308_v29  ;;  %v507_v48 = vld [vmem:[%s4274_s9 + $0xb8] sm:$0xff]  ;;  %v490_v55 = vld [vmem:[%s4274_s9 + $0x30] sm:$0xff] }
  0x1b   : > { %407 = vst.msk [vmem:[#allocation2 + $0xd8] sm:$0xff] %vm382_vm0, %v4164_v7  ;;  %408 = vst.msk [vmem:[#allocation2 + $0xf8] sm:$0xff] %vm382_vm0, %v4164_v7  ;;  %v3527_v41 = vmul.f32 -1.442695, %v4311_v30  ;;  %v3510_v42 = vmul.f32 -1.442695, %v4314_v31  ;;  %v536_v43 = vmul.f32 %v504_v28, %v4286_v12  ;;  %3747 = vmatprep.subr.bf16.mxu1 %v5924_v3  ;;  %2222 = vmatprep.subr.bf16.mxu0 %v5924_v3 }
  0x1c   : > { %409 = vst.msk [vmem:[#allocation2 + $0x118] sm:$0xff] %vm382_vm0, %v4164_v7  ;;  %410 = vst.msk [vmem:[#allocation2 + $0x138] sm:$0xff] %vm382_vm0, %v4164_v7  ;;  %v3511_v44 = vmul.f32 -1.442695, %v4317_v32  ;;  %v4342_v45 = vadd.f32 %v519_v27, %v4288_v13  ;;  %v537_v46 = vmul.f32 %v505_v33, %v4286_v12  ;;  %3961 = vpow2.f32 %v3526_v40  ;;  %3759 = vmatpush1.bf16.msra.mxu1 %v3928_v34  ;;  %v491_v59 = vld [vmem:[%s4274_s9 + $0x38] sm:$0xff]  ;;  %v508_v2 = vld [vmem:[%s4274_s9 + $0xc0] sm:$0xff] }
  0x1d   : > { %411 = vst.msk [vmem:[#allocation2 + $0x158] sm:$0xff] %vm382_vm0, %v4164_v7  ;;  %412 = vst.msk [vmem:[#allocation2 + $0x178] sm:$0xff] %vm382_vm0, %v4164_v7  ;;  %v3528_v49 = vmul.f32 -1.442695, %v4324_v35  ;;  %v3529_v50 = vmul.f32 -1.442695, %v4327_v36  ;;  %v4350_v51 = vadd.f32 %v536_v43, %v4288_v13  ;;  %3963 = vpow2.f32 %v3527_v41  ;;  %2223 = vmatpush1.bf16.msra.mxu0 %v3928_v34  ;;  %3748 = vmatprep.subr.bf16.mxu1 %v5924_v3 }
  0x1e   : > { %413 = vst.msk [vmem:[#allocation2 + $0x198] sm:$0xff] %vm382_vm0, %v4164_v7  ;;  %414 = vst.msk [vmem:[#allocation2 + $0x1b8] sm:$0xff] %vm382_vm0, %v4164_v7  ;;  %v4353_v52 = vadd.f32 %v537_v46, %v4288_v13  ;;  %v520_v53 = vmul.f32 %v488_v38, %v4286_v12  ;;  %v521_v54 = vmul.f32 %v489_v39, %v4286_v12  ;;  %3965 = vpow2.f32 %v3510_v42  ;;  %v509_v4 = vld [vmem:[%s4274_s9 + $0xc8] sm:$0xff]  ;;  %v492_v8 = vld [vmem:[%s4274_s9 + $0x40] sm:$0xff] }
  0x1f   : > { %415 = vst.msk [vmem:[#allocation2 + $0x1d8] sm:$0xff] %vm382_vm0, %v4164_v7  ;;  %416 = vst.msk [vmem:[#allocation2 + $0x1f8] sm:$0xff] %vm382_vm0, %v4164_v7  ;;  %v3512_v56 = vmul.f32 -1.442695, %v4330_v37  ;;  %v538_v57 = vmul.f32 %v506_v47, %v4286_v12  ;;  %v539_v58 = vmul.f32 %v507_v48, %v4286_v12  ;;  %2224 = vmatprep.subr.bf16.mxu0 %v5924_v3  ;;  %3967 = vpow2.f32 %v3511_v44  ;;  %v493_v9 = vld [vmem:[%s4274_s9 + $0x48] sm:$0xff]  ;;  %v510_v15 = vld [vmem:[%s4274_s9 + $0xd0] sm:$0xff] }
  0x20   : > { %417 = vst.msk [vmem:[#allocation2 + $0x218] sm:$0xff] %vm382_vm0, %v4164_v7  ;;  %418 = vst.msk [vmem:[#allocation2 + $0x238] sm:$0xff] %vm382_vm0, %v4164_v7  ;;  %v3513_v60 = vmul.f32 -1.442695, %v4342_v45  ;;  %v4366_v61 = vadd.f32 %v520_v53, %v4288_v13  ;;  %v4369_v62 = vadd.f32 %v521_v54, %v4288_v13  ;;  %3969 = vpow2.f32 %v3528_v49  ;;  %v3929_v16 = vld [vmem:[%s5911_s3 + $0x80] sm:$0xff]   ;;  %v511_v22 = vld [vmem:[%s4274_s9 + $0xd8] sm:$0xff] }
  0x21   : > { %5940 = vst [vmem:[#allocation3_spill] sm:$0xff] %v4286_v12  ;;  %5941 = vst [vmem:[#allocation4_spill] sm:$0xff] %v4288_v13  ;;  %v3530_v63 = vmul.f32 -1.442695, %v4350_v51  ;;  %v4373_v0 = vadd.f32 %v538_v57, %v4288_v13  ;;  %v522_v1 = vmul.f32 %v490_v55, %v4286_v12  ;;  %3971 = vpow2.f32 %v3529_v50  ;;  %3760 = vmatpush1.bf16.msra.mxu1 %v3929_v16  ;;  %v3930_v23 = vld [vmem:[%s5911_s3 + $0x88] sm:$0xff]   ;;  %v494_v42 = vld [vmem:[%s4274_s9 + $0x50] sm:$0xff] }
  0x22   : > { %v3531_v5 = vmul.f32 -1.442695, %v4353_v52  ;;  %v4380_v6 = vadd.f32 %v539_v58, %v4288_v13  ;;  %v523_v7 = vmul.f32 %v491_v59, %v4286_v12  ;;  %3973 = vpow2.f32 %v3512_v56  ;;  %2225 = vmatpush1.bf16.msra.mxu0 %v3929_v16  ;;  %3749 = vmatprep.subr.bf16.mxu1 %v5924_v3  ;;  %v3931_v48 = vld [vmem:[%s5911_s3 + $0x90] sm:$0xff]   ;;  %v495_v54 = vld [vmem:[%s4274_s9 + $0x58] sm:$0xff]  ;;  %v512_v59 = vld [vmem:[%s4274_s9 + $0xe0] sm:$0xff] }
  0x23   : > { %v3514_v10 = vmul.f32 -1.442695, %v4366_v61  ;;  %v3515_v11 = vmul.f32 -1.442695, %v4369_v62  ;;  %v4388_v14 = vadd.f32 %v522_v1, %v4288_v13  ;;  %3975 = vpow2.f32 %v3513_v60  ;;  %2226 = vmatprep.subr.bf16.mxu0 %v5924_v3 }
  0x24   : > { %v4395_v17 = vadd.f32 %v523_v7, %v4288_v13  ;;  %v540_v18 = vmul.f32 %v508_v2, %v4286_v12  ;;  %v541_v19 = vmul.f32 %v509_v4, %v4286_v12  ;;  %3977 = vpow2.f32 %v3530_v63  ;;  %v513_v4 = vld [vmem:[%s4274_s9 + $0xe8] sm:$0xff] }
  0x25   : > { %v3532_v20 = vmul.f32 -1.442695, %v4373_v0  ;;  %v524_v21 = vmul.f32 %v492_v8, %v4286_v12  ;;  %3979 = vpow2.f32 %v3531_v5  ;;  %v4406_v24 = vmul.f32 -1.442695, %v4380_v6  ;;  %3761 = vmatpush1.bf16.msra.mxu1 %v3930_v23 }
  0x26   : > { %v4409_v25 = vadd.f32 %v540_v18, %v4288_v13  ;;  %v4412_v26 = vadd.f32 %v541_v19, %v4288_v13  ;;  %v3962_v27 = vpop.eup %3961  ;;  %3981 = vpow2.f32 %v3514_v10  ;;  %v4417_v28 = vmul.f32 -1.442695, %v4388_v14  ;;  %2227 = vmatpush1.bf16.msra.mxu0 %v3930_v23  ;;  %3750 = vmatprep.subr.bf16.mxu1 %v5924_v3 }
  0x27   : > { %v525_v33 = vmul.f32 %v493_v9, %v4286_v12  ;;  %v542_v34 = vmul.f32 %v510_v15, %v4286_v12  ;;  %v3964_v38 = vpop.eup %3963  ;;  %v692_v39 = vadd.f32 1.0, %v3962_v27  ;;  %3983 = vpow2.f32 %v3515_v11  ;;  %2228 = vmatprep.subr.bf16.mxu0 %v5924_v3  ;;  %v3932_v9 = vld [vmem:[%s5911_s3 + $0x98] sm:$0xff]  }
  0x28   : > { %v4422_v40 = vmul.f32 -1.442695, %v4395_v17  ;;  %v4425_v41 = vadd.f32 %v524_v21, %v4288_v13  ;;  %v3966_v43 = vpop.eup %3965  ;;  %v693_v44 = vadd.f32 1.0, %v3964_v38  ;;  %3985 = vpow2.f32 %v3532_v20  ;;  %v497_v38 = vld [vmem:[%s4274_s9 + $0x68] sm:$0xff] }
  0x29   : > { %v4429_v46 = vmul.f32 -1.442695, %v4409_v25  ;;  %v4432_v47 = vmul.f32 -1.442695, %v4412_v26  ;;  %v3968_v49 = vpop.eup %3967  ;;  %3987 = vrcp.f32 %v692_v39  ;;  %v676_v50 = vadd.f32 1.0, %v3966_v43  ;;  %3762 = vmatpush1.bf16.msra.mxu1 %v3931_v48 }
  0x2a   : > { %v543_v53 = vmul.f32 %v511_v22, %v4286_v12  ;;  %v3970_v55 = vpop.eup %3969  ;;  %3989 = vrcp.f32 %v693_v44  ;;  %v677_v56 = vadd.f32 1.0, %v3968_v49  ;;  %v4442_v57 = vadd.f32 %v525_v33, %v4288_v13  ;;  %2229 = vmatpush1.bf16.msra.mxu0 %v3931_v48  ;;  %3751 = vmatprep.subr.bf16.mxu1 %v5924_v3  ;;  %v496_v22 = vld [vmem:[%s4274_s9 + $0x60] sm:$0xff] }
  0x2b   : > { %v4445_v58 = vadd.f32 %v542_v34, %v4288_v13  ;;  %v3972_v60 = vpop.eup %3971  ;;  %3991 = vrcp.f32 %v676_v50  ;;  %v694_v63 = vadd.f32 1.0, %v3970_v55  ;;  %v4449_v1 = vmul.f32 -1.442695, %v4425_v41  ;;  %2230 = vmatprep.subr.bf16.mxu0 %v5924_v3 }
  0x2c   : > { %v526_v2 = vmul.f32 %v494_v42, %v4286_v12  ;;  %v3974_v5 = vpop.eup %3973  ;;  %3993 = vrcp.f32 %v677_v56  ;;  %v695_v7 = vadd.f32 1.0, %v3972_v60  ;;  %v527_v8 = vmul.f32 %v495_v54, %v4286_v12 }
  0x2d   : > { %v3976_v10 = vpop.eup %3975  ;;  %3995 = vrcp.f32 %v694_v63  ;;  %v678_v11 = vadd.f32 1.0, %v3974_v5  ;;  %v4458_v15 = vadd.f32 %v543_v53, %v4288_v13  ;;  %v544_v16 = vmul.f32 %v512_v59, %v4286_v12  ;;  %3763 = vmatpush1.bf16.msra.mxu1 %v3932_v9  ;;  %v514_v59 = vld [vmem:[%s4274_s9 + $0xf0] sm:$0xff]  ;;  %v515_v5 = vld [vmem:[%s4274_s9 + $0xf8] sm:$0xff] }
  0x2e   : > { %v3978_v18 = vpop.eup %3977  ;;  %3997 = vrcp.f32 %v695_v7  ;;  %v679_v19 = vadd.f32 1.0, %v3976_v10  ;;  %v4464_v20 = vmul.f32 -1.442695, %v4442_v57  ;;  %v4467_v21 = vmul.f32 -1.442695, %v4445_v58  ;;  %2231 = vmatpush1.bf16.msra.mxu0 %v3932_v9  ;;  %3752 = vmatprep.subr.bf16.mxu1 %v5924_v3 }
  0x2f   : > { %v3980_v23 = vpop.eup %3979  ;;  %3999 = vrcp.f32 %v678_v11  ;;  %v696_v27 = vadd.f32 1.0, %v3978_v18  ;;  %v4471_v33 = vadd.f32 %v526_v2, %v4288_v13  ;;  %v545_v34 = vmul.f32 %v513_v4, %v4286_v12  ;;  %2232 = vmatprep.subr.bf16.mxu0 %v5924_v3 }
  0x30   : > { %v3982_v39 = vpop.eup %3981  ;;  %4001 = vrcp.f32 %v679_v19  ;;  %v697_v42 = vadd.f32 1.0, %v3980_v23  ;;  %v4476_v43 = vadd.f32 %v527_v8, %v4288_v13  ;;  %v4479_v44 = vadd.f32 %v544_v16, %v4288_v13 }
  0x31   : > { %v3984_v48 = vpop.eup %3983  ;;  %4003 = vrcp.f32 %v696_v27  ;;  %v680_v49 = vadd.f32 1.0, %v3982_v39  ;;  %v4482_v50 = vmul.f32 -1.442695, %v4458_v15  ;;  %v528_v53 = vmul.f32 %v496_v22, %v4286_v12  ;;  %v498_v22 = vld [vmem:[%s4274_s9 + $0x70] sm:$0xff] }
  0x32   : > { %v3986_v54 = vpop.eup %3985  ;;  %4005 = vrcp.f32 %v697_v42  ;;  %v681_v55 = vadd.f32 1.0, %v3984_v48  ;;  %v529_v56 = vmul.f32 %v497_v38, %v4286_v12  ;;  %v4491_v2 = vmul.f32 -1.442695, %v4471_v33 }
  0x33   : > { %v3988_v60 = vpop.eup %3987  ;;  %4007 = vrcp.f32 %v680_v49  ;;  %v698_v63 = vadd.f32 1.0, %v3986_v54  ;;  %v4494_v4 = vadd.f32 %v545_v34, %v4288_v13  ;;  %v4499_v9 = vmul.f32 -1.442695, %v4476_v43  ;;  %v499_v34 = vld [vmem:[%s4274_s9 + $0x78] sm:$0xff] }
  0x34   : > { %v3990_v7 = vpop.eup %3989  ;;  %v788_v8 = vmul.f32 %v3988_v60, %v4308_v29  ;;  %4009 = vrcp.f32 %v681_v55  ;;  %v4502_v10 = vmul.f32 -1.442695, %v4479_v44  ;;  %v4507_v18 = vadd.f32 %v528_v53, %v4288_v13 }
  0x35   : > { %v3992_v11 = vpop.eup %3991  ;;  %v789_v16 = vmul.f32 %v3990_v7, %v4311_v30  ;;  %4011 = vpow2.f32 %v4406_v24  ;;  %v546_v19 = vmul.f32 %v514_v59, %v4286_v12  ;;  %v4514_v27 = vadd.f32 %v529_v56, %v4288_v13 }
  0x36   : > { %5942 = vst [vmem:[#allocation5_spill] sm:$0xff] %v4507_v18  ;;  %v3994_v23 = vpop.eup %3993  ;;  %821 = vst.msk [vmem:[#allocation2 + $0x128] sm:$0xff] %vm382_vm0, %v788_v8  ;;  %v772_v29 = vmul.f32 %v3992_v11, %v4314_v31  ;;  %4013 = vrcp.f32 %v698_v63  ;;  %v4520_v24 = vmul.f32 -1.442695, %v4494_v4  ;;  %v547_v31 = vmul.f32 %v515_v5, %v4286_v12 }
  0x37   : > { %5943 = vst [vmem:[#allocation6_spill] sm:$0xff] %v4514_v27  ;;  %v3996_v38 = vpop.eup %3995  ;;  %822 = vst.msk [vmem:[#allocation2 + $0x130] sm:$0xff] %vm382_vm0, %v789_v16  ;;  %v773_v30 = vmul.f32 %v3994_v23, %v4317_v32  ;;  %4015 = vpow2.f32 %v4417_v28  ;;  %v4530_v32 = vmul.f32 -1.442695, %v4507_v18  ;;  %v4533_v53 = vadd.f32 %v546_v19, %v4288_v13  ;;  %v844_v18 = vld [vmem:[#allocation2 + $0x38] sm:$0xff] }
  0x38   : > { %v3998_v39 = vpop.eup %3997  ;;  %805 = vst.msk [vmem:[#allocation2 + $0x28] sm:$0xff] %vm382_vm0, %v772_v29  ;;  %v790_v42 = vmul.f32 %v3996_v38, %v4324_v35  ;;  %4017 = vpow2.f32 %v4422_v40  ;;  %v4539_v28 = vmul.f32 -1.442695, %v4514_v27  ;;  %v3933_v40 = vld [vmem:[%s5911_s3 + $0xa0] sm:$0xff]   ;;  %v4560_v60 = vadd.f32 %v547_v31, %v4288_v13 }
  0x39   : > { %v4000_v48 = vpop.eup %3999  ;;  %806 = vst.msk [vmem:[#allocation2 + $0x30] sm:$0xff] %vm382_vm0, %v773_v30  ;;  %v791_v49 = vmul.f32 %v3998_v39, %v4327_v36  ;;  %5944 = vst [vmem:[#allocation7_spill] sm:$0xff] %v4533_v53  ;;  %4019 = vpow2.f32 %v4429_v46  ;;  %v530_v36 = vmul.f32 %v498_v22, %v4286_v12  ;;  %3764 = vmatpush1.bf16.msra.mxu1 %v3933_v40  ;;  %2233 = vmatpush1.bf16.msra.mxu0 %v3933_v40  ;;  %v3935_v40 = vld [vmem:[%s5911_s3 + $0xb0] sm:$0xff]  }
  0x3a   : > { %v4002_v54 = vpop.eup %4001  ;;  %823 = vst.msk [vmem:[#allocation2 + $0x148] sm:$0xff] %vm382_vm0, %v790_v42  ;;  %v774_v35 = vmul.f32 %v4000_v48, %v4330_v37  ;;  %4021 = vpow2.f32 %v4432_v47  ;;  %v531_v37 = vmul.f32 %v499_v34, %v4286_v12  ;;  %5945 = vst [vmem:[#allocation8_spill] sm:$0xff] %v4560_v60  ;;  %3753 = vmatprep.subr.bf16.mxu1 %v5924_v3  ;;  %2234 = vmatprep.subr.bf16.mxu0 %v5924_v3 }
  0x3b   : > { %v4004_v55 = vpop.eup %4003  ;;  %824 = vst.msk [vmem:[#allocation2 + $0x150] sm:$0xff] %vm382_vm0, %v791_v49  ;;  %v775_v56 = vmul.f32 %v4002_v54, %v4342_v45  ;;  %4023 = vpow2.f32 %v4449_v1  ;;  %v4598_v38 = vmul.f32 -1.442695, %v4560_v60 }
  0x3c   : > { %v4006_v46 = vpop.eup %4005  ;;  %807 = vst.msk [vmem:[#allocation2 + $0x48] sm:$0xff] %vm382_vm0, %v774_v35  ;;  %v792_v59 = vmul.f32 %v4004_v55, %v4350_v51  ;;  %4025 = vpow2.f32 %v4464_v20  ;;  %v4568_v51 = vmul.f32 -1.442695, %v4533_v53  ;;  %v419_v20 = vld [vmem:[%s4554_s11] sm:$0xff]  ;;  %v4589_v23 = vadd.f32 %v531_v37, %v4288_v13 }
  0x3d   : > { %v4008_v45 = vpop.eup %4007  ;;  %v4562_v47 = vld [vmem:[#allocation2 + $0x128] sm:$0xff]  ;;  %808 = vst.msk [vmem:[#allocation2 + $0x50] sm:$0xff] %vm382_vm0, %v775_v56  ;;  %v793_v63 = vmul.f32 %v4006_v46, %v4353_v52  ;;  %4027 = vpow2.f32 %v4467_v21  ;;  %v4579_v52 = vadd.f32 %v530_v36, %v4288_v13 }
  0x3e   : > { %v4010_v1 = vpop.eup %4009  ;;  %v4572_v5 = vld [vmem:[#allocation2 + $0x130] sm:$0xff]  ;;  %v973_v7 = vrot.slane %v4562_v47, 1  ;;  %825 = vst.msk [vmem:[#allocation2 + $0x168] sm:$0xff] %vm382_vm0, %v792_v59  ;;  %v776_v8 = vmul.f32 %v4008_v45, %v4366_v61  ;;  %4029 = vpow2.f32 %v4482_v50  ;;  %5947 = vst [vmem:[#allocation10_spill] sm:$0xff] %v4589_v23  ;;  %v420_v61 = vld [vmem:[%s4554_s11 + $0x8] sm:$0xff]  ;;  %v1226_v55 = vrot.slane %v4562_v47, 2 }
  0x3f   : > { %5946 = vst [vmem:[#allocation9_spill] sm:$0xff] %v4579_v52  ;;  %v4012_v11 = vpop.eup %4011  ;;  %v974_v16 = vrot.slane %v4572_v5, 1  ;;  %v4583_v19 = vld [vmem:[#allocation2 + $0x28] sm:$0xff]  ;;  %826 = vst.msk [vmem:[#allocation2 + $0x170] sm:$0xff] %vm382_vm0, %v793_v63  ;;  %v777_v22 = vmul.f32 %v4010_v1, %v4369_v62  ;;  %4031 = vpow2.f32 %v4491_v2  ;;  %v427_v2 = vmul.f32 %v4286_v12, %v419_v20 }
  0x40   : > { %v949_v21 = vrot.slane %v4583_v19, 1  ;;  %v4593_v29 = vld [vmem:[#allocation2 + $0x30] sm:$0xff]  ;;  %809 = vst.msk [vmem:[#allocation2 + $0x68] sm:$0xff] %vm382_vm0, %v776_v8  ;;  %v699_v34 = vadd.f32 1.0, %v4012_v11  ;;  %v3934_v62 = vld [vmem:[%s5911_s3 + $0xa8] sm:$0xff]   ;;  %v4014_v50 = vpop.eup %4013  ;;  %4033 = vpow2.f32 %v4499_v9  ;;  %v428_v36 = vmul.f32 %v4286_v12, %v420_v61 }
  0x41   : > { %v975_v30 = vsel %vm945_vm1, %v973_v7, %v974_v16  ;;  %v950_v39 = vrot.slane %v4593_v29, 1  ;;  %v4605_v42 = vld [vmem:[#allocation2 + $0x148] sm:$0xff]  ;;  %810 = vst.msk [vmem:[#allocation2 + $0x70] sm:$0xff] %vm382_vm0, %v777_v22  ;;  %v4016_v31 = vpop.eup %4015  ;;  %v4614_v35 = vmul.f32 -1.442695, %v4579_v52  ;;  %3765 = vmatpush1.bf16.msra.mxu1 %v3934_v62  ;;  %2235 = vmatpush1.bf16.msra.mxu0 %v3934_v62  ;;  %v5919_v56 = vrot.slane %v4572_v5, 2 }
  0x42   : > { %v3795_v48 = vpack.i.bf16 %v975_v30, %v973_v7  ;;  %v4610_v49 = vld [vmem:[#allocation2 + $0x150] sm:$0xff]  ;;  %v976_v54 = vrot.slane %v4605_v42, 1  ;;  %v4018_v9 = vpop.eup %4017  ;;  %3754 = vmatprep.subr.bf16.mxu1 %v5924_v3  ;;  %2236 = vmatprep.subr.bf16.mxu0 %v5924_v3  ;;  %v3800_v63 = vpack.i.bf16 %v949_v21, %v974_v16  ;;  %4035 = vrcp.f32 %v699_v34 }
  0x43   : > { %v951_v37 = vsel %vm945_vm1, %v949_v21, %v950_v39  ;;  %v977_v46 = vrot.slane %v4610_v49, 1  ;;  %v4624_v59 = vld [vmem:[#allocation2 + $0x48] sm:$0xff]  ;;  %v4020_v45 = vpop.eup %4019  ;;  %v794_v61 = vmul.f32 %v4014_v50, %v4373_v0  ;;  %v4638_v62 = vmul.f32 -1.442695, %v4589_v23  ;;  %v3936_v0 = vld [vmem:[%s5911_s3 + $0xb8] sm:$0xff]  }
  0x44   : > { %3796 = vrot.lane.b32.xlu0 %v3795_v48, %s4165_s16  ;;  %v3810_v1 = vpack.i.bf16 %v950_v39, %v951_v37  ;;  %v952_v47 = vrot.slane %v4624_v59, 1  ;;  %v4630_v7 = vld [vmem:[#allocation2 + $0x50] sm:$0xff]  ;;  %v4022_v8 = vpop.eup %4021  ;;  %v4645_v39 = vadd.f32 %v4288_v13, %v427_v2  ;;  %v4648_v48 = vadd.f32 %v4288_v13, %v428_v36 }
  0x45   : > { %v978_v20 = vsel %vm945_vm1, %v976_v54, %v977_v46  ;;  %v953_v11 = vrot.slane %v4630_v7, 1  ;;  %v4634_v22 = vld [vmem:[#allocation2 + $0x168] sm:$0xff]  ;;  %v4024_v30 = vpop.eup %4023  ;;  %3766 = vmatpush1.bf16.msra.mxu1 %v3935_v40  ;;  %827 = vst.msk [vmem:[#allocation2 + $0x188] sm:$0xff] %vm382_vm0, %v794_v61  ;;  %v682_v2 = vadd.f32 1.0, %v4016_v31  ;;  %2237 = vmatpush1.bf16.msra.mxu0 %v3935_v40  ;;  %v1186_v13 = vrot.slane %v4583_v19, 2 }
  0x46   : > { %3811 = vrot.lane.b32.xlu1 %v3810_v1, %s4165_s16  ;;  %v3815_v16 = vpack.i.bf16 %v978_v20, %v976_v54  ;;  %v4641_v21 = vld [vmem:[#allocation2 + $0x170] sm:$0xff]  ;;  %v979_v34 = vrot.slane %v4634_v22, 1  ;;  %v4026_v50 = vpop.eup %4025  ;;  %v1228_v54 = vsel %vm1180_vm2, %v1226_v55, %v5919_v56  ;;  %3755 = vmatprep.subr.bf16.mxu1 %v5924_v3  ;;  %v3805_v12 = vpack.i.bf16 %v952_v47, %v977_v46 }
  0x47   : > { %v954_v37 = vsel %vm945_vm1, %v952_v47, %v953_v11  ;;  %v980_v1 = vrot.slane %v4641_v21, 1  ;;  %v4658_v20 = vld [vmem:[#allocation2 + $0x68] sm:$0xff]  ;;  %v4028_v36 = vpop.eup %4027  ;;  %v683_v52 = vadd.f32 1.0, %v4018_v9  ;;  %2238 = vmatprep.subr.bf16.mxu0 %v5924_v3  ;;  %v1187_v61 = vrot.slane %v4593_v29, 2 }
  0x48   : > { %5948 = vst [vmem:[#allocation11_spill] sm:$0xff] %v4658_v20  ;;  %3801 = vrot.lane.b32.xlu0 %v3800_v63, %s4165_s16  ;;  %v955_v56 = vrot.slane %v4658_v20, 1  ;;  %v4665_v23 = vld [vmem:[#allocation2 + $0x70] sm:$0xff]  ;;  %v4030_v60 = vpop.eup %4029  ;;  %4037 = vrcp.f32 %v682_v2  ;;  %v4671_v19 = vpack.c.bf16 %v1228_v54, %v1226_v55  ;;  %v3820_v46 = vpack.i.bf16 %v953_v11, %v954_v37  ;;  %v876_v37 = vld [vmem:[#allocation2 + $0x138] sm:$0xff] }
  0x49   : > { %v981_v31 = vsel %vm945_vm1, %v979_v34, %v980_v1  ;;  %v956_v40 = vrot.slane %v4665_v23, 1  ;;  %v4032_v53 = vpop.eup %4031  ;;  %4039 = vrcp.f32 %v683_v52  ;;  %v700_v63 = vadd.f32 1.0, %v4020_v45  ;;  %3767 = vmatpush1.bf16.msra.mxu1 %v3936_v0  ;;  %2239 = vmatpush1.bf16.msra.mxu0 %v3936_v0 }
  0x4a   : > { %3816 = vrot.lane.b32.xlu1 %v3815_v16, %s4165_s16  ;;  %v4034_v9 = vpop.eup %4033  ;;  %v701_v3 = vadd.f32 1.0, %v4022_v8  ;;  %v684_v27 = vadd.f32 1.0, %v4024_v30  ;;  %v685_v29 = vadd.f32 1.0, %v4026_v50  ;;  %v5949_v20 = vmov 0  }
  0x4b   : > { %v957_v47 = vsel %vm945_vm1, %v955_v56, %v956_v40  ;;  %2452 = vmatprep.subr.bf16.mxu1 %v5949_v20  ;;  %v3830_v55 = vpack.i.bf16 %v981_v31, %v979_v34  ;;  %v3825_v54 = vpack.i.bf16 %v955_v56, %v980_v1  ;;  %4041 = vrcp.f32 %v700_v63  ;;  %2748 = vmatprep.subr.bf16.mxu0 %v5949_v20 }
  0x4c   : > { %3806 = vrot.lane.b32.xlu0 %v3805_v12, %s4165_s16  ;;  %v702_v16 = vadd.f32 1.0, %v4028_v36  ;;  %v3835_v52 = vpack.i.bf16 %v956_v40, %v957_v47  ;;  %4043 = vrcp.f32 %v701_v3  ;;  %v703_v45 = vadd.f32 1.0, %v4030_v60  ;;  %v4036_v8 = vpop.eup %4035  ;;  %v4679_v30 = vld [vmem:[#allocation2 + $0x188] sm:$0xff] }
  0x4d   : > { %v686_v11 = vadd.f32 1.0, %v4032_v53  ;;  %4045 = vrcp.f32 %v684_v27  ;;  %v687_v0 = vadd.f32 1.0, %v4034_v9  ;;  %v1188_v12 = vsel %vm1180_vm2, %v1186_v13, %v1187_v61 }
  0x4e   : > { %3821 = vrot.lane.b32.xlu1 %v3820_v46, %s4165_s16  ;;  %v1189_v34 = vrot.slane %v844_v18, 2  ;;  %v795_v56 = vmul.f32 %v4036_v8, %v4380_v6  ;;  %v982_v50 = vrot.slane %v4679_v30, 1  ;;  %4047 = vrcp.f32 %v685_v29 }
  0x4f   : > { %4049 = vrcp.f32 %v702_v16  ;;  %v1384_v53 = vpack.c.bf16 %v1188_v12, %v1186_v13  ;;  %v1229_v60 = vrot.slane %v876_v37, 2  ;;  %v1776_v1 = vshrl.u32 %v4671_v19, 16 }
  0x50   : > { %3831 = vrot.lane.b32.xlu0 %v3830_v55, %s4165_s16  ;;  %v1190_v3 = vsel %vm1180_vm2, %v1187_v61, %v1189_v34  ;;  %828 = vst.msk [vmem:[#allocation2 + $0x190] sm:$0xff] %vm382_vm0, %v795_v56  ;;  %4051 = vrcp.f32 %v703_v45  ;;  %v1779_v18 = vshll.u32 %v4671_v19, 16  ;;  %v5950_v36 = vrot.slane %v4572_v5, 2 }
  0x51   : > { %v1386_v27 = vpack.c.bf16 %v1190_v3, %v1190_v3  ;;  %4053 = vrcp.f32 %v686_v11  ;;  %v1504_v6 = vshrl.u32 %v1384_v53, 16  ;;  %v1507_v2 = vshll.u32 %v1384_v53, 16 }
  0x52   : > { %3826 = vrot.lane.b32.xlu1 %v3825_v54, %s4165_s16  ;;  %v1230_v31 = vsel %vm1180_vm2, %v5950_v36, %v1229_v60  ;;  %v4038_v61 = vpop.eup %4037  ;;  %4055 = vrcp.f32 %v687_v0  ;;  %v1778_v45 = vrot.slane %v1776_v1, 3 }
  0x53   : > { %v1512_v13 = vshrl.u32 %v1386_v27, 16  ;;  %v1515_v40 = vshll.u32 %v1386_v27, 16  ;;  %v1418_v46 = vpack.c.bf16 %v1230_v31, %v1230_v31  ;;  %v4040_v63 = vpop.eup %4039  ;;  %v778_v9 = vmul.f32 %v4038_v61, %v4388_v14 }
  0x54   : > { %3836 = vrot.lane.b32.xlu0 %v3835_v52, %s4165_s16  ;;  %4057 = vpow2.f32 %v4502_v10  ;;  %v1506_v19 = vrot.slane %v1504_v6, 3  ;;  %v1509_v47 = vrot.slane %v1507_v2, 4  ;;  %v779_v29 = vmul.f32 %v4040_v63, %v4395_v17 }
  0x55   : > { %4059 = vpow2.f32 %v4520_v24  ;;  %v1514_v5 = vrot.slane %v1512_v13, 3  ;;  %v1517_v55 = vrot.slane %v1515_v40, 4  ;;  %v4042_v54 = vpop.eup %4041  ;;  %811 = vst.msk [vmem:[#allocation2 + $0x88] sm:$0xff] %vm382_vm0, %v778_v9  ;;  %v1781_v52 = vrot.slane %v1779_v18, 4 }
  0x56   : > { %4061 = vpow2.f32 %v4530_v32  ;;  %v1510_v16 = vor.u32 %v1509_v47, %v1506_v19  ;;  %v4044_v11 = vpop.eup %4043  ;;  %812 = vst.msk [vmem:[#allocation2 + $0x90] sm:$0xff] %vm382_vm0, %v779_v29  ;;  %v796_v14 = vmul.f32 %v4042_v54, %v4409_v25  ;;  %v1784_v10 = vshrl.u32 %v1418_v46, 16 }
  0x57   : > { %4063 = vpow2.f32 %v4539_v28  ;;  %v1518_v17 = vor.u32 %v1517_v55, %v1514_v5  ;;  %v4046_v24 = vpop.eup %4045  ;;  %v4703_v37 = vld [vmem:[#allocation2 + $0x190] sm:$0xff]  ;;  %v797_v8 = vmul.f32 %v4044_v11, %v4412_v26  ;;  %v3506_v32 = vmul.f32 -1.442695, %v4645_v39 }
  0x58   : > { %4065 = vpow2.f32 %v4568_v51  ;;  %v1787_v0 = vshll.u32 %v1418_v46, 16  ;;  %v4048_v12 = vpop.eup %4047  ;;  %v983_v34 = vrot.slane %v4703_v37, 1  ;;  %829 = vst.msk [vmem:[#allocation2 + $0x1a8] sm:$0xff] %vm382_vm0, %v796_v14  ;;  %v780_v25 = vmul.f32 %v4046_v24, %v4425_v41 }
  0x59   : > { %v3507_v28 = vmul.f32 -1.442695, %v4648_v48  ;;  %v1782_v56 = vor.u32 %v1781_v52, %v1778_v45  ;;  %v4050_v3 = vpop.eup %4049  ;;  %830 = vst.msk [vmem:[#allocation2 + $0x1b0] sm:$0xff] %vm382_vm0, %v797_v8  ;;  %v781_v26 = vmul.f32 %v4048_v12, %v4442_v57  ;;  %4067 = vpow2.f32 %v4598_v38 }
  0x5a   : > { %v4716_v51 = vsel %vm1451_vm3, %v1510_v16, %v1518_v17  ;;  %v1786_v53 = vrot.slane %v1784_v10, 3  ;;  %v4052_v60 = vpop.eup %4051  ;;  %v984_v27 = vsel %vm945_vm1, %v982_v50, %v983_v34  ;;  %813 = vst.msk [vmem:[#allocation2 + $0xa8] sm:$0xff] %vm382_vm0, %v780_v25  ;;  %v798_v41 = vmul.f32 %v4050_v3, %v4445_v58 }
  0x5b   : > { %5951 = vst [vmem:[#allocation12_spill] sm:$0xff] %v4716_v51  ;;  %4069 = vpow2.f32 %v4614_v35  ;;  %3578 = vmatprep.mubr.msk.bf16.mxu0 %vm382_vm0, %v4716_v51  ;;  %v1789_v57 = vrot.slane %v1787_v0, 4  ;;  %v4054_v38 = vpop.eup %4053  ;;  %v3845_v1 = vpack.i.bf16 %v984_v27, %v982_v50  ;;  %814 = vst.msk [vmem:[#allocation2 + $0xb0] sm:$0xff] %vm382_vm0, %v781_v26  ;;  %v799_v18 = vmul.f32 %v4052_v60, %v4458_v15 }
  0x5c   : > { %4071 = vpow2.f32 %v4638_v62  ;;  %v4056_v6 = vpop.eup %4055  ;;  %v4731_v2 = vld [vmem:[#allocation2 + $0x88] sm:$0xff]  ;;  %831 = vst.msk [vmem:[#allocation2 + $0x1c8] sm:$0xff] %vm382_vm0, %v798_v41  ;;  %v782_v58 = vmul.f32 %v4054_v38, %v4471_v33  ;;  %v1231_v26 = vrot.slane %v4605_v42, 2 }
  0x5d   : > { %4073 = vpow2.f32 %v3506_v32  ;;  %v1790_v35 = vor.u32 %v1789_v57, %v1786_v53  ;;  %3846 = vrot.lane.b32.xlu1 %v3845_v1, %s4165_s16  ;;  %v958_v50 = vrot.slane %v4731_v2, 1  ;;  %v4737_v31 = vld [vmem:[#allocation2 + $0x90] sm:$0xff]  ;;  %832 = vst.msk [vmem:[#allocation2 + $0x1d0] sm:$0xff] %vm382_vm0, %v799_v18  ;;  %v783_v15 = vmul.f32 %v4056_v6, %v4476_v43 }
  0x5e   : > { %v4058_v36 = vpop.eup %4057  ;;  %4075 = vpow2.f32 %v3507_v28  ;;  %v959_v61 = vrot.slane %v4737_v31, 1  ;;  %815 = vst.msk [vmem:[#allocation2 + $0xc8] sm:$0xff] %vm382_vm0, %v782_v58  ;;  %v1232_v57 = vrot.slane %v4610_v49, 2 }
  0x5f   : > { %v4060_v62 = vpop.eup %4059  ;;  %v704_v33 = vadd.f32 1.0, %v4058_v36  ;;  %v4744_v13 = vsel %vm1451_vm3, %v1782_v56, %v1790_v35  ;;  %v3840_v46 = vpack.i.bf16 %v958_v50, %v983_v34  ;;  %v4746_v63 = vld [vmem:[#allocation2 + $0x1a8] sm:$0xff]  ;;  %816 = vst.msk [vmem:[#allocation2 + $0xd0] sm:$0xff] %vm382_vm0, %v783_v15  ;;  %v880_v56 = vld [vmem:[#allocation2 + $0x158] sm:$0xff] }
  0x60   : > { %5952 = vst [vmem:[#allocation13_spill] sm:$0xff] %v4744_v13  ;;  %v4062_v40 = vpop.eup %4061  ;;  %v705_v9 = vadd.f32 1.0, %v4060_v62  ;;  %3586 = vmatprep.mubr.msk.bf16.mxu1 %vm382_vm0, %v4744_v13  ;;  %v960_v19 = vsel %vm945_vm1, %v958_v50, %v959_v61  ;;  %v4752_v47 = vld [vmem:[#allocation2 + $0x1b0] sm:$0xff]  ;;  %v985_v29 = vrot.slane %v4746_v63, 1  ;;  %v1234_v36 = vrot.slane %v880_v56, 2 }
  0x61   : > { %v4064_v43 = vpop.eup %4063  ;;  %4077 = vrcp.f32 %v704_v33  ;;  %3841 = vrot.lane.b32.xlu0 %v3840_v46, %s4165_s16  ;;  %v3850_v55 = vpack.i.bf16 %v959_v61, %v960_v19  ;;  %v986_v54 = vrot.slane %v4752_v47, 1  ;;  %v4757_v16 = vld [vmem:[#allocation2 + $0xa8] sm:$0xff]  ;;  %v688_v11 = vadd.f32 1.0, %v4062_v40  ;;  %v5954_v56 = vld [vmem:[#allocation5_spill] sm:$0xff] }
  0x62   : > { %v4066_v5 = vpop.eup %4065  ;;  %4079 = vrcp.f32 %v705_v9  ;;  %v961_v45 = vrot.slane %v4757_v16, 1  ;;  %v4760_v52 = vld [vmem:[#allocation2 + $0xb0] sm:$0xff]  ;;  %v689_v14 = vadd.f32 1.0, %v4064_v43  ;;  %v1233_v9 = vsel %vm1180_vm2, %v1231_v26, %v1232_v57 }
  0x63   : > { %v4068_v17 = vpop.eup %4067  ;;  %3851 = vrot.lane.b32.xlu1 %v3850_v55, %s4165_s16  ;;  %v987_v10 = vsel %vm945_vm1, %v985_v29, %v986_v54  ;;  %v962_v24 = vrot.slane %v4760_v52, 1  ;;  %v4765_v8 = vld [vmem:[#allocation2 + $0x1c8] sm:$0xff]  ;;  %v706_v28 = vadd.f32 1.0, %v4066_v5  ;;  %4081 = vrcp.f32 %v688_v11 }
  0x64   : > { %v3860_v0 = vpack.i.bf16 %v987_v10, %v985_v29  ;;  %v3855_v12 = vpack.i.bf16 %v961_v45, %v986_v54  ;;  %v4767_v34 = vld [vmem:[#allocation2 + $0x1d0] sm:$0xff]  ;;  %v988_v25 = vrot.slane %v4765_v8, 1  ;;  %4083 = vrcp.f32 %v689_v14  ;;  %v848_v14 = vld [vmem:[#allocation2 + $0x58] sm:$0xff] }
  0x65   : > { %v4070_v32 = vpop.eup %4069  ;;  %v963_v53 = vsel %vm945_vm1, %v961_v45, %v962_v24  ;;  %v989_v60 = vrot.slane %v4767_v34, 1  ;;  %v4773_v27 = vld [vmem:[#allocation2 + $0xc8] sm:$0xff]  ;;  %v707_v35 = vadd.f32 1.0, %v4068_v17  ;;  %4085 = vrcp.f32 %v706_v28 }
  0x66   : > { %v4072_v3 = vpop.eup %4071  ;;  %3861 = vrot.lane.b32.xlu0 %v3860_v0, %s4165_s16  ;;  %v3865_v38 = vpack.i.bf16 %v962_v24, %v963_v53  ;;  %v964_v1 = vrot.slane %v4773_v27, 1  ;;  %v4778_v18 = vld [vmem:[#allocation2 + $0xd0] sm:$0xff]  ;;  %v690_v49 = vadd.f32 1.0, %v4070_v32  ;;  %v1235_v5 = vsel %vm1180_vm2, %v1232_v57, %v1234_v36 }
  0x67   : > { %v4074_v41 = vpop.eup %4073  ;;  %3856 = vrot.lane.b32.xlu1 %v3855_v12, %s4165_s16  ;;  %v990_v42 = vsel %vm945_vm1, %v988_v25, %v989_v60  ;;  %v965_v58 = vrot.slane %v4778_v18, 1  ;;  %4087 = vrcp.f32 %v707_v35  ;;  %v691_v62 = vadd.f32 1.0, %v4072_v3 }
  0x68   : > { %v4076_v6 = vpop.eup %4075  ;;  %v3875_v50 = vpack.i.bf16 %v990_v42, %v988_v25  ;;  %v441_v61 = vadd.f32 1.0, %v4074_v41  ;;  %v3870_v40 = vpack.i.bf16 %v964_v1, %v989_v60  ;;  %4089 = vrcp.f32 %v690_v49  ;;  %v5955_v41 = vld [vmem:[#allocation6_spill] sm:$0xff] }
  0x69   : > { %v966_v15 = vsel %vm945_vm1, %v964_v1, %v965_v58  ;;  %v442_v46 = vadd.f32 1.0, %v4076_v6  ;;  %4091 = vrcp.f32 %v691_v62  ;;  %v1191_v55 = vrot.slane %v4624_v59, 2  ;;  %v852_v1 = vld [vmem:[#allocation2 + $0x78] sm:$0xff]  ;;  %v5956_v62 = vld [vmem:[#allocation7_spill] sm:$0xff] }
  0x6a   : > { %3866 = vrot.lane.b32.xlu0 %v3865_v38, %s4165_s16  ;;  %v3880_v19 = vpack.i.bf16 %v965_v58, %v966_v15  ;;  %v1192_v54 = vrot.slane %v4630_v7, 2  ;;  %4093 = vrcp.f32 %v441_v61  ;;  %v1420_v11 = vpack.c.bf16 %v1233_v9, %v1231_v26  ;;  %v5957_v9 = vld [vmem:[#allocation8_spill] sm:$0xff] }
  0x6b   : > { %v4078_v33 = vpop.eup %4077  ;;  %3876 = vrot.lane.b32.xlu1 %v3875_v50, %s4165_s16  ;;  %4095 = vrcp.f32 %v442_v46  ;;  %v1236_v17 = vrot.slane %v4634_v22, 2  ;;  %v1237_v10 = vrot.slane %v4641_v21, 2  ;;  %v1422_v59 = vpack.c.bf16 %v1235_v5, %v1235_v5 }
  0x6c   : > { %v4080_v43 = vpop.eup %4079  ;;  %v800_v29 = vmul.f32 %v4078_v33, %v4479_v44  ;;  %v5953_v44 = vld [vmem:[#allocation11_spill] sm:$0xff]  ;;  %v1241_v32 = vrot.slane %v4679_v30, 2  ;;  %v1242_v0 = vrot.slane %v4703_v37, 2  ;;  %v1201_v12 = vrot.slane %v4731_v2, 2 }
  0x6d   : > { %v801_v45 = vmul.f32 %v4080_v43, %v4494_v4  ;;  %v1196_v24 = vrot.slane %v5953_v44, 2  ;;  %v4082_v7 = vpop.eup %4081  ;;  %v1197_v4 = vrot.slane %v4665_v23, 2  ;;  %v1202_v28 = vrot.slane %v4737_v31, 2  ;;  %v5958_v44 = vld [vmem:[#allocation9_spill] sm:$0xff] }
  0x6e   : > { %833 = vst.msk [vmem:[#allocation2 + $0x1e8] sm:$0xff] %vm382_vm0, %v800_v29  ;;  %3871 = vrot.lane.b32.xlu0 %v3870_v40, %s4165_s16  ;;  %v4084_v25 = vpop.eup %4083  ;;  %v784_v3 = vmul.f32 %v4082_v7, %v5954_v56  ;;  %v1193_v26 = vsel %vm1180_vm2, %v1191_v55, %v1192_v54  ;;  %v1194_v53 = vrot.slane %v848_v14, 2  ;;  %v1246_v60 = vrot.slane %v4746_v63, 2 }
  0x6f   : > { %834 = vst.msk [vmem:[#allocation2 + $0x1f0] sm:$0xff] %vm382_vm0, %v801_v45  ;;  %3881 = vrot.lane.b32.xlu1 %v3880_v19, %s4165_s16  ;;  %v785_v23 = vmul.f32 %v4084_v25, %v5955_v41  ;;  %v1810_v57 = vshrl.u32 %v1420_v11, 16  ;;  %v1813_v38 = vshll.u32 %v1420_v11, 16  ;;  %v4086_v6 = vpop.eup %4085  ;;  %v1247_v42 = vrot.slane %v4752_v47, 2 }
  0x70   : > { %v1206_v58 = vrot.slane %v4757_v16, 2  ;;  %817 = vst.msk [vmem:[#allocation2 + $0xe8] sm:$0xff] %vm382_vm0, %v784_v3  ;;  %v1818_v35 = vshrl.u32 %v1422_v59, 16  ;;  %v1821_v36 = vshll.u32 %v1422_v59, 16  ;;  %v1207_v49 = vrot.slane %v4760_v52, 2  ;;  %v864_v52 = vld [vmem:[#allocation2 + $0xd8] sm:$0xff] }
  0x71   : > { %v4088_v50 = vpop.eup %4087  ;;  %818 = vst.msk [vmem:[#allocation2 + $0xf0] sm:$0xff] %vm382_vm0, %v785_v23  ;;  %v802_v61 = vmul.f32 %v4086_v6, %v5956_v62  ;;  %v4815_v33 = vpack.c.bf16 %v1193_v26, %v1191_v55  ;;  %v1195_v19 = vsel %vm1180_vm2, %v1192_v54, %v1194_v53  ;;  %v1198_v29 = vsel %vm1180_vm2, %v1196_v24, %v1197_v4  ;;  %v5959_v54 = vld [vmem:[#allocation10_spill] sm:$0xff] }
  0x72   : > { %v4090_v40 = vpop.eup %4089  ;;  %v803_v43 = vmul.f32 %v4088_v50, %v5957_v9  ;;  %v1199_v5 = vrot.slane %v852_v1, 2  ;;  %v4827_v59 = vrot.slane %v1810_v57, 3  ;;  %v4829_v7 = vrot.slane %v1813_v38, 4  ;;  %v884_v62 = vld [vmem:[#allocation2 + $0x178] sm:$0xff] }
  0x73   : > { %v4092_v45 = vpop.eup %4091  ;;  %835 = vst.msk [vmem:[#allocation2 + $0x208] sm:$0xff] %vm382_vm0, %v802_v61  ;;  %v786_v55 = vmul.f32 %v4090_v40, %v5958_v44  ;;  %v4834_v26 = vrot.slane %v1818_v35, 3  ;;  %v4836_v53 = vrot.slane %v1821_v36, 4  ;;  %v1390_v38 = vpack.c.bf16 %v1195_v19, %v1195_v19 }
  0x74   : > { %v4094_v25 = vpop.eup %4093  ;;  %836 = vst.msk [vmem:[#allocation2 + $0x210] sm:$0xff] %vm382_vm0, %v803_v43  ;;  %v787_v3 = vmul.f32 %v4092_v45, %v5959_v54  ;;  %v1392_v1 = vpack.c.bf16 %v1198_v29, %v1196_v24  ;;  %v1538_v35 = vshrl.u32 %v4815_v33, 16  ;;  %v1200_v36 = vsel %vm1180_vm2, %v1197_v4, %v1199_v5 }
  0x75   : > { %v4817_v46 = vld [vmem:[#allocation2 + $0x1e8] sm:$0xff]  ;;  %v4096_v41 = vpop.eup %4095  ;;  %819 = vst.msk [vmem:[#allocation2 + $0x108] sm:$0xff] %vm382_vm0, %v786_v55  ;;  %v447_v57 = vmul.f32 %v4094_v25, %v4645_v39  ;;  %v1824_v4 = vor.u32 %v4836_v53, %v4834_v26  ;;  %v1541_v45 = vshll.u32 %v4815_v33, 16  ;;  %v1239_v44 = vrot.slane %v884_v62, 2 }
  0x76   : > { %v4822_v11 = vld [vmem:[#allocation2 + $0x1f0] sm:$0xff]  ;;  %v991_v14 = vrot.slane %v4817_v46, 1  ;;  %820 = vst.msk [vmem:[#allocation2 + $0x110] sm:$0xff] %vm382_vm0, %v787_v3  ;;  %v448_v50 = vmul.f32 %v4096_v41, %v4648_v48  ;;  %v1816_v48 = vor.u32 %v4829_v7, %v4827_v59  ;;  %v4864_v54 = vrot.slane %v1538_v35, 3 }
  0x77   : > { %v992_v56 = vrot.slane %v4822_v11, 1  ;;  %v4848_v43 = vld [vmem:[#allocation2 + $0xe8] sm:$0xff]  ;;  %v453_v39 = vmul.f32 0.0, %v447_v57  ;;  %v1546_v59 = vshrl.u32 %v1390_v38, 16  ;;  %v1572_v7 = vshrl.u32 %v1392_v1, 16 }
  0x78   : > { %v967_v24 = vrot.slane %v4848_v43, 1  ;;  %v4851_v19 = vld [vmem:[#allocation2 + $0xf0] sm:$0xff]  ;;  %v454_v29 = vmul.f32 0.0, %v448_v50  ;;  %v1549_v41 = vshll.u32 %v1390_v38, 16  ;;  %v1238_v33 = vsel %vm1180_vm2, %v1236_v17, %v1237_v10 }
  0x79   : > { %v993_v6 = vsel %vm945_vm1, %v991_v14, %v992_v56  ;;  %v968_v5 = vrot.slane %v4851_v19, 1  ;;  %479 = vst.msk [vmem:[#allocation2 + $0x8] sm:$0xff] %vm382_vm0, %v453_v39  ;;  %v1575_v50 = vshll.u32 %v1392_v1, 16  ;;  %v1240_v35 = vsel %vm1180_vm2, %v1237_v10, %v1239_v44 }
  0x7a   : > { %v3890_v9 = vpack.i.bf16 %v993_v6, %v991_v14  ;;  %v1394_v14 = vpack.c.bf16 %v1200_v36, %v1200_v36  ;;  %v3885_v55 = vpack.i.bf16 %v967_v24, %v992_v56  ;;  %v4861_v25 = vld [vmem:[#allocation2 + $0x208] sm:$0xff]  ;;  %480 = vst.msk [vmem:[#allocation2 + $0x10] sm:$0xff] %vm382_vm0, %v454_v29  ;;  %v1543_v62 = vrot.slane %v1541_v45, 4 }
  0x7b   : > { %v969_v3 = vsel %vm945_vm1, %v967_v24, %v968_v5  ;;  %v4867_v26 = vld [vmem:[#allocation2 + $0x210] sm:$0xff]  ;;  %v994_v53 = vrot.slane %v4861_v25, 1  ;;  %v856_v24 = vld [vmem:[#allocation2 + $0x98] sm:$0xff]  ;;  %v1424_v21 = vpack.c.bf16 %v1238_v33, %v1236_v17  ;;  %v1548_v44 = vrot.slane %v1546_v59, 3 }
  0x7c   : > { %3891 = vrot.lane.b32.xlu0 %v3890_v9, %s4165_s16  ;;  %3886 = vrot.lane.b32.xlu1 %v3885_v55, %s4165_s16  ;;  %v3895_v56 = vpack.i.bf16 %v968_v5, %v969_v3  ;;  %v995_v57 = vrot.slane %v4867_v26, 1  ;;  %v4877_v6 = vld [vmem:[#allocation2 + $0x108] sm:$0xff]  ;;  %v1580_v9 = vshrl.u32 %v1394_v14, 16  ;;  %v1583_v39 = vshll.u32 %v1394_v14, 16 }
  0x7d   : > { %v970_v38 = vrot.slane %v4877_v6, 1  ;;  %v4883_v36 = vld [vmem:[#allocation2 + $0x110] sm:$0xff]  ;;  %v1574_v55 = vrot.slane %v1572_v7, 3  ;;  %v1426_v3 = vpack.c.bf16 %v1240_v35, %v1240_v35  ;;  %v1551_v14 = vrot.slane %v1549_v41, 4 }
  0x7e   : > { %v996_v29 = vsel %vm945_vm1, %v994_v53, %v995_v57  ;;  %v971_v5 = vrot.slane %v4883_v36, 1  ;;  %v1577_v23 = vrot.slane %v1575_v50, 4  ;;  %v1204_v61 = vrot.slane %v856_v24, 2 }
  0x7f   : > { %v3905_v1 = vpack.i.bf16 %v996_v29, %v994_v53  ;;  %v3900_v10 = vpack.i.bf16 %v970_v38, %v995_v57  ;;  %v1582_v22 = vrot.slane %v1580_v9, 3  ;;  %v1585_v17 = vrot.slane %v1583_v39, 4 }
  0x80   : > { %3896 = vrot.lane.b32.xlu0 %v3895_v56, %s4165_s16  ;;  %v972_v15 = vsel %vm945_vm1, %v970_v38, %v971_v5  ;;  %v4891_v45 = vld [vmem:[#allocation2 + $0x8] sm:$0xff]  ;;  %v1256_v53 = vrot.slane %v4817_v46, 2  ;;  %v4901_v33 = vsel %vm1451_vm3, %v1816_v48, %v1824_v4  ;;  %v1844_v41 = vshrl.u32 %v1424_v21, 16  ;;  %v888_v38 = vld [vmem:[#allocation2 + $0x198] sm:$0xff] }
  0x81   : > { %3906 = vrot.lane.b32.xlu1 %v3905_v1, %s4165_s16  ;;  %v3910_v56 = vpack.i.bf16 %v971_v5, %v972_v15  ;;  %v4894_v40 = vld [vmem:[#allocation2 + $0x10] sm:$0xff]  ;;  %v946_v7 = vrot.slane %v4891_v45, 1  ;;  %v1847_v57 = vshll.u32 %v1424_v21, 16  ;;  %v1852_v50 = vshrl.u32 %v1426_v3, 16  ;;  %v860_v1 = vld [vmem:[#allocation2 + $0xb8] sm:$0xff] }
  0x82   : > { %v947_v59 = vrot.slane %v4894_v40, 1  ;;  %v1855_v35 = vshll.u32 %v1426_v3, 16  ;;  %v1203_v15 = vsel %vm1180_vm2, %v1201_v12, %v1202_v28  ;;  %v1544_v39 = vor.u32 %v1543_v62, %v4864_v54 }
  0x83   : > { %v1552_v24 = vor.u32 %v1551_v14, %v1548_v44  ;;  %v1205_v48 = vsel %vm1180_vm2, %v1202_v28, %v1204_v61  ;;  %v1257_v4 = vrot.slane %v4822_v11, 2  ;;  %v1578_v5 = vor.u32 %v1577_v23, %v1574_v55 }
  0x84   : > { %3901 = vrot.lane.b32.xlu0 %v3900_v10, %s4165_s16  ;;  %v948_v9 = vsel %vm945_vm1, %v946_v7, %v947_v59  ;;  %v1586_v21 = vor.u32 %v1585_v17, %v1582_v22  ;;  %v1846_v10 = vrot.slane %v1844_v41, 3  ;;  %v1396_v3 = vpack.c.bf16 %v1203_v15, %v1201_v12  ;;  %v892_v17 = vld [vmem:[#allocation2 + $0x1b8] sm:$0xff] }
  0x85   : > { %3911 = vrot.lane.b32.xlu1 %v3910_v56, %s4165_s16  ;;  %v3915_v29 = vpack.i.bf16 %v948_v9, %v946_v7  ;;  %v1243_v31 = vsel %vm1180_vm2, %v1241_v32, %v1242_v0  ;;  %v1244_v54 = vrot.slane %v888_v38, 2  ;;  %v1849_v28 = vrot.slane %v1847_v57, 4 }
  0x86   : > { %v1854_v61 = vrot.slane %v1852_v50, 3  ;;  %v1857_v62 = vrot.slane %v1855_v35, 4  ;;  %v1398_v44 = vpack.c.bf16 %v1205_v48, %v1205_v48  ;;  %v1216_v23 = vrot.slane %v4848_v43, 2 }
  0x87   : > { %v1217_v55 = vrot.slane %v4851_v19, 2  ;;  %v4926_v2 = vsel %vm1451_vm3, %v1544_v39, %v1552_v24  ;;  %v1209_v12 = vrot.slane %v860_v1, 2  ;;  %v1261_v14 = vrot.slane %v4861_v25, 2 }
  0x88   : > { %3916 = vrot.lane.b32.xlu0 %v3915_v29, %s4165_s16  ;;  %v1262_v56 = vrot.slane %v4867_v26, 2  ;;  %v4932_v7 = vsel %vm1451_vm3, %v1578_v5, %v1586_v21  ;;  %v1428_v22 = vpack.c.bf16 %v1243_v31, %v1241_v32  ;;  %v1606_v41 = vshrl.u32 %v1396_v3, 16  ;;  %v840_v26 = vld [vmem:[#allocation2 + $0x18] sm:$0xff] }
  0x89   : > { %1004 = vrot.lane.b32.xlu1 %v947_v59, %s4165_s16  ;;  %5960 = vst [vmem:[#allocation11_spill] sm:$0xff] %v4932_v7  ;;  %v1609_v57 = vshll.u32 %v1396_v3, 16  ;;  %v1245_v50 = vsel %vm1180_vm2, %v1242_v0, %v1244_v54  ;;  %v1208_v35 = vsel %vm1180_vm2, %v1206_v58, %v1207_v49  ;;  %v1850_v59 = vor.u32 %v1849_v28, %v1846_v10 }
  0x8a   : > { %v1858_v15 = vor.u32 %v1857_v62, %v1854_v61  ;;  %v1614_v38 = vshrl.u32 %v1398_v44, 16  ;;  %v1210_v30 = vsel %vm1180_vm2, %v1207_v49, %v1209_v12  ;;  %v1221_v32 = vrot.slane %v4877_v6, 2 }
  0x8b   : > { %v1617_v9 = vshll.u32 %v1398_v44, 16  ;;  %v1248_v37 = vsel %vm1180_vm2, %v1246_v60, %v1247_v42  ;;  %v1249_v0 = vrot.slane %v892_v17, 2  ;;  %v1222_v39 = vrot.slane %v4883_v36, 2  ;;  %v421_v36 = vld [vmem:[%s4554_s11 + $0x10] sm:$0xff] }
  0x8c   : > { %v1430_v24 = vpack.c.bf16 %v1245_v50, %v1245_v50  ;;  %v1878_v48 = vshrl.u32 %v1428_v22, 16  ;;  %v1400_v29 = vpack.c.bf16 %v1208_v35, %v1206_v58  ;;  %v4957_v5 = vrot.slane %v1606_v41, 3  ;;  %v896_v41 = vld [vmem:[#allocation2 + $0x1d8] sm:$0xff] }
  0x8d   : > { %v4959_v21 = vrot.slane %v1609_v57, 4  ;;  %v1402_v1 = vpack.c.bf16 %v1210_v30, %v1210_v30  ;;  %v4963_v3 = vsel %vm1451_vm3, %v1850_v59, %v1858_v15  ;;  %v4965_v31 = vrot.slane %v1614_v38, 3 }
  0x8e   : > { %5961 = vst [vmem:[#allocation5_spill] sm:$0xff] %v4963_v3  ;;  %v1432_v54 = vpack.c.bf16 %v1248_v37, %v1246_v60  ;;  %v4969_v16 = vrot.slane %v1617_v9, 4  ;;  %v1881_v58 = vshll.u32 %v1428_v22, 16  ;;  %v1250_v28 = vsel %vm1180_vm2, %v1247_v42, %v1249_v0 }
  0x8f   : > { %v1214_v61 = vrot.slane %v864_v52, 2  ;;  %v4974_v62 = vrot.slane %v1878_v48, 3  ;;  %v1886_v44 = vshrl.u32 %v1430_v24, 16  ;;  %v1889_v12 = vshll.u32 %v1430_v24, 16 }
  0x90   : > { %v1640_v17 = vshrl.u32 %v1400_v29, 16  ;;  %v1643_v50 = vshll.u32 %v1400_v29, 16  ;;  %v1648_v63 = vshrl.u32 %v1402_v1, 16  ;;  %v5962_v60 = vrot.slane %v4778_v18, 2 }
  0x91   : > { %v5963_v22 = vrot.slane %v4773_v27, 2  ;;  %v1651_v35 = vshll.u32 %v1402_v1, 16  ;;  %v1434_v42 = vpack.c.bf16 %v1250_v28, %v1250_v28  ;;  %v1912_v59 = vshrl.u32 %v1432_v54, 16  ;;  %v868_v28 = vld [vmem:[#allocation2 + $0xf8] sm:$0xff] }
  0x92   : > { %v5964_v15 = vmov %v5962_v60  ;;  %v4988_v9 = vrot.slane %v1881_v58, 4  ;;  %v1915_v37 = vshll.u32 %v1432_v54, 16  ;;  %v1254_v0 = vrot.slane %v896_v41, 2 }
  0x93   : > { %v1213_v47 = vsel %vm1180_vm2, %v5963_v22, %v5962_v60  ;;  %v1215_v38 = vsel %vm1180_vm2, %v5964_v15, %v1214_v61  ;;  %v4990_v24 = vrot.slane %v1886_v44, 3  ;;  %v4992_v48 = vrot.slane %v1889_v12, 4 }
  0x94   : > { %v4994_v29 = vrot.slane %v1640_v17, 3  ;;  %v5965_v52 = vmov %v5963_v22  ;;  %v4998_v18 = vrot.slane %v1643_v50, 4  ;;  %v5000_v61 = vrot.slane %v1648_v63, 3 }
  0x95   : > { %v1404_v1 = vpack.c.bf16 %v1213_v47, %v5965_v52  ;;  %v1406_v60 = vpack.c.bf16 %v1215_v38, %v1215_v38  ;;  %v5966_v58 = vrot.slane %v4767_v34, 2  ;;  %v5967_v54 = vrot.slane %v4765_v8, 2  ;;  %v900_v34 = vld [vmem:[#allocation2 + $0x1f8] sm:$0xff] }
  0x96   : > { %v5007_v41 = vrot.slane %v1651_v35, 4  ;;  %v5009_v12 = vrot.slane %v1912_v59, 3  ;;  %v1920_v17 = vshrl.u32 %v1434_v42, 16  ;;  %v1923_v22 = vshll.u32 %v1434_v42, 16 }
  0x97   : > { %v1253_v44 = vsel %vm1180_vm2, %v5967_v54, %v5966_v58  ;;  %v5011_v27 = vrot.slane %v1915_v37, 4  ;;  %v5968_v50 = vmov %v5966_v58  ;;  %v1218_v47 = vsel %vm1180_vm2, %v1216_v23, %v1217_v55 }
  0x98   : > { %v1255_v63 = vsel %vm1180_vm2, %v5968_v50, %v1254_v0  ;;  %v1219_v15 = vrot.slane %v868_v28, 2  ;;  %v1674_v42 = vshrl.u32 %v1404_v1, 16  ;;  %v5969_v38 = vmov %v5967_v54 }
  0x99   : > { %v1436_v37 = vpack.c.bf16 %v1253_v44, %v5969_v38  ;;  %v1677_v52 = vshll.u32 %v1404_v1, 16  ;;  %v1682_v58 = vshrl.u32 %v1406_v60, 16  ;;  %v5034_v50 = vrot.slane %v1920_v17, 3 }
  0x9a   : > { %v1220_v28 = vsel %vm1180_vm2, %v1217_v55, %v1219_v15  ;;  %v1438_v35 = vpack.c.bf16 %v1255_v63, %v1255_v63  ;;  %v1408_v8 = vpack.c.bf16 %v1218_v47, %v1216_v23  ;;  %v5040_v38 = vrot.slane %v1923_v22, 4  ;;  %v872_v63 = vld [vmem:[#allocation2 + $0x118] sm:$0xff] }
  0x9b   : > { %v1410_v1 = vpack.c.bf16 %v1220_v28, %v1220_v28  ;;  %v1259_v0 = vrot.slane %v900_v34, 2  ;;  %v5042_v59 = vrot.slane %v1674_v42, 3  ;;  %v1685_v19 = vshll.u32 %v1406_v60, 16 }
  0x9c   : > { %v1946_v55 = vshrl.u32 %v1436_v37, 16  ;;  %v1258_v17 = vsel %vm1180_vm2, %v1256_v53, %v1257_v4  ;;  %v5049_v43 = vrot.slane %v1677_v52, 4  ;;  %v5051_v23 = vrot.slane %v1682_v58, 3 }
  0x9d   : > { %v1949_v47 = vshll.u32 %v1436_v37, 16  ;;  %v1260_v22 = vsel %vm1180_vm2, %v1257_v4, %v1259_v0  ;;  %v1954_v15 = vshrl.u32 %v1438_v35, 16  ;;  %v1957_v42 = vshll.u32 %v1438_v35, 16  ;;  %v904_v0 = vld [vmem:[#allocation2 + $0x218] sm:$0xff] }
  0x9e   : > { %v1708_v60 = vshrl.u32 %v1408_v8, 16  ;;  %v1223_v34 = vsel %vm1180_vm2, %v1221_v32, %v1222_v39  ;;  %v1711_v28 = vshll.u32 %v1408_v8, 16  ;;  %v1716_v44 = vshrl.u32 %v1410_v1, 16 }
  0x9f   : > { %v1440_v52 = vpack.c.bf16 %v1258_v17, %v1256_v53  ;;  %v1224_v37 = vrot.slane %v872_v63, 2  ;;  %v5063_v58 = vrot.slane %v1685_v19, 4  ;;  %v5065_v11 = vrot.slane %v1946_v55, 3 }
  0xa0   : > { %v1719_v4 = vshll.u32 %v1410_v1, 16  ;;  %v1442_v35 = vpack.c.bf16 %v1260_v22, %v1260_v22  ;;  %v5067_v54 = vrot.slane %v1949_v47, 4  ;;  %v1412_v46 = vpack.c.bf16 %v1223_v34, %v1221_v32  ;;  %v422_v34 = vld [vmem:[%s4554_s11 + $0x18] sm:$0xff] }
  0xa1   : > { %v1225_v57 = vsel %vm1180_vm2, %v1222_v39, %v1224_v37  ;;  %v1263_v53 = vsel %vm1180_vm2, %v1261_v14, %v1262_v56  ;;  %v5079_v8 = vrot.slane %v1954_v15, 3  ;;  %v5081_v1 = vrot.slane %v1957_v42, 4 }
  0xa2   : > { %v5083_v19 = vrot.slane %v1708_v60, 3  ;;  %v1414_v55 = vpack.c.bf16 %v1225_v57, %v1225_v57  ;;  %v5086_v17 = vrot.slane %v1711_v28, 4  ;;  %v5088_v39 = vrot.slane %v1716_v44, 3  ;;  %v5970_v60 = vld [vmem:[#allocation3_spill] sm:$0xff] }
  0xa3   : > { %v1980_v6 = vshrl.u32 %v1440_v52, 16  ;;  %v1264_v32 = vrot.slane %v904_v0, 2  ;;  %v5090_v63 = vrot.slane %v1719_v4, 4  ;;  %v1983_v47 = vshll.u32 %v1440_v52, 16 }
  0xa4   : > { %v1988_v22 = vshrl.u32 %v1442_v35, 16  ;;  %v1444_v15 = vpack.c.bf16 %v1263_v53, %v1261_v14  ;;  %v1991_v42 = vshll.u32 %v1442_v35, 16  ;;  %v1742_v37 = vshrl.u32 %v1412_v46, 16  ;;  %v5971_v35 = vld [vmem:[#allocation4_spill] sm:$0xff] }
  0xa5   : > { %v1265_v57 = vsel %vm1180_vm2, %v1262_v56, %v1264_v32  ;;  %v455_v28 = vmul.f32 %v5970_v60, %v421_v36  ;;  %v1745_v44 = vshll.u32 %v1412_v46, 16  ;;  %v1750_v30 = vshrl.u32 %v1414_v55, 16 }
  0xa6   : > { %v1753_v49 = vshll.u32 %v1414_v55, 16  ;;  %v1446_v0 = vpack.c.bf16 %v1265_v57, %v1265_v57  ;;  %v1982_v4 = vrot.slane %v1980_v6, 3  ;;  %v2054_v10 = vshrl.u32 %v1444_v15, 16 }
  0xa7   : > { %v2057_v52 = vshll.u32 %v1444_v15, 16  ;;  %v456_v13 = vmul.f32 %v5970_v60, %v422_v34  ;;  %v1985_v25 = vrot.slane %v1983_v47, 4  ;;  %v5101_v51 = vadd.f32 %v455_v28, %v5971_v35 }
  0xa8   : > { %v2062_v14 = vshrl.u32 %v1446_v0, 16  ;;  %v2065_v53 = vshll.u32 %v1446_v0, 16  ;;  %v1990_v3 = vrot.slane %v1988_v22, 3  ;;  %v1993_v56 = vrot.slane %v1991_v42, 4 }
  0xa9   : > { %v1744_v32 = vrot.slane %v1742_v37, 3  ;;  %v5972_v46 = vrot.slane %v4894_v40, 2  ;;  %v5973_v55 = vrot.slane %v4891_v45, 2  ;;  %v1747_v6 = vrot.slane %v1745_v44, 4 }
  0xaa   : > { %v1752_v15 = vrot.slane %v1750_v30, 3  ;;  %v1755_v57 = vrot.slane %v1753_v49, 4  ;;  %v3508_v47 = vmul.f32 -1.442695, %v5101_v51  ;;  %v2056_v34 = vrot.slane %v2054_v10, 3 }
  0xab   : > { %v1183_v36 = vsel %vm1180_vm2, %v5973_v55, %v5972_v46  ;;  %v2059_v60 = vrot.slane %v2057_v52, 4  ;;  %v5110_v28 = vadd.f32 %v456_v13, %v5971_v35  ;;  %v1184_v0 = vrot.slane %v840_v26, 2  ;;  %v4105_v35 = vld [vmem:[#allocation2 + $0x128] sm:$0xff] }
  0xac   : > { %v2064_v22 = vrot.slane %v2062_v14, 3  ;;  %v2067_v42 = vrot.slane %v2065_v53, 4  ;;  %4097 = vpow2.f32 %v3508_v47  ;;  %v5974_v37 = vmov %v5973_v55 }
  0xad   : > { %v1380_v7 = vpack.c.bf16 %v1183_v36, %v5974_v37  ;;  %v1926_v46 = vor.u32 %v5040_v38, %v5034_v50  ;;  %v1680_v49 = vor.u32 %v5049_v43, %v5042_v59  ;;  %v1688_v10 = vor.u32 %v5063_v58, %v5051_v23  ;;  %v4107_v37 = vld [vmem:[#allocation2 + $0x28] sm:$0xff] }
  0xae   : > { %v1952_v13 = vor.u32 %v5067_v54, %v5065_v11  ;;  %v1960_v30 = vor.u32 %v5081_v1, %v5079_v8  ;;  %v1714_v44 = vor.u32 %v5086_v17, %v5083_v19  ;;  %v1722_v45 = vor.u32 %v5090_v63, %v5088_v39 }
  0xaf   : > { %v1986_v52 = vor.u32 %v1985_v25, %v1982_v4  ;;  %v1994_v50 = vor.u32 %v1993_v56, %v1990_v3  ;;  %v1748_v38 = vor.u32 %v1747_v6, %v1744_v32  ;;  %v1756_v14 = vor.u32 %v1755_v57, %v1752_v15  ;;  %v841_v6 = vld [vmem:[#allocation2 + $0x20] sm:$0xff] }
  0xb0   : > { %v5975_v59 = vrot.slane %v4894_v40, 2  ;;  %v2060_v23 = vor.u32 %v2059_v60, %v2056_v34  ;;  %v2068_v58 = vor.u32 %v2067_v42, %v2064_v22  ;;  %v3509_v54 = vmul.f32 -1.442695, %v5110_v28  ;;  %v4106_v22 = vld [vmem:[#allocation2 + $0x30] sm:$0xff] }
  0xb1   : > { %v1470_v11 = vshrl.u32 %v1380_v7, 16  ;;  %v5976_v8 = vor.u32 %v4969_v16, %v4965_v31  ;;  %v5977_v1 = vor.u32 %v4959_v21, %v4957_v5  ;;  %v5978_v3 = vor.u32 %v4992_v48, %v4990_v24  ;;  %v873_v24 = vld [vmem:[#allocation2 + $0x120] sm:$0xff] }
  0xb2   : > { %v1185_v43 = vsel %vm1180_vm2, %v5975_v59, %v1184_v0  ;;  %v5979_v40 = vor.u32 %v4988_v9, %v4974_v62  ;;  %v5980_v39 = vor.u32 %v5007_v41, %v5000_v61  ;;  %v5981_v31 = vor.u32 %v4998_v18, %v4994_v29 }
  0xb3   : > { %v5139_v19 = vsel %vm1451_vm3, %v5977_v1, %v5976_v8  ;;  %v5982_v21 = vor.u32 %v5011_v27, %v5009_v12  ;;  %v5166_v9 = vsel %vm1451_vm3, %v1680_v49, %v1688_v10  ;;  %v5169_v48 = vsel %vm1451_vm3, %v1952_v13, %v1960_v30  ;;  %v877_v10 = vld [vmem:[#allocation2 + $0x140] sm:$0xff]  ;;  %v4109_v1 = vld [vmem:[#allocation2 + $0x148] sm:$0xff] }
  0xb4   : > { %v5148_v17 = vsel %vm1451_vm3, %v5979_v40, %v5978_v3  ;;  %v5157_v5 = vsel %vm1451_vm3, %v5981_v31, %v5980_v39  ;;  %5983 = vst [vmem:[#allocation6_spill] sm:$0xff] %v5169_v48  ;;  %v5171_v61 = vpack.c.bf16 %v1185_v43, %v1185_v43  ;;  %v1473_v29 = vshll.u32 %v1380_v7, 16 }
  0xb5   : > { %v5163_v16 = vsel %vm1451_vm3, %v5982_v21, %v1926_v46  ;;  %v5174_v63 = vsel %vm1451_vm3, %v1714_v44, %v1722_v45  ;;  %v5177_v12 = vsel %vm1451_vm3, %v1986_v52, %v1994_v50  ;;  %v5180_v4 = vsel %vm1451_vm3, %v1748_v38, %v1756_v14  ;;  %v4108_v50 = vld [vmem:[#allocation2 + $0x130] sm:$0xff] }
  0xb6   : > { %v3797_v62 = vpop.permute.xlu0 %3796  ;;  %5984 = vst [vmem:[#allocation7_spill] sm:$0xff] %v5177_v12  ;;  %v5183_v25 = vsel %vm1451_vm3, %v2060_v23, %v2068_v58  ;;  %4099 = vpow2.f32 %v3509_v54  ;;  %v5185_v53 = vrot.slane %v1470_v11, 3  ;;  %v4098_v55 = vpop.eup %4097  ;;  %v5191_v57 = vrot.slane %v1473_v29, 4  ;;  %v845_v11 = vld [vmem:[#allocation2 + $0x40] sm:$0xff] }
  0xb7   : > { %v3799_v18 = vunpack.i.h.bf16 %v3797_v62  ;;  %v3798_v41 = vunpack.i.l.bf16 %v3797_v62  ;;  %v1478_v47 = vshrl.u32 %v5171_v61, 16  ;;  %v5199_v45 = vadd.f32 1.0, %v4098_v55  ;;  %v881_v55 = vld [vmem:[#allocation2 + $0x160] sm:$0xff] }
  0xb8   : > { %v3812_v27 = vpop.permute.xlu1 %3811 }
  0xb9   : > { %v1353_v7 = vsel %vm382_vm0, %v4105_v35, %v3799_v18  ;;  %v1352_v26 = vsel %vm382_vm0, %v873_v24, %v3798_v41  ;;  %v3814_v56 = vunpack.i.h.bf16 %v3812_v27  ;;  %v3813_v32 = vunpack.i.l.bf16 %v3812_v27  ;;  %v4110_v27 = vld [vmem:[#allocation2 + $0x150] sm:$0xff] }
  0xba   : > { %v5189_v36 = vpack.c.bf16 %v1353_v7, %v1352_v26  ;;  %v3802_v15 = vpop.permute.xlu0 %3801  ;;  %4101 = vrcp.f32 %v5199_v45 }
  0xbb   : > { %v3804_v60 = vunpack.i.h.bf16 %v3802_v15  ;;  %v3803_v0 = vunpack.i.l.bf16 %v3802_v15  ;;  %v1330_v42 = vsel %vm382_vm0, %v4106_v22, %v3814_v56  ;;  %v1329_v46 = vsel %vm382_vm0, %v4107_v37, %v3813_v32 }
  0xbc   : > { %v1385_v49 = vpack.c.bf16 %v1330_v42, %v1330_v42  ;;  %v3817_v13 = vpop.permute.xlu1 %3816  ;;  %v1759_v30 = vshrl.u32 %v5189_v36, 16  ;;  %v1762_v44 = vshll.u32 %v5189_v36, 16  ;;  %v4112_v42 = vld [vmem:[#allocation2 + $0x48] sm:$0xff] }
  0xbd   : > { %v1328_v52 = vsel %vm382_vm0, %v841_v6, %v3804_v60  ;;  %v1354_v38 = vsel %vm382_vm0, %v4108_v50, %v3803_v0  ;;  %v3819_v14 = vunpack.i.h.bf16 %v3817_v13  ;;  %v3818_v59 = vunpack.i.l.bf16 %v3817_v13  ;;  %v4111_v0 = vld [vmem:[#allocation2 + $0x50] sm:$0xff] }
  0xbe   : > { %v1417_v43 = vpack.c.bf16 %v1354_v38, %v1354_v38  ;;  %v1495_v23 = vshrl.u32 %v1385_v49, 16  ;;  %v1498_v58 = vshll.u32 %v1385_v49, 16  ;;  %v1383_v54 = vpack.c.bf16 %v1329_v46, %v1328_v52  ;;  %v3807_v8 = vpop.permute.xlu0 %3806  ;;  %v4113_v38 = vld [vmem:[#allocation2 + $0x168] sm:$0xff] }
  0xbf   : > { %v1356_v3 = vsel %vm382_vm0, %v4109_v1, %v3819_v14  ;;  %v1355_v40 = vsel %vm382_vm0, %v877_v10, %v3818_v59  ;;  %v3809_v39 = vunpack.i.h.bf16 %v3807_v8  ;;  %v3808_v31 = vunpack.i.l.bf16 %v3807_v8 }
  0xc0   : > { %v1767_v21 = vshrl.u32 %v1417_v43, 16  ;;  %v1770_v24 = vshll.u32 %v1417_v43, 16  ;;  %v5205_v62 = vpack.c.bf16 %v1356_v3, %v1355_v40  ;;  %v3822_v29 = vpop.permute.xlu1 %3821  ;;  %v1487_v18 = vshrl.u32 %v1383_v54, 16  ;;  %v5209_v56 = vpop.eup %4099 }
  0xc1   : > { %v1331_v41 = vsel %vm382_vm0, %v845_v11, %v3809_v39  ;;  %v1357_v35 = vsel %vm382_vm0, %v4110_v27, %v3808_v31  ;;  %v3824_v7 = vunpack.i.h.bf16 %v3822_v29  ;;  %v3823_v26 = vunpack.i.l.bf16 %v3822_v29  ;;  %v849_v27 = vld [vmem:[#allocation2 + $0x60] sm:$0xff] }
  0xc2   : > { %v5211_v32 = vpack.c.bf16 %v1357_v35, %v1357_v35  ;;  %v3832_v36 = vpop.permute.xlu0 %3831  ;;  %v1489_v6 = vrot.slane %v1487_v18, 3  ;;  %v1490_v15 = vshll.u32 %v1383_v54, 16  ;;  %v1497_v60 = vrot.slane %v1495_v23, 3 }
  0xc3   : > { %v1333_v22 = vsel %vm382_vm0, %v4111_v0, %v3824_v7  ;;  %v1332_v37 = vsel %vm382_vm0, %v4112_v42, %v3823_v26  ;;  %v3834_v46 = vunpack.i.h.bf16 %v3832_v36  ;;  %v3833_v49 = vunpack.i.l.bf16 %v3832_v36 }
  0xc4   : > { %v1801_v10 = vshrl.u32 %v5211_v32, 16  ;;  %v1804_v13 = vshll.u32 %v5211_v32, 16  ;;  %v1389_v52 = vpack.c.bf16 %v1333_v22, %v1333_v22  ;;  %v1387_v50 = vpack.c.bf16 %v1332_v37, %v1331_v41  ;;  %v3827_v54 = vpop.permute.xlu1 %3826  ;;  %v3938_v41 = vld [vmem:[%s5911_s3 + $0xc0] sm:$0xff]   ;;  %v4116_v37 = vld [vmem:[#allocation2 + $0x68] sm:$0xff]  ;;  %v4102_v34 = vpop.eup %4101 }
  0xc5   : > { %v1359_v14 = vsel %vm382_vm0, %v4113_v38, %v3834_v46  ;;  %v1358_v59 = vsel %vm382_vm0, %v881_v55, %v3833_v49  ;;  %v1492_v43 = vrot.slane %v1490_v15, 4  ;;  %v1500_v23 = vrot.slane %v1498_v58, 4  ;;  %v4114_v15 = vld [vmem:[#allocation2 + $0x170] sm:$0xff] }
  0xc6   : > { %v1529_v11 = vshrl.u32 %v1389_v52, 16  ;;  %v1532_v8 = vshll.u32 %v1389_v52, 16  ;;  %v5219_v1 = vpack.c.bf16 %v1359_v14, %v1358_v59  ;;  %v1761_v3 = vrot.slane %v1759_v30, 3  ;;  %v3837_v40 = vpop.permute.xlu0 %3836  ;;  %v3940_v52 = vld [vmem:[%s5911_s3 + $0xc8] sm:$0xff]  }
  0xc7   : > { %v1493_v39 = vor.u32 %v1492_v43, %v1489_v6  ;;  %v1501_v31 = vor.u32 %v1500_v23, %v1497_v60  ;;  %v1764_v29 = vrot.slane %v1762_v44, 4  ;;  %v1769_v18 = vrot.slane %v1767_v21, 3  ;;  %v3937_v44 = vld [vmem:[%s5911_s3] sm:$0xff]   ;;  %v4115_v60 = vld [vmem:[#allocation2 + $0x70] sm:$0xff] }
  0xc8   : > { %v1772_v35 = vrot.slane %v1770_v24, 4  ;;  %v3829_v7 = vunpack.i.h.bf16 %v3827_v54  ;;  %v3828_v26 = vunpack.i.l.bf16 %v3827_v54  ;;  %v3839_v58 = vunpack.i.h.bf16 %v3837_v40 }
  0xc9   : > { %v5225_v32 = vsel %vm1451_vm3, %v1493_v39, %v1501_v31  ;;  %v1765_v55 = vor.u32 %v1764_v29, %v1761_v3  ;;  %v3838_v36 = vunpack.i.l.bf16 %v3837_v40  ;;  %v1521_v30 = vshrl.u32 %v1387_v50, 16  ;;  %v3939_v39 = vld [vmem:[%s5911_s3 + $0x8] sm:$0xff]  }
  0xca   : > { %2249 = vmatmul.mubr.bf16.vlgmr.msra.gmra.mrb[0].mxu0 %v5225_v32  ;;  %v1773_v6 = vor.u32 %v1772_v35, %v1769_v18  ;;  %v1334_v21 = vsel %vm382_vm0, %v849_v27, %v3829_v7  ;;  %v1360_v24 = vsel %vm382_vm0, %v4114_v15, %v3828_v26  ;;  %v1336_v0 = vsel %vm382_vm0, %v4115_v60, %v3839_v58  ;;  %v885_v7 = vld [vmem:[#allocation2 + $0x180] sm:$0xff]  ;;  %v3941_v15 = vld [vmem:[%s5911_s3 + $0x10] sm:$0xff]  }
  0xcb   : > { %v5234_v22 = vpack.c.bf16 %v1360_v24, %v1360_v24  ;;  %2749 = vmatpush1.bf16.msra.mxu0 %v3938_v41  ;;  %v1393_v42 = vpack.c.bf16 %v1336_v0, %v1336_v0  ;;  %v1335_v46 = vsel %vm382_vm0, %v4116_v37, %v3838_v36  ;;  %3579 = vmatprep.mubr.msk.bf16.mxu0 %vm382_vm0, %v4926_v2  ;;  %v1523_v49 = vrot.slane %v1521_v30, 3  ;;  %v4117_v0 = vld [vmem:[#allocation2 + $0x188] sm:$0xff] }
  0xcc   : > { %v5243_v38 = vsel %vm1451_vm3, %v1765_v55, %v1773_v6  ;;  %v1391_v14 = vpack.c.bf16 %v1335_v46, %v1334_v21  ;;  %2750 = vmatprep.subr.bf16.mxu0 %v5949_v20  ;;  %v1524_v59 = vshll.u32 %v1387_v50, 16  ;;  %v1531_v43 = vrot.slane %v1529_v11, 3 }
  0xcd   : > { %2313 = vmatmul.mubr.bf16.vlgmr.msra.gmra.mrb[0].mxu1 %v5243_v38  ;;  %v1835_v23 = vshrl.u32 %v5234_v22, 16  ;;  %v1838_v54 = vshll.u32 %v5234_v22, 16  ;;  %v1563_v3 = vshrl.u32 %v1393_v42, 16  ;;  %v1566_v40 = vshll.u32 %v1393_v42, 16 }
  0xce   : > { %2453 = vmatpush1.bf16.msra.mxu1 %v3937_v44  ;;  %3587 = vmatprep.mubr.msk.bf16.mxu1 %vm382_vm0, %v4901_v33  ;;  %v1526_v31 = vrot.slane %v1524_v59, 4  ;;  %v1534_v29 = vrot.slane %v1532_v8, 4  ;;  %v1793_v50 = vshrl.u32 %v5205_v62, 16  ;;  %v1796_v11 = vshll.u32 %v5205_v62, 16  ;;  %v3942_v8 = vld [vmem:[%s5911_s3 + $0xd0] sm:$0xff]  }
  0xcf   : > { %2454 = vmatprep.subr.bf16.mxu1 %v5949_v20  ;;  %v1803_v18 = vrot.slane %v1801_v10, 3  ;;  %v1806_v27 = vrot.slane %v1804_v13, 4  ;;  %2751 = vmatpush1.bf16.msra.mxu0 %v3940_v52  ;;  %v1555_v41 = vshrl.u32 %v1391_v14, 16  ;;  %v1558_v35 = vshll.u32 %v1391_v14, 16  ;;  %v3847_v26 = vpop.permute.xlu1 %3846  ;;  %v853_v14 = vld [vmem:[#allocation2 + $0x80] sm:$0xff] }
  0xd0   : > { %v1527_v58 = vor.u32 %v1526_v31, %v1523_v49  ;;  %v1535_v55 = vor.u32 %v1534_v29, %v1531_v43  ;;  %v1795_v36 = vrot.slane %v1793_v50, 3  ;;  %v1798_v30 = vrot.slane %v1796_v11, 4  ;;  %2752 = vmatprep.subr.bf16.mxu0 %v5949_v20  ;;  %v5985_v43 = vld [vmem:[#allocation11_spill] sm:$0xff] }
  0xd1   : > { %v3849_v62 = vunpack.i.h.bf16 %v3847_v26  ;;  %v3848_v6 = vunpack.i.l.bf16 %v3847_v26  ;;  %v1807_v44 = vor.u32 %v1806_v27, %v1803_v18  ;;  %v1557_v10 = vrot.slane %v1555_v41, 3  ;;  %v5986_v27 = vld [vmem:[#allocation5_spill] sm:$0xff] }
  0xd2   : > { %2455 = vmatpush1.bf16.msra.mxu1 %v3939_v39  ;;  %v5262_v13 = vsel %vm1451_vm3, %v1527_v58, %v1535_v55  ;;  %v1799_v21 = vor.u32 %v1798_v30, %v1795_v36  ;;  %v1560_v24 = vrot.slane %v1558_v35, 4  ;;  %v1565_v60 = vrot.slane %v1563_v3, 3  ;;  %v4118_v55 = vld [vmem:[#allocation2 + $0x190] sm:$0xff] }
  0xd3   : > { %v1362_v22 = vsel %vm382_vm0, %v4117_v0, %v3849_v62  ;;  %v1361_v42 = vsel %vm382_vm0, %v885_v7, %v3848_v6  ;;  %2257 = vmatmul.mubr.bf16.gmra.mrb[4].mxu0 %v5262_v13  ;;  %2456 = vmatprep.subr.bf16.mxu1 %v5949_v20  ;;  %v1568_v37 = vrot.slane %v1566_v40, 4  ;;  %v1827_v46 = vshrl.u32 %v5219_v1, 16  ;;  %v3842_v59 = vpop.permute.xlu0 %3841  ;;  %v3944_v40 = vld [vmem:[%s5911_s3 + $0xd8] sm:$0xff]  }
  0xd4   : > { %v5272_v49 = vpack.c.bf16 %v1362_v22, %v1361_v42  ;;  %v5275_v52 = vsel %vm1451_vm3, %v1799_v21, %v1807_v44  ;;  %2753 = vmatpush1.bf16.msra.mxu0 %v3942_v8  ;;  %3580 = vmatprep.mubr.msk.bf16.mxu0 %vm382_vm0, %v5985_v43  ;;  %v1561_v3 = vor.u32 %v1560_v24, %v1557_v10  ;;  %v1830_v39 = vshll.u32 %v5219_v1, 16  ;;  %v3943_v7 = vld [vmem:[%s5911_s3 + $0x18] sm:$0xff]   ;;  %v3946_v44 = vld [vmem:[%s5911_s3 + $0xe0] sm:$0xff]   ;;  %v4119_v10 = vld [vmem:[#allocation2 + $0x90] sm:$0xff] }
  0xd5   : > { %2321 = vmatmul.mubr.bf16.gmra.mrb[4].mxu1 %v5275_v52  ;;  %v3844_v31 = vunpack.i.h.bf16 %v3842_v59  ;;  %v3843_v29 = vunpack.i.l.bf16 %v3842_v59  ;;  %v1569_v50 = vor.u32 %v1568_v37, %v1565_v60  ;;  %v1829_v11 = vrot.slane %v1827_v46, 3  ;;  %2754 = vmatprep.subr.bf16.mxu0 %v5949_v20  ;;  %v3852_v18 = vpop.permute.xlu1 %3851  ;;  %v889_v59 = vld [vmem:[#allocation2 + $0x1a0] sm:$0xff] }
  0xd6   : > { %2457 = vmatpush1.bf16.msra.mxu1 %v3941_v15  ;;  %3588 = vmatprep.mubr.msk.bf16.mxu1 %vm382_vm0, %v5986_v27  ;;  %v1832_v41 = vrot.slane %v1830_v39, 4  ;;  %v1837_v35 = vrot.slane %v1835_v23, 3  ;;  %v1840_v1 = vrot.slane %v1838_v54, 4  ;;  %v1861_v26 = vshrl.u32 %v5272_v49, 16  ;;  %v4120_v15 = vld [vmem:[#allocation2 + $0x88] sm:$0xff] }
  0xd7   : > { %v1337_v58 = vsel %vm382_vm0, %v853_v14, %v3844_v31  ;;  %v1363_v36 = vsel %vm382_vm0, %v4118_v55, %v3843_v29  ;;  %v3854_v30 = vunpack.i.h.bf16 %v3852_v18  ;;  %v3853_v8 = vunpack.i.l.bf16 %v3852_v18  ;;  %2458 = vmatprep.subr.bf16.mxu1 %v5949_v20 }
  0xd8   : > { %v5294_v62 = vpack.c.bf16 %v1363_v36, %v1363_v36  ;;  %v5297_v23 = vsel %vm1451_vm3, %v1561_v3, %v1569_v50  ;;  %v1833_v54 = vor.u32 %v1832_v41, %v1829_v11  ;;  %v1841_v6 = vor.u32 %v1840_v1, %v1837_v35  ;;  %2755 = vmatpush1.bf16.msra.mxu0 %v3944_v40  ;;  %v3862_v60 = vpop.permute.xlu0 %3861  ;;  %v857_v3 = vld [vmem:[#allocation2 + $0xa0] sm:$0xff] }
  0xd9   : > { %v1339_v21 = vsel %vm382_vm0, %v4119_v10, %v3854_v30  ;;  %v1338_v24 = vsel %vm382_vm0, %v4120_v15, %v3853_v8  ;;  %2756 = vmatprep.subr.bf16.mxu0 %v5949_v20  ;;  %v5305_v0 = vrot.slane %v1861_v26, 3  ;;  %v1864_v22 = vshll.u32 %v5272_v49, 16  ;;  %v3857_v39 = vpop.permute.xlu1 %3856  ;;  %v3945_v40 = vld [vmem:[%s5911_s3 + $0x20] sm:$0xff]   ;;  %v4121_v26 = vld [vmem:[#allocation2 + $0x1a8] sm:$0xff]  ;;  %v3952_v49 = vld [vmem:[%s5911_s3 + $0xf8] sm:$0xff]  }
  0xda   : > { %v1869_v42 = vshrl.u32 %v5294_v62, 16  ;;  %v1872_v37 = vshll.u32 %v5294_v62, 16  ;;  %v1397_v46 = vpack.c.bf16 %v1339_v21, %v1339_v21  ;;  %v1395_v14 = vpack.c.bf16 %v1338_v24, %v1337_v58  ;;  %2459 = vmatpush1.bf16.msra.mxu1 %v3943_v7  ;;  %v3948_v7 = vld [vmem:[%s5911_s3 + $0xe8] sm:$0xff]  }
  0xdb   : > { %v3864_v31 = vunpack.i.h.bf16 %v3862_v60  ;;  %v3863_v29 = vunpack.i.l.bf16 %v3862_v60  ;;  %2265 = vmatmul.mubr.bf16.gmra.mrb[8].mxu0 %v5297_v23  ;;  %v5315_v50 = vsel %vm1451_vm3, %v1833_v54, %v1841_v6  ;;  %v3859_v11 = vunpack.i.h.bf16 %v3857_v39  ;;  %2460 = vmatprep.subr.bf16.mxu1 %v5949_v20  ;;  %v4122_v6 = vld [vmem:[#allocation2 + $0x1b0] sm:$0xff]  ;;  %v3947_v24 = vld [vmem:[%s5911_s3 + $0x28] sm:$0xff]  }
  0xdc   : > { %v1597_v18 = vshrl.u32 %v1397_v46, 16  ;;  %v1600_v41 = vshll.u32 %v1397_v46, 16  ;;  %v3858_v35 = vunpack.i.l.bf16 %v3857_v39  ;;  %3581 = vmatprep.mubr.msk.bf16.mxu0 %vm382_vm0, %v5139_v19  ;;  %v1589_v1 = vshrl.u32 %v1395_v14, 16  ;;  %2757 = vmatpush1.bf16.msra.mxu0 %v3946_v44  ;;  %v3867_v30 = vpop.permute.xlu0 %3866  ;;  %v893_v46 = vld [vmem:[#allocation2 + $0x1c0] sm:$0xff]  ;;  %v4123_v39 = vld [vmem:[#allocation2 + $0xb0] sm:$0xff] }
  0xdd   : > { %v1365_v58 = vsel %vm382_vm0, %v4121_v26, %v3864_v31  ;;  %v1364_v55 = vsel %vm382_vm0, %v889_v59, %v3863_v29  ;;  %2329 = vmatmul.mubr.bf16.gmra.mrb[8].mxu1 %v5315_v50  ;;  %v1340_v36 = vsel %vm382_vm0, %v857_v3, %v3859_v11  ;;  %v1592_v8 = vshll.u32 %v1395_v14, 16  ;;  %2758 = vmatprep.subr.bf16.mxu0 %v5949_v20  ;;  %v3877_v15 = vpop.permute.xlu1 %3876  ;;  %v3950_v26 = vld [vmem:[%s5911_s3 + $0xf0] sm:$0xff]  }
  0xde   : > { %v5328_v54 = vpack.c.bf16 %v1365_v58, %v1364_v55  ;;  %v1366_v44 = vsel %vm382_vm0, %v4122_v6, %v3858_v35  ;;  %v3869_v10 = vunpack.i.h.bf16 %v3867_v30  ;;  %v3868_v21 = vunpack.i.l.bf16 %v3867_v30  ;;  %2461 = vmatpush1.bf16.msra.mxu1 %v3945_v40  ;;  %3589 = vmatprep.mubr.msk.bf16.mxu1 %vm382_vm0, %v5148_v17  ;;  %v4124_v40 = vld [vmem:[#allocation2 + $0xa8] sm:$0xff] }
  0xdf   : > { %v5336_v60 = vpack.c.bf16 %v1366_v44, %v1366_v44  ;;  %v3879_v14 = vunpack.i.h.bf16 %v3877_v15  ;;  %v3878_v59 = vunpack.i.l.bf16 %v3877_v15  ;;  %v1591_v3 = vrot.slane %v1589_v1, 3  ;;  %2462 = vmatprep.subr.bf16.mxu1 %v5949_v20  ;;  %v4125_v6 = vld [vmem:[#allocation2 + $0x1c8] sm:$0xff]  ;;  %v3949_v15 = vld [vmem:[%s5911_s3 + $0x30] sm:$0xff]  }
  0xe0   : > { %v1342_v31 = vsel %vm382_vm0, %v4123_v39, %v3869_v10  ;;  %v1341_v29 = vsel %vm382_vm0, %v4124_v40, %v3868_v21  ;;  %v1594_v11 = vrot.slane %v1592_v8, 4  ;;  %v1599_v35 = vrot.slane %v1597_v18, 3  ;;  %2759 = vmatpush1.bf16.msra.mxu0 %v3948_v7  ;;  %v3872_v7 = vpop.permute.xlu0 %3871 }
  0xe1   : > { %v1903_v58 = vshrl.u32 %v5336_v60, 16  ;;  %v1906_v55 = vshll.u32 %v5336_v60, 16  ;;  %v1401_v1 = vpack.c.bf16 %v1342_v31, %v1342_v31  ;;  %v1399_v30 = vpack.c.bf16 %v1341_v29, %v1340_v36  ;;  %2760 = vmatprep.subr.bf16.mxu0 %v5949_v20  ;;  %v3882_v21 = vpop.permute.xlu1 %3881  ;;  %v861_v29 = vld [vmem:[#allocation2 + $0xc0] sm:$0xff] }
  0xe2   : > { %v1368_v44 = vsel %vm382_vm0, %v4125_v6, %v3879_v14  ;;  %v1367_v10 = vsel %vm382_vm0, %v893_v46, %v3878_v59  ;;  %v1595_v8 = vor.u32 %v1594_v11, %v1591_v3  ;;  %v1602_v18 = vrot.slane %v1600_v41, 4  ;;  %2463 = vmatpush1.bf16.msra.mxu1 %v3947_v24  ;;  %v4127_v6 = vld [vmem:[#allocation2 + $0xd0] sm:$0xff] }
  0xe3   : > { %v1631_v39 = vshrl.u32 %v1401_v1, 16  ;;  %v1634_v40 = vshll.u32 %v1401_v1, 16  ;;  %v5352_v31 = vpack.c.bf16 %v1368_v44, %v1367_v10  ;;  %v1866_v36 = vrot.slane %v1864_v22, 4  ;;  %2464 = vmatprep.subr.bf16.mxu1 %v5949_v20  ;;  %v4128_v10 = vld [vmem:[#allocation2 + $0xc8] sm:$0xff] }
  0xe4   : > { %v1603_v46 = vor.u32 %v1602_v18, %v1599_v35  ;;  %v1871_v41 = vrot.slane %v1869_v42, 3  ;;  %v1874_v24 = vrot.slane %v1872_v37, 4  ;;  %v3874_v14 = vunpack.i.h.bf16 %v3872_v7  ;;  %2761 = vmatpush1.bf16.msra.mxu0 %v3950_v26  ;;  %v4126_v35 = vld [vmem:[#allocation2 + $0x1d0] sm:$0xff] }
  0xe5   : > { %v1867_v59 = vor.u32 %v1866_v36, %v5305_v0  ;;  %v3873_v3 = vunpack.i.l.bf16 %v3872_v7  ;;  %v3884_v11 = vunpack.i.h.bf16 %v3882_v21  ;;  %v3883_v1 = vunpack.i.l.bf16 %v3882_v21  ;;  %2762 = vmatprep.subr.bf16.mxu0 %v5949_v20  ;;  %v3951_v0 = vld [vmem:[%s5911_s3 + $0x38] sm:$0xff]  }
  0xe6   : > { %v5367_v22 = vsel %vm1451_vm3, %v1595_v8, %v1603_v46  ;;  %v1875_v42 = vor.u32 %v1874_v24, %v1871_v41  ;;  %v1343_v62 = vsel %vm382_vm0, %v861_v29, %v3874_v14  ;;  %v1623_v37 = vshrl.u32 %v1399_v30, 16  ;;  %2465 = vmatpush1.bf16.msra.mxu1 %v3949_v15 }
  0xe7   : > { %2273 = vmatmul.mubr.bf16.gmra.mrb[12].mxu0 %v5367_v22  ;;  %v1369_v26 = vsel %vm382_vm0, %v4126_v35, %v3873_v3  ;;  %v1345_v44 = vsel %vm382_vm0, %v4127_v6, %v3884_v11  ;;  %v1344_v8 = vsel %vm382_vm0, %v4128_v10, %v3883_v1  ;;  %v1626_v18 = vshll.u32 %v1399_v30, 16  ;;  %2466 = vmatprep.subr.bf16.mxu1 %v5949_v20  ;;  %v3954_v30 = vld [vmem:[%s5911_s3 + $0x100] sm:$0xff]  }
  0xe8   : > { %v5379_v7 = vsel %vm1451_vm3, %v1867_v59, %v1875_v42  ;;  %v5381_v21 = vpack.c.bf16 %v1369_v26, %v1369_v26  ;;  %v1405_v15 = vpack.c.bf16 %v1345_v44, %v1345_v44  ;;  %v1403_v36 = vpack.c.bf16 %v1344_v8, %v1343_v62  ;;  %3582 = vmatprep.mubr.msk.bf16.mxu0 %vm382_vm0, %v5157_v5  ;;  %v897_v8 = vld [vmem:[#allocation2 + $0x1e0] sm:$0xff] }
  0xe9   : > { %2337 = vmatmul.mubr.bf16.gmra.mrb[12].mxu1 %v5379_v7  ;;  %v1625_v29 = vrot.slane %v1623_v37, 3  ;;  %v1628_v46 = vrot.slane %v1626_v18, 4  ;;  %v1633_v41 = vrot.slane %v1631_v39, 3  ;;  %v1636_v24 = vrot.slane %v1634_v40, 4  ;;  %2763 = vmatpush1.bf16.msra.mxu0 %v3952_v49  ;;  %v3953_v39 = vld [vmem:[%s5911_s3 + $0x40] sm:$0xff]  }
  0xea   : > { %v1937_v14 = vshrl.u32 %v5381_v21, 16  ;;  %v1940_v59 = vshll.u32 %v5381_v21, 16  ;;  %v1665_v3 = vshrl.u32 %v1405_v15, 16  ;;  %v1668_v11 = vshll.u32 %v1405_v15, 16  ;;  %3590 = vmatprep.mubr.msk.bf16.mxu1 %vm382_vm0, %v5163_v16  ;;  %2467 = vmatpush1.bf16.msra.mxu1 %v3951_v0 }
  0xeb   : > { %v1629_v40 = vor.u32 %v1628_v46, %v1625_v29  ;;  %v1637_v1 = vor.u32 %v1636_v24, %v1633_v41  ;;  %v1895_v49 = vshrl.u32 %v5328_v54, 16  ;;  %v1898_v42 = vshll.u32 %v5328_v54, 16  ;;  %2468 = vmatprep.subr.bf16.mxu1 %v5949_v20  ;;  %2764 = vmatprep.subr.bf16.mxu0 %v5949_v20  ;;  %v3956_v54 = vld [vmem:[%s5911_s3 + $0x108] sm:$0xff]  }
  0xec   : > { %v1905_v62 = vrot.slane %v1903_v58, 3  ;;  %v1908_v37 = vrot.slane %v1906_v55, 4  ;;  %v1657_v0 = vshrl.u32 %v1403_v36, 16  ;;  %v1660_v35 = vshll.u32 %v1403_v36, 16  ;;  %v3955_v41 = vld [vmem:[%s5911_s3 + $0x48] sm:$0xff]  }
  0xed   : > { %v5405_v26 = vsel %vm1451_vm3, %v1629_v40, %v1637_v1  ;;  %v1897_v6 = vrot.slane %v1895_v49, 3  ;;  %v1900_v44 = vrot.slane %v1898_v42, 4  ;;  %v1667_v10 = vrot.slane %v1665_v3, 3  ;;  %2765 = vmatpush1.bf16.msra.mxu0 %v3954_v30  ;;  %v865_v42 = vld [vmem:[#allocation2 + $0xe0] sm:$0xff] }
  0xee   : > { %v3892_v18 = vpop.permute.xlu0 %3891  ;;  %v1909_v21 = vor.u32 %v1908_v37, %v1905_v62  ;;  %v1659_v58 = vrot.slane %v1657_v0, 3  ;;  %v1662_v15 = vrot.slane %v1660_v35, 4  ;;  %v1670_v60 = vrot.slane %v1668_v11, 4  ;;  %2469 = vmatpush1.bf16.msra.mxu1 %v3953_v39  ;;  %2766 = vmatprep.subr.bf16.mxu0 %v5949_v20  ;;  %v4129_v39 = vld [vmem:[#allocation2 + $0x1e8] sm:$0xff]  ;;  %v3887_v62 = vpop.permute.xlu1 %3886  ;;  %v3958_v0 = vld [vmem:[%s5911_s3 + $0x110] sm:$0xff]  }
  0xef   : > { %v3894_v55 = vunpack.i.h.bf16 %v3892_v18  ;;  %v3893_v36 = vunpack.i.l.bf16 %v3892_v18  ;;  %2281 = vmatmul.mubr.bf16.gmra.mrb[16].mxu0 %v5405_v26  ;;  %v1901_v29 = vor.u32 %v1900_v44, %v1897_v6  ;;  %v1929_v46 = vshrl.u32 %v5352_v31, 16  ;;  %2470 = vmatprep.subr.bf16.mxu1 %v5949_v20  ;;  %v3957_v18 = vld [vmem:[%s5911_s3 + $0x50] sm:$0xff]  }
  0xf0   : > { %3583 = vmatprep.mubr.msk.bf16.mxu0 %vm382_vm0, %v5166_v9  ;;  %v1663_v24 = vor.u32 %v1662_v15, %v1659_v58  ;;  %v1671_v30 = vor.u32 %v1670_v60, %v1667_v10  ;;  %v1932_v3 = vshll.u32 %v5352_v31, 16  ;;  %v1939_v11 = vrot.slane %v1937_v14, 3 }
  0xf1   : > { %v1371_v40 = vsel %vm382_vm0, %v4129_v39, %v3894_v55  ;;  %v1370_v1 = vsel %vm382_vm0, %v897_v8, %v3893_v36  ;;  %v5423_v49 = vsel %vm1451_vm3, %v1901_v29, %v1909_v21  ;;  %v1931_v37 = vrot.slane %v1929_v46, 3  ;;  %2767 = vmatpush1.bf16.msra.mxu0 %v3956_v54  ;;  %v4131_v46 = vld [vmem:[#allocation2 + $0xf0] sm:$0xff] }
  0xf2   : > { %v5428_v35 = vpack.c.bf16 %v1371_v40, %v1370_v1  ;;  %2345 = vmatmul.mubr.bf16.gmra.mrb[16].mxu1 %v5423_v49  ;;  %v3889_v31 = vunpack.i.h.bf16 %v3887_v62  ;;  %v3888_v14 = vunpack.i.l.bf16 %v3887_v62  ;;  %2768 = vmatprep.subr.bf16.mxu0 %v5949_v20  ;;  %v5434_v6 = vrot.slane %v1478_v47, 3  ;;  %v3897_v44 = vpop.permute.xlu0 %3896  ;;  %v4130_v47 = vld [vmem:[#allocation2 + $0x1f0] sm:$0xff] }
  0xf3   : > { %3591 = vmatprep.mubr.msk.bf16.mxu1 %vm382_vm0, %v5169_v48  ;;  %v5439_v10 = vsel %vm1451_vm3, %v1663_v24, %v1671_v30  ;;  %v1934_v54 = vrot.slane %v1932_v3, 4  ;;  %v1942_v8 = vrot.slane %v1940_v59, 4  ;;  %2471 = vmatpush1.bf16.msra.mxu1 %v3955_v41  ;;  %v466_v21 = vadd.f32 1.0, %v5209_v56  ;;  %v3960_v56 = vld [vmem:[%s5911_s3 + $0x118] sm:$0xff]   ;;  %v4132_v24 = vld [vmem:[#allocation2 + $0xe8] sm:$0xff]  ;;  %v3907_v3 = vpop.permute.xlu1 %3906 }
  0xf4   : > { %v1346_v58 = vsel %vm382_vm0, %v865_v42, %v3889_v31  ;;  %v1372_v15 = vsel %vm382_vm0, %v4130_v47, %v3888_v14  ;;  %v3899_v60 = vunpack.i.h.bf16 %v3897_v44  ;;  %v3898_v55 = vunpack.i.l.bf16 %v3897_v44  ;;  %2472 = vmatprep.subr.bf16.mxu1 %v5949_v20  ;;  %v901_v42 = vld [vmem:[#allocation2 + $0x200] sm:$0xff]  ;;  %v4133_v47 = vld [vmem:[#allocation2 + $0x208] sm:$0xff] }
  0xf5   : > { %v5448_v36 = vpack.c.bf16 %v1372_v15, %v1372_v15  ;;  %v1935_v29 = vor.u32 %v1934_v54, %v1931_v37  ;;  %v1943_v59 = vor.u32 %v1942_v8, %v1939_v11  ;;  %2769 = vmatpush1.bf16.msra.mxu0 %v3958_v0  ;;  %v1963_v39 = vshrl.u32 %v5428_v35, 16  ;;  %v3959_v37 = vld [vmem:[%s5911_s3 + $0x58] sm:$0xff]   ;;  %v869_v14 = vld [vmem:[#allocation2 + $0x100] sm:$0xff] }
  0xf6   : > { %v1348_v41 = vsel %vm382_vm0, %v4131_v46, %v3899_v60  ;;  %v1347_v30 = vsel %vm382_vm0, %v4132_v24, %v3898_v55  ;;  %v1966_v40 = vshll.u32 %v5428_v35, 16  ;;  %2770 = vmatprep.subr.bf16.mxu0 %v5949_v20  ;;  %v3902_v62 = vpop.permute.xlu0 %3901  ;;  %4103 = vrcp.f32 %v466_v21  ;;  %v4134_v46 = vld [vmem:[#allocation2 + $0x210] sm:$0xff] }
  0xf7   : > { %v1971_v11 = vshrl.u32 %v5448_v36, 16  ;;  %v1409_v45 = vpack.c.bf16 %v1348_v41, %v1348_v41  ;;  %v1407_v1 = vpack.c.bf16 %v1347_v30, %v1346_v58  ;;  %2289 = vmatmul.mubr.bf16.gmra.mrb[20].mxu0 %v5439_v10  ;;  %2473 = vmatpush1.bf16.msra.mxu1 %v3957_v18  ;;  %v3909_v0 = vunpack.i.h.bf16 %v3907_v3  ;;  %v3912_v55 = vpop.permute.xlu1 %3911 }
  0xf8   : > { %v3908_v31 = vunpack.i.l.bf16 %v3907_v3  ;;  %v5465_v35 = vsel %vm1451_vm3, %v1935_v29, %v1943_v59  ;;  %v3904_v44 = vunpack.i.h.bf16 %v3902_v62  ;;  %3584 = vmatprep.mubr.msk.bf16.mxu0 %vm382_vm0, %v5174_v63  ;;  %2474 = vmatprep.subr.bf16.mxu1 %v5949_v20  ;;  %v3903_v18 = vunpack.i.l.bf16 %v3902_v62  ;;  %v4136_v62 = vld [vmem:[#allocation2 + $0x108] sm:$0xff] }
  0xf9   : > { %5987 = vst [vmem:[#allocation8_spill] sm:$0xff] %v5465_v35  ;;  %v1699_v54 = vshrl.u32 %v1409_v45, 16  ;;  %v1702_v8 = vshll.u32 %v1409_v45, 16  ;;  %v1691_v21 = vshrl.u32 %v1407_v1, 16  ;;  %2771 = vmatpush1.bf16.msra.mxu0 %v3960_v56  ;;  %v1974_v58 = vshll.u32 %v5448_v36, 16  ;;  %v4135_v45 = vld [vmem:[#allocation2 + $0x110] sm:$0xff] }
  0xfa   : > { %v1374_v15 = vsel %vm382_vm0, %v4133_v47, %v3909_v0  ;;  %v1373_v60 = vsel %vm382_vm0, %v901_v42, %v3908_v31  ;;  %2353 = vmatmul.mubr.bf16.gmra.mrb[20].mxu1 %v5465_v35  ;;  %v1694_v29 = vshll.u32 %v1407_v1, 16  ;;  %v1349_v59 = vsel %vm382_vm0, %v869_v14, %v3904_v44  ;;  %v3917_v14 = vpop.permute.xlu0 %3916 }
  0xfb   : > { %v1375_v20 = vsel %vm382_vm0, %v4134_v46, %v3903_v18  ;;  %v3914_v41 = vunpack.i.h.bf16 %v3912_v55  ;;  %v3913_v24 = vunpack.i.l.bf16 %v3912_v55  ;;  %3592 = vmatprep.mubr.msk.bf16.mxu1 %vm382_vm0, %v5177_v12  ;;  %2475 = vmatpush1.bf16.msra.mxu1 %v3959_v37  ;;  %v1693_v56 = vrot.slane %v1691_v21, 3  ;;  %v1005_v46 = vpop.permute.xlu1 %1004 }
  0xfc   : > { %v1445_v36 = vpack.c.bf16 %v1375_v20, %v1375_v20  ;;  %v1696_v30 = vrot.slane %v1694_v29, 4  ;;  %v1701_v3 = vrot.slane %v1699_v54, 3  ;;  %v1704_v0 = vrot.slane %v1702_v8, 4 }
  0xfd   : > { %v1351_v42 = vsel %vm382_vm0, %v4135_v45, %v3914_v41  ;;  %v1350_v1 = vsel %vm382_vm0, %v4136_v62, %v3913_v24  ;;  %v1965_v31 = vrot.slane %v1963_v39, 3  ;;  %v1443_v44 = vpack.c.bf16 %v1374_v15, %v1373_v60  ;;  %v837_v41 = vld [vmem:[#allocation2] sm:$0xff]  ;;  %v4137_v60 = vld [vmem:[#allocation2 + $0x10] sm:$0xff] }
  0xfe   : > { %v2045_v18 = vshrl.u32 %v1445_v36, 16  ;;  %v1413_v47 = vpack.c.bf16 %v1351_v42, %v1351_v42  ;;  %v1411_v55 = vpack.c.bf16 %v1350_v1, %v1349_v59  ;;  %v1697_v37 = vor.u32 %v1696_v30, %v1693_v56  ;;  %v4138_v56 = vld [vmem:[#allocation2 + $0x8] sm:$0xff] }
  0xff   : > { %v1705_v20 = vor.u32 %v1704_v0, %v1701_v3  ;;  %v1968_v21 = vrot.slane %v1966_v40, 4  ;;  %v1973_v29 = vrot.slane %v1971_v11, 3  ;;  %v1976_v35 = vrot.slane %v1974_v58, 4 }
 0x100   : > { %v1733_v54 = vshrl.u32 %v1413_v47, 16  ;;  %v1736_v12 = vshll.u32 %v1413_v47, 16  ;;  %v3919_v45 = vunpack.i.h.bf16 %v3917_v14  ;;  %v4104_v48 = vpop.eup %4103  ;;  %v3918_v15 = vunpack.i.l.bf16 %v3917_v14 }
 0x101   : > { %v5481_v8 = vsel %vm1451_vm3, %v1697_v37, %v1705_v20  ;;  %v1969_v39 = vor.u32 %v1968_v21, %v1965_v31  ;;  %v1327_v59 = vsel %vm382_vm0, %v4137_v60, %v1005_v46  ;;  %v1977_v24 = vor.u32 %v1976_v35, %v1973_v29 }
 0x102   : > { %2297 = vmatmul.mubr.bf16.gmra.mrb[24].mxu0 %v5481_v8  ;;  %v1326_v40 = vsel %vm382_vm0, %v4138_v56, %v3919_v45  ;;  %v1381_v11 = vpack.c.bf16 %v1327_v59, %v1327_v59  ;;  %v1725_v30 = vshrl.u32 %v1411_v55, 16  ;;  %v1325_v58 = vsel %vm382_vm0, %v837_v41, %v3918_v15 }
 0x103   : > { %3585 = vmatprep.mubr.msk.bf16.mxu0 %vm382_vm0, %v5180_v4  ;;  %v1728_v3 = vshll.u32 %v1411_v55, 16  ;;  %v1735_v42 = vrot.slane %v1733_v54, 3  ;;  %v1738_v62 = vrot.slane %v1736_v12, 4  ;;  %v2048_v1 = vshll.u32 %v1445_v36, 16 }
 0x104   : > { %v5490_v0 = vsel %vm1451_vm3, %v1969_v39, %v1977_v24  ;;  %v1379_v31 = vpack.c.bf16 %v1326_v40, %v1325_v58  ;;  %v5988_v35 = vshll.u32 %v5171_v61, 16  ;;  %v1727_v47 = vrot.slane %v1725_v30, 3 }
 0x105   : > { %2361 = vmatmul.mubr.bf16.gmra.mrb[24].mxu1 %v5490_v0  ;;  %v1730_v46 = vrot.slane %v1728_v3, 4  ;;  %v1739_v37 = vor.u32 %v1738_v62, %v1735_v42  ;;  %v2037_v20 = vshrl.u32 %v1443_v44, 16  ;;  %v1461_v41 = vshrl.u32 %v1381_v11, 16 }
 0x106   : > { %v1483_v14 = vrot.slane %v5988_v35, 4  ;;  %v1453_v21 = vshrl.u32 %v1379_v31, 16  ;;  %v1456_v29 = vshll.u32 %v1379_v31, 16  ;;  %v1464_v55 = vshll.u32 %v1381_v11, 16  ;;  %3593 = vmatprep.mubr.msk.bf16.mxu1 %vm382_vm0, %v5183_v25  ;;  %v5989_v35 = vld [vmem:[#allocation12_spill] sm:$0xff] }
 0x107   : > { %v1731_v12 = vor.u32 %v1730_v46, %v1727_v47  ;;  %v2039_v36 = vrot.slane %v2037_v20, 3  ;;  %v2040_v54 = vshll.u32 %v1443_v44, 16  ;;  %v2047_v45 = vrot.slane %v2045_v18, 3 }
 0x108   : > { %v2050_v39 = vrot.slane %v2048_v1, 4  ;;  %v1476_v61 = vor.u32 %v5191_v57, %v5185_v53  ;;  %v1484_v15 = vor.u32 %v1483_v14, %v5434_v6  ;;  %v471_v24 = vmul.f32 %v4102_v34, %v5101_v51 }
 0x109   : > { %v5501_v60 = vsel %vm1451_vm3, %v1731_v12, %v1739_v37  ;;  %v2042_v59 = vrot.slane %v2040_v54, 4  ;;  %v472_v56 = vmul.f32 %v4104_v48, %v5110_v28  ;;  %v1455_v40 = vrot.slane %v1453_v21, 3 }
 0x10a   : > { %v1463_v11 = vrot.slane %v1461_v41, 3  ;;  %v1466_v30 = vrot.slane %v1464_v55, 4  ;;  %2305 = vmatmul.mubr.bf16.gmra.mrb[28].mxu0 %v5501_v60  ;;  %v2051_v44 = vor.u32 %v2050_v39, %v2047_v45  ;;  %v1458_v18 = vrot.slane %v1456_v29, 4 }
 0x10b   : > { %v2043_v58 = vor.u32 %v2042_v59, %v2039_v36  ;;  %v477_v3 = vmul.f32 0.0, %v471_v24  ;;  %v478_v53 = vmul.f32 0.0, %v472_v56  ;;  %3658 = vmatprep.mubr.msk.bf16.mxu0 %vm382_vm0, %v4926_v2  ;;  %v1485_v57 = vsel %vm1451_vm3, %v1476_v61, %v1484_v15 }
 0x10c   : > { %v1467_v51 = vor.u32 %v1466_v30, %v1463_v11  ;;  %v1459_v28 = vor.u32 %v1458_v18, %v1455_v40 }
 0x10d   : > { %v5510_v6 = vsel %vm1451_vm3, %v2043_v58, %v2051_v44  ;;  %482 = vst.msk [vmem:[#allocation2 + $0x228] sm:$0xff] %vm382_vm0, %v477_v3  ;;  %483 = vst.msk [vmem:[#allocation2 + $0x230] sm:$0xff] %vm382_vm0, %v478_v53 }
 0x10e   : > { %2369 = vmatmul.mubr.bf16.gmra.mrb[28].mxu1 %v5510_v6  ;;  %v1468_v48 = vsel %vm1451_vm3, %v1459_v28, %v1467_v51 }
 0x10f   : > { %3606 = vmatprep.mubr.msk.bf16.mxu1 %vm382_vm0, %v1485_v57 }
 0x112   : > { %2781 = vmatmul.mubr.bf16.vlgmr.msra.gmra.mrb[32].mxu0 %v5262_v13 }
 0x113   : > { %3659 = vmatprep.mubr.msk.bf16.mxu0 %vm382_vm0, %v5985_v43 }
 0x114   : > { %v5520_v34 = vld [vmem:[#allocation2 + $0x228] sm:$0xff]  ;;  %v5522_v42 = vld [vmem:[#allocation2 + $0x230] sm:$0xff] }
 0x115   : > { %v997_v62 = vrot.slane %v5520_v34, 1  ;;  %v998_v1 = vrot.slane %v5522_v42, 1 }
 0x116   : > { %2485 = vmatmul.mubr.bf16.vlgmr.msra.gmra.mrb[32].mxu1 %v1468_v48 }
 0x117   : > { %v999_v31 = vsel %vm945_vm1, %v997_v62, %v998_v1  ;;  %1106 = vrot.lane.b32.xlu1 %v998_v1, %s4165_s16  ;;  %3607 = vmatprep.mubr.msk.bf16.mxu1 %vm382_vm0, %v5989_v35 }
 0x118   : > { %v3920_v14 = vpack.i.bf16 %v999_v31, %v997_v62 }
 0x11a   : > { %3921 = vrot.lane.b32.xlu0 %v3920_v14, %s4165_s16  ;;  %2789 = vmatmul.mubr.bf16.gmra.mrb[36].mxu0 %v5297_v23 }
 0x11b   : > { %3660 = vmatprep.mubr.msk.bf16.mxu0 %vm382_vm0, %v5139_v19 }
 0x11e   : > { %2493 = vmatmul.mubr.bf16.gmra.mrb[36].mxu1 %v5225_v32 }
 0x11f   : > { %3608 = vmatprep.mubr.msk.bf16.mxu1 %vm382_vm0, %v4926_v2  ;;  %v5990_v2 = vld [vmem:[#allocation13_spill] sm:$0xff] }
 0x122   : > { %2797 = vmatmul.mubr.bf16.gmra.mrb[40].mxu0 %v5367_v22 }
 0x123   : > { %3661 = vmatprep.mubr.msk.bf16.mxu0 %vm382_vm0, %v5157_v5 }
 0x126   : > { %2501 = vmatmul.mubr.bf16.gmra.mrb[40].mxu1 %v5262_v13 }
 0x127   : > { %3609 = vmatprep.mubr.msk.bf16.mxu1 %vm382_vm0, %v5985_v43  ;;  %v5993_v43 = vld [vmem:[#allocation7_spill] sm:$0xff] }
 0x12a   : > { %2805 = vmatmul.mubr.bf16.gmra.mrb[44].mxu0 %v5405_v26 }
 0x12b   : > { %3662 = vmatprep.mubr.msk.bf16.mxu0 %vm382_vm0, %v5166_v9 }
 0x12e   : > { %2509 = vmatmul.mubr.bf16.gmra.mrb[44].mxu1 %v5297_v23 }
 0x12f   : > { %3610 = vmatprep.mubr.msk.bf16.mxu1 %vm382_vm0, %v5139_v19  ;;  %v908_v19 = vld [vmem:[#allocation2 + $0x238] sm:$0xff] }
 0x132   : > { %2813 = vmatmul.mubr.bf16.gmra.mrb[48].mxu0 %v5439_v10 }
 0x133   : > { %3663 = vmatprep.mubr.msk.bf16.mxu0 %vm382_vm0, %v5174_v63 }
 0x136   : > { %2517 = vmatmul.mubr.bf16.gmra.mrb[48].mxu1 %v5367_v22 }
 0x137   : > { %3611 = vmatprep.mubr.msk.bf16.mxu1 %vm382_vm0, %v5157_v5  ;;  %v1266_v5 = vrot.slane %v5520_v34, 2 }
 0x13a   : > { %2821 = vmatmul.mubr.bf16.gmra.mrb[52].mxu0 %v5481_v8 }
 0x13b   : > { %3664 = vmatprep.mubr.msk.bf16.mxu0 %vm382_vm0, %v5180_v4 }
 0x13e   : > { %2525 = vmatmul.mubr.bf16.gmra.mrb[52].mxu1 %v5405_v26 }
 0x13f   : > { %3612 = vmatprep.mubr.msk.bf16.mxu1 %vm382_vm0, %v5166_v9  ;;  %v1267_v9 = vrot.slane %v5522_v42, 2 }
 0x142   : > { %2829 = vmatmul.mubr.bf16.gmra.mrb[56].mxu0 %v5501_v60 }
 0x143   : > { %3665 = vmatprep.mubr.msk.bf16.mxu0 %vm382_vm0, %v5990_v2 }
 0x146   : > { %2533 = vmatmul.mubr.bf16.gmra.mrb[56].mxu1 %v5439_v10 }
 0x147   : > { %3613 = vmatprep.mubr.msk.bf16.mxu1 %vm382_vm0, %v5174_v63  ;;  %v1269_v63 = vrot.slane %v908_v19, 2 }
 0x149   : > { %v1270_v32 = vsel %vm1180_vm2, %v1267_v9, %v1269_v63 }
 0x14a   : > { %2837 = vmatmul.mubr.bf16.gmra.mrb[60].mxu0 %v5243_v38  ;;  %v1450_v13 = vpack.c.bf16 %v1270_v32, %v1270_v32 }
 0x14b   : > { %3666 = vmatprep.mubr.msk.bf16.mxu0 %vm382_vm0, %v4901_v33 }
 0x14c   : > { %v2639_v22 = vshrl.u32 %v1450_v13, 16  ;;  %v2642_v26 = vshll.u32 %v1450_v13, 16 }
 0x14e   : > { %2541 = vmatmul.mubr.bf16.gmra.mrb[60].mxu1 %v5481_v8  ;;  %v2641_v8 = vrot.slane %v2639_v22, 3 }
 0x14f   : > { %3614 = vmatprep.mubr.msk.bf16.mxu1 %vm382_vm0, %v5180_v4  ;;  %v5991_v4 = vld [vmem:[#allocation6_spill] sm:$0xff] }
 0x152   : > { %2845 = vmatmul.mubr.bf16.gmra.mrb[64].mxu0 %v5275_v52 }
 0x153   : > { %3667 = vmatprep.mubr.msk.bf16.mxu0 %vm382_vm0, %v5986_v27 }
 0x156   : > { %2549 = vmatmul.mubr.bf16.gmra.mrb[64].mxu1 %v5501_v60 }
 0x157   : > { %3615 = vmatprep.mubr.msk.bf16.mxu1 %vm382_vm0, %v5990_v2 }
 0x15a   : > { %2853 = vmatmul.mubr.bf16.gmra.mrb[68].mxu0 %v5315_v50 }
 0x15b   : > { %3668 = vmatprep.mubr.msk.bf16.mxu0 %vm382_vm0, %v5148_v17 }
 0x15e   : > { %2557 = vmatmul.mubr.bf16.gmra.mrb[68].mxu1 %v5243_v38 }
 0x15f   : > { %3616 = vmatprep.mubr.msk.bf16.mxu1 %vm382_vm0, %v4901_v33  ;;  %v1268_v33 = vsel %vm1180_vm2, %v1266_v5, %v1267_v9 }
 0x160   : > { %v1448_v38 = vpack.c.bf16 %v1268_v33, %v1266_v5 }
 0x162   : > { %2861 = vmatmul.mubr.bf16.gmra.mrb[72].mxu0 %v5379_v7  ;;  %v2634_v23 = vshll.u32 %v1448_v38, 16 }
 0x163   : > { %3669 = vmatprep.mubr.msk.bf16.mxu0 %vm382_vm0, %v5163_v16 }
 0x164   : > { %v2636_v10 = vrot.slane %v2634_v23, 4 }
 0x166   : > { %2565 = vmatmul.mubr.bf16.gmra.mrb[72].mxu1 %v5275_v52  ;;  %v5992_v52 = vld [vmem:[#allocation8_spill] sm:$0xff] }
 0x167   : > { %3617 = vmatprep.mubr.msk.bf16.mxu1 %vm382_vm0, %v5986_v27  ;;  %v2631_v27 = vshrl.u32 %v1448_v38, 16 }
 0x16a   : > { %2869 = vmatmul.mubr.bf16.gmra.mrb[76].mxu0 %v5423_v49 }
 0x16b   : > { %3670 = vmatprep.mubr.msk.bf16.mxu0 %vm382_vm0, %v5991_v4 }
 0x16e   : > { %2573 = vmatmul.mubr.bf16.gmra.mrb[76].mxu1 %v5315_v50  ;;  %v2633_v50 = vrot.slane %v2631_v27, 3 }
 0x16f   : > { %3618 = vmatprep.mubr.msk.bf16.mxu1 %vm382_vm0, %v5148_v17  ;;  %v2644_v17 = vrot.slane %v2642_v26, 4 }
 0x170   : > { %v2637_v47 = vor.u32 %v2636_v10, %v2633_v50 }
 0x171   : > { %v2645_v46 = vor.u32 %v2644_v17, %v2641_v8 }
 0x172   : > { %2877 = vmatmul.mubr.bf16.gmra.mrb[80].mxu0 %v5992_v52 }
 0x173   : > { %3671 = vmatprep.mubr.msk.bf16.mxu0 %vm382_vm0, %v5993_v43 }
 0x176   : > { %2581 = vmatmul.mubr.bf16.gmra.mrb[80].mxu1 %v5379_v7  ;;  %v2646_v7 = vsel %vm1451_vm3, %v2637_v47, %v2645_v46 }
 0x177   : > { %3619 = vmatprep.mubr.msk.bf16.mxu1 %vm382_vm0, %v5163_v16 }
 0x17a   : > { %2885 = vmatmul.mubr.bf16.gmra.mrb[84].mxu0 %v5490_v0 }
 0x17b   : > { %3672 = vmatprep.mubr.msk.bf16.mxu0 %vm382_vm0, %v5183_v25 }
 0x17e   : > { %2589 = vmatmul.mubr.bf16.gmra.mrb[84].mxu1 %v5423_v49  ;;  %v905_v49 = vld [vmem:[#allocation2 + $0x220] sm:$0xff] }
 0x17f   : > { %3620 = vmatprep.mubr.msk.bf16.mxu1 %vm382_vm0, %v5991_v4 }
 0x182   : > { %2893 = vmatmul.mubr.bf16.gmra.mrb[88].mxu0 %v5510_v6 }
 0x183   : > { %3673 = vmatprep.mubr.msk.bf16.mxu0 %vm382_vm0, %v2646_v7 }
 0x186   : > { %2597 = vmatmul.mubr.bf16.gmra.mrb[88].mxu1 %v5992_v52 }
 0x187   : > { %3621 = vmatprep.mubr.msk.bf16.mxu1 %vm382_vm0, %v5993_v43 }
 0x189   : > { %v1107_v16 = vpop.permute.xlu1 %1106 }
 0x18a   : > { %v1378_v25 = vsel %vm382_vm0, %v5522_v42, %v1107_v16 }
 0x18b   : > { %v1449_v37 = vpack.c.bf16 %v1378_v25, %v1378_v25 }
 0x18c   : > { %v3922_v20 = vpop.permute.xlu0 %3921 }
 0x18d   : > { %v3924_v21 = vunpack.i.h.bf16 %v3922_v20  ;;  %v3923_v29 = vunpack.i.l.bf16 %v3922_v20  ;;  %v2622_v41 = vshrl.u32 %v1449_v37, 16  ;;  %v2625_v55 = vshll.u32 %v1449_v37, 16 }
 0x18e   : > { %2605 = vmatmul.mubr.bf16.gmra.mrb[92].mxu1 %v5490_v0 }
 0x18f   : > { %v1377_v12 = vsel %vm382_vm0, %v5520_v34, %v3924_v21  ;;  %v1376_v36 = vsel %vm382_vm0, %v905_v49, %v3923_v29  ;;  %v2624_v45 = vrot.slane %v2622_v41, 3  ;;  %v2627_v39 = vrot.slane %v2625_v55, 4 }
 0x190   : > { %v1447_v54 = vpack.c.bf16 %v1377_v12, %v1376_v36 }
 0x191   : > { %v2628_v24 = vor.u32 %v2627_v39, %v2624_v45 }
 0x192   : > { %v2614_v61 = vshrl.u32 %v1447_v54, 16  ;;  %v2617_v15 = vshll.u32 %v1447_v54, 16 }
 0x194   : > { %v2616_v60 = vrot.slane %v2614_v61, 3  ;;  %v2619_v59 = vrot.slane %v2617_v15, 4 }
 0x196   : > { %v2620_v56 = vor.u32 %v2619_v59, %v2616_v60 }
 0x198   : > { %v2629_v40 = vsel %vm1451_vm3, %v2620_v56, %v2628_v24 }
 0x199   : > { %2901 = vmatmul.mubr.bf16.gmra.mrb[92].mxu0 %v2629_v40 }
 0x19d   : > { %v5626_v11 = vpop.f32.mrb[0].mxu0 }
 0x19e   : > { %v2252_v0 = vpop.f32.mrb[1].mxu0 }
 0x19f   : > { %v5628_v30 = vpop.f32.mrb[2].mxu0 }
 0x1a0   : > { %v5630_v44 = vpop.f32.mrb[0].mxu1  ;;  %v2255_v18 = vpop.f32.mrb[3].mxu0 }
 0x1a1   : > { %v2316_v58 = vpop.f32.mrb[1].mxu1 }
 0x1a2   : > { %v5632_v3 = vpop.f32.mrb[2].mxu1 }
 0x1a3   : > { %v2319_v53 = vpop.f32.mrb[3].mxu1 }
 0x1a6   : > { %v5634_v57 = vpop.f32.mrb[4].mxu0 }
 0x1a7   : > { %v2260_v6 = vpop.f32.mrb[5].mxu0 }
 0x1a8   : > { %v5636_v51 = vpop.f32.mrb[4].mxu1  ;;  %v5638_v28 = vpop.f32.mrb[6].mxu0 }
 0x1a9   : > { %v2324_v48 = vpop.f32.mrb[5].mxu1  ;;  %v2263_v34 = vpop.f32.mrb[7].mxu0 }
 0x1aa   : > { %v5640_v42 = vpop.f32.mrb[6].mxu1 }
 0x1ab   : > { %v2327_v62 = vpop.f32.mrb[7].mxu1 }
 0x1ac   : > { %v5695_v62 = vld [vmem:[%s361_s13] ss:$0 sm:$0xff] }
 0x1ae   : > { %v5642_v1 = vpop.f32.mrb[8].mxu0 }
 0x1af   : > { %v2268_v31 = vpop.f32.mrb[9].mxu0 }
 0x1b0   : > { %v5644_v35 = vpop.f32.mrb[8].mxu1  ;;  %v5646_v14 = vpop.f32.mrb[10].mxu0 }
 0x1b1   : > { %v2332_v2 = vpop.f32.mrb[9].mxu1  ;;  %v2271_v19 = vpop.f32.mrb[11].mxu0 }
 0x1b2   : > { %v5648_v5 = vpop.f32.mrb[10].mxu1 }
 0x1b3   : > { %v2335_v9 = vpop.f32.mrb[11].mxu1 }
 0x1ba   : > { %v5650_v63 = vpop.f32.mrb[12].mxu0 }
 0x1bb   : > { %v2276_v4 = vpop.f32.mrb[13].mxu0 }
 0x1bc   : > { %v5652_v33 = vpop.f32.mrb[12].mxu1  ;;  %v5654_v32 = vpop.f32.mrb[14].mxu0 }
 0x1bd   : > { %v2340_v38 = vpop.f32.mrb[13].mxu1  ;;  %v2279_v13 = vpop.f32.mrb[15].mxu0 }
 0x1be   : > { %v5656_v52 = vpop.f32.mrb[14].mxu1 }
 0x1bf   : > { %v2343_v43 = vpop.f32.mrb[15].mxu1 }
 0x1c2   : > { %v5658_v27 = vpop.f32.mrb[16].mxu0 }
 0x1c3   : > { %v2284_v23 = vpop.f32.mrb[17].mxu0 }
 0x1c4   : > { %v5660_v22 = vpop.f32.mrb[18].mxu0 }
 0x1c5   : > { %v5662_v26 = vpop.f32.mrb[16].mxu1  ;;  %v2287_v50 = vpop.f32.mrb[19].mxu0 }
 0x1c6   : > { %v2348_v10 = vpop.f32.mrb[17].mxu1 }
 0x1c7   : > { %v5664_v8 = vpop.f32.mrb[18].mxu1 }
 0x1c8   : > { %v2351_v17 = vpop.f32.mrb[19].mxu1 }
 0x1ca   : > { %v5666_v47 = vpop.f32.mrb[20].mxu0 }
 0x1cb   : > { %v2292_v46 = vpop.f32.mrb[21].mxu0 }
 0x1cc   : > { %v5668_v7 = vpop.f32.mrb[22].mxu0 }
 0x1cd   : > { %v5670_v16 = vpop.f32.mrb[20].mxu1  ;;  %v2295_v25 = vpop.f32.mrb[23].mxu0 }
 0x1ce   : > { %v2356_v37 = vpop.f32.mrb[21].mxu1 }
 0x1cf   : > { %v5672_v49 = vpop.f32.mrb[22].mxu1 }
 0x1d0   : > { %v2359_v20 = vpop.f32.mrb[23].mxu1 }
 0x1d5   : > { %v5674_v21 = vpop.f32.mrb[24].mxu0 }
 0x1d6   : > { %v2300_v29 = vpop.f32.mrb[25].mxu0 }
 0x1d7   : > { %v5676_v41 = vpop.f32.mrb[26].mxu0 }
 0x1d8   : > { %v5678_v55 = vpop.f32.mrb[24].mxu1  ;;  %v2303_v12 = vpop.f32.mrb[27].mxu0 }
 0x1d9   : > { %v2364_v36 = vpop.f32.mrb[25].mxu1 }
 0x1da   : > { %v5680_v54 = vpop.f32.mrb[26].mxu1 }
 0x1db   : > { %v2367_v45 = vpop.f32.mrb[27].mxu1 }
 0x1dd   : > { %v5682_v39 = vpop.f32.mrb[28].mxu0 }
 0x1de   : > { %v2308_v61 = vpop.f32.mrb[29].mxu0 }
 0x1df   : > { %v5684_v15 = vpop.f32.mrb[30].mxu0 }
 0x1e0   : > { %v2311_v60 = vpop.f32.mrb[31].mxu0 }
 0x1e1   : > { %v5686_v59 = vpop.f32.mrb[28].mxu1 }
 0x1e2   : > { %v2372_v24 = vpop.f32.mrb[29].mxu1 }
 0x1e3   : > { %v5688_v56 = vpop.f32.mrb[30].mxu1 }
 0x1e4   : > { %v2375_v40 = vpop.f32.mrb[31].mxu1 }
 0x1e5   : > { %v2782_v0 = vpop.f32.mrb[32].mxu0 }
 0x1e6   : > { %v2784_v18 = vpop.f32.mrb[33].mxu0 }
 0x1e7   : > { %v2785_v58 = vpop.f32.mrb[34].mxu0 }
 0x1e8   : > { %v2787_v53 = vpop.f32.mrb[35].mxu0 }
 0x1e9   : > { %v2486_v6 = vpop.f32.mrb[32].mxu1 }
 0x1ea   : > { %v2487_v48 = vadd.f32 %v2486_v6, %v5626_v11  ;;  %v2488_v34 = vpop.f32.mrb[33].mxu1 }
 0x1eb   : > { %v2489_v31 = vpop.f32.mrb[34].mxu1 }
 0x1ec   : > { %v2909_v2 = vadd.f32 %v2782_v0, %v2487_v48  ;;  %v2490_v19 = vadd.f32 %v2489_v31, %v5628_v30  ;;  %v2491_v9 = vpop.f32.mrb[35].mxu1 }
 0x1ed   : > { %v2790_v4 = vpop.f32.mrb[36].mxu0 }
 0x1ee   : > { %v2948_v38 = vadd.f32 %v5695_v62, %v2909_v2  ;;  %v2910_v13 = vadd.f32 %v2785_v58, %v2490_v19  ;;  %v2792_v43 = vpop.f32.mrb[37].mxu0 }
 0x1ef   : > { %v2793_v11 = vpop.f32.mrb[38].mxu0 }
 0x1f0   : > { %v3051_v23 = vmul.f32 %v2948_v38, %v2948_v38  ;;  %v3712_v50 = vpack.c.bf16 %v2948_v38, %v2948_v38  ;;  %v2949_v10 = vadd.f32 %v5695_v62, %v2910_v13  ;;  %v2795_v30 = vpop.f32.mrb[39].mxu0  ;;  %v2980_v46 = vsel %vm382_vm0, %v2948_v38, 0.0 }
 0x1f1   : > { %v2494_v17 = vpop.f32.mrb[36].mxu1 }
 0x1f2   : > { %3282 = vst.msk [vmem:[%s5703_s18] sm:$0xf] %vm3281_vm4, %v3712_v50  ;;  %v2981_v25 = vsel %vm382_vm0, %v2949_v10, 0.0  ;;  %v3052_v37 = vmul.f32 %v2949_v10, %v2949_v10  ;;  %v3713_v20 = vpack.c.bf16 %v2949_v10, %v2949_v10  ;;  %v2496_v29 = vpop.f32.mrb[37].mxu1  ;;  %v2495_v36 = vadd.f32 %v2494_v17, %v5634_v57 }
 0x1f3   : > { %v2982_v12 = vadd.f32 %v2981_v25, %v2980_v46  ;;  %v2497_v45 = vpop.f32.mrb[38].mxu1  ;;  %v3083_v61 = vsel %vm382_vm0, %v3051_v23, 0.0 }
 0x1f4   : > { %v3084_v60 = vsel %vm382_vm0, %v3052_v37, 0.0  ;;  %3283 = vst.msk [vmem:[%s5703_s18 + $0x4] sm:$0xf] %vm3281_vm4, %v3713_v20  ;;  %v2498_v24 = vadd.f32 %v2497_v45, %v5638_v28  ;;  %v2499_v40 = vpop.f32.mrb[39].mxu1  ;;  %v2911_v18 = vadd.f32 %v2790_v4, %v2495_v36 }
 0x1f5   : > { %v3085_v0 = vadd.f32 %v3084_v60, %v3083_v61  ;;  %v2798_v58 = vpop.f32.mrb[40].mxu0 }
 0x1f6   : > { %v2912_v53 = vadd.f32 %v2793_v11, %v2498_v24  ;;  %v2800_v6 = vpop.f32.mrb[41].mxu0  ;;  %v2950_v48 = vadd.f32 %v5695_v62, %v2911_v18 }
 0x1f7   : > { %v2801_v34 = vpop.f32.mrb[42].mxu0 }
 0x1f8   : > { %v2951_v57 = vadd.f32 %v5695_v62, %v2912_v53  ;;  %v2803_v31 = vpop.f32.mrb[43].mxu0  ;;  %v2983_v2 = vsel %vm382_vm0, %v2950_v48, 0.0  ;;  %v3053_v19 = vmul.f32 %v2950_v48, %v2950_v48  ;;  %v3714_v9 = vpack.c.bf16 %v2950_v48, %v2950_v48 }
 0x1f9   : > { %v2502_v38 = vpop.f32.mrb[40].mxu1  ;;  %v2984_v28 = vadd.f32 %v2983_v2, %v2982_v12 }
 0x1fa   : > { %v2985_v13 = vsel %vm382_vm0, %v2951_v57, 0.0  ;;  %v3054_v4 = vmul.f32 %v2951_v57, %v2951_v57  ;;  %v3715_v43 = vpack.c.bf16 %v2951_v57, %v2951_v57  ;;  %v2504_v11 = vpop.f32.mrb[41].mxu1  ;;  %v3086_v23 = vsel %vm382_vm0, %v3053_v19, 0.0  ;;  %3284 = vst.msk [vmem:[%s5703_s18 + $0x8] sm:$0xf] %vm3281_vm4, %v3714_v9 }
 0x1fb   : > { %v2503_v50 = vadd.f32 %v2502_v38, %v5642_v1  ;;  %v2505_v10 = vpop.f32.mrb[42].mxu1  ;;  %v3087_v30 = vadd.f32 %v3086_v23, %v3085_v0  ;;  %v2986_v17 = vadd.f32 %v2985_v13, %v2984_v28 }
 0x1fc   : > { %v3088_v46 = vsel %vm382_vm0, %v3054_v4, 0.0  ;;  %3285 = vst.msk [vmem:[%s5703_s18 + $0xc] sm:$0xf] %vm3281_vm4, %v3715_v43  ;;  %v2506_v25 = vadd.f32 %v2505_v10, %v5646_v14  ;;  %v2507_v37 = vpop.f32.mrb[43].mxu1 }
 0x1fd   : > { %v2913_v20 = vadd.f32 %v2798_v58, %v2503_v50  ;;  %v2806_v29 = vpop.f32.mrb[44].mxu0  ;;  %v3089_v12 = vadd.f32 %v3088_v46, %v3087_v30 }
 0x1fe   : > { %v2914_v36 = vadd.f32 %v2801_v34, %v2506_v25  ;;  %v2808_v45 = vpop.f32.mrb[45].mxu0 }
 0x1ff   : > { %v2952_v61 = vadd.f32 %v5695_v62, %v2913_v20  ;;  %v2809_v60 = vpop.f32.mrb[46].mxu0 }
 0x200   : > { %v2953_v1 = vadd.f32 %v5695_v62, %v2914_v36  ;;  %v2811_v24 = vpop.f32.mrb[47].mxu0 }
 0x201   : > { %v2987_v40 = vsel %vm382_vm0, %v2952_v61, 0.0  ;;  %v3055_v0 = vmul.f32 %v2952_v61, %v2952_v61  ;;  %v3716_v18 = vpack.c.bf16 %v2952_v61, %v2952_v61  ;;  %v2510_v53 = vpop.f32.mrb[44].mxu1 }
 0x202   : > { %v2988_v14 = vadd.f32 %v2987_v40, %v2986_v17  ;;  %v2989_v58 = vsel %vm382_vm0, %v2953_v1, 0.0  ;;  %v3056_v6 = vmul.f32 %v2953_v1, %v2953_v1  ;;  %v3717_v48 = vpack.c.bf16 %v2953_v1, %v2953_v1  ;;  %v2512_v34 = vpop.f32.mrb[45].mxu1 }
 0x203   : > { %v3090_v57 = vsel %vm382_vm0, %v3055_v0, 0.0  ;;  %3286 = vst.msk [vmem:[%s5703_s18 + $0x10] sm:$0xf] %vm3281_vm4, %v3716_v18  ;;  %v2511_v31 = vadd.f32 %v2510_v53, %v5650_v63  ;;  %v2513_v2 = vpop.f32.mrb[46].mxu1 }
 0x204   : > { %v3091_v19 = vadd.f32 %v3090_v57, %v3089_v12  ;;  %v2990_v9 = vadd.f32 %v2989_v58, %v2988_v14  ;;  %v3092_v38 = vsel %vm382_vm0, %v3056_v6, 0.0  ;;  %3287 = vst.msk [vmem:[%s5703_s18 + $0x14] sm:$0xf] %vm3281_vm4, %v3717_v48  ;;  %v2514_v28 = vadd.f32 %v2513_v2, %v5654_v32  ;;  %v2515_v13 = vpop.f32.mrb[47].mxu1 }
 0x205   : > { %v2915_v4 = vadd.f32 %v2806_v29, %v2511_v31  ;;  %v2814_v43 = vpop.f32.mrb[48].mxu0 }
 0x206   : > { %v3093_v11 = vadd.f32 %v3092_v38, %v3091_v19  ;;  %v2916_v23 = vadd.f32 %v2809_v60, %v2514_v28  ;;  %v2816_v50 = vpop.f32.mrb[49].mxu0 }
 0x207   : > { %v2954_v10 = vadd.f32 %v5695_v62, %v2915_v4  ;;  %v2817_v30 = vpop.f32.mrb[50].mxu0 }
 0x208   : > { %v2955_v63 = vadd.f32 %v5695_v62, %v2916_v23  ;;  %v2819_v17 = vpop.f32.mrb[51].mxu0 }
 0x209   : > { %v2991_v46 = vsel %vm382_vm0, %v2954_v10, 0.0  ;;  %v3057_v25 = vmul.f32 %v2954_v10, %v2954_v10  ;;  %v3718_v37 = vpack.c.bf16 %v2954_v10, %v2954_v10  ;;  %v2518_v20 = vpop.f32.mrb[48].mxu1 }
 0x20a   : > { %v2992_v32 = vadd.f32 %v2991_v46, %v2990_v9  ;;  %v2993_v29 = vsel %vm382_vm0, %v2955_v63, 0.0  ;;  %v3058_v12 = vmul.f32 %v2955_v63, %v2955_v63  ;;  %v3719_v36 = vpack.c.bf16 %v2955_v63, %v2955_v63  ;;  %v2520_v45 = vpop.f32.mrb[49].mxu1 }
 0x20b   : > { %v3094_v61 = vsel %vm382_vm0, %v3057_v25, 0.0  ;;  %3288 = vst.msk [vmem:[%s5703_s18 + $0x18] sm:$0xf] %vm3281_vm4, %v3718_v37  ;;  %v2519_v60 = vadd.f32 %v2518_v20, %v5658_v27  ;;  %v2521_v1 = vpop.f32.mrb[50].mxu1 }
 0x20c   : > { %v3095_v24 = vadd.f32 %v3094_v61, %v3093_v11  ;;  %v2994_v40 = vadd.f32 %v2993_v29, %v2992_v32  ;;  %v3096_v0 = vsel %vm382_vm0, %v3058_v12, 0.0  ;;  %3289 = vst.msk [vmem:[%s5703_s18 + $0x1c] sm:$0xf] %vm3281_vm4, %v3719_v36  ;;  %v2522_v18 = vadd.f32 %v2521_v1, %v5660_v22  ;;  %v2523_v53 = vpop.f32.mrb[51].mxu1 }
 0x20d   : > { %v2917_v14 = vadd.f32 %v2814_v43, %v2519_v60  ;;  %v2822_v58 = vpop.f32.mrb[52].mxu0 }
 0x20e   : > { %v3097_v6 = vadd.f32 %v3096_v0, %v3095_v24  ;;  %v2918_v48 = vadd.f32 %v2817_v30, %v2522_v18  ;;  %v2824_v34 = vpop.f32.mrb[53].mxu0 }
 0x20f   : > { %v2956_v57 = vadd.f32 %v5695_v62, %v2917_v14  ;;  %v2825_v31 = vpop.f32.mrb[54].mxu0 }
 0x210   : > { %v2957_v27 = vadd.f32 %v5695_v62, %v2918_v48  ;;  %v2827_v2 = vpop.f32.mrb[55].mxu0 }
 0x211   : > { %v2995_v19 = vsel %vm382_vm0, %v2956_v57, 0.0  ;;  %v3059_v9 = vmul.f32 %v2956_v57, %v2956_v57  ;;  %v3720_v38 = vpack.c.bf16 %v2956_v57, %v2956_v57  ;;  %v2526_v28 = vpop.f32.mrb[52].mxu1 }
 0x212   : > { %v2996_v22 = vadd.f32 %v2995_v19, %v2994_v40  ;;  %v2997_v13 = vsel %vm382_vm0, %v2957_v27, 0.0  ;;  %v3060_v4 = vmul.f32 %v2957_v27, %v2957_v27  ;;  %v3721_v43 = vpack.c.bf16 %v2957_v27, %v2957_v27  ;;  %v2528_v11 = vpop.f32.mrb[53].mxu1 }
 0x213   : > { %v3098_v23 = vsel %vm382_vm0, %v3059_v9, 0.0  ;;  %3290 = vst.msk [vmem:[%s5703_s18 + $0x20] sm:$0xf] %vm3281_vm4, %v3720_v38  ;;  %v2527_v50 = vadd.f32 %v2526_v28, %v5666_v47  ;;  %v2529_v10 = vpop.f32.mrb[54].mxu1 }
 0x214   : > { %v3099_v30 = vadd.f32 %v3098_v23, %v3097_v6  ;;  %v2998_v63 = vadd.f32 %v2997_v13, %v2996_v22  ;;  %v3100_v17 = vsel %vm382_vm0, %v3060_v4, 0.0  ;;  %3291 = vst.msk [vmem:[%s5703_s18 + $0x24] sm:$0xf] %vm3281_vm4, %v3721_v43  ;;  %v2530_v46 = vadd.f32 %v2529_v10, %v5668_v7  ;;  %v2531_v25 = vpop.f32.mrb[55].mxu1 }
 0x215   : > { %v2919_v37 = vadd.f32 %v2822_v58, %v2527_v50  ;;  %v2830_v20 = vpop.f32.mrb[56].mxu0 }
 0x216   : > { %v3101_v32 = vadd.f32 %v3100_v17, %v3099_v30  ;;  %v2920_v29 = vadd.f32 %v2825_v31, %v2530_v46  ;;  %v2832_v12 = vpop.f32.mrb[57].mxu0 }
 0x217   : > { %v2958_v36 = vadd.f32 %v5695_v62, %v2919_v37  ;;  %v2833_v45 = vpop.f32.mrb[58].mxu0 }
 0x218   : > { %v2959_v47 = vadd.f32 %v5695_v62, %v2920_v29  ;;  %v2835_v61 = vpop.f32.mrb[59].mxu0 }
 0x219   : > { %v2999_v60 = vsel %vm382_vm0, %v2958_v36, 0.0  ;;  %v3061_v1 = vmul.f32 %v2958_v36, %v2958_v36  ;;  %v3722_v24 = vpack.c.bf16 %v2958_v36, %v2958_v36  ;;  %v2534_v40 = vpop.f32.mrb[56].mxu1 }
 0x21a   : > { %v3000_v7 = vadd.f32 %v2999_v60, %v2998_v63  ;;  %v3001_v0 = vsel %vm382_vm0, %v2959_v47, 0.0  ;;  %v3062_v18 = vmul.f32 %v2959_v47, %v2959_v47  ;;  %v3723_v53 = vpack.c.bf16 %v2959_v47, %v2959_v47  ;;  %v2536_v14 = vpop.f32.mrb[57].mxu1 }
 0x21b   : > { %v3102_v58 = vsel %vm382_vm0, %v3061_v1, 0.0  ;;  %3292 = vst.msk [vmem:[%s5703_s18 + $0x28] sm:$0xf] %vm3281_vm4, %v3722_v24  ;;  %v2535_v6 = vadd.f32 %v2534_v40, %v5674_v21  ;;  %v2537_v48 = vpop.f32.mrb[58].mxu1 }
 0x21c   : > { %v3103_v34 = vadd.f32 %v3102_v58, %v3101_v32  ;;  %v3002_v57 = vadd.f32 %v3001_v0, %v3000_v7  ;;  %v3104_v31 = vsel %vm382_vm0, %v3062_v18, 0.0  ;;  %3293 = vst.msk [vmem:[%s5703_s18 + $0x2c] sm:$0xf] %vm3281_vm4, %v3723_v53  ;;  %v2538_v27 = vadd.f32 %v2537_v48, %v5676_v41  ;;  %v2539_v2 = vpop.f32.mrb[59].mxu1 }
 0x21d   : > { %v2921_v19 = vadd.f32 %v2830_v20, %v2535_v6  ;;  %v2838_v9 = vpop.f32.mrb[60].mxu0 }
 0x21e   : > { %v3105_v38 = vadd.f32 %v3104_v31, %v3103_v34  ;;  %v2922_v28 = vadd.f32 %v2833_v45, %v2538_v27  ;;  %v2840_v22 = vpop.f32.mrb[61].mxu0 }
 0x21f   : > { %v2960_v13 = vadd.f32 %v5695_v62, %v2921_v19  ;;  %v2841_v4 = vpop.f32.mrb[62].mxu0 }
 0x220   : > { %v2961_v21 = vadd.f32 %v5695_v62, %v2922_v28  ;;  %v2843_v43 = vpop.f32.mrb[63].mxu0 }
 0x221   : > { %v3003_v11 = vsel %vm382_vm0, %v2960_v13, 0.0  ;;  %v3063_v23 = vmul.f32 %v2960_v13, %v2960_v13  ;;  %v3724_v50 = vpack.c.bf16 %v2960_v13, %v2960_v13  ;;  %v2542_v10 = vpop.f32.mrb[60].mxu1 }
 0x222   : > { %v3004_v41 = vadd.f32 %v3003_v11, %v3002_v57  ;;  %v3005_v30 = vsel %vm382_vm0, %v2961_v21, 0.0  ;;  %v3064_v63 = vmul.f32 %v2961_v21, %v2961_v21  ;;  %v3725_v17 = vpack.c.bf16 %v2961_v21, %v2961_v21  ;;  %v2544_v46 = vpop.f32.mrb[61].mxu1 }
 0x223   : > { %v3106_v25 = vsel %vm382_vm0, %v3063_v23, 0.0  ;;  %3294 = vst.msk [vmem:[%s5703_s18 + $0x30] sm:$0xf] %vm3281_vm4, %v3724_v50  ;;  %v2543_v37 = vadd.f32 %v2542_v10, %v5682_v39  ;;  %v2545_v20 = vpop.f32.mrb[62].mxu1 }
 0x224   : > { %v3107_v32 = vadd.f32 %v3106_v25, %v3105_v38  ;;  %v3006_v29 = vadd.f32 %v3005_v30, %v3004_v41  ;;  %v3108_v12 = vsel %vm382_vm0, %v3064_v63, 0.0  ;;  %3295 = vst.msk [vmem:[%s5703_s18 + $0x34] sm:$0xf] %vm3281_vm4, %v3725_v17  ;;  %v2546_v36 = vadd.f32 %v2545_v20, %v5684_v15  ;;  %v2547_v45 = vpop.f32.mrb[63].mxu1 }
 0x225   : > { %v2923_v47 = vadd.f32 %v2838_v9, %v2543_v37  ;;  %v2846_v61 = vpop.f32.mrb[64].mxu0 }
 0x226   : > { %v3109_v60 = vadd.f32 %v3108_v12, %v3107_v32  ;;  %v2924_v1 = vadd.f32 %v2841_v4, %v2546_v36  ;;  %v2848_v24 = vpop.f32.mrb[65].mxu0 }
 0x227   : > { %v2962_v40 = vadd.f32 %v5695_v62, %v2923_v47  ;;  %v2849_v7 = vpop.f32.mrb[66].mxu0 }
 0x228   : > { %v2963_v39 = vadd.f32 %v5695_v62, %v2924_v1  ;;  %v2851_v0 = vpop.f32.mrb[67].mxu0 }
 0x229   : > { %v3007_v18 = vsel %vm382_vm0, %v2962_v40, 0.0  ;;  %v3065_v53 = vmul.f32 %v2962_v40, %v2962_v40  ;;  %v3726_v14 = vpack.c.bf16 %v2962_v40, %v2962_v40  ;;  %v2550_v58 = vpop.f32.mrb[64].mxu1 }
 0x22a   : > { %v3008_v15 = vadd.f32 %v3007_v18, %v3006_v29  ;;  %v3009_v6 = vsel %vm382_vm0, %v2963_v39, 0.0  ;;  %v3066_v48 = vmul.f32 %v2963_v39, %v2963_v39  ;;  %v3727_v34 = vpack.c.bf16 %v2963_v39, %v2963_v39  ;;  %v2552_v57 = vpop.f32.mrb[65].mxu1 }
 0x22b   : > { %v3110_v31 = vsel %vm382_vm0, %v3065_v53, 0.0  ;;  %3296 = vst.msk [vmem:[%s5703_s18 + $0x38] sm:$0xf] %vm3281_vm4, %v3726_v14  ;;  %v2551_v27 = vadd.f32 %v2550_v58, %v5630_v44  ;;  %v2553_v2 = vpop.f32.mrb[66].mxu1 }
 0x22c   : > { %v3111_v19 = vadd.f32 %v3110_v31, %v3109_v60  ;;  %v3010_v9 = vadd.f32 %v3009_v6, %v3008_v15  ;;  %v3112_v38 = vsel %vm382_vm0, %v3066_v48, 0.0  ;;  %3297 = vst.msk [vmem:[%s5703_s18 + $0x3c] sm:$0xf] %vm3281_vm4, %v3727_v34  ;;  %v2554_v28 = vadd.f32 %v2553_v2, %v5632_v3  ;;  %v2555_v22 = vpop.f32.mrb[67].mxu1 }
 0x22d   : > { %v2925_v13 = vadd.f32 %v2846_v61, %v2551_v27  ;;  %v2854_v4 = vpop.f32.mrb[68].mxu0 }
 0x22e   : > { %v3113_v21 = vadd.f32 %v3112_v38, %v3111_v19  ;;  %v2926_v43 = vadd.f32 %v2849_v7, %v2554_v28  ;;  %v2856_v11 = vpop.f32.mrb[69].mxu0 }
 0x22f   : > { %v2964_v23 = vadd.f32 %v5695_v62, %v2925_v13  ;;  %v2857_v50 = vpop.f32.mrb[70].mxu0 }
 0x230   : > { %v2965_v44 = vadd.f32 %v5695_v62, %v2926_v43  ;;  %v2859_v10 = vpop.f32.mrb[71].mxu0 }
 0x231   : > { %v3011_v41 = vsel %vm382_vm0, %v2964_v23, 0.0  ;;  %v3067_v30 = vmul.f32 %v2964_v23, %v2964_v23  ;;  %v3728_v63 = vpack.c.bf16 %v2964_v23, %v2964_v23  ;;  %v2558_v17 = vpop.f32.mrb[68].mxu1 }
 0x232   : > { %v3012_v3 = vadd.f32 %v3011_v41, %v3010_v9  ;;  %v3013_v46 = vsel %vm382_vm0, %v2965_v44, 0.0  ;;  %v3068_v25 = vmul.f32 %v2965_v44, %v2965_v44  ;;  %v3729_v37 = vpack.c.bf16 %v2965_v44, %v2965_v44  ;;  %v2560_v20 = vpop.f32.mrb[69].mxu1 }
 0x233   : > { %v3114_v32 = vsel %vm382_vm0, %v3067_v30, 0.0  ;;  %3298 = vst.msk [vmem:[%s5703_s18 + $0x40] sm:$0xf] %vm3281_vm4, %v3728_v63  ;;  %v2559_v29 = vadd.f32 %v2558_v17, %v5636_v51  ;;  %v2561_v12 = vpop.f32.mrb[70].mxu1 }
 0x234   : > { %v3115_v36 = vadd.f32 %v3114_v32, %v3113_v21  ;;  %v3014_v45 = vadd.f32 %v3013_v46, %v3012_v3  ;;  %v3116_v47 = vsel %vm382_vm0, %v3068_v25, 0.0  ;;  %3299 = vst.msk [vmem:[%s5703_s18 + $0x44] sm:$0xf] %vm3281_vm4, %v3729_v37  ;;  %v2562_v61 = vadd.f32 %v2561_v12, %v5640_v42  ;;  %v2563_v60 = vpop.f32.mrb[71].mxu1 }
 0x235   : > { %v2927_v1 = vadd.f32 %v2854_v4, %v2559_v29  ;;  %v2862_v24 = vpop.f32.mrb[72].mxu0 }
 0x236   : > { %v3117_v40 = vadd.f32 %v3116_v47, %v3115_v36  ;;  %v2928_v7 = vadd.f32 %v2857_v50, %v2562_v61  ;;  %v2864_v39 = vpop.f32.mrb[73].mxu0 }
 0x237   : > { %v2966_v0 = vadd.f32 %v5695_v62, %v2927_v1  ;;  %v2865_v18 = vpop.f32.mrb[74].mxu0 }
 0x238   : > { %v2967_v51 = vadd.f32 %v5695_v62, %v2928_v7  ;;  %v2867_v53 = vpop.f32.mrb[75].mxu0 }
 0x239   : > { %v3015_v14 = vsel %vm382_vm0, %v2966_v0, 0.0  ;;  %v3069_v58 = vmul.f32 %v2966_v0, %v2966_v0  ;;  %v3730_v15 = vpack.c.bf16 %v2966_v0, %v2966_v0  ;;  %v2566_v6 = vpop.f32.mrb[72].mxu1 }
 0x23a   : > { %v3016_v42 = vadd.f32 %v3015_v14, %v3014_v45  ;;  %v3017_v48 = vsel %vm382_vm0, %v2967_v51, 0.0  ;;  %v3070_v34 = vmul.f32 %v2967_v51, %v2967_v51  ;;  %v3731_v57 = vpack.c.bf16 %v2967_v51, %v2967_v51  ;;  %v2568_v31 = vpop.f32.mrb[73].mxu1 }
 0x23b   : > { %v3118_v27 = vsel %vm382_vm0, %v3069_v58, 0.0  ;;  %3300 = vst.msk [vmem:[%s5703_s18 + $0x48] sm:$0xf] %vm3281_vm4, %v3730_v15  ;;  %v2567_v2 = vadd.f32 %v2566_v6, %v5644_v35  ;;  %v2569_v19 = vpop.f32.mrb[74].mxu1 }
 0x23c   : > { %v3119_v9 = vadd.f32 %v3118_v27, %v3117_v40  ;;  %v3018_v38 = vadd.f32 %v3017_v48, %v3016_v42  ;;  %v3120_v28 = vsel %vm382_vm0, %v3070_v34, 0.0  ;;  %3301 = vst.msk [vmem:[%s5703_s18 + $0x4c] sm:$0xf] %vm3281_vm4, %v3731_v57  ;;  %v2570_v22 = vadd.f32 %v2569_v19, %v5648_v5  ;;  %v2571_v13 = vpop.f32.mrb[75].mxu1 }
 0x23d   : > { %v2929_v4 = vadd.f32 %v2862_v24, %v2567_v2  ;;  %v2870_v21 = vpop.f32.mrb[76].mxu0 }
 0x23e   : > { %v3121_v43 = vadd.f32 %v3120_v28, %v3119_v9  ;;  %v2930_v11 = vadd.f32 %v2865_v18, %v2570_v22  ;;  %v2872_v23 = vpop.f32.mrb[77].mxu0 }
 0x23f   : > { %v2968_v50 = vadd.f32 %v5695_v62, %v2929_v4  ;;  %v2873_v44 = vpop.f32.mrb[78].mxu0 }
 0x240   : > { %v2969_v35 = vadd.f32 %v5695_v62, %v2930_v11  ;;  %v2875_v10 = vpop.f32.mrb[79].mxu0 }
 0x241   : > { %v3019_v41 = vsel %vm382_vm0, %v2968_v50, 0.0  ;;  %v3071_v30 = vmul.f32 %v2968_v50, %v2968_v50  ;;  %v3732_v63 = vpack.c.bf16 %v2968_v50, %v2968_v50  ;;  %v2574_v17 = vpop.f32.mrb[76].mxu1 }
 0x242   : > { %v3020_v5 = vadd.f32 %v3019_v41, %v3018_v38  ;;  %v3021_v3 = vsel %vm382_vm0, %v2969_v35, 0.0  ;;  %v3072_v46 = vmul.f32 %v2969_v35, %v2969_v35  ;;  %v3733_v25 = vpack.c.bf16 %v2969_v35, %v2969_v35  ;;  %v2576_v37 = vpop.f32.mrb[77].mxu1 }
 0x243   : > { %v3122_v20 = vsel %vm382_vm0, %v3071_v30, 0.0  ;;  %3302 = vst.msk [vmem:[%s5703_s18 + $0x50] sm:$0xf] %vm3281_vm4, %v3732_v63  ;;  %v2575_v32 = vadd.f32 %v2574_v17, %v5652_v33  ;;  %v2577_v29 = vpop.f32.mrb[78].mxu1 }
 0x244   : > { %v3123_v12 = vadd.f32 %v3122_v20, %v3121_v43  ;;  %v3022_v36 = vadd.f32 %v3021_v3, %v3020_v5  ;;  %v3124_v45 = vsel %vm382_vm0, %v3072_v46, 0.0  ;;  %3303 = vst.msk [vmem:[%s5703_s18 + $0x54] sm:$0xf] %vm3281_vm4, %v3733_v25  ;;  %v2578_v47 = vadd.f32 %v2577_v29, %v5656_v52  ;;  %v2579_v61 = vpop.f32.mrb[79].mxu1 }
 0x245   : > { %v2931_v60 = vadd.f32 %v2870_v21, %v2575_v32  ;;  %v2878_v1 = vpop.f32.mrb[80].mxu0 }
 0x246   : > { %v3125_v24 = vadd.f32 %v3124_v45, %v3123_v12  ;;  %v2932_v40 = vadd.f32 %v2873_v44, %v2578_v47  ;;  %v2880_v7 = vpop.f32.mrb[81].mxu0 }
 0x247   : > { %v2970_v39 = vadd.f32 %v5695_v62, %v2931_v60  ;;  %v2881_v0 = vpop.f32.mrb[82].mxu0 }
 0x248   : > { %v2971_v33 = vadd.f32 %v5695_v62, %v2932_v40  ;;  %v2883_v18 = vpop.f32.mrb[83].mxu0 }
 0x249   : > { %v3023_v51 = vsel %vm382_vm0, %v2970_v39, 0.0  ;;  %v3073_v53 = vmul.f32 %v2970_v39, %v2970_v39  ;;  %v3734_v14 = vpack.c.bf16 %v2970_v39, %v2970_v39  ;;  %v2582_v58 = vpop.f32.mrb[80].mxu1 }
 0x24a   : > { %v3024_v52 = vadd.f32 %v3023_v51, %v3022_v36  ;;  %v3025_v15 = vsel %vm382_vm0, %v2971_v33, 0.0  ;;  %v3074_v6 = vmul.f32 %v2971_v33, %v2971_v33  ;;  %v3735_v42 = vpack.c.bf16 %v2971_v33, %v2971_v33  ;;  %v2584_v48 = vpop.f32.mrb[81].mxu1 }
 0x24b   : > { %v3126_v34 = vsel %vm382_vm0, %v3073_v53, 0.0  ;;  %3304 = vst.msk [vmem:[%s5703_s18 + $0x58] sm:$0xf] %vm3281_vm4, %v3734_v14  ;;  %v2583_v57 = vadd.f32 %v2582_v58, %v5662_v26  ;;  %v2585_v31 = vpop.f32.mrb[82].mxu1 }
 0x24c   : > { %v3127_v27 = vadd.f32 %v3126_v34, %v3125_v24  ;;  %v3026_v2 = vadd.f32 %v3025_v15, %v3024_v52  ;;  %v3128_v19 = vsel %vm382_vm0, %v3074_v6, 0.0  ;;  %3305 = vst.msk [vmem:[%s5703_s18 + $0x5c] sm:$0xf] %vm3281_vm4, %v3735_v42  ;;  %v2586_v9 = vadd.f32 %v2585_v31, %v5664_v8  ;;  %v2587_v38 = vpop.f32.mrb[83].mxu1 }
 0x24d   : > { %v2933_v28 = vadd.f32 %v2878_v1, %v2583_v57  ;;  %v2886_v22 = vpop.f32.mrb[84].mxu0 }
 0x24e   : > { %v3129_v13 = vadd.f32 %v3128_v19, %v3127_v27  ;;  %v2934_v4 = vadd.f32 %v2881_v0, %v2586_v9  ;;  %v2888_v21 = vpop.f32.mrb[85].mxu0 }
 0x24f   : > { %v2972_v43 = vadd.f32 %v5695_v62, %v2933_v28  ;;  %v2889_v11 = vpop.f32.mrb[86].mxu0 }
 0x250   : > { %v2973_v26 = vadd.f32 %v5695_v62, %v2934_v4  ;;  %v2891_v23 = vpop.f32.mrb[87].mxu0 }
 0x251   : > { %v3027_v50 = vsel %vm382_vm0, %v2972_v43, 0.0  ;;  %v3075_v44 = vmul.f32 %v2972_v43, %v2972_v43  ;;  %v3736_v35 = vpack.c.bf16 %v2972_v43, %v2972_v43  ;;  %v2590_v10 = vpop.f32.mrb[84].mxu1 }
 0x252   : > { %v3028_v8 = vadd.f32 %v3027_v50, %v3026_v2  ;;  %v3029_v41 = vsel %vm382_vm0, %v2973_v26, 0.0  ;;  %v3076_v30 = vmul.f32 %v2973_v26, %v2973_v26  ;;  %v3737_v63 = vpack.c.bf16 %v2973_v26, %v2973_v26  ;;  %v2592_v17 = vpop.f32.mrb[85].mxu1 }
 0x253   : > { %v3130_v5 = vsel %vm382_vm0, %v3075_v44, 0.0  ;;  %3306 = vst.msk [vmem:[%s5703_s18 + $0x60] sm:$0xf] %vm3281_vm4, %v3736_v35  ;;  %v2591_v3 = vadd.f32 %v2590_v10, %v5670_v16  ;;  %v2593_v46 = vpop.f32.mrb[86].mxu1 }
 0x254   : > { %v3131_v25 = vadd.f32 %v3130_v5, %v3129_v13  ;;  %v3030_v37 = vadd.f32 %v3029_v41, %v3028_v8  ;;  %v3132_v20 = vsel %vm382_vm0, %v3076_v30, 0.0  ;;  %3307 = vst.msk [vmem:[%s5703_s18 + $0x64] sm:$0xf] %vm3281_vm4, %v3737_v63  ;;  %v2594_v32 = vadd.f32 %v2593_v46, %v5672_v49  ;;  %v2595_v29 = vpop.f32.mrb[87].mxu1 }
 0x255   : > { %v2935_v12 = vadd.f32 %v2886_v22, %v2591_v3  ;;  %v2894_v36 = vpop.f32.mrb[88].mxu0 }
 0x256   : > { %v3133_v45 = vadd.f32 %v3132_v20, %v3131_v25  ;;  %v2936_v47 = vadd.f32 %v2889_v11, %v2594_v32  ;;  %v2896_v61 = vpop.f32.mrb[89].mxu0 }
 0x257   : > { %v2974_v60 = vadd.f32 %v5695_v62, %v2935_v12  ;;  %v2897_v1 = vpop.f32.mrb[90].mxu0 }
 0x258   : > { %v2975_v16 = vadd.f32 %v5695_v62, %v2936_v47  ;;  %v2899_v24 = vpop.f32.mrb[91].mxu0 }
 0x259   : > { %v3031_v40 = vsel %vm382_vm0, %v2974_v60, 0.0  ;;  %v3077_v7 = vmul.f32 %v2974_v60, %v2974_v60  ;;  %v3738_v39 = vpack.c.bf16 %v2974_v60, %v2974_v60  ;;  %v2598_v0 = vpop.f32.mrb[88].mxu1 }
 0x25a   : > { %v3032_v49 = vadd.f32 %v3031_v40, %v3030_v37  ;;  %v3033_v33 = vsel %vm382_vm0, %v2975_v16, 0.0  ;;  %v3078_v18 = vmul.f32 %v2975_v16, %v2975_v16  ;;  %v3739_v51 = vpack.c.bf16 %v2975_v16, %v2975_v16  ;;  %v2600_v53 = vpop.f32.mrb[89].mxu1 }
 0x25b   : > { %v3134_v14 = vsel %vm382_vm0, %v3077_v7, 0.0  ;;  %3308 = vst.msk [vmem:[%s5703_s18 + $0x68] sm:$0xf] %vm3281_vm4, %v3738_v39  ;;  %v2599_v58 = vadd.f32 %v2598_v0, %v5678_v55  ;;  %v2601_v52 = vpop.f32.mrb[90].mxu1 }
 0x25c   : > { %v3135_v15 = vadd.f32 %v3134_v14, %v3133_v45  ;;  %v3034_v6 = vadd.f32 %v3033_v33, %v3032_v49  ;;  %v3136_v42 = vsel %vm382_vm0, %v3078_v18, 0.0  ;;  %3309 = vst.msk [vmem:[%s5703_s18 + $0x6c] sm:$0xf] %vm3281_vm4, %v3739_v51  ;;  %v2602_v48 = vadd.f32 %v2601_v52, %v5680_v54  ;;  %v2603_v34 = vpop.f32.mrb[91].mxu1 }
 0x25d   : > { %v2937_v57 = vadd.f32 %v2894_v36, %v2599_v58 }
 0x25e   : > { %v3137_v31 = vadd.f32 %v3136_v42, %v3135_v15  ;;  %v2938_v27 = vadd.f32 %v2897_v1, %v2602_v48 }
 0x25f   : > { %v2976_v2 = vadd.f32 %v5695_v62, %v2937_v57 }
 0x260   : > { %v2977_v19 = vadd.f32 %v5695_v62, %v2938_v27 }
 0x261   : > { %v3035_v55 = vsel %vm382_vm0, %v2976_v2, 0.0  ;;  %v3079_v9 = vmul.f32 %v2976_v2, %v2976_v2  ;;  %v3740_v38 = vpack.c.bf16 %v2976_v2, %v2976_v2  ;;  %v2606_v28 = vpop.f32.mrb[92].mxu1 }
 0x262   : > { %v3036_v22 = vadd.f32 %v3035_v55, %v3034_v6  ;;  %v3037_v13 = vsel %vm382_vm0, %v2977_v19, 0.0  ;;  %v3080_v4 = vmul.f32 %v2977_v19, %v2977_v19  ;;  %v3741_v54 = vpack.c.bf16 %v2977_v19, %v2977_v19  ;;  %v2608_v21 = vpop.f32.mrb[93].mxu1 }
 0x263   : > { %v3138_v43 = vsel %vm382_vm0, %v3079_v9, 0.0  ;;  %3310 = vst.msk [vmem:[%s5703_s18 + $0x70] sm:$0xf] %vm3281_vm4, %v3740_v38  ;;  %v2607_v11 = vadd.f32 %v2606_v28, %v5686_v59  ;;  %v2609_v26 = vpop.f32.mrb[94].mxu1 }
 0x264   : > { %v3139_v23 = vadd.f32 %v3138_v43, %v3137_v31  ;;  %v3038_v50 = vadd.f32 %v3037_v13, %v3036_v22  ;;  %v3140_v44 = vsel %vm382_vm0, %v3080_v4, 0.0  ;;  %3311 = vst.msk [vmem:[%s5703_s18 + $0x74] sm:$0xf] %vm3281_vm4, %v3741_v54  ;;  %v2610_v35 = vadd.f32 %v2609_v26, %v5688_v56  ;;  %v2611_v10 = vpop.f32.mrb[95].mxu1 }
 0x266   : > { %v3141_v8 = vadd.f32 %v3140_v44, %v3139_v23 }
 0x26c   : > { %v2902_v41 = vpop.f32.mrb[92].mxu0 }
 0x26d   : > { %v2939_v30 = vadd.f32 %v2902_v41, %v2607_v11  ;;  %v2904_v63 = vpop.f32.mrb[93].mxu0 }
 0x26e   : > { %v2905_v17 = vpop.f32.mrb[94].mxu0 }
 0x26f   : > { %v2978_v5 = vadd.f32 %v5695_v62, %v2939_v30  ;;  %v2940_v59 = vadd.f32 %v2905_v17, %v2610_v35  ;;  %v2907_v3 = vpop.f32.mrb[95].mxu0 }
 0x271   : > { %v3039_v46 = vsel %vm382_vm0, %v2978_v5, 0.0  ;;  %v3081_v25 = vmul.f32 %v2978_v5, %v2978_v5  ;;  %v3742_v37 = vpack.c.bf16 %v2978_v5, %v2978_v5  ;;  %v2979_v20 = vadd.f32 %v5695_v62, %v2940_v59 }
 0x272   : > { %v3040_v32 = vadd.f32 %v3039_v46, %v3038_v50 }
 0x273   : > { %v3142_v56 = vsel %vm382_vm0, %v3081_v25, 0.0  ;;  %3312 = vst.msk [vmem:[%s5703_s18 + $0x78] sm:$0xf] %vm3281_vm4, %v3742_v37  ;;  %v3041_v29 = vsel %vm382_vm0, %v2979_v20, 0.0  ;;  %v3082_v12 = vmul.f32 %v2979_v20, %v2979_v20  ;;  %v3743_v36 = vpack.c.bf16 %v2979_v20, %v2979_v20 }
 0x274   : > { %v3143_v45 = vadd.f32 %v3142_v56, %v3141_v8  ;;  %v3042_v47 = vadd.f32 %v3041_v29, %v3040_v32 }
 0x275   : > { %v3144_v61 = vsel %vm382_vm0, %v3082_v12, 0.0  ;;  %3313 = vst.msk [vmem:[%s5703_s18 + $0x7c] sm:$0xf] %vm3281_vm4, %v3743_v36 }
 0x276   : > { %v3043_v60 = vrot.slane %v3042_v47, 4  ;;  %v3145_v1 = vadd.f32 %v3144_v61, %v3143_v45 }
 0x278   : > { %v3044_v16 = vadd.f32 %v3043_v60, %v3042_v47  ;;  %v3146_v62 = vrot.slane %v3145_v1, 4 }
 0x27a   : > { %v3045_v24 = vrot.slane %v3044_v16, 2  ;;  %v3147_v40 = vadd.f32 %v3146_v62, %v3145_v1 }
 0x27c   : > { %v3046_v7 = vadd.f32 %v3045_v24, %v3044_v16  ;;  %v3148_v39 = vrot.slane %v3147_v40, 2 }
 0x27e   : > { %v3047_v0 = vrot.slane %v3046_v7, 1  ;;  %v3149_v49 = vadd.f32 %v3148_v39, %v3147_v40 }
 0x280   : > { %v3048_v33 = vadd.f32 %v3047_v0, %v3046_v7  ;;  %v3150_v18 = vrot.slane %v3149_v49, 1 }
 0x282   : > { %3050 = vst.msk [vmem:[%s379_s25] sm:$0x1] %vm3049_vm5, %v3048_v33  ;;  %v3151_v51 = vadd.f32 %v3150_v18, %v3149_v49 }
 0x284   : > { %3152 = vst.msk [vmem:[%s379_s25 + $0x1] sm:$0x1] %vm3049_vm5, %v3151_v51 }
 0x285 PF: > { %s17_s23 = sadd.s32 1, %s4161_s23   ;;  %s5994_s21 = smov %s4157_s22 }
 0x286   : > { %p14_p5 = scmp.ge.s32.totalorder %s17_s23, 4   ;;  %s5995_s22 = smov %s5997_s24 }
 0x288   :  { %16 = sbr.rel (!%p14_p5) target bundleno = 2 (0x2), region = 95 }

</bundles_post_ra>
